<compile_context>
chip_gen: v7x
topology: tpu7x:2x2x1
jax: 0.10.0
libtpu: 0.0.40
codegen_flags: <defaults>
</compile_context>

<pallas_src>
import numpy as np

import jax
import jax.numpy as jnp
from jax.experimental import pallas as pl
from jax.experimental.pallas import tpu as pltpu


_BN_EPS = 1e-5
_LANES = 128  # channel padding target -> lane-dense accumulators/stores


# ----------------------------------------------------------------------------
# Host-side helpers (static-shape, trace-time constants)
# ----------------------------------------------------------------------------
def _interp_matrix(out_size: int, in_size: int) -> np.ndarray:
    """1-D bilinear interpolation matrix, align_corners=True, (out_size, in_size)."""
    m = np.zeros((out_size, in_size), np.float32)
    if out_size == 1 or in_size == 1:
        pos = np.zeros((out_size,), np.float64)
    else:
        pos = np.arange(out_size, dtype=np.float64) * (in_size - 1) / (out_size - 1)
    i0 = np.clip(np.floor(pos).astype(np.int64), 0, in_size - 1)
    i1 = np.minimum(i0 + 1, in_size - 1)
    frac = (pos - i0).astype(np.float32)
    rows = np.arange(out_size)
    m[rows, i0] += (1.0 - frac)
    m[rows, i1] += frac
    return m


def _pad_lanes(a, target):
    """Zero-pad the last dim of `a` to `target`."""
    pad = target - a.shape[-1]
    if pad == 0:
        return a
    widths = [(0, 0)] * (a.ndim - 1) + [(0, pad)]
    return jnp.pad(a, widths)


# ----------------------------------------------------------------------------
# Fused Pallas kernel
# ----------------------------------------------------------------------------
def _upsample_block_kernel(
    x_ref,      # (N, Hi, Wi, Cin)        input feature map (NHWC)
    skip_ref,   # (N, Ho, Wo, Cskip)      skip feature map (NHWC)
    u_ref,      # (Ho*Wo, Hi*Wi)          bilinear interpolation matrix
    w1_ref,     # (9*Ccat, CP)            conv1 weights, im2col-flat, Cout padded
    b1_ref,     # (1, CP)
    g1_ref,     # (1, CP)                 BN1 gamma (padded with zeros)
    bt1_ref,    # (1, CP)                 BN1 beta
    w2_ref,     # (9*CP, CP)              conv2 weights, channels padded both ways
    b2_ref,     # (1, CP)
    g2_ref,     # (1, CP)
    bt2_ref,    # (1, CP)
    o_ref,      # (N*Ho*Wo, CP)           lane-dense output
    pad1_ref,   # VMEM scratch (N, Ho+2, Wo+2, Ccat)  zero-padded conv1 input
    pad2_ref,   # VMEM scratch (N, Ho+2, Wo+2, CP)    zero-padded conv2 input
):
    N, Hi, Wi, Cin = x_ref.shape
    _, Ho, Wo, Cskip = skip_ref.shape
    Ccat = Cin + Cskip
    CP = w1_ref.shape[1]
    NHW = N * Ho * Wo
    f32 = jnp.float32

    # ---- bilinear upsample (align_corners=True) as one MXU matmul per batch
    #      element, fused with the channel concat while filling the zero-padded
    #      conv1 input buffer. ----
    pad1_ref[...] = jnp.zeros(pad1_ref.shape, f32)
    u = u_ref[...]                                           # (Ho*Wo, Hi*Wi)
    for n in range(N):                                       # N is tiny & static
        xin = x_ref[n].reshape(Hi * Wi, Cin)                 # (Hi*Wi, Cin)
        xup = jnp.dot(u, xin, preferred_element_type=f32)    # (Ho*Wo, Cin)
        cat = jnp.concatenate(
            [xup.reshape(Ho, Wo, Cin), skip_ref[n]], axis=-1)  # (Ho, Wo, Ccat)
        pad1_ref[n, 1:Ho + 1, 1:Wo + 1, :] = cat

    # ---- conv1: im2col -> single matmul with a lane-dense (NHW, CP) accumulator ----
    taps1 = [
        pad1_ref[:, dy:dy + Ho, dx:dx + Wo, :].reshape(NHW, Ccat)
        for dy in range(3) for dx in range(3)
    ]
    patches1 = jnp.concatenate(taps1, axis=-1)               # (NHW, 9*Ccat)
    acc1 = jnp.dot(patches1, w1_ref[...], preferred_element_type=f32) + b1_ref[...]

    # ---- BN1 (training-mode batch stats, biased variance) + ReLU, in VMEM ----
    mean1 = jnp.mean(acc1, axis=0, keepdims=True)            # (1, CP)
    var1 = jnp.mean(jnp.square(acc1 - mean1), axis=0, keepdims=True)
    scale1 = g1_ref[...] * jax.lax.rsqrt(var1 + _BN_EPS)     # padded gamma = 0
    shift1 = bt1_ref[...] - mean1 * scale1
    act1 = jnp.maximum(acc1 * scale1 + shift1, 0.0)          # (NHW, CP), padded cols stay 0

    # ---- conv2 on the lane-dense activation ----
    pad2_ref[...] = jnp.zeros(pad2_ref.shape, f32)
    pad2_ref[:, 1:Ho + 1, 1:Wo + 1, :] = act1.reshape(N, Ho, Wo, CP)
    taps2 = [
        pad2_ref[:, dy:dy + Ho, dx:dx + Wo, :].reshape(NHW, CP)
        for dy in range(3) for dx in range(3)
    ]
    patches2 = jnp.concatenate(taps2, axis=-1)               # (NHW, 9*CP)
    acc2 = jnp.dot(patches2, w2_ref[...], preferred_element_type=f32) + b2_ref[...]

    # ---- BN2 + ReLU, lane-dense store ----
    mean2 = jnp.mean(acc2, axis=0, keepdims=True)
    var2 = jnp.mean(jnp.square(acc2 - mean2), axis=0, keepdims=True)
    scale2 = g2_ref[...] * jax.lax.rsqrt(var2 + _BN_EPS)
    shift2 = bt2_ref[...] - mean2 * scale2
    o_ref[...] = jnp.maximum(acc2 * scale2 + shift2, 0.0)


# ----------------------------------------------------------------------------
# Parameters & forward wrapper
# ----------------------------------------------------------------------------
def init_upsample_block_params(key, in_channels, skip_channels, out_channels):
    c1_in = in_channels + skip_channels
    k1, k2, k3, k4 = jax.random.split(key, 4)
    return {
        # conv weights stored HWIO (kernel layout); PyTorch uses OIHW.
        "w1": 0.1 * jax.random.normal(k1, (3, 3, c1_in, out_channels), jnp.float32),
        "b1": 0.05 * jax.random.normal(k2, (out_channels,), jnp.float32),
        "gamma1": 1.0 + 0.1 * jnp.arange(out_channels, dtype=jnp.float32),
        "beta1": 0.01 * jnp.arange(out_channels, dtype=jnp.float32),
        "w2": 0.1 * jax.random.normal(k3, (3, 3, out_channels, out_channels), jnp.float32),
        "b2": 0.05 * jax.random.normal(k4, (out_channels,), jnp.float32),
        "gamma2": 1.0 - 0.05 * jnp.arange(out_channels, dtype=jnp.float32),
        "beta2": -0.02 * jnp.arange(out_channels, dtype=jnp.float32),
    }


@jax.jit
def upsample_block_forward(x_nchw, skip_nchw, params):
    N, Cin, Hi, Wi = x_nchw.shape
    _, Cskip, Ho, Wo = skip_nchw.shape
    Cout = params["w1"].shape[-1]
    Ccat = Cin + Cskip
    CP = ((Cout + _LANES - 1) // _LANES) * _LANES   # lane-dense channel padding
    NHW = N * Ho * Wo

    # NCHW -> NHWC at the boundary (matches the PyTorch layout contract).
    x = jnp.transpose(x_nchw, (0, 2, 3, 1)).astype(jnp.float32)
    skip = jnp.transpose(skip_nchw, (0, 2, 3, 1)).astype(jnp.float32)

    # Bilinear (align_corners=True) interpolation matrix, built from static shapes.
    u = jnp.asarray(np.kron(_interp_matrix(Ho, Hi), _interp_matrix(Wo, Wi)),
                    jnp.float32)                                  # (Ho*Wo, Hi*Wi)

    # Conv weights flattened for im2col, output (and conv2 input) channels padded to CP.
    w1 = _pad_lanes(params["w1"].reshape(9 * Ccat, Cout), CP)     # (9*Ccat, CP)
    b1 = _pad_lanes(params["b1"].reshape(1, Cout), CP)
    g1 = _pad_lanes(params["gamma1"].reshape(1, Cout), CP)
    bt1 = _pad_lanes(params["beta1"].reshape(1, Cout), CP)

    w2p = jnp.zeros((3, 3, CP, CP), jnp.float32)
    w2p = w2p.at[:, :, :Cout, :Cout].set(params["w2"])
    w2 = w2p.reshape(9 * CP, CP)                                  # (9*CP, CP)
    b2 = _pad_lanes(params["b2"].reshape(1, Cout), CP)
    g2 = _pad_lanes(params["gamma2"].reshape(1, Cout), CP)
    bt2 = _pad_lanes(params["beta2"].reshape(1, Cout), CP)

    def full_spec(shape):
        nd = len(shape)
        return pl.BlockSpec(shape, lambda i: (0,) * nd)

    # TODO(synk): for production-sized H/W/C, add a "parallel" H-tile grid axis
    # (with a 1-row halo) so both v7x TensorCores get work and blocks fit the
    # 64 MiB v7x VMEM; at these toy shapes a single fused VMEM-resident step is best.
    # TODO(synk): on v6e/v7x, feed bf16 operands to the MXU (keep f32 accumulate)
    # once channel dims are production-sized.
    out2d = pl.pallas_call(
        _upsample_block_kernel,
        out_shape=jax.ShapeDtypeStruct((NHW, CP), jnp.float32),
        grid_spec=pltpu.PrefetchScalarGridSpec(
            num_scalar_prefetch=0,
            grid=(1,),
            in_specs=[
                full_spec((N, Hi, Wi, Cin)),       # x
                full_spec((N, Ho, Wo, Cskip)),     # skip
                full_spec((Ho * Wo, Hi * Wi)),     # bilinear matrix
                full_spec((9 * Ccat, CP)),         # w1 (im2col)
                full_spec((1, CP)),                # b1
                full_spec((1, CP)),                # gamma1
                full_spec((1, CP)),                # beta1
                full_spec((9 * CP, CP)),           # w2 (im2col, padded)
                full_spec((1, CP)),                # b2
                full_spec((1, CP)),                # gamma2
                full_spec((1, CP)),                # beta2
            ],
            out_specs=full_spec((NHW, CP)),
            scratch_shapes=[
                pltpu.VMEM((N, Ho + 2, Wo + 2, Ccat), jnp.float32),  # padded conv1 input
                pltpu.VMEM((N, Ho + 2, Wo + 2, CP), jnp.float32),    # padded conv2 input
            ],
        ),
        compiler_params=pltpu.CompilerParams(
            dimension_semantics=("arbitrary",),
            vmem_limit_bytes=32 * 1024 * 1024,
        ),
    )(x, skip, u, w1, b1, g1, bt1, w2, b2, g2, bt2)

    # Strip channel padding; NHWC -> NCHW.
    y = out2d[:, :Cout].reshape(N, Ho, Wo, Cout)
    return jnp.transpose(y, (0, 3, 1, 2))


if __name__ == "__main__":
    key = jax.random.PRNGKey(0)
    kx, ks, kp = jax.random.split(key, 3)

    batch = 2
    in_channels = 4
    skip_channels = 4
    out_channels = 8
    x = jax.random.normal(kx, (batch, in_channels, 8, 8), jnp.float32)         # NCHW
    skip = jax.random.normal(ks, (batch, skip_channels, 16, 16), jnp.float32)  # NCHW

    params = init_upsample_block_params(kp, in_channels, skip_channels, out_channels)

    out = upsample_block_forward(x, skip, params)
    out = jax.block_until_ready(out)

    assert out.shape == (batch, out_channels, 16, 16), out.shape
    assert bool(jnp.all(jnp.isfinite(out)))
    assert bool(jnp.all(out >= 0.0))  # ReLU output
    print("KERNEL_OK")
</pallas_src>

<mosaic_0001>
module attributes {stable_mosaic.version = 11 : i64} {
  func.func @_upsample_block_kernel(%arg0: i32, %arg1: memref<2x8x8x4xf32, #tpu.memory_space<vmem>>, %arg2: memref<2x16x16x4xf32, #tpu.memory_space<vmem>>, %arg3: memref<256x64xf32, #tpu.memory_space<vmem>>, %arg4: memref<72x128xf32, #tpu.memory_space<vmem>>, %arg5: memref<1x128xf32, #tpu.memory_space<vmem>>, %arg6: memref<1x128xf32, #tpu.memory_space<vmem>>, %arg7: memref<1x128xf32, #tpu.memory_space<vmem>>, %arg8: memref<1152x128xf32, #tpu.memory_space<vmem>>, %arg9: memref<1x128xf32, #tpu.memory_space<vmem>>, %arg10: memref<1x128xf32, #tpu.memory_space<vmem>>, %arg11: memref<1x128xf32, #tpu.memory_space<vmem>>, %arg12: memref<512x128xf32, #tpu.memory_space<vmem>>, %arg13: memref<2x18x18x8xf32, #tpu.memory_space<vmem>>, %arg14: memref<2x18x18x128xf32, #tpu.memory_space<vmem>>) attributes {dimension_semantics = [#tpu.dimension_semantics<arbitrary>], iteration_bounds = array<i64: 1>, scalar_prefetch = 0 : i64, scratch_operands = 2 : i64, tpu.core_type = #tpu.core_type<tc>, window_params = [{pipeline_mode = #tpu.pipeline_mode<synchronous>, transform_indices = @transform_0, window_bounds = array<i64: 2, 8, 8, 4>}, {pipeline_mode = #tpu.pipeline_mode<synchronous>, transform_indices = @transform_1, window_bounds = array<i64: 2, 16, 16, 4>}, {pipeline_mode = #tpu.pipeline_mode<synchronous>, transform_indices = @transform_2, window_bounds = array<i64: 256, 64>}, {pipeline_mode = #tpu.pipeline_mode<synchronous>, transform_indices = @transform_3, window_bounds = array<i64: 72, 128>}, {pipeline_mode = #tpu.pipeline_mode<synchronous>, transform_indices = @transform_4, window_bounds = array<i64: 1, 128>}, {pipeline_mode = #tpu.pipeline_mode<synchronous>, transform_indices = @transform_5, window_bounds = array<i64: 1, 128>}, {pipeline_mode = #tpu.pipeline_mode<synchronous>, transform_indices = @transform_6, window_bounds = array<i64: 1, 128>}, {pipeline_mode = #tpu.pipeline_mode<synchronous>, transform_indices = @transform_7, window_bounds = array<i64: 1152, 128>}, {pipeline_mode = #tpu.pipeline_mode<synchronous>, transform_indices = @transform_8, window_bounds = array<i64: 1, 128>}, {pipeline_mode = #tpu.pipeline_mode<synchronous>, transform_indices = @transform_9, window_bounds = array<i64: 1, 128>}, {pipeline_mode = #tpu.pipeline_mode<synchronous>, transform_indices = @transform_10, window_bounds = array<i64: 1, 128>}, {pipeline_mode = #tpu.pipeline_mode<synchronous>, transform_indices = @transform_11, window_bounds = array<i64: 512, 128>}]} {
    %cst = arith.constant 0.000000e+00 : f32
    %0 = vector.broadcast %cst : f32 to vector<2x18x18x8xf32>
    %c0 = arith.constant 0 : index
    %c0_0 = arith.constant 0 : index
    %c0_1 = arith.constant 0 : index
    %c0_2 = arith.constant 0 : index
    %1 = vector.load %arg13[%c0, %c0_0, %c0_1, %c0_2] : memref<2x18x18x8xf32, #tpu.memory_space<vmem>>, vector<2x18x18x8xf32>
    tpu.vector_store %arg13[%c0, %c0_0, %c0_1, %c0_2], %0 {strides = array<i32>} : memref<2x18x18x8xf32, #tpu.memory_space<vmem>>, vector<2x18x18x8xf32>,
    %c0_3 = arith.constant 0 : index
    %c0_4 = arith.constant 0 : index
    %2 = vector.load %arg3[%c0_3, %c0_4] : memref<256x64xf32, #tpu.memory_space<vmem>>, vector<256x64xf32>
    %c0_5 = arith.constant 0 : index
    %c0_6 = arith.constant 0 : index
    %c0_7 = arith.constant 0 : index
    %c0_8 = arith.constant 0 : index
    %3 = vector.load %arg1[%c0_5, %c0_6, %c0_7, %c0_8] : memref<2x8x8x4xf32, #tpu.memory_space<vmem>>, vector<1x8x8x4xf32>
    %4 = vector.shape_cast %3 : vector<1x8x8x4xf32> to vector<8x8x4xf32>
    %5 = vector.shape_cast %4 : vector<8x8x4xf32> to vector<64x4xf32>
    %cst_9 = arith.constant dense<0.000000e+00> : vector<256x4xf32>
    %6 = tpu.matmul %2, %5, %cst_9 {dimension_numbers = #tpu.dot_dimension_numbers<[1], [0], [0], [1], [0, 0, 1, 1], [], []>} : vector<256x64xf32>, vector<64x4xf32>, vector<256x4xf32> -> vector<256x4xf32>
    %7 = vector.shape_cast %6 : vector<256x4xf32> to vector<16x16x4xf32>
    %c0_10 = arith.constant 0 : index
    %c0_11 = arith.constant 0 : index
    %c0_12 = arith.constant 0 : index
    %c0_13 = arith.constant 0 : index
    %8 = vector.load %arg2[%c0_10, %c0_11, %c0_12, %c0_13] : memref<2x16x16x4xf32, #tpu.memory_space<vmem>>, vector<1x16x16x4xf32>
    %9 = vector.shape_cast %8 : vector<1x16x16x4xf32> to vector<16x16x4xf32>
    %10 = tpu.concatenate %7, %9 in 2 : vector<16x16x4xf32>, vector<16x16x4xf32> -> vector<16x16x8xf32>
    %c0_14 = arith.constant 0 : index
    %c1 = arith.constant 1 : index
    %c1_15 = arith.constant 1 : index
    %c0_16 = arith.constant 0 : index
    %11 = vector.load %arg13[%c0_14, %c1, %c1_15, %c0_16] : memref<2x18x18x8xf32, #tpu.memory_space<vmem>>, vector<1x16x16x8xf32>
    %12 = vector.shape_cast %11 : vector<1x16x16x8xf32> to vector<16x16x8xf32>
    %13 = vector.shape_cast %10 : vector<16x16x8xf32> to vector<1x16x16x8xf32>
    tpu.vector_store %arg13[%c0_14, %c1, %c1_15, %c0_16], %13 {strides = array<i32>} : memref<2x18x18x8xf32, #tpu.memory_space<vmem>>, vector<1x16x16x8xf32>,
    %c1_17 = arith.constant 1 : index
    %c0_18 = arith.constant 0 : index
    %c0_19 = arith.constant 0 : index
    %c0_20 = arith.constant 0 : index
    %14 = vector.load %arg1[%c1_17, %c0_18, %c0_19, %c0_20] : memref<2x8x8x4xf32, #tpu.memory_space<vmem>>, vector<1x8x8x4xf32>
    %15 = vector.shape_cast %14 : vector<1x8x8x4xf32> to vector<8x8x4xf32>
    %16 = vector.shape_cast %15 : vector<8x8x4xf32> to vector<64x4xf32>
    %cst_21 = arith.constant dense<0.000000e+00> : vector<256x4xf32>
    %17 = tpu.matmul %2, %16, %cst_21 {dimension_numbers = #tpu.dot_dimension_numbers<[1], [0], [0], [1], [0, 0, 1, 1], [], []>} : vector<256x64xf32>, vector<64x4xf32>, vector<256x4xf32> -> vector<256x4xf32>
    %18 = vector.shape_cast %17 : vector<256x4xf32> to vector<16x16x4xf32>
    %c1_22 = arith.constant 1 : index
    %c0_23 = arith.constant 0 : index
    %c0_24 = arith.constant 0 : index
    %c0_25 = arith.constant 0 : index
    %19 = vector.load %arg2[%c1_22, %c0_23, %c0_24, %c0_25] : memref<2x16x16x4xf32, #tpu.memory_space<vmem>>, vector<1x16x16x4xf32>
    %20 = vector.shape_cast %19 : vector<1x16x16x4xf32> to vector<16x16x4xf32>
    %21 = tpu.concatenate %18, %20 in 2 : vector<16x16x4xf32>, vector<16x16x4xf32> -> vector<16x16x8xf32>
    %c1_26 = arith.constant 1 : index
    %c1_27 = arith.constant 1 : index
    %c1_28 = arith.constant 1 : index
    %c0_29 = arith.constant 0 : index
    %22 = vector.load %arg13[%c1_26, %c1_27, %c1_28, %c0_29] : memref<2x18x18x8xf32, #tpu.memory_space<vmem>>, vector<1x16x16x8xf32>
    %23 = vector.shape_cast %22 : vector<1x16x16x8xf32> to vector<16x16x8xf32>
    %24 = vector.shape_cast %21 : vector<16x16x8xf32> to vector<1x16x16x8xf32>
    tpu.vector_store %arg13[%c1_26, %c1_27, %c1_28, %c0_29], %24 {strides = array<i32>} : memref<2x18x18x8xf32, #tpu.memory_space<vmem>>, vector<1x16x16x8xf32>,
    %c0_30 = arith.constant 0 : index
    %c0_31 = arith.constant 0 : index
    %c0_32 = arith.constant 0 : index
    %c0_33 = arith.constant 0 : index
    %25 = vector.load %arg13[%c0_30, %c0_31, %c0_32, %c0_33] : memref<2x18x18x8xf32, #tpu.memory_space<vmem>>, vector<2x16x16x8xf32>
    %26 = vector.shape_cast %25 : vector<2x16x16x8xf32> to vector<512x8xf32>
    %c0_34 = arith.constant 0 : index
    %c0_35 = arith.constant 0 : index
    %c1_36 = arith.constant 1 : index
    %c0_37 = arith.constant 0 : index
    %27 = vector.load %arg13[%c0_34, %c0_35, %c1_36, %c0_37] : memref<2x18x18x8xf32, #tpu.memory_space<vmem>>, vector<2x16x16x8xf32>
    %28 = vector.shape_cast %27 : vector<2x16x16x8xf32> to vector<512x8xf32>
    %c0_38 = arith.constant 0 : index
    %c0_39 = arith.constant 0 : index
    %c2 = arith.constant 2 : index
    %c0_40 = arith.constant 0 : index
    %29 = vector.load %arg13[%c0_38, %c0_39, %c2, %c0_40] : memref<2x18x18x8xf32, #tpu.memory_space<vmem>>, vector<2x16x16x8xf32>
    %30 = vector.shape_cast %29 : vector<2x16x16x8xf32> to vector<512x8xf32>
    %c0_41 = arith.constant 0 : index
    %c1_42 = arith.constant 1 : index
    %c0_43 = arith.constant 0 : index
    %c0_44 = arith.constant 0 : index
    %31 = vector.load %arg13[%c0_41, %c1_42, %c0_43, %c0_44] : memref<2x18x18x8xf32, #tpu.memory_space<vmem>>, vector<2x16x16x8xf32>
    %32 = vector.shape_cast %31 : vector<2x16x16x8xf32> to vector<512x8xf32>
    %c0_45 = arith.constant 0 : index
    %c1_46 = arith.constant 1 : index
    %c1_47 = arith.constant 1 : index
    %c0_48 = arith.constant 0 : index
    %33 = vector.load %arg13[%c0_45, %c1_46, %c1_47, %c0_48] : memref<2x18x18x8xf32, #tpu.memory_space<vmem>>, vector<2x16x16x8xf32>
    %34 = vector.shape_cast %33 : vector<2x16x16x8xf32> to vector<512x8xf32>
    %c0_49 = arith.constant 0 : index
    %c1_50 = arith.constant 1 : index
    %c2_51 = arith.constant 2 : index
    %c0_52 = arith.constant 0 : index
    %35 = vector.load %arg13[%c0_49, %c1_50, %c2_51, %c0_52] : memref<2x18x18x8xf32, #tpu.memory_space<vmem>>, vector<2x16x16x8xf32>
    %36 = vector.shape_cast %35 : vector<2x16x16x8xf32> to vector<512x8xf32>
    %c0_53 = arith.constant 0 : index
    %c2_54 = arith.constant 2 : index
    %c0_55 = arith.constant 0 : index
    %c0_56 = arith.constant 0 : index
    %37 = vector.load %arg13[%c0_53, %c2_54, %c0_55, %c0_56] : memref<2x18x18x8xf32, #tpu.memory_space<vmem>>, vector<2x16x16x8xf32>
    %38 = vector.shape_cast %37 : vector<2x16x16x8xf32> to vector<512x8xf32>
    %c0_57 = arith.constant 0 : index
    %c2_58 = arith.constant 2 : index
    %c1_59 = arith.constant 1 : index
    %c0_60 = arith.constant 0 : index
    %39 = vector.load %arg13[%c0_57, %c2_58, %c1_59, %c0_60] : memref<2x18x18x8xf32, #tpu.memory_space<vmem>>, vector<2x16x16x8xf32>
    %40 = vector.shape_cast %39 : vector<2x16x16x8xf32> to vector<512x8xf32>
    %c0_61 = arith.constant 0 : index
    %c2_62 = arith.constant 2 : index
    %c2_63 = arith.constant 2 : index
    %c0_64 = arith.constant 0 : index
    %41 = vector.load %arg13[%c0_61, %c2_62, %c2_63, %c0_64] : memref<2x18x18x8xf32, #tpu.memory_space<vmem>>, vector<2x16x16x8xf32>
    %42 = vector.shape_cast %41 : vector<2x16x16x8xf32> to vector<512x8xf32>
    %43 = tpu.concatenate %26, %28, %30, %32, %34, %36, %38, %40, %42 in 1 : vector<512x8xf32>, vector<512x8xf32>, vector<512x8xf32>, vector<512x8xf32>, vector<512x8xf32>, vector<512x8xf32>, vector<512x8xf32>, vector<512x8xf32>, vector<512x8xf32> -> vector<512x72xf32>
    %c0_65 = arith.constant 0 : index
    %c0_66 = arith.constant 0 : index
    %44 = vector.load %arg4[%c0_65, %c0_66] : memref<72x128xf32, #tpu.memory_space<vmem>>, vector<72x128xf32>
    %cst_67 = arith.constant dense<0.000000e+00> : vector<512x128xf32>
    %45 = tpu.matmul %43, %44, %cst_67 {dimension_numbers = #tpu.dot_dimension_numbers<[1], [0], [0], [1], [0, 0, 1, 1], [], []>} : vector<512x72xf32>, vector<72x128xf32>, vector<512x128xf32> -> vector<512x128xf32>
    %c0_68 = arith.constant 0 : index
    %c0_69 = arith.constant 0 : index
    %46 = vector.load %arg5[%c0_68, %c0_69] : memref<1x128xf32, #tpu.memory_space<vmem>>, vector<1x128xf32>
    %47 = vector.broadcast %46 : vector<1x128xf32> to vector<512x128xf32>
    %48 = arith.addf %45, %47 : vector<512x128xf32>
    %cst_70 = arith.constant dense<0.000000e+00> : vector<128xf32>
    %49 = vector.multi_reduction <add>, %48, %cst_70 [0] : vector<512x128xf32> to vector<128xf32>
    %50 = vector.shape_cast %49 : vector<128xf32> to vector<1x128xf32>
    %cst_71 = arith.constant 5.120000e+02 : f32
    %51 = vector.broadcast %cst_71 : f32 to vector<1x128xf32>
    %52 = arith.divf %50, %51 : vector<1x128xf32>
    %53 = vector.broadcast %52 : vector<1x128xf32> to vector<512x128xf32>
    %54 = arith.subf %48, %53 : vector<512x128xf32>
    %55 = arith.mulf %54, %54 : vector<512x128xf32>
    %cst_72 = arith.constant dense<0.000000e+00> : vector<128xf32>
    %56 = vector.multi_reduction <add>, %55, %cst_72 [0] : vector<512x128xf32> to vector<128xf32>
    %57 = vector.shape_cast %56 : vector<128xf32> to vector<1x128xf32>
    %cst_73 = arith.constant 5.120000e+02 : f32
    %58 = vector.broadcast %cst_73 : f32 to vector<1x128xf32>
    %59 = arith.divf %57, %58 : vector<1x128xf32>
    %c0_74 = arith.constant 0 : index
    %c0_75 = arith.constant 0 : index
    %60 = vector.load %arg6[%c0_74, %c0_75] : memref<1x128xf32, #tpu.memory_space<vmem>>, vector<1x128xf32>
    %cst_76 = arith.constant 9.99999974E-6 : f32
    %61 = vector.broadcast %cst_76 : f32 to vector<1x128xf32>
    %62 = arith.addf %59, %61 : vector<1x128xf32>
    %63 = math.rsqrt %62 : vector<1x128xf32>
    %64 = arith.mulf %60, %63 : vector<1x128xf32>
    %c0_77 = arith.constant 0 : index
    %c0_78 = arith.constant 0 : index
    %65 = vector.load %arg7[%c0_77, %c0_78] : memref<1x128xf32, #tpu.memory_space<vmem>>, vector<1x128xf32>
    %66 = arith.mulf %52, %64 : vector<1x128xf32>
    %67 = arith.subf %65, %66 : vector<1x128xf32>
    %68 = vector.broadcast %64 : vector<1x128xf32> to vector<512x128xf32>
    %69 = arith.mulf %48, %68 : vector<512x128xf32>
    %70 = vector.broadcast %67 : vector<1x128xf32> to vector<512x128xf32>
    %71 = arith.addf %69, %70 : vector<512x128xf32>
    %cst_79 = arith.constant 0.000000e+00 : f32
    %72 = vector.broadcast %cst_79 : f32 to vector<512x128xf32>
    %73 = arith.maximumf %71, %72 : vector<512x128xf32>
    %cst_80 = arith.constant 0.000000e+00 : f32
    %74 = vector.broadcast %cst_80 : f32 to vector<2x18x18x128xf32>
    %c0_81 = arith.constant 0 : index
    %c0_82 = arith.constant 0 : index
    %c0_83 = arith.constant 0 : index
    %c0_84 = arith.constant 0 : index
    %75 = vector.load %arg14[%c0_81, %c0_82, %c0_83, %c0_84] : memref<2x18x18x128xf32, #tpu.memory_space<vmem>>, vector<2x18x18x128xf32>
    tpu.vector_store %arg14[%c0_81, %c0_82, %c0_83, %c0_84], %74 {strides = array<i32>} : memref<2x18x18x128xf32, #tpu.memory_space<vmem>>, vector<2x18x18x128xf32>,
    %76 = vector.shape_cast %73 : vector<512x128xf32> to vector<2x16x16x128xf32>
    %c0_85 = arith.constant 0 : index
    %c1_86 = arith.constant 1 : index
    %c1_87 = arith.constant 1 : index
    %c0_88 = arith.constant 0 : index
    %77 = vector.load %arg14[%c0_85, %c1_86, %c1_87, %c0_88] : memref<2x18x18x128xf32, #tpu.memory_space<vmem>>, vector<2x16x16x128xf32>
    tpu.vector_store %arg14[%c0_85, %c1_86, %c1_87, %c0_88], %76 {strides = array<i32>} : memref<2x18x18x128xf32, #tpu.memory_space<vmem>>, vector<2x16x16x128xf32>,
    %c0_89 = arith.constant 0 : index
    %c0_90 = arith.constant 0 : index
    %c0_91 = arith.constant 0 : index
    %c0_92 = arith.constant 0 : index
    %78 = vector.load %arg14[%c0_89, %c0_90, %c0_91, %c0_92] : memref<2x18x18x128xf32, #tpu.memory_space<vmem>>, vector<2x16x16x128xf32>
    %79 = vector.shape_cast %78 : vector<2x16x16x128xf32> to vector<512x128xf32>
    %c0_93 = arith.constant 0 : index
    %c0_94 = arith.constant 0 : index
    %c1_95 = arith.constant 1 : index
    %c0_96 = arith.constant 0 : index
    %80 = vector.load %arg14[%c0_93, %c0_94, %c1_95, %c0_96] : memref<2x18x18x128xf32, #tpu.memory_space<vmem>>, vector<2x16x16x128xf32>
    %81 = vector.shape_cast %80 : vector<2x16x16x128xf32> to vector<512x128xf32>
    %c0_97 = arith.constant 0 : index
    %c0_98 = arith.constant 0 : index
    %c2_99 = arith.constant 2 : index
    %c0_100 = arith.constant 0 : index
    %82 = vector.load %arg14[%c0_97, %c0_98, %c2_99, %c0_100] : memref<2x18x18x128xf32, #tpu.memory_space<vmem>>, vector<2x16x16x128xf32>
    %83 = vector.shape_cast %82 : vector<2x16x16x128xf32> to vector<512x128xf32>
    %c0_101 = arith.constant 0 : index
    %c1_102 = arith.constant 1 : index
    %c0_103 = arith.constant 0 : index
    %c0_104 = arith.constant 0 : index
    %84 = vector.load %arg14[%c0_101, %c1_102, %c0_103, %c0_104] : memref<2x18x18x128xf32, #tpu.memory_space<vmem>>, vector<2x16x16x128xf32>
    %85 = vector.shape_cast %84 : vector<2x16x16x128xf32> to vector<512x128xf32>
    %c0_105 = arith.constant 0 : index
    %c1_106 = arith.constant 1 : index
    %c1_107 = arith.constant 1 : index
    %c0_108 = arith.constant 0 : index
    %86 = vector.load %arg14[%c0_105, %c1_106, %c1_107, %c0_108] : memref<2x18x18x128xf32, #tpu.memory_space<vmem>>, vector<2x16x16x128xf32>
    %87 = vector.shape_cast %86 : vector<2x16x16x128xf32> to vector<512x128xf32>
    %c0_109 = arith.constant 0 : index
    %c1_110 = arith.constant 1 : index
    %c2_111 = arith.constant 2 : index
    %c0_112 = arith.constant 0 : index
    %88 = vector.load %arg14[%c0_109, %c1_110, %c2_111, %c0_112] : memref<2x18x18x128xf32, #tpu.memory_space<vmem>>, vector<2x16x16x128xf32>
    %89 = vector.shape_cast %88 : vector<2x16x16x128xf32> to vector<512x128xf32>
    %c0_113 = arith.constant 0 : index
    %c2_114 = arith.constant 2 : index
    %c0_115 = arith.constant 0 : index
    %c0_116 = arith.constant 0 : index
    %90 = vector.load %arg14[%c0_113, %c2_114, %c0_115, %c0_116] : memref<2x18x18x128xf32, #tpu.memory_space<vmem>>, vector<2x16x16x128xf32>
    %91 = vector.shape_cast %90 : vector<2x16x16x128xf32> to vector<512x128xf32>
    %c0_117 = arith.constant 0 : index
    %c2_118 = arith.constant 2 : index
    %c1_119 = arith.constant 1 : index
    %c0_120 = arith.constant 0 : index
    %92 = vector.load %arg14[%c0_117, %c2_118, %c1_119, %c0_120] : memref<2x18x18x128xf32, #tpu.memory_space<vmem>>, vector<2x16x16x128xf32>
    %93 = vector.shape_cast %92 : vector<2x16x16x128xf32> to vector<512x128xf32>
    %c0_121 = arith.constant 0 : index
    %c2_122 = arith.constant 2 : index
    %c2_123 = arith.constant 2 : index
    %c0_124 = arith.constant 0 : index
    %94 = vector.load %arg14[%c0_121, %c2_122, %c2_123, %c0_124] : memref<2x18x18x128xf32, #tpu.memory_space<vmem>>, vector<2x16x16x128xf32>
    %95 = vector.shape_cast %94 : vector<2x16x16x128xf32> to vector<512x128xf32>
    %96 = tpu.concatenate %79, %81, %83, %85, %87, %89, %91, %93, %95 in 1 : vector<512x128xf32>, vector<512x128xf32>, vector<512x128xf32>, vector<512x128xf32>, vector<512x128xf32>, vector<512x128xf32>, vector<512x128xf32>, vector<512x128xf32>, vector<512x128xf32> -> vector<512x1152xf32>
    %c0_125 = arith.constant 0 : index
    %c0_126 = arith.constant 0 : index
    %97 = vector.load %arg8[%c0_125, %c0_126] : memref<1152x128xf32, #tpu.memory_space<vmem>>, vector<1152x128xf32>
    %cst_127 = arith.constant dense<0.000000e+00> : vector<512x128xf32>
    %98 = tpu.matmul %96, %97, %cst_127 {dimension_numbers = #tpu.dot_dimension_numbers<[1], [0], [0], [1], [0, 0, 1, 1], [], []>} : vector<512x1152xf32>, vector<1152x128xf32>, vector<512x128xf32> -> vector<512x128xf32>
    %c0_128 = arith.constant 0 : index
    %c0_129 = arith.constant 0 : index
    %99 = vector.load %arg9[%c0_128, %c0_129] : memref<1x128xf32, #tpu.memory_space<vmem>>, vector<1x128xf32>
    %100 = vector.broadcast %99 : vector<1x128xf32> to vector<512x128xf32>
    %101 = arith.addf %98, %100 : vector<512x128xf32>
    %cst_130 = arith.constant dense<0.000000e+00> : vector<128xf32>
    %102 = vector.multi_reduction <add>, %101, %cst_130 [0] : vector<512x128xf32> to vector<128xf32>
    %103 = vector.shape_cast %102 : vector<128xf32> to vector<1x128xf32>
    %cst_131 = arith.constant 5.120000e+02 : f32
    %104 = vector.broadcast %cst_131 : f32 to vector<1x128xf32>
    %105 = arith.divf %103, %104 : vector<1x128xf32>
    %106 = vector.broadcast %105 : vector<1x128xf32> to vector<512x128xf32>
    %107 = arith.subf %101, %106 : vector<512x128xf32>
    %108 = arith.mulf %107, %107 : vector<512x128xf32>
    %cst_132 = arith.constant dense<0.000000e+00> : vector<128xf32>
    %109 = vector.multi_reduction <add>, %108, %cst_132 [0] : vector<512x128xf32> to vector<128xf32>
    %110 = vector.shape_cast %109 : vector<128xf32> to vector<1x128xf32>
    %cst_133 = arith.constant 5.120000e+02 : f32
    %111 = vector.broadcast %cst_133 : f32 to vector<1x128xf32>
    %112 = arith.divf %110, %111 : vector<1x128xf32>
    %c0_134 = arith.constant 0 : index
    %c0_135 = arith.constant 0 : index
    %113 = vector.load %arg10[%c0_134, %c0_135] : memref<1x128xf32, #tpu.memory_space<vmem>>, vector<1x128xf32>
    %cst_136 = arith.constant 9.99999974E-6 : f32
    %114 = vector.broadcast %cst_136 : f32 to vector<1x128xf32>
    %115 = arith.addf %112, %114 : vector<1x128xf32>
    %116 = math.rsqrt %115 : vector<1x128xf32>
    %117 = arith.mulf %113, %116 : vector<1x128xf32>
    %c0_137 = arith.constant 0 : index
    %c0_138 = arith.constant 0 : index
    %118 = vector.load %arg11[%c0_137, %c0_138] : memref<1x128xf32, #tpu.memory_space<vmem>>, vector<1x128xf32>
    %119 = arith.mulf %105, %117 : vector<1x128xf32>
    %120 = arith.subf %118, %119 : vector<1x128xf32>
    %121 = vector.broadcast %117 : vector<1x128xf32> to vector<512x128xf32>
    %122 = arith.mulf %101, %121 : vector<512x128xf32>
    %123 = vector.broadcast %120 : vector<1x128xf32> to vector<512x128xf32>
    %124 = arith.addf %122, %123 : vector<512x128xf32>
    %cst_139 = arith.constant 0.000000e+00 : f32
    %125 = vector.broadcast %cst_139 : f32 to vector<512x128xf32>
    %126 = arith.maximumf %124, %125 : vector<512x128xf32>
    %c0_140 = arith.constant 0 : index
    %c0_141 = arith.constant 0 : index
    %127 = vector.load %arg12[%c0_140, %c0_141] : memref<512x128xf32, #tpu.memory_space<vmem>>, vector<512x128xf32>
    tpu.vector_store %arg12[%c0_140, %c0_141], %126 {strides = array<i32>} : memref<512x128xf32, #tpu.memory_space<vmem>>, vector<512x128xf32>,
    return
  }
  func.func @transform_0(%arg0: i32) -> (i32, i32, i32, i32) {
    %c0_i32 = arith.constant 0 : i32
    %c0_i32_0 = arith.constant 0 : i32
    %c0_i32_1 = arith.constant 0 : i32
    %c0_i32_2 = arith.constant 0 : i32
    %c0_i32_3 = arith.constant 0 : i32
    return %c0_i32, %c0_i32_0, %c0_i32_1, %c0_i32_2 : i32, i32, i32, i32
  }
  func.func @transform_1(%arg0: i32) -> (i32, i32, i32, i32) {
    %c0_i32 = arith.constant 0 : i32
    %c0_i32_0 = arith.constant 0 : i32
    %c0_i32_1 = arith.constant 0 : i32
    %c0_i32_2 = arith.constant 0 : i32
    %c0_i32_3 = arith.constant 0 : i32
    return %c0_i32, %c0_i32_0, %c0_i32_1, %c0_i32_2 : i32, i32, i32, i32
  }
  func.func @transform_2(%arg0: i32) -> (i32, i32) {
    %c0_i32 = arith.constant 0 : i32
    %c0_i32_0 = arith.constant 0 : i32
    %c0_i32_1 = arith.constant 0 : i32
    return %c0_i32, %c0_i32_0 : i32, i32
  }
  func.func @transform_3(%arg0: i32) -> (i32, i32) {
    %c0_i32 = arith.constant 0 : i32
    %c0_i32_0 = arith.constant 0 : i32
    %c0_i32_1 = arith.constant 0 : i32
    return %c0_i32, %c0_i32_0 : i32, i32
  }
  func.func @transform_4(%arg0: i32) -> (i32, i32) {
    %c0_i32 = arith.constant 0 : i32
    %c0_i32_0 = arith.constant 0 : i32
    %c0_i32_1 = arith.constant 0 : i32
    return %c0_i32, %c0_i32_0 : i32, i32
  }
  func.func @transform_5(%arg0: i32) -> (i32, i32) {
    %c0_i32 = arith.constant 0 : i32
    %c0_i32_0 = arith.constant 0 : i32
    %c0_i32_1 = arith.constant 0 : i32
    return %c0_i32, %c0_i32_0 : i32, i32
  }
  func.func @transform_6(%arg0: i32) -> (i32, i32) {
    %c0_i32 = arith.constant 0 : i32
    %c0_i32_0 = arith.constant 0 : i32
    %c0_i32_1 = arith.constant 0 : i32
    return %c0_i32, %c0_i32_0 : i32, i32
  }
  func.func @transform_7(%arg0: i32) -> (i32, i32) {
    %c0_i32 = arith.constant 0 : i32
    %c0_i32_0 = arith.constant 0 : i32
    %c0_i32_1 = arith.constant 0 : i32
    return %c0_i32, %c0_i32_0 : i32, i32
  }
  func.func @transform_8(%arg0: i32) -> (i32, i32) {
    %c0_i32 = arith.constant 0 : i32
    %c0_i32_0 = arith.constant 0 : i32
    %c0_i32_1 = arith.constant 0 : i32
    return %c0_i32, %c0_i32_0 : i32, i32
  }
  func.func @transform_9(%arg0: i32) -> (i32, i32) {
    %c0_i32 = arith.constant 0 : i32
    %c0_i32_0 = arith.constant 0 : i32
    %c0_i32_1 = arith.constant 0 : i32
    return %c0_i32, %c0_i32_0 : i32, i32
  }
  func.func @transform_10(%arg0: i32) -> (i32, i32) {
    %c0_i32 = arith.constant 0 : i32
    %c0_i32_0 = arith.constant 0 : i32
    %c0_i32_1 = arith.constant 0 : i32
    return %c0_i32, %c0_i32_0 : i32, i32
  }
  func.func @transform_11(%arg0: i32) -> (i32, i32) {
    %c0_i32 = arith.constant 0 : i32
    %c0_i32_0 = arith.constant 0 : i32
    %c0_i32_1 = arith.constant 0 : i32
    return %c0_i32, %c0_i32_0 : i32, i32
  }
}

</mosaic_0001>

<bundles_post_ra>
// kernel: upsample_block_forward.1
= control target key start
LH: loop header
LB: loop body
LE: loop exit
PB: predicated region body
PF: predicated region fallthrough
CT: control target
= control target key end

     0   :  { %vm38_vm0 = vcmask 64512   ;;  %vm41_vm1 = vcmask 58368   ;;  %vm188_vm2 = vcmask 523264   ;;  %v10265_v3 = vmov 0.0   ;;  %s10266_s21 = smov 4   ;;  %s10268_s12 = smov 16   ;;  %s17411_s0 = inlined_call_operand.vmem [shape: f32[2,8,8,4], index: 0, kind: input, shape index: {}]   ;;  %s17412_s2 = inlined_call_operand.vmem [shape: f32[256,64], index: 2, kind: input, shape index: {}]   ;;  %s17413_s1 = inlined_call_operand.vmem [shape: f32[2,16,16,4], index: 1, kind: input, shape index: {}]   ;;  %s17414_s3 = inlined_call_operand.vmem [shape: f32[72,128], index: 3, kind: input, shape index: {}]   ;;  %s17415_s4 = inlined_call_operand.vmem [shape: f32[1,128], index: 4, kind: input, shape index: {}]   ;;  %s17416_s7 = inlined_call_operand.vmem [shape: f32[1152,128], index: 7, kind: input, shape index: {}]   ;;  %s17417_s5 = inlined_call_operand.vmem [shape: f32[1,128], index: 5, kind: input, shape index: {}]   ;;  %s17418_s6 = inlined_call_operand.vmem [shape: f32[1,128], index: 6, kind: input, shape index: {}]   ;;  %s17419_s8 = inlined_call_operand.vmem [shape: f32[1,128], index: 8, kind: input, shape index: {}]   ;;  %s17420_s9 = inlined_call_operand.vmem [shape: f32[1,128], index: 9, kind: input, shape index: {}]   ;;  %s17421_s10 = inlined_call_operand.vmem [shape: f32[1,128], index: 10, kind: input, shape index: {}]   ;;  %s17422_s11 = inlined_call_operand.vmem [shape: f32[512,128], index: 11, kind: output, shape index: {}]  }
   0x1   :  { %v10339_v0 = vld [vmem:[%s17411_s0] sm:$0xff]  ;;  %v10344_v1 = vld [vmem:[%s17411_s0 + $0x8] sm:$0xff]  ;;  %v10349_v2 = vld [vmem:[%s17411_s0 + $0x10] sm:$0xff]  ;;  %39 = vst.msk [vmem:[#allocation2] sm:$0xff] %vm38_vm0, %v10265_v3  ;;  %vm670_vm3 = vcmask 31744   ;;  %s10269_s17 = smov 32  }
   0x2   :  { %40 = vst.msk [vmem:[#allocation2 + $0x8] sm:$0xff] %vm38_vm0, %v10265_v3  ;;  %43 = vst.msk [vmem:[#allocation2 + $0x18] sm:$0xff] %vm38_vm0, %v10265_v3  ;;  %v9559_v4 = vpack.c.bf16 %v10344_v1, %v10339_v0  ;;  %v183_v5 = vld [vmem:[%s17411_s0 + $0x18] sm:$0xff]  ;;  %v184_v7 = vld [vmem:[%s17411_s0 + $0x20] sm:$0xff]  ;;  %s10270_s18 = smov 24   ;;  %s10271_s19 = smov 40  }
   0x3   :  { %44 = vst.msk [vmem:[#allocation2 + $0x20] sm:$0xff] %vm38_vm0, %v10265_v3  ;;  %46 = vst.msk [vmem:[#allocation2 + $0x30] sm:$0xff] %vm38_vm0, %v10265_v3  ;;  %v9563_v6 = vpack.c.bf16 %v183_v5, %v10349_v2  ;;  %v185_v8 = vld [vmem:[%s17411_s0 + $0x28] sm:$0xff]  ;;  %v148_v9 = vld [vmem:[%s17412_s2] sm:$0xff]  ;;  %s10272_s20 = smov 56   ;;  %s10273_s15 = smov 64  }
   0x4   :  { %47 = vst.msk [vmem:[#allocation2 + $0x38] sm:$0xff] %vm38_vm0, %v10265_v3  ;;  %49 = vst.msk [vmem:[#allocation2 + $0x48] sm:$0xff] %vm38_vm0, %v10265_v3  ;;  %9560 = vmatprep.subr.bf16.mxu0 %v9559_v4  ;;  %9205 = vmatprep.mubr.msk.f32.mxu0 %vm188_vm2, %v148_v9  ;;  %v9567_v10 = vpack.c.bf16 %v185_v8, %v184_v7  ;;  %v186_v11 = vld [vmem:[%s17411_s0 + $0x30] sm:$0xff]  ;;  %v187_v12 = vld [vmem:[%s17411_s0 + $0x38] sm:$0xff]  ;;  %vm3885_vm4 = vcmask 130048   ;;  %vm3950_vm5 = vcmask 195584  }
   0x5   :  { %50 = vst.msk [vmem:[#allocation2 + $0x50] sm:$0xff] %vm38_vm0, %v10265_v3  ;;  %52 = vst.msk [vmem:[#allocation2 + $0x60] sm:$0xff] %vm38_vm0, %v10265_v3  ;;  %9562 = vmatpush3.bf16.msra.mxu0 %v9559_v4  ;;  %9269 = vmatprep.mubr.msk.f32.mxu1 %vm188_vm2, %v148_v9  ;;  %v9571_v13 = vpack.c.bf16 %v187_v12, %v186_v11  ;;  %v8818_v14 = vld [vmem:[%s17411_s0 + $0x40] sm:$0xff]  ;;  %v8819_v15 = vld [vmem:[%s17411_s0 + $0x48] sm:$0xff]  ;;  %vm4015_vm6 = vcmask 261120   ;;  %vm4080_vm7 = vcmask 326656  }
   0x6   :  { %53 = vst.msk [vmem:[#allocation2 + $0x68] sm:$0xff] %vm38_vm0, %v10265_v3  ;;  %55 = vst.msk [vmem:[#allocation2 + $0x78] sm:$0xff] %vm38_vm0, %v10265_v3  ;;  %9564 = vmatprep.subr.bf16.mxu0 %v9563_v6  ;;  %v9575_v16 = vpack.c.bf16 %v8819_v15, %v8818_v14  ;;  %v8820_v17 = vld [vmem:[%s17411_s0 + $0x50] sm:$0xff]  ;;  %v8821_v18 = vld [vmem:[%s17411_s0 + $0x58] sm:$0xff]  ;;  %vm4145_vm8 = vcmask 392192   ;;  %vm4210_vm9 = vcmask 457728  }
   0x7   :  { %56 = vst.msk [vmem:[#allocation2 + $0x80] sm:$0xff] %vm38_vm0, %v10265_v3  ;;  %58 = vst.msk [vmem:[#allocation2 + $0x90] sm:$0xff] %vm38_vm0, %v10265_v3  ;;  %v9579_v19 = vpack.c.bf16 %v8821_v18, %v8820_v17  ;;  %v8822_v20 = vld [vmem:[%s17411_s0 + $0x60] sm:$0xff]  ;;  %v8823_v21 = vld [vmem:[%s17411_s0 + $0x68] sm:$0xff]  ;;  %vm4355_vm10 = vcmask 588800  }
   0x8   :  { %59 = vst.msk [vmem:[#allocation2 + $0x98] sm:$0xff] %vm38_vm0, %v10265_v3  ;;  %61 = vst.msk [vmem:[#allocation2 + $0xa8] sm:$0xff] %vm38_vm0, %v10265_v3  ;;  %9576 = vmatprep.subr.bf16.mxu1 %v9575_v16  ;;  %v149_v22 = vld [vmem:[%s17412_s2 + $0x8] sm:$0xff]  ;;  %v150_v23 = vld [vmem:[%s17412_s2 + $0x10] sm:$0xff]  ;;  %v9583_v24 = vpack.c.bf16 %v8823_v21, %v8822_v20 }
   0x9   :  { %62 = vst.msk [vmem:[#allocation2 + $0xb0] sm:$0xff] %vm38_vm0, %v10265_v3  ;;  %64 = vst.msk [vmem:[#allocation2 + $0xc0] sm:$0xff] %vm38_vm0, %v10265_v3  ;;  %9566 = vmatpush3.bf16.msra.mxu0 %v9563_v6  ;;  %9578 = vmatpush3.bf16.msra.mxu1 %v9575_v16  ;;  %v510_v25 = vld [vmem:[%s17413_s1] sm:$0xff]  ;;  %v512_v26 = vld [vmem:[%s17413_s1 + $0x10] sm:$0xff] }
   0xa   :  { %65 = vst.msk [vmem:[#allocation2 + $0xc8] sm:$0xff] %vm38_vm0, %v10265_v3  ;;  %67 = vst.msk [vmem:[#allocation2 + $0xd8] sm:$0xff] %vm38_vm0, %v10265_v3  ;;  %9568 = vmatprep.subr.bf16.mxu0 %v9567_v10  ;;  %9580 = vmatprep.subr.bf16.mxu1 %v9579_v19  ;;  %v8824_v27 = vld [vmem:[%s17411_s0 + $0x70] sm:$0xff]  ;;  %v8825_v28 = vld [vmem:[%s17411_s0 + $0x78] sm:$0xff]  ;;  %s10274_s0 = smov 48  }
   0xb   :  { %68 = vst.msk [vmem:[#allocation2 + $0xe0] sm:$0xff] %vm38_vm0, %v10265_v3  ;;  %70 = vst.msk [vmem:[#allocation2 + $0xf0] sm:$0xff] %vm38_vm0, %v10265_v3  ;;  %574 = vrot.lane.b32.xlu0 %v510_v25, %s10266_s21  ;;  %578 = vrot.lane.b32.xlu1 %v512_v26, %s10266_s21  ;;  %v511_v29 = vld [vmem:[%s17413_s1 + $0x8] sm:$0xff]  ;;  %v513_v30 = vld [vmem:[%s17413_s1 + $0x18] sm:$0xff]  ;;  %v9587_v32 = vpack.c.bf16 %v8825_v28, %v8824_v27 }
   0xc   :  { %71 = vst.msk [vmem:[#allocation2 + $0xf8] sm:$0xff] %vm38_vm0, %v10265_v3  ;;  %73 = vst.msk [vmem:[#allocation2 + $0x108] sm:$0xff] %vm38_vm0, %v10265_v3  ;;  %v151_v31 = vld [vmem:[%s17412_s2 + $0x18] sm:$0xff]  ;;  %v152_v33 = vld [vmem:[%s17412_s2 + $0x20] sm:$0xff] }
   0xd   :  { %74 = vst.msk [vmem:[#allocation2 + $0x110] sm:$0xff] %vm38_vm0, %v10265_v3  ;;  %76 = vst.msk [vmem:[#allocation2 + $0x120] sm:$0xff] %vm38_vm0, %v10265_v3  ;;  %9570 = vmatpush3.bf16.msra.mxu0 %v9567_v10  ;;  %9582 = vmatpush3.bf16.msra.mxu1 %v9579_v19  ;;  %v514_v34 = vld [vmem:[%s17413_s1 + $0x20] sm:$0xff]  ;;  %v515_v35 = vld [vmem:[%s17413_s1 + $0x28] sm:$0xff] }
   0xe   :  { %77 = vst.msk [vmem:[#allocation2 + $0x128] sm:$0xff] %vm38_vm0, %v10265_v3  ;;  %79 = vst.msk [vmem:[#allocation2 + $0x138] sm:$0xff] %vm38_vm0, %v10265_v3  ;;  %9572 = vmatprep.subr.bf16.mxu0 %v9571_v13  ;;  %9584 = vmatprep.subr.bf16.mxu1 %v9583_v24  ;;  %v153_v36 = vld [vmem:[%s17412_s2 + $0x28] sm:$0xff]  ;;  %v154_v37 = vld [vmem:[%s17412_s2 + $0x30] sm:$0xff] }
   0xf   :  { %80 = vst.msk [vmem:[#allocation2 + $0x140] sm:$0xff] %vm38_vm0, %v10265_v3  ;;  %82 = vst.msk [vmem:[#allocation2 + $0x150] sm:$0xff] %vm38_vm0, %v10265_v3  ;;  %576 = vrot.lane.b32.xlu0 %v511_v29, %s10266_s21  ;;  %580 = vrot.lane.b32.xlu1 %v513_v30, %s10266_s21  ;;  %v516_v38 = vld [vmem:[%s17413_s1 + $0x30] sm:$0xff]  ;;  %v517_v39 = vld [vmem:[%s17413_s1 + $0x38] sm:$0xff] }
  0x10   :  { %83 = vst.msk [vmem:[#allocation2 + $0x158] sm:$0xff] %vm38_vm0, %v10265_v3  ;;  %85 = vst.msk [vmem:[#allocation2 + $0x168] sm:$0xff] %vm38_vm0, %v10265_v3  ;;  %v155_v40 = vld [vmem:[%s17412_s2 + $0x38] sm:$0xff]  ;;  %v156_v41 = vld [vmem:[%s17412_s2 + $0x40] sm:$0xff] }
  0x11   :  { %86 = vst.msk [vmem:[#allocation2 + $0x170] sm:$0xff] %vm38_vm0, %v10265_v3  ;;  %88 = vst.msk [vmem:[#allocation2 + $0x180] sm:$0xff] %vm38_vm0, %v10265_v3  ;;  %9574 = vmatpush3.bf16.msra.mxu0 %v9571_v13  ;;  %9586 = vmatpush3.bf16.msra.mxu1 %v9583_v24  ;;  %v518_v42 = vld [vmem:[%s17413_s1 + $0x40] sm:$0xff]  ;;  %v519_v43 = vld [vmem:[%s17413_s1 + $0x48] sm:$0xff] }
  0x12   :  { %89 = vst.msk [vmem:[#allocation2 + $0x188] sm:$0xff] %vm38_vm0, %v10265_v3  ;;  %91 = vst.msk [vmem:[#allocation2 + $0x198] sm:$0xff] %vm38_vm0, %v10265_v3  ;;  %9588 = vmatprep.subr.bf16.mxu1 %v9587_v32  ;;  %v157_v44 = vld [vmem:[%s17412_s2 + $0x48] sm:$0xff]  ;;  %v158_v45 = vld [vmem:[%s17412_s2 + $0x50] sm:$0xff] }
  0x13   :  { %92 = vst.msk [vmem:[#allocation2 + $0x1a0] sm:$0xff] %vm38_vm0, %v10265_v3  ;;  %94 = vst.msk [vmem:[#allocation2 + $0x1b0] sm:$0xff] %vm38_vm0, %v10265_v3  ;;  %582 = vrot.lane.b32.xlu0 %v514_v34, %s10266_s21  ;;  %584 = vrot.lane.b32.xlu1 %v515_v35, %s10266_s21  ;;  %v520_v46 = vld [vmem:[%s17413_s1 + $0x50] sm:$0xff]  ;;  %v521_v47 = vld [vmem:[%s17413_s1 + $0x58] sm:$0xff] }
  0x14   :  { %95 = vst.msk [vmem:[#allocation2 + $0x1b8] sm:$0xff] %vm38_vm0, %v10265_v3  ;;  %97 = vst.msk [vmem:[#allocation2 + $0x1c8] sm:$0xff] %vm38_vm0, %v10265_v3  ;;  %9206 = vmatmul.mubr.msk.f32.vlgmr.msra.gmra.mrb[0].mxu0 %vm188_vm2, %v149_v22  ;;  %v159_v48 = vld [vmem:[%s17412_s2 + $0x58] sm:$0xff]  ;;  %v160_v49 = vld [vmem:[%s17412_s2 + $0x60] sm:$0xff] }
  0x15   :  { %98 = vst.msk [vmem:[#allocation2 + $0x1d0] sm:$0xff] %vm38_vm0, %v10265_v3  ;;  %100 = vst.msk [vmem:[#allocation2 + $0x1e0] sm:$0xff] %vm38_vm0, %v10265_v3  ;;  %9208 = vmatprep.mubr.msk.f32.mxu0 %vm188_vm2, %v150_v23  ;;  %9590 = vmatpush3.bf16.msra.mxu1 %v9587_v32  ;;  %v522_v50 = vld [vmem:[%s17413_s1 + $0x60] sm:$0xff]  ;;  %v523_v51 = vld [vmem:[%s17413_s1 + $0x68] sm:$0xff] }
  0x16   :  { %101 = vst.msk [vmem:[#allocation2 + $0x1e8] sm:$0xff] %vm38_vm0, %v10265_v3  ;;  %103 = vst.msk [vmem:[#allocation2 + $0x1f8] sm:$0xff] %vm38_vm0, %v10265_v3  ;;  %v161_v52 = vld [vmem:[%s17412_s2 + $0x68] sm:$0xff]  ;;  %v162_v53 = vld [vmem:[%s17412_s2 + $0x70] sm:$0xff] }
  0x17   :  { %104 = vst.msk [vmem:[#allocation2 + $0x200] sm:$0xff] %vm38_vm0, %v10265_v3  ;;  %106 = vst.msk [vmem:[#allocation2 + $0x210] sm:$0xff] %vm38_vm0, %v10265_v3  ;;  %586 = vrot.lane.b32.xlu0 %v516_v38, %s10266_s21  ;;  %588 = vrot.lane.b32.xlu1 %v517_v39, %s10266_s21  ;;  %v524_v54 = vld [vmem:[%s17413_s1 + $0x70] sm:$0xff]  ;;  %v525_v55 = vld [vmem:[%s17413_s1 + $0x78] sm:$0xff] }
  0x18   :  { %107 = vst.msk [vmem:[#allocation2 + $0x218] sm:$0xff] %vm38_vm0, %v10265_v3  ;;  %109 = vst.msk [vmem:[#allocation2 + $0x228] sm:$0xff] %vm38_vm0, %v10265_v3  ;;  %9209 = vmatmul.mubr.msk.f32.gmra.mrb[2].mxu0 %vm188_vm2, %v151_v31  ;;  %9270 = vmatmul.mubr.msk.f32.vlgmr.msra.gmra.mrb[0].mxu1 %vm188_vm2, %v149_v22  ;;  %v163_v56 = vld [vmem:[%s17412_s2 + $0x78] sm:$0xff]  ;;  %v164_v57 = vld [vmem:[%s17412_s2 + $0x80] sm:$0xff] }
  0x19   :  { %110 = vst.msk [vmem:[#allocation2 + $0x230] sm:$0xff] %vm38_vm0, %v10265_v3  ;;  %112 = vst.msk [vmem:[#allocation2 + $0x240] sm:$0xff] %vm38_vm0, %v10265_v3  ;;  %9211 = vmatprep.mubr.msk.f32.mxu0 %vm188_vm2, %v152_v33  ;;  %9272 = vmatprep.mubr.msk.f32.mxu1 %vm188_vm2, %v150_v23  ;;  %v526_v58 = vld [vmem:[%s17413_s1 + $0x80] sm:$0xff]  ;;  %v527_v59 = vld [vmem:[%s17413_s1 + $0x88] sm:$0xff] }
  0x1a   :  { %113 = vst.msk [vmem:[#allocation2 + $0x248] sm:$0xff] %vm38_vm0, %v10265_v3  ;;  %115 = vst.msk [vmem:[#allocation2 + $0x258] sm:$0xff] %vm38_vm0, %v10265_v3  ;;  %v165_v60 = vld [vmem:[%s17412_s2 + $0x88] sm:$0xff]  ;;  %v166_v61 = vld [vmem:[%s17412_s2 + $0x90] sm:$0xff] }
  0x1b   :  { %116 = vst.msk [vmem:[#allocation2 + $0x260] sm:$0xff] %vm38_vm0, %v10265_v3  ;;  %118 = vst.msk [vmem:[#allocation2 + $0x270] sm:$0xff] %vm38_vm0, %v10265_v3  ;;  %590 = vrot.lane.b32.xlu0 %v518_v42, %s10266_s21  ;;  %592 = vrot.lane.b32.xlu1 %v519_v43, %s10266_s21  ;;  %v528_v62 = vld [vmem:[%s17413_s1 + $0x90] sm:$0xff]  ;;  %v529_v63 = vld [vmem:[%s17413_s1 + $0x98] sm:$0xff] }
  0x1c   :  { %119 = vst.msk [vmem:[#allocation2 + $0x278] sm:$0xff] %vm38_vm0, %v10265_v3  ;;  %121 = vst.msk [vmem:[#allocation2 + $0x288] sm:$0xff] %vm38_vm0, %v10265_v3  ;;  %9212 = vmatmul.mubr.msk.f32.gmra.mrb[4].mxu0 %vm188_vm2, %v153_v36  ;;  %9273 = vmatmul.mubr.msk.f32.gmra.mrb[2].mxu1 %vm188_vm2, %v151_v31  ;;  %v167_v0 = vld [vmem:[%s17412_s2 + $0x98] sm:$0xff]  ;;  %v168_v1 = vld [vmem:[%s17412_s2 + $0xa0] sm:$0xff] }
  0x1d   :  { %122 = vst.msk [vmem:[#allocation2 + $0x290] sm:$0xff] %vm38_vm0, %v10265_v3  ;;  %124 = vst.msk [vmem:[#allocation2 + $0x2a0] sm:$0xff] %vm38_vm0, %v10265_v3  ;;  %9214 = vmatprep.mubr.msk.f32.mxu0 %vm188_vm2, %v154_v37  ;;  %9275 = vmatprep.mubr.msk.f32.mxu1 %vm188_vm2, %v152_v33  ;;  %v530_v2 = vld [vmem:[%s17413_s1 + $0xa0] sm:$0xff]  ;;  %v169_v4 = vld [vmem:[%s17412_s2 + $0xa8] sm:$0xff] }
  0x1e   :  { %125 = vst.msk [vmem:[#allocation2 + $0x2a8] sm:$0xff] %vm38_vm0, %v10265_v3  ;;  %127 = vst.msk [vmem:[#allocation2 + $0x2b8] sm:$0xff] %vm38_vm0, %v10265_v3  ;;  %v170_v5 = vld [vmem:[%s17412_s2 + $0xb0] sm:$0xff]  ;;  %v533_v7 = vld [vmem:[%s17413_s1 + $0xb8] sm:$0xff] }
  0x1f   :  { %128 = vst.msk [vmem:[#allocation2 + $0x2c0] sm:$0xff] %vm38_vm0, %v10265_v3  ;;  %130 = vst.msk [vmem:[#allocation2 + $0x2d0] sm:$0xff] %vm38_vm0, %v10265_v3  ;;  %594 = vrot.lane.b32.xlu0 %v520_v46, %s10266_s21  ;;  %596 = vrot.lane.b32.xlu1 %v521_v47, %s10266_s21  ;;  %v532_v6 = vld [vmem:[%s17413_s1 + $0xb0] sm:$0xff]  ;;  %v171_v8 = vld [vmem:[%s17412_s2 + $0xb8] sm:$0xff] }
  0x20   :  { %131 = vst.msk [vmem:[#allocation2 + $0x2d8] sm:$0xff] %vm38_vm0, %v10265_v3  ;;  %133 = vst.msk [vmem:[#allocation2 + $0x2e8] sm:$0xff] %vm38_vm0, %v10265_v3  ;;  %9215 = vmatmul.mubr.msk.f32.gmra.mrb[6].mxu0 %vm188_vm2, %v155_v40  ;;  %9276 = vmatmul.mubr.msk.f32.gmra.mrb[4].mxu1 %vm188_vm2, %v153_v36  ;;  %v172_v9 = vld [vmem:[%s17412_s2 + $0xc0] sm:$0xff]  ;;  %v535_v11 = vld [vmem:[%s17413_s1 + $0xc8] sm:$0xff] }
  0x21   :  { %134 = vst.msk [vmem:[#allocation2 + $0x2f0] sm:$0xff] %vm38_vm0, %v10265_v3  ;;  %136 = vst.msk [vmem:[#allocation2 + $0x300] sm:$0xff] %vm38_vm0, %v10265_v3  ;;  %9217 = vmatprep.mubr.msk.f32.mxu0 %vm188_vm2, %v156_v41  ;;  %9278 = vmatprep.mubr.msk.f32.mxu1 %vm188_vm2, %v154_v37  ;;  %v534_v10 = vld [vmem:[%s17413_s1 + $0xc0] sm:$0xff]  ;;  %v173_v12 = vld [vmem:[%s17412_s2 + $0xc8] sm:$0xff] }
  0x22   :  { %137 = vst.msk [vmem:[#allocation2 + $0x308] sm:$0xff] %vm38_vm0, %v10265_v3  ;;  %139 = vst.msk [vmem:[#allocation2 + $0x318] sm:$0xff] %vm38_vm0, %v10265_v3  ;;  %v174_v13 = vld [vmem:[%s17412_s2 + $0xd0] sm:$0xff]  ;;  %v537_v15 = vld [vmem:[%s17413_s1 + $0xd8] sm:$0xff] }
  0x23   :  { %140 = vst.msk [vmem:[#allocation2 + $0x320] sm:$0xff] %vm38_vm0, %v10265_v3  ;;  %142 = vst.msk [vmem:[#allocation2 + $0x330] sm:$0xff] %vm38_vm0, %v10265_v3  ;;  %598 = vrot.lane.b32.xlu0 %v522_v50, %s10266_s21  ;;  %600 = vrot.lane.b32.xlu1 %v523_v51, %s10266_s21  ;;  %v536_v14 = vld [vmem:[%s17413_s1 + $0xd0] sm:$0xff]  ;;  %v175_v16 = vld [vmem:[%s17412_s2 + $0xd8] sm:$0xff] }
  0x24   :  { %143 = vst.msk [vmem:[#allocation2 + $0x338] sm:$0xff] %vm38_vm0, %v10265_v3  ;;  %145 = vst.msk [vmem:[#allocation2 + $0x348] sm:$0xff] %vm38_vm0, %v10265_v3  ;;  %9218 = vmatmul.mubr.msk.f32.gmra.mrb[8].mxu0 %vm188_vm2, %v157_v44  ;;  %9279 = vmatmul.mubr.msk.f32.gmra.mrb[6].mxu1 %vm188_vm2, %v155_v40  ;;  %v176_v17 = vld [vmem:[%s17412_s2 + $0xe0] sm:$0xff]  ;;  %v539_v19 = vld [vmem:[%s17413_s1 + $0xe8] sm:$0xff] }
  0x25   :  { %146 = vst.msk [vmem:[#allocation2 + $0x350] sm:$0xff] %vm38_vm0, %v10265_v3  ;;  %5413 = vst [vmem:[#allocation3] sm:$0xff] %v10265_v3  ;;  %9220 = vmatprep.mubr.msk.f32.mxu0 %vm188_vm2, %v158_v45  ;;  %9281 = vmatprep.mubr.msk.f32.mxu1 %vm188_vm2, %v156_v41  ;;  %v538_v18 = vld [vmem:[%s17413_s1 + $0xe0] sm:$0xff]  ;;  %v177_v20 = vld [vmem:[%s17412_s2 + $0xe8] sm:$0xff] }
  0x26   :  { %5414 = vst [vmem:[#allocation3 + $0x8] sm:$0xff] %v10265_v3  ;;  %5415 = vst [vmem:[#allocation3 + $0x10] sm:$0x3] %v10265_v3  ;;  %v178_v21 = vld [vmem:[%s17412_s2 + $0xf0] sm:$0xff]  ;;  %v541_v23 = vld [vmem:[%s17413_s1 + $0xf8] sm:$0xff] }
  0x27   :  { %5416 = vst [vmem:[#allocation3 + $0x18] sm:$0xff] %v10265_v3  ;;  %5417 = vst [vmem:[#allocation3 + $0x20] sm:$0xff] %v10265_v3  ;;  %602 = vrot.lane.b32.xlu0 %v524_v54, %s10266_s21  ;;  %604 = vrot.lane.b32.xlu1 %v525_v55, %s10266_s21  ;;  %v540_v22 = vld [vmem:[%s17413_s1 + $0xf0] sm:$0xff]  ;;  %v179_v24 = vld [vmem:[%s17412_s2 + $0xf8] sm:$0xff]  ;;  %s10267_s2 = smov 8  }
  0x28   :  { %5418 = vst [vmem:[#allocation3 + $0x28] sm:$0x3] %v10265_v3  ;;  %5419 = vst [vmem:[#allocation3 + $0x30] sm:$0xff] %v10265_v3  ;;  %9221 = vmatmul.mubr.msk.f32.gmra.mrb[10].mxu0 %vm188_vm2, %v159_v48  ;;  %9282 = vmatmul.mubr.msk.f32.gmra.mrb[8].mxu1 %vm188_vm2, %v157_v44  ;;  %v8858_v25 = vld [vmem:[%s17413_s1 + $0x100] sm:$0xff]  ;;  %v8859_v26 = vld [vmem:[%s17413_s1 + $0x108] sm:$0xff] }
  0x29   :  { %5420 = vst [vmem:[#allocation3 + $0x38] sm:$0xff] %v10265_v3  ;;  %5421 = vst [vmem:[#allocation3 + $0x40] sm:$0x3] %v10265_v3  ;;  %9223 = vmatprep.mubr.msk.f32.mxu0 %vm188_vm2, %v160_v49  ;;  %9284 = vmatprep.mubr.msk.f32.mxu1 %vm188_vm2, %v158_v45  ;;  %v1260_v27 = vld [vmem:[#allocation2 + $0x1] sm:$0xff]  ;;  %v8860_v30 = vld [vmem:[%s17413_s1 + $0x110] sm:$0xff] }
  0x2a   :  { %5422 = vst [vmem:[#allocation3 + $0x48] sm:$0xff] %v10265_v3  ;;  %5423 = vst [vmem:[#allocation3 + $0x50] sm:$0xff] %v10265_v3  ;;  %v1324_v29 = vld [vmem:[#allocation2 + $0x2] sm:$0xff]  ;;  %v8861_v33 = vld [vmem:[%s17413_s1 + $0x118] sm:$0xff] }
  0x2b   :  { %5424 = vst [vmem:[#allocation3 + $0x58] sm:$0x3] %v10265_v3  ;;  %5425 = vst [vmem:[#allocation3 + $0x60] sm:$0xff] %v10265_v3  ;;  %606 = vrot.lane.b32.xlu0 %v526_v58, %s10266_s21  ;;  %608 = vrot.lane.b32.xlu1 %v527_v59, %s10266_s21  ;;  %v8863_v32 = vld [vmem:[%s17413_s1 + $0x128] sm:$0xff]  ;;  %v8865_v34 = vld [vmem:[%s17413_s1 + $0x138] sm:$0xff] }
  0x2c   :  { %5426 = vst [vmem:[#allocation3 + $0x68] sm:$0xff] %v10265_v3  ;;  %5427 = vst [vmem:[#allocation3 + $0x70] sm:$0x3] %v10265_v3  ;;  %9224 = vmatmul.mubr.msk.f32.gmra.mrb[12].mxu0 %vm188_vm2, %v161_v52  ;;  %9285 = vmatmul.mubr.msk.f32.gmra.mrb[10].mxu1 %vm188_vm2, %v159_v48  ;;  %v8862_v35 = vld [vmem:[%s17413_s1 + $0x120] sm:$0xff]  ;;  %v8867_v36 = vld [vmem:[%s17413_s1 + $0x148] sm:$0xff] }
  0x2d   :  { %5428 = vst [vmem:[#allocation3 + $0x78] sm:$0xff] %v10265_v3  ;;  %5429 = vst [vmem:[#allocation3 + $0x80] sm:$0xff] %v10265_v3  ;;  %9226 = vmatprep.mubr.msk.f32.mxu0 %vm188_vm2, %v162_v53  ;;  %9287 = vmatprep.mubr.msk.f32.mxu1 %vm188_vm2, %v160_v49  ;;  %v8864_v37 = vld [vmem:[%s17413_s1 + $0x130] sm:$0xff]  ;;  %v8869_v38 = vld [vmem:[%s17413_s1 + $0x158] sm:$0xff] }
  0x2e   :  { %5430 = vst [vmem:[#allocation3 + $0x88] sm:$0x3] %v10265_v3  ;;  %5431 = vst [vmem:[#allocation3 + $0x90] sm:$0xff] %v10265_v3  ;;  %v8866_v39 = vld [vmem:[%s17413_s1 + $0x140] sm:$0xff]  ;;  %v8871_v40 = vld [vmem:[%s17413_s1 + $0x168] sm:$0xff] }
  0x2f   :  { %5432 = vst [vmem:[#allocation3 + $0x98] sm:$0xff] %v10265_v3  ;;  %5433 = vst [vmem:[#allocation3 + $0xa0] sm:$0x3] %v10265_v3  ;;  %610 = vrot.lane.b32.xlu0 %v528_v62, %s10266_s21  ;;  %612 = vrot.lane.b32.xlu1 %v529_v63, %s10266_s21  ;;  %v8868_v41 = vld [vmem:[%s17413_s1 + $0x150] sm:$0xff]  ;;  %v8870_v42 = vld [vmem:[%s17413_s1 + $0x160] sm:$0xff] }
  0x30   :  { %5434 = vst [vmem:[#allocation3 + $0xa8] sm:$0xff] %v10265_v3  ;;  %5435 = vst [vmem:[#allocation3 + $0xb0] sm:$0xff] %v10265_v3  ;;  %9227 = vmatmul.mubr.msk.f32.gmra.mrb[14].mxu0 %vm188_vm2, %v163_v56  ;;  %9288 = vmatmul.mubr.msk.f32.gmra.mrb[12].mxu1 %vm188_vm2, %v161_v52 }
  0x31   :  { %5436 = vst [vmem:[#allocation3 + $0xb8] sm:$0x3] %v10265_v3  ;;  %5437 = vst [vmem:[#allocation3 + $0xc0] sm:$0xff] %v10265_v3  ;;  %9229 = vmatprep.mubr.msk.f32.mxu0 %vm188_vm2, %v164_v57  ;;  %9290 = vmatprep.mubr.msk.f32.mxu1 %vm188_vm2, %v162_v53 }
  0x32   :  { %5438 = vst [vmem:[#allocation3 + $0xc8] sm:$0xff] %v10265_v3  ;;  %5439 = vst [vmem:[#allocation3 + $0xd0] sm:$0x3] %v10265_v3 }
  0x33   :  { %5440 = vst [vmem:[#allocation3 + $0xd8] sm:$0xff] %v10265_v3  ;;  %5441 = vst [vmem:[#allocation3 + $0xe0] sm:$0xff] %v10265_v3  ;;  %614 = vrot.lane.b32.xlu0 %v530_v2, %s10266_s21 }
  0x34   :  { %5442 = vst [vmem:[#allocation3 + $0xe8] sm:$0x3] %v10265_v3  ;;  %5443 = vst [vmem:[#allocation3 + $0xf0] sm:$0xff] %v10265_v3  ;;  %9230 = vmatmul.mubr.msk.f32.gmra.mrb[16].mxu0 %vm188_vm2, %v165_v60  ;;  %9291 = vmatmul.mubr.msk.f32.gmra.mrb[14].mxu1 %vm188_vm2, %v163_v56 }
  0x35   :  { %5444 = vst [vmem:[#allocation3 + $0xf8] sm:$0xff] %v10265_v3  ;;  %5445 = vst [vmem:[#allocation3 + $0x100] sm:$0x3] %v10265_v3  ;;  %9232 = vmatprep.mubr.msk.f32.mxu0 %vm188_vm2, %v166_v61  ;;  %9293 = vmatprep.mubr.msk.f32.mxu1 %vm188_vm2, %v164_v57 }
  0x36   :  { %5446 = vst [vmem:[#allocation3 + $0x108] sm:$0xff] %v10265_v3  ;;  %5447 = vst [vmem:[#allocation3 + $0x110] sm:$0xff] %v10265_v3 }
  0x37   :  { %5448 = vst [vmem:[#allocation3 + $0x118] sm:$0x3] %v10265_v3  ;;  %5449 = vst [vmem:[#allocation3 + $0x120] sm:$0xff] %v10265_v3  ;;  %618 = vrot.lane.b32.xlu0 %v532_v6, %s10266_s21 }
  0x38   :  { %5450 = vst [vmem:[#allocation3 + $0x128] sm:$0xff] %v10265_v3  ;;  %5451 = vst [vmem:[#allocation3 + $0x130] sm:$0x3] %v10265_v3  ;;  %9233 = vmatmul.mubr.msk.f32.gmra.mrb[18].mxu0 %vm188_vm2, %v167_v0  ;;  %9294 = vmatmul.mubr.msk.f32.gmra.mrb[16].mxu1 %vm188_vm2, %v165_v60 }
  0x39   :  { %5452 = vst [vmem:[#allocation3 + $0x138] sm:$0xff] %v10265_v3  ;;  %5453 = vst [vmem:[#allocation3 + $0x140] sm:$0xff] %v10265_v3  ;;  %9235 = vmatprep.mubr.msk.f32.mxu0 %vm188_vm2, %v168_v1  ;;  %9296 = vmatprep.mubr.msk.f32.mxu1 %vm188_vm2, %v166_v61 }
  0x3a   :  { %5454 = vst [vmem:[#allocation3 + $0x148] sm:$0x3] %v10265_v3  ;;  %5455 = vst [vmem:[#allocation3 + $0x150] sm:$0xff] %v10265_v3 }
  0x3b   :  { %5456 = vst [vmem:[#allocation3 + $0x158] sm:$0xff] %v10265_v3  ;;  %5457 = vst [vmem:[#allocation3 + $0x160] sm:$0x3] %v10265_v3  ;;  %622 = vrot.lane.b32.xlu0 %v534_v10, %s10266_s21 }
  0x3c   :  { %5458 = vst [vmem:[#allocation3 + $0x168] sm:$0xff] %v10265_v3  ;;  %5459 = vst [vmem:[#allocation3 + $0x170] sm:$0xff] %v10265_v3  ;;  %9236 = vmatmul.mubr.msk.f32.gmra.mrb[20].mxu0 %vm188_vm2, %v169_v4  ;;  %9297 = vmatmul.mubr.msk.f32.gmra.mrb[18].mxu1 %vm188_vm2, %v167_v0 }
  0x3d   :  { %5460 = vst [vmem:[#allocation3 + $0x178] sm:$0x3] %v10265_v3  ;;  %5461 = vst [vmem:[#allocation3 + $0x180] sm:$0xff] %v10265_v3  ;;  %9238 = vmatprep.mubr.msk.f32.mxu0 %vm188_vm2, %v170_v5  ;;  %9299 = vmatprep.mubr.msk.f32.mxu1 %vm188_vm2, %v168_v1 }
  0x3e   :  { %5462 = vst [vmem:[#allocation3 + $0x188] sm:$0xff] %v10265_v3  ;;  %5463 = vst [vmem:[#allocation3 + $0x190] sm:$0x3] %v10265_v3 }
  0x3f   :  { %5464 = vst [vmem:[#allocation3 + $0x198] sm:$0xff] %v10265_v3  ;;  %5465 = vst [vmem:[#allocation3 + $0x1a0] sm:$0xff] %v10265_v3  ;;  %626 = vrot.lane.b32.xlu0 %v536_v14, %s10266_s21 }
  0x40   :  { %5466 = vst [vmem:[#allocation3 + $0x1a8] sm:$0x3] %v10265_v3  ;;  %5467 = vst [vmem:[#allocation3 + $0x1b0] sm:$0xff] %v10265_v3  ;;  %9239 = vmatmul.mubr.msk.f32.gmra.mrb[22].mxu0 %vm188_vm2, %v171_v8  ;;  %9300 = vmatmul.mubr.msk.f32.gmra.mrb[20].mxu1 %vm188_vm2, %v169_v4 }
  0x41   :  { %5468 = vst [vmem:[#allocation3 + $0x1b8] sm:$0xff] %v10265_v3  ;;  %5469 = vst [vmem:[#allocation3 + $0x1c0] sm:$0x3] %v10265_v3  ;;  %9241 = vmatprep.mubr.msk.f32.mxu0 %vm188_vm2, %v172_v9  ;;  %9302 = vmatprep.mubr.msk.f32.mxu1 %vm188_vm2, %v170_v5 }
  0x42   :  { %5470 = vst [vmem:[#allocation3 + $0x1c8] sm:$0xff] %v10265_v3  ;;  %5471 = vst [vmem:[#allocation3 + $0x1d0] sm:$0xff] %v10265_v3 }
  0x43   :  { %5472 = vst [vmem:[#allocation3 + $0x1d8] sm:$0x3] %v10265_v3  ;;  %5473 = vst [vmem:[#allocation3 + $0x1e0] sm:$0xff] %v10265_v3  ;;  %630 = vrot.lane.b32.xlu0 %v538_v18, %s10266_s21 }
  0x44   :  { %5474 = vst [vmem:[#allocation3 + $0x1e8] sm:$0xff] %v10265_v3  ;;  %5475 = vst [vmem:[#allocation3 + $0x1f0] sm:$0x3] %v10265_v3  ;;  %9242 = vmatmul.mubr.msk.f32.gmra.mrb[24].mxu0 %vm188_vm2, %v173_v12  ;;  %9303 = vmatmul.mubr.msk.f32.gmra.mrb[22].mxu1 %vm188_vm2, %v171_v8 }
  0x45   :  { %5476 = vst [vmem:[#allocation3 + $0x1f8] sm:$0xff] %v10265_v3  ;;  %5477 = vst [vmem:[#allocation3 + $0x200] sm:$0xff] %v10265_v3  ;;  %9244 = vmatprep.mubr.msk.f32.mxu0 %vm188_vm2, %v174_v13  ;;  %9305 = vmatprep.mubr.msk.f32.mxu1 %vm188_vm2, %v172_v9 }
  0x46   :  { %5478 = vst [vmem:[#allocation3 + $0x208] sm:$0x3] %v10265_v3  ;;  %5479 = vst [vmem:[#allocation3 + $0x210] sm:$0xff] %v10265_v3 }
  0x47   :  { %5480 = vst [vmem:[#allocation3 + $0x218] sm:$0xff] %v10265_v3  ;;  %5481 = vst [vmem:[#allocation3 + $0x220] sm:$0x3] %v10265_v3  ;;  %634 = vrot.lane.b32.xlu0 %v540_v22, %s10266_s21 }
  0x48   :  { %5482 = vst [vmem:[#allocation3 + $0x228] sm:$0xff] %v10265_v3  ;;  %5483 = vst [vmem:[#allocation3 + $0x230] sm:$0xff] %v10265_v3  ;;  %9245 = vmatmul.mubr.msk.f32.gmra.mrb[26].mxu0 %vm188_vm2, %v175_v16  ;;  %9306 = vmatmul.mubr.msk.f32.gmra.mrb[24].mxu1 %vm188_vm2, %v173_v12 }
  0x49   :  { %5484 = vst [vmem:[#allocation3 + $0x238] sm:$0x3] %v10265_v3  ;;  %5485 = vst [vmem:[#allocation3 + $0x240] sm:$0xff] %v10265_v3  ;;  %9247 = vmatprep.mubr.msk.f32.mxu0 %vm188_vm2, %v176_v17  ;;  %9308 = vmatprep.mubr.msk.f32.mxu1 %vm188_vm2, %v174_v13 }
  0x4a   :  { %5486 = vst [vmem:[#allocation3 + $0x248] sm:$0xff] %v10265_v3  ;;  %5487 = vst [vmem:[#allocation3 + $0x250] sm:$0x3] %v10265_v3 }
  0x4b   :  { %5488 = vst [vmem:[#allocation3 + $0x258] sm:$0xff] %v10265_v3  ;;  %5489 = vst [vmem:[#allocation3 + $0x260] sm:$0xff] %v10265_v3  ;;  %1035 = vrot.lane.b32.xlu0 %v8858_v25, %s10266_s21 }
  0x4c   :  { %5490 = vst [vmem:[#allocation3 + $0x268] sm:$0x3] %v10265_v3  ;;  %5491 = vst [vmem:[#allocation3 + $0x270] sm:$0xff] %v10265_v3  ;;  %9248 = vmatmul.mubr.msk.f32.gmra.mrb[28].mxu0 %vm188_vm2, %v177_v20  ;;  %9309 = vmatmul.mubr.msk.f32.gmra.mrb[26].mxu1 %vm188_vm2, %v175_v16 }
  0x4d   :  { %5492 = vst [vmem:[#allocation3 + $0x278] sm:$0xff] %v10265_v3  ;;  %5493 = vst [vmem:[#allocation3 + $0x280] sm:$0x3] %v10265_v3  ;;  %9250 = vmatprep.mubr.msk.f32.mxu0 %vm188_vm2, %v178_v21  ;;  %9311 = vmatprep.mubr.msk.f32.mxu1 %vm188_vm2, %v176_v17 }
  0x4e   :  { %5494 = vst [vmem:[#allocation3 + $0x288] sm:$0xff] %v10265_v3  ;;  %5495 = vst [vmem:[#allocation3 + $0x290] sm:$0xff] %v10265_v3 }
  0x4f   :  { %5496 = vst [vmem:[#allocation3 + $0x298] sm:$0x3] %v10265_v3  ;;  %5497 = vst [vmem:[#allocation3 + $0x2a0] sm:$0xff] %v10265_v3  ;;  %1837 = vrot.lane.b32.xlu0 %v1260_v27, %s10267_s2 }
  0x50   :  { %5498 = vst [vmem:[#allocation3 + $0x2a8] sm:$0xff] %v10265_v3  ;;  %5499 = vst [vmem:[#allocation3 + $0x2b0] sm:$0x3] %v10265_v3  ;;  %9251 = vmatmul.mubr.msk.f32.gmra.mrb[30].mxu0 %vm188_vm2, %v179_v24  ;;  %9312 = vmatmul.mubr.msk.f32.gmra.mrb[28].mxu1 %vm188_vm2, %v177_v20 }
  0x51   :  { %5500 = vst [vmem:[#allocation3 + $0x2b8] sm:$0xff] %v10265_v3  ;;  %5501 = vst [vmem:[#allocation3 + $0x2c0] sm:$0xff] %v10265_v3  ;;  %9314 = vmatprep.mubr.msk.f32.mxu1 %vm188_vm2, %v178_v21 }
  0x52   :  { %5502 = vst [vmem:[#allocation3 + $0x2c8] sm:$0x3] %v10265_v3  ;;  %5503 = vst [vmem:[#allocation3 + $0x2d0] sm:$0xff] %v10265_v3 }
  0x53   :  { %5504 = vst [vmem:[#allocation3 + $0x2d8] sm:$0xff] %v10265_v3  ;;  %5505 = vst [vmem:[#allocation3 + $0x2e0] sm:$0x3] %v10265_v3  ;;  %2093 = vrot.lane.b32.xlu0 %v1324_v29, %s10268_s12 }
  0x54   :  { %5506 = vst [vmem:[#allocation3 + $0x2e8] sm:$0xff] %v10265_v3  ;;  %5507 = vst [vmem:[#allocation3 + $0x2f0] sm:$0xff] %v10265_v3  ;;  %9315 = vmatmul.mubr.msk.f32.gmra.mrb[30].mxu1 %vm188_vm2, %v179_v24 }
  0x55   :  { %5508 = vst [vmem:[#allocation3 + $0x2f8] sm:$0x3] %v10265_v3  ;;  %5509 = vst [vmem:[#allocation3 + $0x300] sm:$0xff] %v10265_v3 }
  0x56   :  { %5510 = vst [vmem:[#allocation3 + $0x308] sm:$0xff] %v10265_v3  ;;  %5511 = vst [vmem:[#allocation3 + $0x310] sm:$0x3] %v10265_v3 }
  0x57   :  { %5512 = vst [vmem:[#allocation3 + $0x318] sm:$0xff] %v10265_v3  ;;  %5513 = vst [vmem:[#allocation3 + $0x320] sm:$0xff] %v10265_v3 }
  0x58   :  { %5514 = vst [vmem:[#allocation3 + $0x328] sm:$0x3] %v10265_v3  ;;  %5515 = vst [vmem:[#allocation3 + $0x330] sm:$0xff] %v10265_v3 }
  0x59   :  { %5516 = vst [vmem:[#allocation3 + $0x338] sm:$0xff] %v10265_v3  ;;  %5517 = vst [vmem:[#allocation3 + $0x340] sm:$0x3] %v10265_v3 }
  0x5a   :  { %5518 = vst [vmem:[#allocation3 + $0x348] sm:$0xff] %v10265_v3  ;;  %5519 = vst [vmem:[#allocation3 + $0x350] sm:$0xff] %v10265_v3 }
  0x5b   :  { %5520 = vst [vmem:[#allocation3 + $0x358] sm:$0x3] %v10265_v3  ;;  %42 = vst.msk [vmem:[#allocation2 + $0x10] sm:$0x3] %vm41_vm1, %v10265_v3 }
  0x5c   :  { %45 = vst.msk [vmem:[#allocation2 + $0x28] sm:$0x3] %vm41_vm1, %v10265_v3  ;;  %48 = vst.msk [vmem:[#allocation2 + $0x40] sm:$0x3] %vm41_vm1, %v10265_v3 }
  0x5d   :  { %51 = vst.msk [vmem:[#allocation2 + $0x58] sm:$0x3] %vm41_vm1, %v10265_v3  ;;  %54 = vst.msk [vmem:[#allocation2 + $0x70] sm:$0x3] %vm41_vm1, %v10265_v3 }
  0x5e   :  { %57 = vst.msk [vmem:[#allocation2 + $0x88] sm:$0x3] %vm41_vm1, %v10265_v3  ;;  %60 = vst.msk [vmem:[#allocation2 + $0xa0] sm:$0x3] %vm41_vm1, %v10265_v3 }
  0x5f   :  { %63 = vst.msk [vmem:[#allocation2 + $0xb8] sm:$0x3] %vm41_vm1, %v10265_v3  ;;  %66 = vst.msk [vmem:[#allocation2 + $0xd0] sm:$0x3] %vm41_vm1, %v10265_v3 }
  0x60   :  { %69 = vst.msk [vmem:[#allocation2 + $0xe8] sm:$0x3] %vm41_vm1, %v10265_v3  ;;  %72 = vst.msk [vmem:[#allocation2 + $0x100] sm:$0x3] %vm41_vm1, %v10265_v3 }
  0x61   :  { %75 = vst.msk [vmem:[#allocation2 + $0x118] sm:$0x3] %vm41_vm1, %v10265_v3  ;;  %78 = vst.msk [vmem:[#allocation2 + $0x130] sm:$0x3] %vm41_vm1, %v10265_v3 }
  0x62   :  { %81 = vst.msk [vmem:[#allocation2 + $0x148] sm:$0x3] %vm41_vm1, %v10265_v3  ;;  %84 = vst.msk [vmem:[#allocation2 + $0x160] sm:$0x3] %vm41_vm1, %v10265_v3  ;;  %v1261_v28 = vld [vmem:[#allocation2 + $0x9] sm:$0xff] }
  0x63   :  { %87 = vst.msk [vmem:[#allocation2 + $0x178] sm:$0x3] %vm41_vm1, %v10265_v3  ;;  %90 = vst.msk [vmem:[#allocation2 + $0x190] sm:$0x3] %vm41_vm1, %v10265_v3  ;;  %v1325_v31 = vld [vmem:[#allocation2 + $0xa] sm:$0xff] }
  0x64   :  { %93 = vst.msk [vmem:[#allocation2 + $0x1a8] sm:$0x3] %vm41_vm1, %v10265_v3  ;;  %96 = vst.msk [vmem:[#allocation2 + $0x1c0] sm:$0x3] %vm41_vm1, %v10265_v3  ;;  %2095 = vrot.lane.b32.xlu0 %v1325_v31, %s10268_s12 }
  0x65   :  { %99 = vst.msk [vmem:[#allocation2 + $0x1d8] sm:$0x3] %vm41_vm1, %v10265_v3  ;;  %102 = vst.msk [vmem:[#allocation2 + $0x1f0] sm:$0x3] %vm41_vm1, %v10265_v3 }
  0x66   :  { %105 = vst.msk [vmem:[#allocation2 + $0x208] sm:$0x3] %vm41_vm1, %v10265_v3  ;;  %108 = vst.msk [vmem:[#allocation2 + $0x220] sm:$0x3] %vm41_vm1, %v10265_v3 }
  0x67   :  { %111 = vst.msk [vmem:[#allocation2 + $0x238] sm:$0x3] %vm41_vm1, %v10265_v3  ;;  %114 = vst.msk [vmem:[#allocation2 + $0x250] sm:$0x3] %vm41_vm1, %v10265_v3 }
  0x68   :  { %117 = vst.msk [vmem:[#allocation2 + $0x268] sm:$0x3] %vm41_vm1, %v10265_v3  ;;  %120 = vst.msk [vmem:[#allocation2 + $0x280] sm:$0x3] %vm41_vm1, %v10265_v3  ;;  %1041 = vrot.lane.b32.xlu0 %v8861_v33, %s10266_s21 }
  0x69   :  { %123 = vst.msk [vmem:[#allocation2 + $0x298] sm:$0x3] %vm41_vm1, %v10265_v3  ;;  %126 = vst.msk [vmem:[#allocation2 + $0x2b0] sm:$0x3] %vm41_vm1, %v10265_v3 }
  0x6a   :  { %129 = vst.msk [vmem:[#allocation2 + $0x2c8] sm:$0x3] %vm41_vm1, %v10265_v3  ;;  %132 = vst.msk [vmem:[#allocation2 + $0x2e0] sm:$0x3] %vm41_vm1, %v10265_v3 }
  0x6b   :  { %135 = vst.msk [vmem:[#allocation2 + $0x2f8] sm:$0x3] %vm41_vm1, %v10265_v3  ;;  %138 = vst.msk [vmem:[#allocation2 + $0x310] sm:$0x3] %vm41_vm1, %v10265_v3 }
  0x6c   :  { %141 = vst.msk [vmem:[#allocation2 + $0x328] sm:$0x3] %vm41_vm1, %v10265_v3  ;;  %144 = vst.msk [vmem:[#allocation2 + $0x340] sm:$0x3] %vm41_vm1, %v10265_v3  ;;  %1043 = vrot.lane.b32.xlu0 %v8862_v35, %s10266_s21 }
  0x6d   :  { %147 = vst.msk [vmem:[#allocation2 + $0x358] sm:$0x3] %vm41_vm1, %v10265_v3  ;;  %v531_v3 = vld [vmem:[%s17413_s1 + $0xa8] sm:$0xff] }
  0x6e   :  { %616 = vrot.lane.b32.xlu1 %v531_v3, %s10266_s21 }
  0x70   :  { %1047 = vrot.lane.b32.xlu0 %v8864_v37, %s10266_s21 }
  0x72   :  { %620 = vrot.lane.b32.xlu1 %v533_v7, %s10266_s21 }
  0x74   :  { %1051 = vrot.lane.b32.xlu0 %v8866_v39, %s10266_s21 }
  0x76   :  { %624 = vrot.lane.b32.xlu1 %v535_v11, %s10266_s21 }
  0x78   :  { %1055 = vrot.lane.b32.xlu0 %v8868_v41, %s10266_s21 }
  0x7a   :  { %628 = vrot.lane.b32.xlu1 %v537_v15, %s10266_s21 }
  0x7c   :  { %1059 = vrot.lane.b32.xlu0 %v8870_v42, %s10266_s21 }
  0x7d   :  { %v575_v43 = vpop.permute.xlu0 %574  ;;  %v579_v44 = vpop.permute.xlu1 %578 }
  0x7e   :  { %632 = vrot.lane.b32.xlu1 %v539_v19, %s10266_s21 }
  0x81   :  { %v577_v45 = vpop.permute.xlu0 %576  ;;  %v581_v46 = vpop.permute.xlu1 %580 }
  0x82   :  { %636 = vrot.lane.b32.xlu1 %v541_v23, %s10266_s21 }
  0x85   :  { %v583_v47 = vpop.permute.xlu0 %582  ;;  %v585_v48 = vpop.permute.xlu1 %584 }
  0x86   :  { %1037 = vrot.lane.b32.xlu1 %v8859_v26, %s10266_s21 }
  0x89   :  { %v11065_v49 = vpop.permute.xlu0 %586  ;;  %v11067_v50 = vpop.permute.xlu1 %588 }
  0x8a   :  { %1839 = vrot.lane.b32.xlu1 %v1261_v28, %s10267_s2 }
  0x8d   :  { %v11069_v51 = vpop.permute.xlu0 %590  ;;  %v11071_v52 = vpop.permute.xlu1 %592 }
  0x8e   :  { %1039 = vrot.lane.b32.xlu1 %v8860_v30, %s10266_s21 }
  0x91   :  { %v11073_v53 = vpop.permute.xlu0 %594  ;;  %v11075_v54 = vpop.permute.xlu1 %596 }
  0x92   :  { %1045 = vrot.lane.b32.xlu1 %v8863_v32, %s10266_s21 }
  0x95   :  { %v11077_v55 = vpop.permute.xlu0 %598  ;;  %v11081_v57 = vpop.permute.xlu1 %600 }
  0x96   :  { %1049 = vrot.lane.b32.xlu1 %v8865_v34, %s10266_s21 }
  0x99   :  { %v11079_v56 = vpop.permute.xlu0 %602  ;;  %v11085_v59 = vpop.permute.xlu1 %604 }
  0x9a   :  { %1053 = vrot.lane.b32.xlu1 %v8867_v36, %s10266_s21 }
  0x9d   :  { %v11083_v58 = vpop.permute.xlu0 %606  ;;  %v11089_v61 = vpop.permute.xlu1 %608 }
  0x9e   :  { %1057 = vrot.lane.b32.xlu1 %v8869_v38, %s10266_s21 }
  0xa1   :  { %v11087_v60 = vpop.permute.xlu0 %610  ;;  %v11093_v63 = vpop.permute.xlu1 %612 }
  0xa2   :  { %1061 = vrot.lane.b32.xlu1 %v8871_v40, %s10266_s21 }
  0xa5   :  { %v11091_v62 = vpop.permute.xlu0 %614 }
  0xa9   :  { %v11095_v0 = vpop.permute.xlu0 %618 }
  0xad   :  { %v11099_v2 = vpop.permute.xlu0 %622 }
  0xb1   :  { %v11103_v4 = vpop.permute.xlu0 %626 }
  0xb5   :  { %v11107_v6 = vpop.permute.xlu0 %630 }
  0xb9   :  { %v11111_v8 = vpop.permute.xlu0 %634 }
  0xbd   :  { %v1036_v10 = vpop.permute.xlu0 %1035 }
  0xc1   :  { %v11117_v12 = vpop.permute.xlu0 %1837 }
  0xc5   :  { %v11119_v14 = vpop.permute.xlu0 %2093 }
  0xd6   :  { %v11123_v16 = vpop.permute.xlu0 %2095 }
  0xda   :  { %v1042_v22 = vpop.permute.xlu0 %1041 }
  0xde   :  { %v1044_v33 = vpop.permute.xlu0 %1043 }
  0xe0   :  { %v11097_v1 = vpop.permute.xlu1 %616 }
  0xe4   :  { %v11101_v3 = vpop.permute.xlu1 %620 }
  0xe7   :  { %v9207_v17 = vpop.f32.mrb[0].mxu0 }
  0xe8   :  { %v11105_v5 = vpop.permute.xlu1 %624  ;;  %v672_v18 = vsel %vm670_vm3, %v9207_v17, %v577_v45  ;;  %v351_v19 = vpop.f32.mrb[1].mxu0 }
  0xe9   :  { %705 = vst.msk [vmem:[#allocation2 + $0x21] sm:$0xff] %vm38_vm0, %v672_v18  ;;  %v671_v21 = vsel %vm670_vm3, %v351_v19, %v575_v43 }
  0xea   :  { %704 = vst.msk [vmem:[#allocation2 + $0x19] sm:$0xff] %vm38_vm0, %v671_v21 }
  0xeb   :  { %v9210_v23 = vpop.f32.mrb[2].mxu0  ;;  %v9271_v35 = vpop.f32.mrb[0].mxu1 }
  0xec   :  { %v11109_v7 = vpop.permute.xlu1 %628  ;;  %v674_v24 = vsel %vm670_vm3, %v9210_v23, %v581_v46  ;;  %v361_v25 = vpop.f32.mrb[3].mxu0 }
  0xed   :  { %707 = vst.msk [vmem:[#allocation2 + $0x39] sm:$0xff] %vm38_vm0, %v674_v24  ;;  %v673_v26 = vsel %vm670_vm3, %v361_v25, %v579_v44  ;;  %v811_v38 = vpop.f32.mrb[1].mxu1  ;;  %v1048_v46 = vpop.permute.xlu0 %1047 }
  0xee   :  { %706 = vst.msk [vmem:[#allocation2 + $0x31] sm:$0xff] %vm38_vm0, %v673_v26  ;;  %v1131_v42 = vsel %vm670_vm3, %v811_v38, %v1036_v10  ;;  %v4339_v38 = vld [vmem:[%s17414_s3] sm:$0xff] }
  0xef   :  { %v9213_v28 = vpop.f32.mrb[4].mxu0  ;;  %1164 = vst.msk [vmem:[#allocation2 + $0x1c9] sm:$0xff] %vm38_vm0, %v1131_v42  ;;  %v9274_v45 = vpop.f32.mrb[2].mxu1 }
  0xf0   :  { %v11113_v9 = vpop.permute.xlu1 %632  ;;  %v1453_v29 = vld [vmem:[#allocation2 + $0x21] sm:$0xff]  ;;  %v676_v31 = vsel %vm670_vm3, %v9213_v28, %v585_v48  ;;  %v371_v32 = vpop.f32.mrb[5].mxu0  ;;  %v1134_v48 = vsel %vm670_vm3, %v9274_v45, %v1042_v22 }
  0xf1   :  { %v1327_v30 = vld [vmem:[#allocation2 + $0x22] sm:$0xff]  ;;  %2607 = vrot.lane.b32.xlu0 %v1453_v29, %s10269_s17  ;;  %709 = vst.msk [vmem:[#allocation2 + $0x51] sm:$0xff] %vm38_vm0, %v676_v31  ;;  %v675_v34 = vsel %vm670_vm3, %v371_v32, %v583_v47  ;;  %v11140_v39 = vld [vmem:[#allocation2 + $0x18] sm:$0xff]  ;;  %1167 = vst.msk [vmem:[#allocation2 + $0x1e9] sm:$0xff] %vm38_vm0, %v1134_v48 }
  0xf2   :  { %2099 = vrot.lane.b32.xlu1 %v1327_v30, %s10268_s12  ;;  %708 = vst.msk [vmem:[#allocation2 + $0x49] sm:$0xff] %vm38_vm0, %v675_v34  ;;  %v11155_v10 = vld [vmem:[#allocation2 + $0x20] sm:$0xff] }
  0xf3   :  { %v9216_v36 = vpop.f32.mrb[6].mxu0  ;;  %v1452_v23 = vld [vmem:[#allocation2 + $0x19] sm:$0xff] }
  0xf4   :  { %v11115_v11 = vpop.permute.xlu1 %636  ;;  %v678_v40 = vsel %vm670_vm3, %v9216_v36, %v11067_v50  ;;  %v381_v41 = vpop.f32.mrb[7].mxu0  ;;  %v1646_v28 = vld [vmem:[#allocation2 + $0x39] sm:$0xff] }
  0xf5   :  { %1843 = vrot.lane.b32.xlu0 %v1453_v29, %s10267_s2  ;;  %711 = vst.msk [vmem:[#allocation2 + $0x69] sm:$0xff] %vm38_vm0, %v678_v40  ;;  %v677_v44 = vsel %vm670_vm3, %v381_v41, %v11065_v49  ;;  %v821_v50 = vpop.f32.mrb[3].mxu1  ;;  %v1516_v32 = vld [vmem:[#allocation2 + $0x1a] sm:$0xff]  ;;  %v4340_v40 = vld [vmem:[%s17414_s3 + $0x8] sm:$0xff] }
  0xf6   :  { %2349 = vrot.lane.b32.xlu1 %v11140_v39, %s10270_s18  ;;  %710 = vst.msk [vmem:[#allocation2 + $0x61] sm:$0xff] %vm38_vm0, %v677_v44  ;;  %v1519_v48 = vld [vmem:[#allocation2 + $0x3a] sm:$0xff] }
  0xf7   :  { %v9219_v47 = vpop.f32.mrb[8].mxu0 }
  0xf8   :  { %v1038_v13 = vpop.permute.xlu1 %1037  ;;  %v391_v17 = vpop.f32.mrb[9].mxu0 }
  0xf9   :  { %v1132_v37 = vsel %vm670_vm3, %v9271_v35, %v1038_v13  ;;  %v680_v13 = vsel %vm670_vm3, %v9219_v47, %v11071_v52  ;;  %2863 = vrot.lane.b32.xlu0 %v1327_v30, %s10271_s19  ;;  %v679_v18 = vsel %vm670_vm3, %v391_v17, %v11069_v51  ;;  %v9277_v52 = vpop.f32.mrb[4].mxu1  ;;  %v1052_v51 = vpop.permute.xlu0 %1051 }
  0xfa   :  { %1165 = vst.msk [vmem:[#allocation2 + $0x1d1] sm:$0xff] %vm38_vm0, %v1132_v37  ;;  %2351 = vrot.lane.b32.xlu1 %v11155_v10, %s10270_s18  ;;  %713 = vst.msk [vmem:[#allocation2 + $0x81] sm:$0xff] %vm38_vm0, %v680_v13  ;;  %v831_v22 = vpop.f32.mrb[5].mxu1  ;;  %v4342_v13 = vld [vmem:[%s17414_s3 + $0x18] sm:$0xff] }
  0xfb   :  { %712 = vst.msk [vmem:[#allocation2 + $0x79] sm:$0xff] %vm38_vm0, %v679_v18  ;;  %v9222_v21 = vpop.f32.mrb[10].mxu0  ;;  %v1135_v26 = vsel %vm670_vm3, %v831_v22, %v1044_v33 }
  0xfc   :  { %v11121_v15 = vpop.permute.xlu1 %1839  ;;  %v682_v24 = vsel %vm670_vm3, %v9222_v21, %v11075_v54  ;;  %v401_v25 = vpop.f32.mrb[11].mxu0  ;;  %1168 = vst.msk [vmem:[#allocation2 + $0x1f9] sm:$0xff] %vm38_vm0, %v1135_v26 }
  0xfd   :  { %2605 = vrot.lane.b32.xlu0 %v1452_v23, %s10269_s17  ;;  %715 = vst.msk [vmem:[#allocation2 + $0x99] sm:$0xff] %vm38_vm0, %v682_v24  ;;  %v9280_v54 = vpop.f32.mrb[6].mxu1  ;;  %v1056_v37 = vpop.permute.xlu0 %1055  ;;  %v4343_v24 = vld [vmem:[%s17414_s3 + $0x20] sm:$0xff] }
  0xfe   :  { %1841 = vrot.lane.b32.xlu1 %v1452_v23, %s10267_s2  ;;  %v841_v31 = vpop.f32.mrb[7].mxu1 }
  0xff   :  { %v9225_v29 = vpop.f32.mrb[12].mxu0  ;;  %v1137_v35 = vsel %vm670_vm3, %v841_v31, %v1048_v46 }
 0x100   :  { %v1040_v20 = vpop.permute.xlu1 %1039  ;;  %v684_v33 = vsel %vm670_vm3, %v9225_v29, %v11081_v57  ;;  %v411_v34 = vpop.f32.mrb[13].mxu0  ;;  %1170 = vst.msk [vmem:[#allocation2 + $0x211] sm:$0xff] %vm38_vm0, %v1137_v35  ;;  %v1645_v35 = vld [vmem:[#allocation2 + $0x31] sm:$0xff] }
 0x101   :  { %v1133_v49 = vsel %vm670_vm3, %v821_v50, %v1040_v20  ;;  %3375 = vrot.lane.b32.xlu0 %v1646_v28, %s10272_s20  ;;  %717 = vst.msk [vmem:[#allocation2 + $0xb1] sm:$0xff] %vm38_vm0, %v684_v33  ;;  %v9283_v57 = vpop.f32.mrb[8].mxu1  ;;  %v4341_v50 = vld [vmem:[%s17414_s3 + $0x10] sm:$0xff]  ;;  %v1060_v23 = vpop.permute.xlu0 %1059 }
 0x102   :  { %1166 = vst.msk [vmem:[#allocation2 + $0x1e1] sm:$0xff] %vm38_vm0, %v1133_v49  ;;  %2861 = vrot.lane.b32.xlu1 %v1516_v32, %s10271_s19 }
 0x103   :  { %v9228_v41 = vpop.f32.mrb[14].mxu0 }
 0x104   :  { %v1046_v27 = vpop.permute.xlu1 %1045  ;;  %v686_v44 = vsel %vm670_vm3, %v9228_v41, %v11085_v59  ;;  %v421_v45 = vpop.f32.mrb[15].mxu0 }
 0x105   :  { %v1136_v20 = vsel %vm670_vm3, %v9277_v52, %v1046_v27  ;;  %v681_v27 = vsel %vm670_vm3, %v401_v25, %v11073_v53  ;;  %v683_v53 = vsel %vm670_vm3, %v411_v34, %v11077_v55  ;;  %v9591_v55 = vpack.c.bf16 %v4340_v40, %v4339_v38  ;;  %1847 = vrot.lane.b32.xlu0 %v1646_v28, %s10267_s2  ;;  %v4344_v25 = vld [vmem:[%s17414_s3 + $0x28] sm:$0xff]  ;;  %v4347_v40 = vld [vmem:[%s17414_s3 + $0x40] sm:$0xff] }
 0x106   :  { %1169 = vst.msk [vmem:[#allocation2 + $0x201] sm:$0xff] %vm38_vm0, %v1136_v20  ;;  %714 = vst.msk [vmem:[#allocation2 + $0x91] sm:$0xff] %vm38_vm0, %v681_v27  ;;  %2097 = vrot.lane.b32.xlu1 %v1516_v32, %s10268_s12  ;;  %v685_v47 = vsel %vm670_vm3, %v421_v45, %v11079_v56  ;;  %v9595_v56 = vpack.c.bf16 %v4342_v13, %v4341_v50  ;;  %v4346_v32 = vld [vmem:[%s17414_s3 + $0x38] sm:$0xff] }
 0x107   :  { %716 = vst.msk [vmem:[#allocation2 + $0xa9] sm:$0xff] %vm38_vm0, %v683_v53  ;;  %719 = vst.msk [vmem:[#allocation2 + $0xc9] sm:$0xff] %vm38_vm0, %v686_v44  ;;  %9592 = vmatprep.subr.bf16.mxu0 %v9591_v55  ;;  %v9231_v17 = vpop.f32.mrb[16].mxu0  ;;  %v1521_v13 = vld [vmem:[#allocation2 + $0x52] sm:$0xff] }
 0x108   :  { %v1050_v43 = vpop.permute.xlu1 %1049  ;;  %718 = vst.msk [vmem:[#allocation2 + $0xc1] sm:$0xff] %vm38_vm0, %v685_v47  ;;  %9594 = vmatpush3.bf16.msra.mxu0 %v9591_v55  ;;  %v688_v52 = vsel %vm670_vm3, %v9231_v17, %v11089_v61  ;;  %v1518_v55 = vld [vmem:[#allocation2 + $0x32] sm:$0xff]  ;;  %v1520_v17 = vld [vmem:[#allocation2 + $0x4a] sm:$0xff] }
 0x109   :  { %v1138_v30 = vsel %vm670_vm3, %v9280_v54, %v1050_v43  ;;  %v851_v43 = vpop.f32.mrb[9].mxu1  ;;  %2867 = vrot.lane.b32.xlu0 %v1519_v48, %s10271_s19  ;;  %721 = vst.msk [vmem:[#allocation2 + $0xe1] sm:$0xff] %vm38_vm0, %v688_v52  ;;  %9596 = vmatprep.subr.bf16.mxu0 %v9595_v56  ;;  %v1649_v52 = vld [vmem:[#allocation2 + $0x61] sm:$0xff] }
 0x10a   :  { %1171 = vst.msk [vmem:[#allocation2 + $0x219] sm:$0xff] %vm38_vm0, %v1138_v30  ;;  %v1139_v46 = vsel %vm670_vm3, %v851_v43, %v1052_v51  ;;  %v9286_v59 = vpop.f32.mrb[10].mxu1  ;;  %2611 = vrot.lane.b32.xlu1 %v1646_v28, %s10269_s17  ;;  %v11236_v28 = vld [vmem:[#allocation2 + $0x30] sm:$0xff] }
 0x10b   :  { %1172 = vst.msk [vmem:[#allocation2 + $0x229] sm:$0xff] %vm38_vm0, %v1139_v46  ;;  %v861_v18 = vpop.f32.mrb[11].mxu1  ;;  %v1648_v46 = vld [vmem:[#allocation2 + $0x51] sm:$0xff] }
 0x10c   :  { %v1054_v19 = vpop.permute.xlu1 %1053  ;;  %v1141_v21 = vsel %vm670_vm3, %v861_v18, %v1056_v37  ;;  %v9289_v61 = vpop.f32.mrb[12].mxu1  ;;  %9598 = vmatpush3.bf16.msra.mxu0 %v9595_v56  ;;  %v11264_v37 = vld [vmem:[#allocation2 + $0x38] sm:$0xff]  ;;  %v1523_v18 = vld [vmem:[#allocation2 + $0x6a] sm:$0xff]  ;;  %v11338_v56 = vld [vmem:[#allocation2 + $0x60] sm:$0xff] }
 0x10d   :  { %v1140_v42 = vsel %vm670_vm3, %v9283_v57, %v1054_v19  ;;  %v431_v19 = vpop.f32.mrb[17].mxu0  ;;  %1174 = vst.msk [vmem:[#allocation2 + $0x241] sm:$0xff] %vm38_vm0, %v1141_v21  ;;  %v871_v27 = vpop.f32.mrb[13].mxu1  ;;  %2353 = vrot.lane.b32.xlu0 %v11236_v28, %s10270_s18  ;;  %v1522_v21 = vld [vmem:[#allocation2 + $0x62] sm:$0xff] }
 0x10e   :  { %1173 = vst.msk [vmem:[#allocation2 + $0x231] sm:$0xff] %vm38_vm0, %v1140_v42  ;;  %v687_v22 = vsel %vm670_vm3, %v431_v19, %v11083_v58  ;;  %v9234_v26 = vpop.f32.mrb[18].mxu0  ;;  %v9599_v58 = vpack.c.bf16 %v4344_v25, %v4343_v24  ;;  %v1143_v30 = vsel %vm670_vm3, %v871_v27, %v1060_v23  ;;  %3631 = vrot.lane.b32.xlu1 %v1519_v48, %s10273_s15  ;;  %v11345_v19 = vld [vmem:[#allocation2 + $0x68] sm:$0xff]  ;;  %v11366_v27 = vld [vmem:[#allocation2 + $0x78] sm:$0xff] }
 0x10f   :  { %720 = vst.msk [vmem:[#allocation2 + $0xd9] sm:$0xff] %vm38_vm0, %v687_v22  ;;  %v690_v54 = vsel %vm670_vm3, %v9234_v26, %v11093_v63  ;;  %v441_v29 = vpop.f32.mrb[19].mxu0  ;;  %1176 = vst.msk [vmem:[#allocation2 + $0x259] sm:$0xff] %vm38_vm0, %v1143_v30  ;;  %v4345_v63 = vld [vmem:[%s17414_s3 + $0x30] sm:$0xff]  ;;  %v1525_v25 = vld [vmem:[#allocation2 + $0x82] sm:$0xff] }
 0x110   :  { %v1058_v36 = vpop.permute.xlu1 %1057  ;;  %723 = vst.msk [vmem:[#allocation2 + $0xf9] sm:$0xff] %vm38_vm0, %v690_v54  ;;  %v689_v31 = vsel %vm670_vm3, %v441_v29, %v11087_v60  ;;  %9600 = vmatprep.subr.bf16.mxu0 %v9599_v58  ;;  %v9237_v33 = vpop.f32.mrb[20].mxu0  ;;  %v9603_v34 = vpack.c.bf16 %v4346_v32, %v4345_v63  ;;  %v1651_v29 = vld [vmem:[#allocation2 + $0x79] sm:$0xff] }
 0x111   :  { %v1142_v49 = vsel %vm670_vm3, %v9286_v59, %v1058_v36  ;;  %722 = vst.msk [vmem:[#allocation2 + $0xf1] sm:$0xff] %vm38_vm0, %v689_v31  ;;  %9602 = vmatpush3.bf16.msra.mxu0 %v9599_v58  ;;  %v692_v60 = vsel %vm670_vm3, %v9237_v33, %v11097_v1  ;;  %v451_v53 = vpop.f32.mrb[21].mxu0  ;;  %3373 = vrot.lane.b32.xlu0 %v1645_v35, %s10272_s20  ;;  %v11375_v63 = vld [vmem:[#allocation2 + $0x80] sm:$0xff] }
 0x112   :  { %1175 = vst.msk [vmem:[#allocation2 + $0x249] sm:$0xff] %vm38_vm0, %v1142_v49  ;;  %2103 = vrot.lane.b32.xlu1 %v1519_v48, %s10268_s12  ;;  %725 = vst.msk [vmem:[#allocation2 + $0x111] sm:$0xff] %vm38_vm0, %v692_v60  ;;  %v691_v36 = vsel %vm670_vm3, %v451_v53, %v11091_v62  ;;  %9604 = vmatprep.subr.bf16.mxu0 %v9603_v34  ;;  %v1650_v49 = vld [vmem:[#allocation2 + $0x69] sm:$0xff]  ;;  %v1524_v60 = vld [vmem:[#allocation2 + $0x7a] sm:$0xff] }
 0x113   :  { %724 = vst.msk [vmem:[#allocation2 + $0x109] sm:$0xff] %vm38_vm0, %v691_v36  ;;  %v9240_v57 = vpop.f32.mrb[22].mxu0 }
 0x114   :  { %v1062_v20 = vpop.permute.xlu1 %1061  ;;  %v694_v1 = vsel %vm670_vm3, %v9240_v57, %v11101_v3  ;;  %v461_v38 = vpop.f32.mrb[23].mxu0  ;;  %v1654_v57 = vld [vmem:[#allocation2 + $0x99] sm:$0xff] }
 0x115   :  { %v1144_v51 = vsel %vm670_vm3, %v9289_v61, %v1062_v20  ;;  %9606 = vmatpush3.bf16.msra.mxu0 %v9603_v34  ;;  %2355 = vrot.lane.b32.xlu0 %v11264_v37, %s10270_s18  ;;  %727 = vst.msk [vmem:[#allocation2 + $0x129] sm:$0xff] %vm38_vm0, %v694_v1  ;;  %v693_v62 = vsel %vm670_vm3, %v461_v38, %v11095_v0  ;;  %v1652_v20 = vld [vmem:[#allocation2 + $0x81] sm:$0xff] }
 0x116   :  { %1177 = vst.msk [vmem:[#allocation2 + $0x261] sm:$0xff] %vm38_vm0, %v1144_v51  ;;  %3117 = vrot.lane.b32.xlu1 %v11236_v28, %s10274_s0  ;;  %726 = vst.msk [vmem:[#allocation2 + $0x121] sm:$0xff] %vm38_vm0, %v693_v62  ;;  %9333 = vmatprep.subr.mxu0 %v4347_v40  ;;  %v1197_v1 = vld [vmem:[#allocation2 + $0x8] sm:$0xff] }
 0x117   :  { %v9243_v3 = vpop.f32.mrb[24].mxu0  ;;  %v3822_v62 = vsel %vm38_vm0, %v1197_v1, %v11121_v15 }
 0x118   :  { %v696_v41 = vsel %vm670_vm3, %v9243_v3, %v11105_v5  ;;  %v471_v42 = vpop.f32.mrb[25].mxu0  ;;  %v11402_v3 = vld [vmem:[#allocation2 + $0x90] sm:$0xff] }
 0x119   :  { %9334 = vmatpush3.msra.mxu0 %v4347_v40  ;;  %1845 = vrot.lane.b32.xlu0 %v1645_v35, %s10267_s2  ;;  %729 = vst.msk [vmem:[#allocation2 + $0x141] sm:$0xff] %vm38_vm0, %v696_v41  ;;  %v695_v43 = vsel %vm670_vm3, %v471_v42, %v11099_v2  ;;  %v1196_v41 = vld [vmem:[#allocation2] sm:$0xff]  ;;  %v3887_v42 = vsel %vm3885_vm4, %v3822_v62, %v11123_v16 }
 0x11a   :  { %3119 = vrot.lane.b32.xlu1 %v11264_v37, %s10274_s0  ;;  %728 = vst.msk [vmem:[#allocation2 + $0x139] sm:$0xff] %vm38_vm0, %v695_v43  ;;  %v3821_v15 = vsel %vm38_vm0, %v1196_v41, %v11117_v12 }
 0x11b   :  { %v9246_v0 = vpop.f32.mrb[26].mxu0 }
 0x11c   :  { %v698_v44 = vsel %vm670_vm3, %v9246_v0, %v11109_v7  ;;  %v481_v45 = vpop.f32.mrb[27].mxu0 }
 0x11d   :  { %2865 = vrot.lane.b32.xlu0 %v1518_v55, %s10271_s19  ;;  %731 = vst.msk [vmem:[#allocation2 + $0x159] sm:$0xff] %vm38_vm0, %v698_v44  ;;  %v697_v5 = vsel %vm670_vm3, %v481_v45, %v11103_v4  ;;  %v1653_v44 = vld [vmem:[#allocation2 + $0x91] sm:$0xff] }
 0x11e   :  { %2609 = vrot.lane.b32.xlu1 %v1645_v35, %s10269_s17  ;;  %730 = vst.msk [vmem:[#allocation2 + $0x151] sm:$0xff] %vm38_vm0, %v697_v5 }
 0x11f   :  { %v9249_v2 = vpop.f32.mrb[28].mxu0 }
 0x120   :  { %v700_v47 = vsel %vm670_vm3, %v9249_v2, %v11113_v9  ;;  %v491_v48 = vpop.f32.mrb[29].mxu0  ;;  %v3886_v2 = vsel %vm3885_vm4, %v3821_v15, %v11119_v14 }
 0x121   :  { %3379 = vrot.lane.b32.xlu0 %v1648_v46, %s10272_s20  ;;  %733 = vst.msk [vmem:[#allocation2 + $0x171] sm:$0xff] %vm38_vm0, %v700_v47  ;;  %v699_v7 = vsel %vm670_vm3, %v491_v48, %v11107_v6  ;;  %v11314_v6 = vld [vmem:[#allocation2 + $0x48] sm:$0xff] }
 0x122   :  { %3629 = vrot.lane.b32.xlu1 %v1518_v55, %s10273_s15  ;;  %732 = vst.msk [vmem:[#allocation2 + $0x169] sm:$0xff] %vm38_vm0, %v699_v7 }
 0x123   :  { %v9252_v4 = vpop.f32.mrb[30].mxu0 }
 0x124   :  { %v702_v59 = vsel %vm670_vm3, %v9252_v4, %v11115_v11  ;;  %v501_v50 = vpop.f32.mrb[31].mxu0  ;;  %v1647_v11 = vld [vmem:[#allocation2 + $0x49] sm:$0xff] }
 0x125   :  { %1851 = vrot.lane.b32.xlu0 %v1648_v46, %s10267_s2  ;;  %735 = vst.msk [vmem:[#allocation2 + $0x189] sm:$0xff] %vm38_vm0, %v702_v59  ;;  %v701_v9 = vsel %vm670_vm3, %v501_v50, %v11111_v8  ;;  %v11321_v8 = vld [vmem:[#allocation2 + $0x50] sm:$0xff] }
 0x126   :  { %2101 = vrot.lane.b32.xlu1 %v1518_v55, %s10268_s12  ;;  %734 = vst.msk [vmem:[#allocation2 + $0x181] sm:$0xff] %vm38_vm0, %v701_v9 }
 0x129   :  { %2871 = vrot.lane.b32.xlu0 %v1521_v13, %s10271_s19 }
 0x12a   :  { %2615 = vrot.lane.b32.xlu1 %v1648_v46, %s10269_s17  ;;  %v11422_v46 = vld [vmem:[#allocation2 + $0x98] sm:$0xff] }
 0x12d   :  { %2357 = vrot.lane.b32.xlu0 %v11314_v6, %s10270_s18 }
 0x12e   :  { %3635 = vrot.lane.b32.xlu1 %v1521_v13, %s10273_s15 }
 0x131   :  { %3377 = vrot.lane.b32.xlu0 %v1647_v11, %s10272_s20 }
 0x132   :  { %2107 = vrot.lane.b32.xlu1 %v1521_v13, %s10268_s12 }
 0x135   :  { %2359 = vrot.lane.b32.xlu0 %v11321_v8, %s10270_s18 }
 0x136   :  { %3121 = vrot.lane.b32.xlu1 %v11314_v6, %s10274_s0 }
 0x139   :  { %1849 = vrot.lane.b32.xlu0 %v1647_v11, %s10267_s2 }
 0x13a   :  { %3123 = vrot.lane.b32.xlu1 %v11321_v8, %s10274_s0 }
 0x13d   :  { %2869 = vrot.lane.b32.xlu0 %v1520_v17, %s10271_s19 }
 0x13e   :  { %2613 = vrot.lane.b32.xlu1 %v1647_v11, %s10269_s17 }
 0x141   :  { %3383 = vrot.lane.b32.xlu0 %v1650_v49, %s10272_s20 }
 0x142   :  { %3633 = vrot.lane.b32.xlu1 %v1520_v17, %s10273_s15 }
 0x145   :  { %1855 = vrot.lane.b32.xlu0 %v1650_v49, %s10267_s2 }
 0x146   :  { %2105 = vrot.lane.b32.xlu1 %v1520_v17, %s10268_s12 }
 0x149   :  { %2875 = vrot.lane.b32.xlu0 %v1523_v18, %s10271_s19 }
 0x14a   :  { %2619 = vrot.lane.b32.xlu1 %v1650_v49, %s10269_s17 }
 0x14d   :  { %2361 = vrot.lane.b32.xlu0 %v11338_v56, %s10270_s18 }
 0x14e   :  { %3639 = vrot.lane.b32.xlu1 %v1523_v18, %s10273_s15 }
 0x151   :  { %3381 = vrot.lane.b32.xlu0 %v1649_v52, %s10272_s20 }
 0x152   :  { %2111 = vrot.lane.b32.xlu1 %v1523_v18, %s10268_s12  ;;  %v1717_v18 = vld [vmem:[#allocation2 + $0x92] sm:$0xff] }
 0x155   :  { %2363 = vrot.lane.b32.xlu0 %v11345_v19, %s10270_s18 }
 0x156   :  { %3125 = vrot.lane.b32.xlu1 %v11338_v56, %s10274_s0 }
 0x159   :  { %1853 = vrot.lane.b32.xlu0 %v1649_v52, %s10267_s2 }
 0x15a   :  { %3127 = vrot.lane.b32.xlu1 %v11345_v19, %s10274_s0 }
 0x15d   :  { %2873 = vrot.lane.b32.xlu0 %v1522_v21, %s10271_s19 }
 0x15e   :  { %2617 = vrot.lane.b32.xlu1 %v1649_v52, %s10269_s17 }
 0x161   :  { %3387 = vrot.lane.b32.xlu0 %v1652_v20, %s10272_s20 }
 0x162   :  { %3637 = vrot.lane.b32.xlu1 %v1522_v21, %s10273_s15 }
 0x163   :  { %v2608_v22 = vpop.permute.xlu0 %2607 }
 0x164   :  { %v11358_v23 = vpop.permute.xlu1 %2099 }
 0x165   :  { %1859 = vrot.lane.b32.xlu0 %v1652_v20, %s10267_s2 }
 0x166   :  { %2109 = vrot.lane.b32.xlu1 %v1522_v21, %s10268_s12 }
 0x167   :  { %v11362_v61 = vpop.permute.xlu0 %1843 }
 0x168   :  { %v2350_v24 = vpop.permute.xlu1 %2349 }
 0x169   :  { %2879 = vrot.lane.b32.xlu0 %v1525_v25, %s10271_s19  ;;  %v3951_v47 = vsel %vm3950_vm5, %v3886_v2, %v2350_v24  ;;  %v1656_v2 = vld [vmem:[#allocation2 + $0xb1] sm:$0xff] }
 0x16a   :  { %2623 = vrot.lane.b32.xlu1 %v1652_v20, %s10269_s17 }
 0x16b   :  { %v2864_v26 = vpop.permute.xlu0 %2863 }
 0x16c   :  { %v2352_v51 = vpop.permute.xlu1 %2351 }
 0x16d   :  { %2365 = vrot.lane.b32.xlu0 %v11366_v27, %s10270_s18  ;;  %v3952_v55 = vsel %vm3950_vm5, %v3887_v42, %v2352_v51  ;;  %v1718_v51 = vld [vmem:[#allocation2 + $0x9a] sm:$0xff] }
 0x16e   :  { %3643 = vrot.lane.b32.xlu1 %v1525_v25, %s10273_s15  ;;  %v4017_v45 = vsel %vm4015_vm6, %v3952_v55, %v2608_v22  ;;  %v11449_v22 = vpop.f32.mrb[14].mxu1 }
 0x16f   :  { %v2606_v58 = vpop.permute.xlu0 %2605  ;;  %v4082_v48 = vsel %vm4080_vm7, %v4017_v45, %v2864_v26  ;;  %v11452_v24 = vpop.f32.mrb[15].mxu1 }
 0x170   :  { %v11371_v54 = vpop.permute.xlu1 %1841  ;;  %v4016_v12 = vsel %vm4015_vm6, %v3951_v47, %v2606_v58 }
 0x171   :  { %3385 = vrot.lane.b32.xlu0 %v1651_v29, %s10272_s20 }
 0x172   :  { %2115 = vrot.lane.b32.xlu1 %v1525_v25, %s10268_s12 }
 0x173   :  { %v3376_v31 = vpop.permute.xlu0 %3375 }
 0x174   :  { %v2862_v30 = vpop.permute.xlu1 %2861 }
 0x175   :  { %2367 = vrot.lane.b32.xlu0 %v11375_v63, %s10270_s18  ;;  %v4081_v7 = vsel %vm4080_vm7, %v4016_v12, %v2862_v30  ;;  %v8872_v30 = vld [vmem:[%s17413_s1 + $0x170] sm:$0xff] }
 0x176   :  { %3129 = vrot.lane.b32.xlu1 %v11366_v27, %s10274_s0 }
 0x177   :  { %v11383_v33 = vpop.permute.xlu0 %1847 }
 0x178   :  { %v11381_v32 = vpop.permute.xlu1 %2097 }
 0x179   :  { %1857 = vrot.lane.b32.xlu0 %v1651_v29, %s10267_s2 }
 0x17a   :  { %3131 = vrot.lane.b32.xlu1 %v11375_v63, %s10274_s0 }
 0x17b   :  { %v11390_v35 = vpop.permute.xlu0 %2867 }
 0x17c   :  { %v11388_v34 = vpop.permute.xlu1 %2611 }
 0x17d   :  { %2877 = vrot.lane.b32.xlu0 %v1524_v60, %s10271_s19 }
 0x17e   :  { %2621 = vrot.lane.b32.xlu1 %v1651_v29, %s10269_s17 }
 0x17f   :  { %v11394_v36 = vpop.permute.xlu0 %2353 }
 0x180   :  { %v3632_v53 = vpop.permute.xlu1 %3631 }
 0x181   :  { %3391 = vrot.lane.b32.xlu0 %v1654_v57, %s10272_s20 }
 0x182   :  { %3641 = vrot.lane.b32.xlu1 %v1524_v60, %s10273_s15 }
 0x183   :  { %v3374_v40 = vpop.permute.xlu0 %3373 }
 0x184   :  { %v11398_v38 = vpop.permute.xlu1 %2103 }
 0x185   :  { %2369 = vrot.lane.b32.xlu0 %v11402_v3, %s10270_s18 }
 0x186   :  { %2113 = vrot.lane.b32.xlu1 %v1524_v60, %s10268_s12 }
 0x187   :  { %v11409_v0 = vpop.permute.xlu0 %2355 }
 0x188   :  { %v3118_v43 = vpop.permute.xlu1 %3117 }
 0x189   :  { %3389 = vrot.lane.b32.xlu0 %v1653_v44, %s10272_s20  ;;  %v4146_v50 = vsel %vm4145_vm8, %v4081_v7, %v3118_v43 }
 0x18a   :  { %3133 = vrot.lane.b32.xlu1 %v11402_v3, %s10274_s0  ;;  %v4211_v11 = vsel %vm4210_vm9, %v4146_v50, %v3374_v40  ;;  %v1719_v50 = vld [vmem:[#allocation2 + $0xaa] sm:$0xff] }
 0x18b   :  { %v11418_v5 = vpop.permute.xlu0 %1845 }
 0x18c   :  { %v3120_v16 = vpop.permute.xlu1 %3119 }
 0x18d   :  { %2371 = vrot.lane.b32.xlu0 %v11422_v46, %s10270_s18  ;;  %v4147_v4 = vsel %vm4145_vm8, %v4082_v48, %v3120_v16 }
 0x18e   :  { %3135 = vrot.lane.b32.xlu1 %v11422_v46, %s10274_s0  ;;  %v4212_v9 = vsel %vm4210_vm9, %v4147_v4, %v3376_v31 }
 0x18f   :  { %v2866_v59 = vpop.permute.xlu0 %2865  ;;  %v4276_v52 = vsel %vm188_vm2, %v4212_v9, %v3632_v53  ;;  %v3824_v53 = vsel %vm38_vm0, %v11155_v10, %v11362_v61  ;;  %v3823_v10 = vsel %vm38_vm0, %v11140_v39, %v11371_v54  ;;  %v1655_v61 = vld [vmem:[#allocation2 + $0xa9] sm:$0xff] }
 0x190   :  { %v2610_v14 = vpop.permute.xlu1 %2609  ;;  %v3889_v1 = vsel %vm3885_vm4, %v3824_v53, %v11358_v23  ;;  %v3888_v42 = vsel %vm3885_vm4, %v3823_v10, %v11381_v32  ;;  %v11496_v39 = vld [vmem:[#allocation2 + $0xb0] sm:$0xff]  ;;  %v8873_v32 = vld [vmem:[%s17413_s1 + $0x178] sm:$0xff]  ;;  %v11553_v10 = vld [vmem:[#allocation2 + $0xc0] sm:$0xff] }
 0x191   :  { %1861 = vrot.lane.b32.xlu0 %v1653_v44, %s10267_s2  ;;  %v3954_v41 = vsel %vm3950_vm5, %v3889_v1, %v11409_v0  ;;  %v3953_v23 = vsel %vm3950_vm5, %v3888_v42, %v11394_v36 }
 0x192   :  { %2625 = vrot.lane.b32.xlu1 %v1653_v44, %s10269_s17  ;;  %v4019_v43 = vsel %vm4015_vm6, %v3954_v41, %v11388_v34  ;;  %v4018_v44 = vsel %vm4015_vm6, %v3953_v23, %v2610_v14 }
 0x193   :  { %v3380_v17 = vpop.permute.xlu0 %3379  ;;  %v4084_v54 = vsel %vm4080_vm7, %v4019_v43, %v11390_v35  ;;  %v4083_v34 = vsel %vm4080_vm7, %v4018_v44, %v2866_v59  ;;  %v11578_v44 = vld [vmem:[#allocation2 + $0xc8] sm:$0xff] }
 0x194   :  { %v3630_v13 = vpop.permute.xlu1 %3629 }
 0x195   :  { %v4275_v49 = vsel %vm188_vm2, %v4211_v11, %v3630_v13  ;;  %2881 = vrot.lane.b32.xlu0 %v1717_v18, %s10271_s19  ;;  %v11531_v11 = vpop.f32.mrb[16].mxu1 }
 0x196   :  { %9335 = vmatprep.mubr.msk.f32.mxu0 %vm4355_vm10, %v4275_v49  ;;  %3645 = vrot.lane.b32.xlu1 %v1717_v18, %s10273_s15 }
 0x197   :  { %9336 = vmatmul.mubr.msk.f32.vlgmr.msra.gmra.mrb[32].mxu0 %vm4355_vm10, %v4276_v52  ;;  %v11446_v20 = vpop.permute.xlu0 %1851  ;;  %v1720_v52 = vld [vmem:[#allocation2 + $0xb2] sm:$0xff] }
 0x198   :  { %v11444_v21 = vpop.permute.xlu1 %2101 }
 0x199   :  { %1863 = vrot.lane.b32.xlu0 %v1654_v57, %s10267_s2 }
 0x19a   :  { %2627 = vrot.lane.b32.xlu1 %v1654_v57, %s10269_s17  ;;  %v11472_v57 = vld [vmem:[#allocation2 + $0xa8] sm:$0xff] }
 0x19b   :  { %v11456_v26 = vpop.permute.xlu0 %2871 }
 0x19c   :  { %v11454_v25 = vpop.permute.xlu1 %2615 }
 0x19d   :  { %2883 = vrot.lane.b32.xlu0 %v1718_v51, %s10271_s19 }
 0x19e   :  { %3647 = vrot.lane.b32.xlu1 %v1718_v51, %s10273_s15 }
 0x19f   :  { %v11460_v29 = vpop.permute.xlu0 %2357 }
 0x1a0   :  { %v3636_v58 = vpop.permute.xlu1 %3635 }
 0x1a1   :  { %1063 = vrot.lane.b32.xlu0 %v8872_v30, %s10266_s21  ;;  %v8874_v30 = vld [vmem:[%s17413_s1 + $0x180] sm:$0xff] }
 0x1a2   :  { %2117 = vrot.lane.b32.xlu1 %v1717_v18, %s10268_s12 }
 0x1a3   :  { %v3378_v60 = vpop.permute.xlu0 %3377 }
 0x1a4   :  { %v11467_v31 = vpop.permute.xlu1 %2107 }
 0x1a5   :  { %2373 = vrot.lane.b32.xlu0 %v11472_v57, %s10270_s18 }
 0x1a6   :  { %3137 = vrot.lane.b32.xlu1 %v11472_v57, %s10274_s0 }
 0x1a7   :  { %v2360_v62 = vpop.permute.xlu0 %2359 }
 0x1a8   :  { %v3122_v40 = vpop.permute.xlu1 %3121 }
 0x1a9   :  { %3393 = vrot.lane.b32.xlu0 %v1655_v61, %s10272_s20  ;;  %v4148_v16 = vsel %vm4145_vm8, %v4083_v34, %v3122_v40 }
 0x1aa   :  { %2119 = vrot.lane.b32.xlu1 %v1718_v51, %s10268_s12  ;;  %v4213_v12 = vsel %vm4210_vm9, %v4148_v16, %v3378_v60  ;;  %v3826_v60 = vsel %vm38_vm0, %v11264_v37, %v11383_v33 }
 0x1ab   :  { %v11493_v0 = vpop.permute.xlu0 %1849  ;;  %v3891_v53 = vsel %vm3885_vm4, %v3826_v60, %v11398_v38  ;;  %v3828_v60 = vsel %vm38_vm0, %v11321_v8, %v11446_v20 }
 0x1ac   :  { %v3124_v55 = vpop.permute.xlu1 %3123  ;;  %v3956_v41 = vsel %vm3950_vm5, %v3891_v53, %v2360_v62  ;;  %v3893_v53 = vsel %vm3885_vm4, %v3828_v60, %v11467_v31 }
 0x1ad   :  { %2375 = vrot.lane.b32.xlu0 %v11496_v39, %s10270_s18  ;;  %v4149_v36 = vsel %vm4145_vm8, %v4084_v54, %v3124_v55  ;;  %v4021_v38 = vsel %vm4015_vm6, %v3956_v41, %v11454_v25 }
 0x1ae   :  { %3139 = vrot.lane.b32.xlu1 %v11496_v39, %s10274_s0  ;;  %v4214_v35 = vsel %vm4210_vm9, %v4149_v36, %v3380_v17  ;;  %v11534_v17 = vpop.f32.mrb[17].mxu1 }
 0x1af   :  { %v2870_v45 = vpop.permute.xlu0 %2869  ;;  %v4278_v4 = vsel %vm188_vm2, %v4214_v35, %v3636_v58 }
 0x1b0   :  { %v2614_v15 = vpop.permute.xlu1 %2613 }
 0x1b1   :  { %3395 = vrot.lane.b32.xlu0 %v1656_v2, %s10272_s20 }
 0x1b2   :  { %1065 = vrot.lane.b32.xlu1 %v8873_v32, %s10266_s21 }
 0x1b3   :  { %v3384_v48 = vpop.permute.xlu0 %3383 }
 0x1b4   :  { %v3634_v47 = vpop.permute.xlu1 %3633 }
 0x1b5   :  { %v4277_v7 = vsel %vm188_vm2, %v4213_v12, %v3634_v47  ;;  %1865 = vrot.lane.b32.xlu0 %v1655_v61, %s10267_s2 }
 0x1b6   :  { %9338 = vmatprep.mubr.msk.f32.mxu0 %vm4355_vm10, %v4277_v7  ;;  %2629 = vrot.lane.b32.xlu1 %v1655_v61, %s10269_s17  ;;  %v3825_v61 = vsel %vm38_vm0, %v11236_v28, %v11418_v5  ;;  %v1657_v5 = vld [vmem:[#allocation2 + $0xc1] sm:$0xff] }
 0x1b7   :  { %9339 = vmatmul.mubr.msk.f32.gmra.mrb[34].mxu0 %vm4355_vm10, %v4278_v4  ;;  %v11522_v59 = vpop.permute.xlu0 %1855  ;;  %v3890_v37 = vsel %vm3885_vm4, %v3825_v61, %v11444_v21  ;;  %v4086_v21 = vsel %vm4080_vm7, %v4021_v38, %v11456_v26  ;;  %v8875_v26 = vld [vmem:[%s17413_s1 + $0x188] sm:$0xff]  ;;  %v8876_v61 = vld [vmem:[%s17413_s1 + $0x190] sm:$0xff] }
 0x1b8   :  { %v11520_v14 = vpop.permute.xlu1 %2105  ;;  %v3955_v33 = vsel %vm3950_vm5, %v3890_v37, %v11460_v29 }
 0x1b9   :  { %2885 = vrot.lane.b32.xlu0 %v1719_v50, %s10271_s19  ;;  %v4020_v28 = vsel %vm4015_vm6, %v3955_v33, %v2614_v15  ;;  %v3827_v33 = vsel %vm38_vm0, %v11314_v6, %v11493_v0 }
 0x1ba   :  { %3649 = vrot.lane.b32.xlu1 %v1719_v50, %s10273_s15  ;;  %v4085_v23 = vsel %vm4080_vm7, %v4020_v28, %v2870_v45  ;;  %v1658_v45 = vld [vmem:[#allocation2 + $0xc9] sm:$0xff]  ;;  %v3892_v8 = vsel %vm3885_vm4, %v3827_v33, %v11520_v14  ;;  %v11640_v28 = vld [vmem:[#allocation2 + $0xd8] sm:$0xff] }
 0x1bb   :  { %v11528_v13 = vpop.permute.xlu0 %2875 }
 0x1bc   :  { %v11526_v9 = vpop.permute.xlu1 %2619 }
 0x1bd   :  { %1867 = vrot.lane.b32.xlu0 %v1656_v2, %s10267_s2 }
 0x1be   :  { %2631 = vrot.lane.b32.xlu1 %v1656_v2, %s10269_s17 }
 0x1bf   :  { %v11536_v18 = vpop.permute.xlu0 %2361 }
 0x1c0   :  { %v3640_v49 = vpop.permute.xlu1 %3639  ;;  %v3957_v20 = vsel %vm3950_vm5, %v3892_v8, %v11536_v18 }
 0x1c1   :  { %2887 = vrot.lane.b32.xlu0 %v1720_v52, %s10271_s19 }
 0x1c2   :  { %3651 = vrot.lane.b32.xlu1 %v1720_v52, %s10273_s15 }
 0x1c3   :  { %v3382_v58 = vpop.permute.xlu0 %3381 }
 0x1c4   :  { %v11540_v51 = vpop.permute.xlu1 %2111 }
 0x1c5   :  { %1067 = vrot.lane.b32.xlu0 %v8874_v30, %s10266_s21  ;;  %v1722_v30 = vld [vmem:[#allocation2 + $0xca] sm:$0xff] }
 0x1c6   :  { %2121 = vrot.lane.b32.xlu1 %v1719_v50, %s10268_s12  ;;  %v11608_v50 = vpop.f32.mrb[18].mxu1 }
 0x1c7   :  { %v2364_v40 = vpop.permute.xlu0 %2363 }
 0x1c8   :  { %v3126_v1 = vpop.permute.xlu1 %3125  ;;  %v3958_v37 = vsel %vm3950_vm5, %v3893_v53, %v2364_v40  ;;  %v1723_v53 = vld [vmem:[#allocation2 + $0xda] sm:$0xff] }
 0x1c9   :  { %2377 = vrot.lane.b32.xlu0 %v11553_v10, %s10270_s18  ;;  %v4150_v25 = vsel %vm4145_vm8, %v4085_v23, %v3126_v1  ;;  %v4023_v31 = vsel %vm4015_vm6, %v3958_v37, %v11526_v9 }
 0x1ca   :  { %3141 = vrot.lane.b32.xlu1 %v11553_v10, %s10274_s0  ;;  %v4215_v34 = vsel %vm4210_vm9, %v4150_v25, %v3382_v58  ;;  %v4088_v6 = vsel %vm4080_vm7, %v4023_v31, %v11528_v13 }
 0x1cb   :  { %v11568_v42 = vpop.permute.xlu0 %1853 }
 0x1cc   :  { %v3128_v62 = vpop.permute.xlu1 %3127 }
 0x1cd   :  { %3397 = vrot.lane.b32.xlu0 %v1657_v5, %s10272_s20  ;;  %v4151_v29 = vsel %vm4145_vm8, %v4086_v21, %v3128_v62  ;;  %v1659_v21 = vld [vmem:[#allocation2 + $0xd9] sm:$0xff] }
 0x1ce   :  { %2123 = vrot.lane.b32.xlu1 %v1720_v52, %s10268_s12  ;;  %v4216_v54 = vsel %vm4210_vm9, %v4151_v29, %v3384_v48  ;;  %v1721_v48 = vld [vmem:[#allocation2 + $0xc2] sm:$0xff] }
 0x1cf   :  { %v2874_v55 = vpop.permute.xlu0 %2873  ;;  %v4280_v16 = vsel %vm188_vm2, %v4216_v54, %v3640_v49  ;;  %v11611_v49 = vpop.f32.mrb[19].mxu1 }
 0x1d0   :  { %v2618_v43 = vpop.permute.xlu1 %2617  ;;  %v11700_v33 = vpop.f32.mrb[20].mxu1 }
 0x1d1   :  { %2379 = vrot.lane.b32.xlu0 %v11578_v44, %s10270_s18  ;;  %v4022_v40 = vsel %vm4015_vm6, %v3957_v20, %v2618_v43 }
 0x1d2   :  { %3143 = vrot.lane.b32.xlu1 %v11578_v44, %s10274_s0  ;;  %v4087_v0 = vsel %vm4080_vm7, %v4022_v40, %v2874_v55  ;;  %v11656_v55 = vld [vmem:[#allocation2 + $0xe0] sm:$0xff] }
 0x1d3   :  { %v3388_v36 = vpop.permute.xlu0 %3387 }
 0x1d4   :  { %v3638_v32 = vpop.permute.xlu1 %3637 }
 0x1d5   :  { %v4279_v15 = vsel %vm188_vm2, %v4215_v34, %v3638_v32  ;;  %3399 = vrot.lane.b32.xlu0 %v1658_v45, %s10272_s20 }
 0x1d6   :  { %9341 = vmatprep.mubr.msk.f32.mxu0 %vm4355_vm10, %v4279_v15  ;;  %1069 = vrot.lane.b32.xlu1 %v8875_v26, %s10266_s21  ;;  %v8877_v26 = vld [vmem:[%s17413_s1 + $0x198] sm:$0xff] }
 0x1d7   :  { %9342 = vmatmul.mubr.msk.f32.gmra.mrb[36].mxu0 %vm4355_vm10, %v4280_v16  ;;  %v11597_v35 = vpop.permute.xlu0 %1859  ;;  %v3829_v16 = vsel %vm38_vm0, %v11338_v56, %v11568_v42  ;;  %v3830_v56 = vsel %vm38_vm0, %v11345_v19, %v11522_v59  ;;  %v11703_v19 = vpop.f32.mrb[21].mxu1 }
 0x1d8   :  { %v11595_v2 = vpop.permute.xlu1 %2109 }
 0x1d9   :  { %1869 = vrot.lane.b32.xlu0 %v1657_v5, %s10267_s2 }
 0x1da   :  { %2633 = vrot.lane.b32.xlu1 %v1657_v5, %s10269_s17 }
 0x1db   :  { %v11603_v12 = vpop.permute.xlu0 %2879 }
 0x1dc   :  { %v11601_v47 = vpop.permute.xlu1 %2623 }
 0x1dd   :  { %2889 = vrot.lane.b32.xlu0 %v1721_v48, %s10271_s19 }
 0x1de   :  { %3653 = vrot.lane.b32.xlu1 %v1721_v48, %s10273_s15 }
 0x1df   :  { %v2366_v4 = vpop.permute.xlu0 %2365 }
 0x1e0   :  { %v3644_v7 = vpop.permute.xlu1 %3643 }
 0x1e1   :  { %1871 = vrot.lane.b32.xlu0 %v1658_v45, %s10267_s2 }
 0x1e2   :  { %2635 = vrot.lane.b32.xlu1 %v1658_v45, %s10269_s17 }
 0x1e3   :  { %v3386_v58 = vpop.permute.xlu0 %3385 }
 0x1e4   :  { %v11613_v52 = vpop.permute.xlu1 %2115 }
 0x1e5   :  { %2891 = vrot.lane.b32.xlu0 %v1722_v30, %s10271_s19 }
 0x1e6   :  { %3655 = vrot.lane.b32.xlu1 %v1722_v30, %s10273_s15 }
 0x1e7   :  { %v2368_v41 = vpop.permute.xlu0 %2367 }
 0x1e8   :  { %v3130_v1 = vpop.permute.xlu1 %3129 }
 0x1e9   :  { %1071 = vrot.lane.b32.xlu0 %v8876_v61, %s10266_s21  ;;  %v4152_v5 = vsel %vm4145_vm8, %v4087_v0, %v3130_v1 }
 0x1ea   :  { %2125 = vrot.lane.b32.xlu1 %v1721_v48, %s10268_s12  ;;  %v4217_v13 = vsel %vm4210_vm9, %v4152_v5, %v3386_v58  ;;  %v3894_v48 = vsel %vm3885_vm4, %v3829_v16, %v11595_v2  ;;  %v11726_v5 = vld [vmem:[#allocation2 + $0xf0] sm:$0xff] }
 0x1eb   :  { %v11637_v62 = vpop.permute.xlu0 %1857 }
 0x1ec   :  { %v3132_v38 = vpop.permute.xlu1 %3131 }
 0x1ed   :  { %2381 = vrot.lane.b32.xlu0 %v11640_v28, %s10270_s18  ;;  %v4153_v14 = vsel %vm4145_vm8, %v4088_v6, %v3132_v38  ;;  %v1724_v38 = vld [vmem:[#allocation2 + $0xe2] sm:$0xff] }
 0x1ee   :  { %3145 = vrot.lane.b32.xlu1 %v11640_v28, %s10274_s0  ;;  %v4218_v23 = vsel %vm4210_vm9, %v4153_v14, %v3388_v36  ;;  %v1660_v36 = vld [vmem:[#allocation2 + $0xe1] sm:$0xff] }
 0x1ef   :  { %v2878_v18 = vpop.permute.xlu0 %2877  ;;  %v4282_v54 = vsel %vm188_vm2, %v4218_v23, %v3644_v7  ;;  %v3959_v7 = vsel %vm3950_vm5, %v3894_v48, %v2366_v4  ;;  %v3895_v4 = vsel %vm3885_vm4, %v3830_v56, %v11540_v51  ;;  %v8878_v6 = vld [vmem:[%s17413_s1 + $0x1a0] sm:$0xff]  ;;  %v3831_v48 = vsel %vm38_vm0, %v11366_v27, %v11637_v62  ;;  %v1725_v56 = vld [vmem:[#allocation2 + $0xf2] sm:$0xff] }
 0x1f0   :  { %v2622_v9 = vpop.permute.xlu1 %2621  ;;  %v3960_v37 = vsel %vm3950_vm5, %v3895_v4, %v2368_v41 }
 0x1f1   :  { %3401 = vrot.lane.b32.xlu0 %v1659_v21, %s10272_s20  ;;  %v4024_v60 = vsel %vm4015_vm6, %v3959_v7, %v2622_v9  ;;  %v4025_v20 = vsel %vm4015_vm6, %v3960_v37, %v11601_v47 }
 0x1f2   :  { %2127 = vrot.lane.b32.xlu1 %v1722_v30, %s10268_s12  ;;  %v4089_v42 = vsel %vm4080_vm7, %v4024_v60, %v2878_v18  ;;  %v4090_v41 = vsel %vm4080_vm7, %v4025_v20, %v11603_v12  ;;  %v1726_v20 = vld [vmem:[#allocation2 + $0xfa] sm:$0xff] }
 0x1f3   :  { %v3392_v43 = vpop.permute.xlu0 %3391 }
 0x1f4   :  { %v3642_v29 = vpop.permute.xlu1 %3641 }
 0x1f5   :  { %v4281_v25 = vsel %vm188_vm2, %v4217_v13, %v3642_v29  ;;  %2383 = vrot.lane.b32.xlu0 %v11656_v55, %s10270_s18  ;;  %v1661_v29 = vld [vmem:[#allocation2 + $0xf1] sm:$0xff] }
 0x1f6   :  { %9344 = vmatprep.mubr.msk.f32.mxu0 %vm4355_vm10, %v4281_v25  ;;  %3147 = vrot.lane.b32.xlu1 %v11656_v55, %s10274_s0 }
 0x1f7   :  { %9345 = vmatmul.mubr.msk.f32.gmra.mrb[38].mxu0 %vm4355_vm10, %v4282_v54  ;;  %v11670_v34 = vpop.permute.xlu0 %2369  ;;  %v11742_v54 = vld [vmem:[#allocation2 + $0xf8] sm:$0xff] }
 0x1f8   :  { %v11668_v32 = vpop.permute.xlu1 %2113 }
 0x1f9   :  { %3403 = vrot.lane.b32.xlu0 %v1660_v36, %s10272_s20 }
 0x1fa   :  { %1073 = vrot.lane.b32.xlu1 %v8877_v26, %s10266_s21  ;;  %v8879_v26 = vld [vmem:[%s17413_s1 + $0x1a8] sm:$0xff] }
 0x1fb   :  { %v3390_v45 = vpop.permute.xlu0 %3389 }
 0x1fc   :  { %v3134_v15 = vpop.permute.xlu1 %3133 }
 0x1fd   :  { %1873 = vrot.lane.b32.xlu0 %v1659_v21, %s10267_s2  ;;  %v4154_v61 = vsel %vm4145_vm8, %v4089_v42, %v3134_v15  ;;  %v1662_v15 = vld [vmem:[#allocation2 + $0xf9] sm:$0xff] }
 0x1fe   :  { %2637 = vrot.lane.b32.xlu1 %v1659_v21, %s10269_s17  ;;  %v4219_v59 = vsel %vm4210_vm9, %v4154_v61, %v3390_v45 }
 0x1ff   :  { %v11682_v30 = vpop.permute.xlu0 %2371 }
 0x200   :  { %v3136_v58 = vpop.permute.xlu1 %3135 }
 0x201   :  { %2893 = vrot.lane.b32.xlu0 %v1723_v53, %s10271_s19  ;;  %v4155_v47 = vsel %vm4145_vm8, %v4090_v41, %v3136_v58  ;;  %v3896_v58 = vsel %vm3885_vm4, %v3831_v48, %v11668_v32  ;;  %v11779_v32 = vpop.f32.mrb[22].mxu1  ;;  %v1664_v48 = vld [vmem:[#allocation2 + $0x111] sm:$0xff] }
 0x202   :  { %3657 = vrot.lane.b32.xlu1 %v1723_v53, %s10273_s15  ;;  %v4220_v14 = vsel %vm4210_vm9, %v4155_v47, %v3392_v43  ;;  %v3961_v42 = vsel %vm3950_vm5, %v3896_v58, %v11670_v34  ;;  %v11783_v37 = vpop.f32.mrb[23].mxu1 }
 0x203   :  { %v11693_v1 = vpop.permute.xlu0 %1861 }
 0x204   :  { %v11691_v2 = vpop.permute.xlu1 %2625 }
 0x205   :  { %1875 = vrot.lane.b32.xlu0 %v1660_v36, %s10267_s2  ;;  %v4026_v27 = vsel %vm4015_vm6, %v3961_v42, %v11691_v2  ;;  %v1727_v42 = vld [vmem:[#allocation2 + $0x10a] sm:$0xff] }
 0x206   :  { %2639 = vrot.lane.b32.xlu1 %v1660_v36, %s10269_s17 }
 0x207   :  { %v2882_v31 = vpop.permute.xlu0 %2881 }
 0x208   :  { %v3646_v8 = vpop.permute.xlu1 %3645 }
 0x209   :  { %v4283_v51 = vsel %vm188_vm2, %v4219_v59, %v3646_v8  ;;  %2895 = vrot.lane.b32.xlu0 %v1724_v38, %s10271_s19 }
 0x20a   :  { %9347 = vmatprep.mubr.msk.f32.mxu0 %vm4355_vm10, %v4283_v51  ;;  %3659 = vrot.lane.b32.xlu1 %v1724_v38, %s10273_s15  ;;  %v3832_v51 = vsel %vm38_vm0, %v11375_v63, %v11597_v35 }
 0x20b   :  { %v11720_v0 = vpop.permute.xlu0 %1863 }
 0x20c   :  { %v11714_v40 = vpop.permute.xlu1 %2627 }
 0x20d   :  { %1075 = vrot.lane.b32.xlu0 %v8878_v6, %s10266_s21  ;;  %v8880_v6 = vld [vmem:[%s17413_s1 + $0x1b0] sm:$0xff] }
 0x20e   :  { %2129 = vrot.lane.b32.xlu1 %v1723_v53, %s10268_s12 }
 0x20f   :  { %v2884_v12 = vpop.permute.xlu0 %2883 }
 0x210   :  { %v3648_v9 = vpop.permute.xlu1 %3647 }
 0x211   :  { %v4284_v18 = vsel %vm188_vm2, %v4220_v14, %v3648_v9  ;;  %2385 = vrot.lane.b32.xlu0 %v11726_v5, %s10270_s18 }
 0x212   :  { %9348 = vmatmul.mubr.msk.f32.gmra.mrb[40].mxu0 %vm4355_vm10, %v4284_v18  ;;  %3149 = vrot.lane.b32.xlu1 %v11726_v5, %s10274_s0 }
 0x213   :  { %v1064_v23 = vpop.permute.xlu0 %1063 }
 0x214   :  { %v11733_v21 = vpop.permute.xlu1 %2117  ;;  %v1145_v13 = vsel %vm670_vm3, %v11452_v24, %v1064_v23  ;;  %v11812_v23 = vld [vmem:[#allocation2 + $0x108] sm:$0xff] }
 0x215   :  { %3405 = vrot.lane.b32.xlu0 %v1661_v29, %s10272_s20  ;;  %1178 = vst.msk [vmem:[#allocation2 + $0x271] sm:$0xff] %vm38_vm0, %v1145_v13 }
 0x216   :  { %2131 = vrot.lane.b32.xlu1 %v1724_v38, %s10268_s12 }
 0x217   :  { %v11740_v25 = vpop.permute.xlu0 %2373 }
 0x218   :  { %v3138_v43 = vpop.permute.xlu1 %3137 }
 0x219   :  { %2387 = vrot.lane.b32.xlu0 %v11742_v54, %s10270_s18 }
 0x21a   :  { %3151 = vrot.lane.b32.xlu1 %v11742_v54, %s10274_s0 }
 0x21b   :  { %v3394_v36 = vpop.permute.xlu0 %3393 }
 0x21c   :  { %v11751_v24 = vpop.permute.xlu1 %2119 }
 0x21d   :  { %3407 = vrot.lane.b32.xlu0 %v1662_v15, %s10272_s20 }
 0x21e   :  { %1077 = vrot.lane.b32.xlu1 %v8879_v26, %s10266_s21 }
 0x21f   :  { %v11755_v16 = vpop.permute.xlu0 %2375 }
 0x220   :  { %v3140_v45 = vpop.permute.xlu1 %3139 }
 0x221   :  { %1877 = vrot.lane.b32.xlu0 %v1661_v29, %s10267_s2 }
 0x222   :  { %2641 = vrot.lane.b32.xlu1 %v1661_v29, %s10269_s17  ;;  %v1663_v29 = vld [vmem:[#allocation2 + $0x109] sm:$0xff] }
 0x223   :  { %v3396_v53 = vpop.permute.xlu0 %3395 }
 0x224   :  { %v1066_v7 = vpop.permute.xlu1 %1065 }
 0x225   :  { %v1146_v60 = vsel %vm670_vm3, %v11449_v22, %v1066_v7  ;;  %2897 = vrot.lane.b32.xlu0 %v1725_v56, %s10271_s19  ;;  %v4091_v22 = vsel %vm4080_vm7, %v4026_v27, %v2882_v31  ;;  %v3897_v31 = vsel %vm3885_vm4, %v3832_v51, %v11613_v52  ;;  %v3833_v27 = vsel %vm38_vm0, %v11402_v3, %v11693_v1  ;;  %v11865_v1 = vpop.f32.mrb[24].mxu1 }
 0x226   :  { %1179 = vst.msk [vmem:[#allocation2 + $0x279] sm:$0xff] %vm38_vm0, %v1146_v60  ;;  %3661 = vrot.lane.b32.xlu1 %v1725_v56, %s10273_s15  ;;  %v4156_v61 = vsel %vm4145_vm8, %v4091_v22, %v3138_v43  ;;  %v3962_v38 = vsel %vm3950_vm5, %v3897_v31, %v11682_v30  ;;  %v3898_v22 = vsel %vm3885_vm4, %v3833_v27, %v11733_v21  ;;  %v1728_v31 = vld [vmem:[#allocation2 + $0x112] sm:$0xff] }
 0x227   :  { %v11775_v62 = vpop.permute.xlu0 %1865  ;;  %v4221_v34 = vsel %vm4210_vm9, %v4156_v61, %v3394_v36  ;;  %v4027_v63 = vsel %vm4015_vm6, %v3962_v38, %v11714_v40  ;;  %v11828_v36 = vld [vmem:[#allocation2 + $0x110] sm:$0xff]  ;;  %v3963_v61 = vsel %vm3950_vm5, %v3898_v22, %v11740_v25 }
 0x228   :  { %v11771_v4 = vpop.permute.xlu1 %2629  ;;  %v4092_v47 = vsel %vm4080_vm7, %v4027_v63, %v2884_v12 }
 0x229   :  { %1879 = vrot.lane.b32.xlu0 %v1662_v15, %s10267_s2  ;;  %v4157_v52 = vsel %vm4145_vm8, %v4092_v47, %v3140_v45  ;;  %v8882_v47 = vld [vmem:[%s17413_s1 + $0x1c0] sm:$0xff] }
 0x22a   :  { %2643 = vrot.lane.b32.xlu1 %v1662_v15, %s10269_s17  ;;  %v4222_v30 = vsel %vm4210_vm9, %v4157_v52, %v3396_v53  ;;  %v8881_v15 = vld [vmem:[%s17413_s1 + $0x1b8] sm:$0xff] }
 0x22b   :  { %v2886_v2 = vpop.permute.xlu0 %2885 }
 0x22c   :  { %v3650_v59 = vpop.permute.xlu1 %3649 }
 0x22d   :  { %v4285_v8 = vsel %vm188_vm2, %v4221_v34, %v3650_v59  ;;  %2899 = vrot.lane.b32.xlu0 %v1726_v20, %s10271_s19 }
 0x22e   :  { %9350 = vmatprep.mubr.msk.f32.mxu0 %vm4355_vm10, %v4285_v8  ;;  %3663 = vrot.lane.b32.xlu1 %v1726_v20, %s10273_s15  ;;  %v11869_v8 = vpop.f32.mrb[25].mxu1 }
 0x22f   :  { %v11804_v35 = vpop.permute.xlu0 %1867 }
 0x230   :  { %v11797_v41 = vpop.permute.xlu1 %2631 }
 0x231   :  { %1079 = vrot.lane.b32.xlu0 %v8880_v6, %s10266_s21 }
 0x232   :  { %2133 = vrot.lane.b32.xlu1 %v1725_v56, %s10268_s12 }
 0x233   :  { %v2888_v18 = vpop.permute.xlu0 %2887 }
 0x234   :  { %v3652_v14 = vpop.permute.xlu1 %3651 }
 0x235   :  { %v4286_v9 = vsel %vm188_vm2, %v4222_v30, %v3652_v14  ;;  %2389 = vrot.lane.b32.xlu0 %v11812_v23, %s10270_s18 }
 0x236   :  { %9351 = vmatmul.mubr.msk.f32.gmra.mrb[42].mxu0 %vm4355_vm10, %v4286_v9  ;;  %3153 = vrot.lane.b32.xlu1 %v11812_v23, %s10274_s0 }
 0x237   :  { %v1068_v12 = vpop.permute.xlu0 %1067 }
 0x238   :  { %v11819_v40 = vpop.permute.xlu1 %2121  ;;  %v1147_v13 = vsel %vm670_vm3, %v11534_v17, %v1068_v12  ;;  %v11900_v12 = vld [vmem:[#allocation2 + $0x120] sm:$0xff] }
 0x239   :  { %3409 = vrot.lane.b32.xlu0 %v1663_v29, %s10272_s20  ;;  %1180 = vst.msk [vmem:[#allocation2 + $0x289] sm:$0xff] %vm38_vm0, %v1147_v13 }
 0x23a   :  { %2135 = vrot.lane.b32.xlu1 %v1726_v20, %s10268_s12 }
 0x23b   :  { %v11826_v26 = vpop.permute.xlu0 %2377 }
 0x23c   :  { %v3142_v43 = vpop.permute.xlu1 %3141 }
 0x23d   :  { %2391 = vrot.lane.b32.xlu0 %v11828_v36, %s10270_s18 }
 0x23e   :  { %3155 = vrot.lane.b32.xlu1 %v11828_v36, %s10274_s0 }
 0x23f   :  { %v3398_v45 = vpop.permute.xlu0 %3397 }
 0x240   :  { %v11837_v17 = vpop.permute.xlu1 %2123 }
 0x241   :  { %3411 = vrot.lane.b32.xlu0 %v1664_v48, %s10272_s20 }
 0x242   :  { %1081 = vrot.lane.b32.xlu1 %v8881_v15, %s10266_s21 }
 0x243   :  { %v11841_v58 = vpop.permute.xlu0 %2379 }
 0x244   :  { %v3144_v7 = vpop.permute.xlu1 %3143 }
 0x245   :  { %1881 = vrot.lane.b32.xlu0 %v1663_v29, %s10267_s2 }
 0x246   :  { %2645 = vrot.lane.b32.xlu1 %v1663_v29, %s10269_s17  ;;  %v1665_v29 = vld [vmem:[#allocation2 + $0x121] sm:$0xff] }
 0x247   :  { %v3400_v56 = vpop.permute.xlu0 %3399 }
 0x248   :  { %v1070_v60 = vpop.permute.xlu1 %1069 }
 0x249   :  { %v1148_v53 = vsel %vm670_vm3, %v11531_v11, %v1070_v60  ;;  %2901 = vrot.lane.b32.xlu0 %v1727_v42, %s10271_s19  ;;  %v4028_v11 = vsel %vm4015_vm6, %v3963_v61, %v11771_v4  ;;  %v1666_v60 = vld [vmem:[#allocation2 + $0x129] sm:$0xff] }
 0x24a   :  { %1181 = vst.msk [vmem:[#allocation2 + $0x291] sm:$0xff] %vm38_vm0, %v1148_v53  ;;  %3665 = vrot.lane.b32.xlu1 %v1727_v42, %s10273_s15  ;;  %v4093_v3 = vsel %vm4080_vm7, %v4028_v11, %v2886_v2  ;;  %v3834_v2 = vsel %vm38_vm0, %v11422_v46, %v11720_v0 }
 0x24b   :  { %v11861_v59 = vpop.permute.xlu0 %1869  ;;  %v4158_v21 = vsel %vm4145_vm8, %v4093_v3, %v3142_v43  ;;  %v3899_v38 = vsel %vm3885_vm4, %v3834_v2, %v11751_v24  ;;  %v1729_v3 = vld [vmem:[#allocation2 + $0x122] sm:$0xff] }
 0x24c   :  { %v11857_v34 = vpop.permute.xlu1 %2633  ;;  %v4223_v25 = vsel %vm4210_vm9, %v4158_v21, %v3398_v45  ;;  %v3964_v6 = vsel %vm3950_vm5, %v3899_v38, %v11755_v16  ;;  %v11916_v45 = vld [vmem:[#allocation2 + $0x128] sm:$0xff]  ;;  %v3835_v21 = vsel %vm38_vm0, %v11472_v57, %v11775_v62  ;;  %v11957_v62 = vpop.f32.mrb[26].mxu1 }
 0x24d   :  { %1883 = vrot.lane.b32.xlu0 %v1664_v48, %s10267_s2  ;;  %v4029_v46 = vsel %vm4015_vm6, %v3964_v6, %v11797_v41  ;;  %v11961_v2 = vpop.f32.mrb[27].mxu1 }
 0x24e   :  { %2647 = vrot.lane.b32.xlu1 %v1664_v48, %s10269_s17  ;;  %v4094_v52 = vsel %vm4080_vm7, %v4029_v46, %v2888_v18  ;;  %v8883_v48 = vld [vmem:[%s17413_s1 + $0x1c8] sm:$0xff] }
 0x24f   :  { %v2890_v4 = vpop.permute.xlu0 %2889  ;;  %v4159_v24 = vsel %vm4145_vm8, %v4094_v52, %v3144_v7 }
 0x250   :  { %v3654_v20 = vpop.permute.xlu1 %3653  ;;  %v4224_v16 = vsel %vm4210_vm9, %v4159_v24, %v3400_v56 }
 0x251   :  { %v4287_v51 = vsel %vm188_vm2, %v4223_v25, %v3654_v20  ;;  %2903 = vrot.lane.b32.xlu0 %v1728_v31, %s10271_s19  ;;  %v3900_v25 = vsel %vm3885_vm4, %v3835_v21, %v11819_v40 }
 0x252   :  { %9353 = vmatprep.mubr.msk.f32.mxu0 %vm4355_vm10, %v4287_v51  ;;  %3667 = vrot.lane.b32.xlu1 %v1728_v31, %s10273_s15  ;;  %v3965_v20 = vsel %vm3950_vm5, %v3900_v25, %v11826_v26 }
 0x253   :  { %v11890_v0 = vpop.permute.xlu0 %1871 }
 0x254   :  { %v11883_v63 = vpop.permute.xlu1 %2635 }
 0x255   :  { %1083 = vrot.lane.b32.xlu0 %v8882_v47, %s10266_s21  ;;  %v1730_v47 = vld [vmem:[#allocation2 + $0x12a] sm:$0xff] }
 0x256   :  { %2137 = vrot.lane.b32.xlu1 %v1727_v42, %s10268_s12 }
 0x257   :  { %v11898_v9 = vpop.permute.xlu0 %2891 }
 0x258   :  { %v3656_v30 = vpop.permute.xlu1 %3655 }
 0x259   :  { %v4288_v14 = vsel %vm188_vm2, %v4224_v16, %v3656_v30  ;;  %2393 = vrot.lane.b32.xlu0 %v11900_v12, %s10270_s18  ;;  %v8884_v16 = vld [vmem:[%s17413_s1 + $0x1d0] sm:$0xff] }
 0x25a   :  { %9354 = vmatmul.mubr.msk.f32.gmra.mrb[44].mxu0 %vm4355_vm10, %v4288_v14  ;;  %3157 = vrot.lane.b32.xlu1 %v11900_v12, %s10274_s0 }
 0x25b   :  { %v1072_v18 = vpop.permute.xlu0 %1071 }
 0x25c   :  { %v11907_v41 = vpop.permute.xlu1 %2125  ;;  %v1149_v13 = vsel %vm670_vm3, %v11611_v49, %v1072_v18 }
 0x25d   :  { %3413 = vrot.lane.b32.xlu0 %v1665_v29, %s10272_s20  ;;  %1182 = vst.msk [vmem:[#allocation2 + $0x2a1] sm:$0xff] %vm38_vm0, %v1149_v13  ;;  %v11993_v13 = vld [vmem:[#allocation2 + $0x138] sm:$0xff] }
 0x25e   :  { %2139 = vrot.lane.b32.xlu1 %v1728_v31, %s10268_s12 }
 0x25f   :  { %v11914_v15 = vpop.permute.xlu0 %2381 }
 0x260   :  { %v3146_v43 = vpop.permute.xlu1 %3145 }
 0x261   :  { %2395 = vrot.lane.b32.xlu0 %v11916_v45, %s10270_s18 }
 0x262   :  { %3159 = vrot.lane.b32.xlu1 %v11916_v45, %s10274_s0 }
 0x263   :  { %v3402_v7 = vpop.permute.xlu0 %3401 }
 0x264   :  { %v11925_v49 = vpop.permute.xlu1 %2127 }
 0x265   :  { %3415 = vrot.lane.b32.xlu0 %v1666_v60, %s10272_s20 }
 0x266   :  { %1085 = vrot.lane.b32.xlu1 %v8883_v48, %s10266_s21 }
 0x267   :  { %v11929_v56 = vpop.permute.xlu0 %2383 }
 0x268   :  { %v3148_v53 = vpop.permute.xlu1 %3147 }
 0x269   :  { %1885 = vrot.lane.b32.xlu0 %v1665_v29, %s10267_s2 }
 0x26a   :  { %2649 = vrot.lane.b32.xlu1 %v1665_v29, %s10269_s17  ;;  %v11932_v42 = vpop.f32.mrb[32].mxu0 }
 0x26b   :  { %v11935_v27 = vpop.f32.mrb[33].mxu0  ;;  %v3404_v11 = vpop.permute.xlu0 %3403 }
 0x26c   :  { %v1074_v22 = vpop.permute.xlu1 %1073 }
 0x26d   :  { %v1150_v61 = vsel %vm670_vm3, %v11608_v50, %v1074_v22  ;;  %2905 = vrot.lane.b32.xlu0 %v1729_v3, %s10271_s19  ;;  %v4030_v50 = vsel %vm4015_vm6, %v3965_v20, %v11857_v34  ;;  %v8885_v22 = vld [vmem:[%s17413_s1 + $0x1d8] sm:$0xff] }
 0x26e   :  { %1183 = vst.msk [vmem:[#allocation2 + $0x2a9] sm:$0xff] %vm38_vm0, %v1150_v61  ;;  %3669 = vrot.lane.b32.xlu1 %v1729_v3, %s10273_s15  ;;  %v4095_v57 = vsel %vm4080_vm7, %v4030_v50, %v2890_v4  ;;  %v3836_v4 = vsel %vm38_vm0, %v11496_v39, %v11804_v35 }
 0x26f   :  { %v11953_v31 = vpop.permute.xlu0 %1873  ;;  %v4160_v40 = vsel %vm4145_vm8, %v4095_v57, %v3146_v43  ;;  %v3901_v46 = vsel %vm3885_vm4, %v3836_v4, %v11837_v17  ;;  %v1667_v43 = vld [vmem:[#allocation2 + $0x139] sm:$0xff] }
 0x270   :  { %v11949_v51 = vpop.permute.xlu1 %2637  ;;  %v4225_v26 = vsel %vm4210_vm9, %v4160_v40, %v3402_v7  ;;  %v3966_v52 = vsel %vm3950_vm5, %v3901_v46, %v11841_v58 }
 0x271   :  { %1887 = vrot.lane.b32.xlu0 %v1666_v60, %s10267_s2  ;;  %v4031_v39 = vsel %vm4015_vm6, %v3966_v52, %v11883_v63 }
 0x272   :  { %2651 = vrot.lane.b32.xlu1 %v1666_v60, %s10269_s17  ;;  %v4096_v30 = vsel %vm4080_vm7, %v4031_v39, %v11898_v9 }
 0x273   :  { %v2894_v34 = vpop.permute.xlu0 %2893  ;;  %v4161_v17 = vsel %vm4145_vm8, %v4096_v30, %v3148_v53  ;;  %v12009_v53 = vld [vmem:[#allocation2 + $0x140] sm:$0xff] }
 0x274   :  { %v3658_v38 = vpop.permute.xlu1 %3657  ;;  %v4226_v58 = vsel %vm4210_vm9, %v4161_v17, %v3404_v11  ;;  %v1668_v11 = vld [vmem:[#allocation2 + $0x141] sm:$0xff] }
 0x275   :  { %v4289_v6 = vsel %vm188_vm2, %v4225_v26, %v3658_v38  ;;  %2907 = vrot.lane.b32.xlu0 %v1730_v47, %s10271_s19  ;;  %v1731_v26 = vld [vmem:[#allocation2 + $0x13a] sm:$0xff]  ;;  %v3837_v38 = vsel %vm38_vm0, %v11553_v10, %v11861_v59  ;;  %v12050_v59 = vpop.f32.mrb[28].mxu1  ;;  %v1732_v30 = vld [vmem:[#allocation2 + $0x142] sm:$0xff] }
 0x276   :  { %9356 = vmatprep.mubr.msk.f32.mxu0 %vm4355_vm10, %v4289_v6  ;;  %3671 = vrot.lane.b32.xlu1 %v1730_v47, %s10273_s15  ;;  %v3902_v6 = vsel %vm3885_vm4, %v3837_v38, %v11907_v41  ;;  %v12054_v52 = vpop.f32.mrb[29].mxu1 }
 0x277   :  { %v11982_v35 = vpop.permute.xlu0 %1875 }
 0x278   :  { %v11975_v24 = vpop.permute.xlu1 %2639 }
 0x279   :  { %1087 = vrot.lane.b32.xlu0 %v8884_v16, %s10266_s21 }
 0x27a   :  { %2141 = vrot.lane.b32.xlu1 %v1729_v3, %s10268_s12 }
 0x27b   :  { %v11991_v29 = vpop.permute.xlu0 %2895 }
 0x27c   :  { %v3660_v14 = vpop.permute.xlu1 %3659 }
 0x27d   :  { %v4290_v18 = vsel %vm188_vm2, %v4226_v58, %v3660_v14  ;;  %2397 = vrot.lane.b32.xlu0 %v11993_v13, %s10270_s18 }
 0x27e   :  { %9357 = vmatmul.mubr.msk.f32.gmra.mrb[46].mxu0 %vm4355_vm10, %v4290_v18  ;;  %3161 = vrot.lane.b32.xlu1 %v11993_v13, %s10274_s0  ;;  %v8886_v18 = vld [vmem:[%s17413_s1 + $0x1e0] sm:$0xff] }
 0x27f   :  { %v1076_v9 = vpop.permute.xlu0 %1075 }
 0x280   :  { %v12000_v63 = vpop.permute.xlu1 %2129  ;;  %v1151_v48 = vsel %vm670_vm3, %v11703_v19, %v1076_v9 }
 0x281   :  { %3417 = vrot.lane.b32.xlu0 %v1667_v43, %s10272_s20  ;;  %1184 = vst.msk [vmem:[#allocation2 + $0x2b9] sm:$0xff] %vm38_vm0, %v1151_v48 }
 0x282   :  { %2143 = vrot.lane.b32.xlu1 %v1730_v47, %s10268_s12  ;;  %v3967_v47 = vsel %vm3950_vm5, %v3902_v6, %v11914_v15 }
 0x283   :  { %v12007_v60 = vpop.permute.xlu0 %2385 }
 0x284   :  { %v3150_v7 = vpop.permute.xlu1 %3149 }
 0x285   :  { %2399 = vrot.lane.b32.xlu0 %v12009_v53, %s10270_s18 }
 0x286   :  { %3163 = vrot.lane.b32.xlu1 %v12009_v53, %s10274_s0 }
 0x287   :  { %v3406_v61 = vpop.permute.xlu0 %3405 }
 0x288   :  { %v12018_v19 = vpop.permute.xlu1 %2131 }
 0x289   :  { %3419 = vrot.lane.b32.xlu0 %v1668_v11, %s10272_s20 }
 0x28a   :  { %1089 = vrot.lane.b32.xlu1 %v8885_v22, %s10266_s21  ;;  %v12021_v3 = vpop.f32.mrb[34].mxu0  ;;  %v12086_v22 = vld [vmem:[#allocation2 + $0x150] sm:$0xff] }
 0x28b   :  { %v12024_v21 = vpop.f32.mrb[35].mxu0  ;;  %v12026_v20 = vpop.permute.xlu0 %2387 }
 0x28c   :  { %v3152_v25 = vpop.permute.xlu1 %3151 }
 0x28d   :  { %1889 = vrot.lane.b32.xlu0 %v1667_v43, %s10267_s2 }
 0x28e   :  { %2653 = vrot.lane.b32.xlu1 %v1667_v43, %s10269_s17 }
 0x28f   :  { %v3408_v40 = vpop.permute.xlu0 %3407 }
 0x290   :  { %v1078_v50 = vpop.permute.xlu1 %1077 }
 0x291   :  { %v1152_v57 = vsel %vm670_vm3, %v11700_v33, %v1078_v50  ;;  %2909 = vrot.lane.b32.xlu0 %v1731_v26, %s10271_s19  ;;  %v4032_v33 = vsel %vm4015_vm6, %v3967_v47, %v11949_v51  ;;  %v1670_v47 = vld [vmem:[#allocation2 + $0x159] sm:$0xff] }
 0x292   :  { %1185 = vst.msk [vmem:[#allocation2 + $0x2c1] sm:$0xff] %vm38_vm0, %v1152_v57  ;;  %3673 = vrot.lane.b32.xlu1 %v1731_v26, %s10273_s15  ;;  %v4097_v10 = vsel %vm4080_vm7, %v4032_v33, %v2894_v34  ;;  %v3838_v34 = vsel %vm38_vm0, %v11578_v44, %v11890_v0  ;;  %v12102_v57 = vld [vmem:[#allocation2 + $0x158] sm:$0xff] }
 0x293   :  { %v12046_v46 = vpop.permute.xlu0 %1877  ;;  %v4162_v41 = vsel %vm4145_vm8, %v4097_v10, %v3150_v7  ;;  %v3903_v17 = vsel %vm3885_vm4, %v3838_v34, %v11925_v49 }
 0x294   :  { %v12042_v4 = vpop.permute.xlu1 %2641  ;;  %v4227_v15 = vsel %vm4210_vm9, %v4162_v41, %v3406_v61  ;;  %v3968_v58 = vsel %vm3950_vm5, %v3903_v17, %v11929_v56  ;;  %v1669_v61 = vld [vmem:[#allocation2 + $0x151] sm:$0xff] }
 0x295   :  { %1891 = vrot.lane.b32.xlu0 %v1668_v11, %s10267_s2  ;;  %v4033_v44 = vsel %vm4015_vm6, %v3968_v58, %v11975_v24 }
 0x296   :  { %2655 = vrot.lane.b32.xlu1 %v1668_v11, %s10269_s17  ;;  %v4098_v9 = vsel %vm4080_vm7, %v4033_v44, %v11991_v29 }
 0x297   :  { %v2898_v51 = vpop.permute.xlu0 %2897  ;;  %v4163_v49 = vsel %vm4145_vm8, %v4098_v9, %v3152_v25 }
 0x298   :  { %v3662_v16 = vpop.permute.xlu1 %3661  ;;  %v4228_v56 = vsel %vm4210_vm9, %v4163_v49, %v3408_v40 }
 0x299   :  { %v4291_v39 = vsel %vm188_vm2, %v4227_v15, %v3662_v16  ;;  %2911 = vrot.lane.b32.xlu0 %v1732_v30, %s10271_s19 }
 0x29a   :  { %9359 = vmatprep.mubr.msk.f32.mxu0 %vm4355_vm10, %v4291_v39  ;;  %3675 = vrot.lane.b32.xlu1 %v1732_v30, %s10273_s15  ;;  %v1733_v39 = vld [vmem:[#allocation2 + $0x152] sm:$0xff] }
 0x29b   :  { %v12075_v0 = vpop.permute.xlu0 %1879 }
 0x29c   :  { %v12068_v14 = vpop.permute.xlu1 %2643 }
 0x29d   :  { %1091 = vrot.lane.b32.xlu0 %v8886_v18, %s10266_s21 }
 0x29e   :  { %2145 = vrot.lane.b32.xlu1 %v1731_v26, %s10268_s12 }
 0x29f   :  { %v12084_v7 = vpop.permute.xlu0 %2899 }
 0x2a0   :  { %v3664_v43 = vpop.permute.xlu1 %3663 }
 0x2a1   :  { %v4292_v48 = vsel %vm188_vm2, %v4228_v56, %v3664_v43  ;;  %2401 = vrot.lane.b32.xlu0 %v12086_v22, %s10270_s18  ;;  %v1734_v56 = vld [vmem:[#allocation2 + $0x15a] sm:$0xff] }
 0x2a2   :  { %9360 = vmatmul.mubr.msk.f32.gmra.mrb[48].mxu0 %vm4355_vm10, %v4292_v48  ;;  %3165 = vrot.lane.b32.xlu1 %v12086_v22, %s10274_s0 }
 0x2a3   :  { %v1080_v29 = vpop.permute.xlu0 %1079 }
 0x2a4   :  { %v12093_v24 = vpop.permute.xlu1 %2133  ;;  %v1153_v11 = vsel %vm670_vm3, %v11783_v37, %v1080_v29  ;;  %v8887_v37 = vld [vmem:[%s17413_s1 + $0x1e8] sm:$0xff] }
 0x2a5   :  { %3421 = vrot.lane.b32.xlu0 %v1669_v61, %s10272_s20  ;;  %1186 = vst.msk [vmem:[#allocation2 + $0x2d1] sm:$0xff] %vm38_vm0, %v1153_v11 }
 0x2a6   :  { %2147 = vrot.lane.b32.xlu1 %v1732_v30, %s10268_s12  ;;  %v3839_v30 = vsel %vm38_vm0, %v11640_v28, %v11953_v31  ;;  %v12143_v31 = vpop.f32.mrb[30].mxu1 }
 0x2a7   :  { %v12100_v50 = vpop.permute.xlu0 %2389  ;;  %v3904_v34 = vsel %vm3885_vm4, %v3839_v30, %v12000_v63  ;;  %v12147_v44 = vpop.f32.mrb[31].mxu1 }
 0x2a8   :  { %v3154_v25 = vpop.permute.xlu1 %3153  ;;  %v3969_v17 = vsel %vm3950_vm5, %v3904_v34, %v12007_v60  ;;  %v12197_v34 = vld [vmem:[#allocation2 + $0x170] sm:$0xff] }
 0x2a9   :  { %2403 = vrot.lane.b32.xlu0 %v12102_v57, %s10270_s18 }
 0x2aa   :  { %3167 = vrot.lane.b32.xlu1 %v12102_v57, %s10274_s0  ;;  %v12106_v40 = vpop.f32.mrb[36].mxu0 }
 0x2ab   :  { %v12110_v26 = vpop.f32.mrb[37].mxu0  ;;  %v3410_v6 = vpop.permute.xlu0 %3409 }
 0x2ac   :  { %v12115_v38 = vpop.permute.xlu1 %2135 }
 0x2ad   :  { %3423 = vrot.lane.b32.xlu0 %v1670_v47, %s10272_s20 }
 0x2ae   :  { %1093 = vrot.lane.b32.xlu1 %v8887_v37, %s10266_s21 }
 0x2af   :  { %v12119_v10 = vpop.permute.xlu0 %2391 }
 0x2b0   :  { %v3156_v33 = vpop.permute.xlu1 %3155 }
 0x2b1   :  { %1893 = vrot.lane.b32.xlu0 %v1669_v61, %s10267_s2 }
 0x2b2   :  { %2657 = vrot.lane.b32.xlu1 %v1669_v61, %s10269_s17  ;;  %v8888_v61 = vld [vmem:[%s17413_s1 + $0x1f0] sm:$0xff] }
 0x2b3   :  { %v3412_v16 = vpop.permute.xlu0 %3411 }
 0x2b4   :  { %v1082_v41 = vpop.permute.xlu1 %1081 }
 0x2b5   :  { %v1154_v15 = vsel %vm670_vm3, %v11779_v32, %v1082_v41  ;;  %2913 = vrot.lane.b32.xlu0 %v1733_v39, %s10271_s19  ;;  %v4034_v32 = vsel %vm4015_vm6, %v3969_v17, %v12042_v4 }
 0x2b6   :  { %1187 = vst.msk [vmem:[#allocation2 + $0x2d9] sm:$0xff] %vm38_vm0, %v1154_v15  ;;  %3677 = vrot.lane.b32.xlu1 %v1733_v39, %s10273_s15  ;;  %v4099_v28 = vsel %vm4080_vm7, %v4034_v32, %v2898_v51  ;;  %v3840_v51 = vsel %vm38_vm0, %v11656_v55, %v11982_v35 }
 0x2b7   :  { %v12139_v18 = vpop.permute.xlu0 %1881  ;;  %v4164_v63 = vsel %vm4145_vm8, %v4099_v28, %v3154_v25  ;;  %v3905_v43 = vsel %vm3885_vm4, %v3840_v51, %v12018_v19  ;;  %v1672_v28 = vld [vmem:[#allocation2 + $0x171] sm:$0xff] }
 0x2b8   :  { %v12135_v58 = vpop.permute.xlu1 %2645  ;;  %v4229_v60 = vsel %vm4210_vm9, %v4164_v63, %v3410_v6  ;;  %v3970_v48 = vsel %vm3950_vm5, %v3905_v43, %v12026_v20  ;;  %v1735_v51 = vld [vmem:[#allocation2 + $0x16a] sm:$0xff]  ;;  %v3841_v43 = vsel %vm38_vm0, %v11726_v5, %v12046_v46 }
 0x2b9   :  { %1895 = vrot.lane.b32.xlu0 %v1670_v47, %s10267_s2  ;;  %v4035_v55 = vsel %vm4015_vm6, %v3970_v48, %v12068_v14  ;;  %v3906_v48 = vsel %vm3885_vm4, %v3841_v43, %v12093_v24  ;;  %v1673_v43 = vld [vmem:[#allocation2 + $0x181] sm:$0xff] }
 0x2ba   :  { %2659 = vrot.lane.b32.xlu1 %v1670_v47, %s10269_s17  ;;  %v4100_v11 = vsel %vm4080_vm7, %v4035_v55, %v12084_v7  ;;  %v12177_v47 = vld [vmem:[#allocation2 + $0x168] sm:$0xff] }
 0x2bb   :  { %v2902_v4 = vpop.permute.xlu0 %2901  ;;  %v4165_v19 = vsel %vm4145_vm8, %v4100_v11, %v3156_v33  ;;  %v1671_v33 = vld [vmem:[#allocation2 + $0x169] sm:$0xff] }
 0x2bc   :  { %v3666_v9 = vpop.permute.xlu1 %3665  ;;  %v4230_v20 = vsel %vm4210_vm9, %v4165_v19, %v3412_v16 }
 0x2bd   :  { %v4293_v49 = vsel %vm188_vm2, %v4229_v60, %v3666_v9  ;;  %2915 = vrot.lane.b32.xlu0 %v1734_v56, %s10271_s19 }
 0x2be   :  { %9362 = vmatprep.mubr.msk.f32.mxu0 %vm4355_vm10, %v4293_v49  ;;  %3679 = vrot.lane.b32.xlu1 %v1734_v56, %s10273_s15 }
 0x2bf   :  { %v12168_v35 = vpop.permute.xlu0 %1883 }
 0x2c0   :  { %v12161_v29 = vpop.permute.xlu1 %2647 }
 0x2c1   :  { %1095 = vrot.lane.b32.xlu0 %v8888_v61, %s10266_s21  ;;  %v3971_v61 = vsel %vm3950_vm5, %v3906_v48, %v12100_v50  ;;  %v1674_v48 = vld [vmem:[#allocation2 + $0x189] sm:$0xff] }
 0x2c2   :  { %2149 = vrot.lane.b32.xlu1 %v1733_v39, %s10268_s12 }
 0x2c3   :  { %v2904_v6 = vpop.permute.xlu0 %2903 }
 0x2c4   :  { %v3668_v25 = vpop.permute.xlu1 %3667 }
 0x2c5   :  { %v4294_v37 = vsel %vm188_vm2, %v4230_v20, %v3668_v25  ;;  %2405 = vrot.lane.b32.xlu0 %v12177_v47, %s10270_s18  ;;  %v1736_v25 = vld [vmem:[#allocation2 + $0x172] sm:$0xff] }
 0x2c6   :  { %9363 = vmatmul.mubr.msk.f32.gmra.mrb[50].mxu0 %vm4355_vm10, %v4294_v37  ;;  %3169 = vrot.lane.b32.xlu1 %v12177_v47, %s10274_s0 }
 0x2c7   :  { %v1084_v7 = vpop.permute.xlu0 %1083 }
 0x2c8   :  { %v12184_v14 = vpop.permute.xlu1 %2137  ;;  %v1155_v15 = vsel %vm670_vm3, %v11869_v8, %v1084_v7  ;;  %v8889_v8 = vld [vmem:[%s17413_s1 + $0x1f8] sm:$0xff] }
 0x2c9   :  { %3425 = vrot.lane.b32.xlu0 %v1671_v33, %s10272_s20  ;;  %1188 = vst.msk [vmem:[#allocation2 + $0x2e9] sm:$0xff] %vm38_vm0, %v1155_v15 }
 0x2ca   :  { %2151 = vrot.lane.b32.xlu1 %v1734_v56, %s10268_s12  ;;  %v12187_v41 = vpop.f32.mrb[38].mxu0 }
 0x2cb   :  { %v12192_v16 = vpop.f32.mrb[39].mxu0  ;;  %v12195_v30 = vpop.permute.xlu0 %2393 }
 0x2cc   :  { %v3158_v39 = vpop.permute.xlu1 %3157 }
 0x2cd   :  { %2407 = vrot.lane.b32.xlu0 %v12197_v34, %s10270_s18 }
 0x2ce   :  { %3171 = vrot.lane.b32.xlu1 %v12197_v34, %s10274_s0 }
 0x2cf   :  { %v3414_v32 = vpop.permute.xlu0 %3413 }
 0x2d0   :  { %v12206_v17 = vpop.permute.xlu1 %2139 }
 0x2d1   :  { %3427 = vrot.lane.b32.xlu0 %v1672_v28, %s10272_s20 }
 0x2d2   :  { %1097 = vrot.lane.b32.xlu1 %v8889_v8, %s10266_s21 }
 0x2d3   :  { %v12210_v60 = vpop.permute.xlu0 %2395 }
 0x2d4   :  { %v3160_v63 = vpop.permute.xlu1 %3159 }
 0x2d5   :  { %1897 = vrot.lane.b32.xlu0 %v1671_v33, %s10267_s2 }
 0x2d6   :  { %2661 = vrot.lane.b32.xlu1 %v1671_v33, %s10269_s17 }
 0x2d7   :  { %v3416_v56 = vpop.permute.xlu0 %3415 }
 0x2d8   :  { %v1086_v9 = vpop.permute.xlu1 %1085 }
 0x2d9   :  { %v1156_v49 = vsel %vm670_vm3, %v11865_v1, %v1086_v9  ;;  %2917 = vrot.lane.b32.xlu0 %v1735_v51, %s10271_s19  ;;  %v4036_v1 = vsel %vm4015_vm6, %v3971_v61, %v12135_v58  ;;  %v3842_v58 = vsel %vm38_vm0, %v11742_v54, %v12075_v0  ;;  %v1610_v9 = vld [vmem:[#allocation2 + $0x188] sm:$0xff] }
 0x2da   :  { %1189 = vst.msk [vmem:[#allocation2 + $0x2f1] sm:$0xff] %vm38_vm0, %v1156_v49  ;;  %3681 = vrot.lane.b32.xlu1 %v1735_v51, %s10273_s15  ;;  %v4101_v5 = vsel %vm4080_vm7, %v4036_v1, %v2902_v4  ;;  %v3907_v4 = vsel %vm3885_vm4, %v3842_v58, %v12115_v38  ;;  %v1292_v1 = vld [vmem:[#allocation2 + $0x1b1] sm:$0xff] }
 0x2db   :  { %v12230_v11 = vpop.permute.xlu0 %1885  ;;  %v4166_v46 = vsel %vm4145_vm8, %v4101_v5, %v3158_v39  ;;  %v3972_v37 = vsel %vm3950_vm5, %v3907_v4, %v12119_v10  ;;  %v3843_v4 = vsel %vm38_vm0, %v11812_v23, %v12139_v18  ;;  %v1547_v23 = vld [vmem:[#allocation2 + $0x18a] sm:$0xff] }
 0x2dc   :  { %v12226_v55 = vpop.permute.xlu1 %2649  ;;  %v4231_v24 = vsel %vm4210_vm9, %v4166_v46, %v3414_v32  ;;  %v4037_v33 = vsel %vm4015_vm6, %v3972_v37, %v12161_v29  ;;  %v3908_v37 = vsel %vm3885_vm4, %v3843_v4, %v12184_v14 }
 0x2dd   :  { %1899 = vrot.lane.b32.xlu0 %v1672_v28, %s10267_s2  ;;  %v4102_v0 = vsel %vm4080_vm7, %v4037_v33, %v2904_v6  ;;  %v3973_v33 = vsel %vm3950_vm5, %v3908_v37, %v12195_v30 }
 0x2de   :  { %2663 = vrot.lane.b32.xlu1 %v1672_v28, %s10269_s17  ;;  %v4167_v38 = vsel %vm4145_vm8, %v4102_v0, %v3160_v63  ;;  %v1609_v28 = vld [vmem:[#allocation2 + $0x180] sm:$0xff] }
 0x2df   :  { %v12238_v20 = vpop.permute.xlu0 %2905  ;;  %v4232_v10 = vsel %vm4210_vm9, %v4167_v38, %v3416_v56 }
 0x2e0   :  { %v3670_v19 = vpop.permute.xlu1 %3669 }
 0x2e1   :  { %v4295_v50 = vsel %vm188_vm2, %v4231_v24, %v3670_v19  ;;  %2919 = vrot.lane.b32.xlu0 %v1736_v25, %s10271_s19  ;;  %v1546_v24 = vld [vmem:[#allocation2 + $0x182] sm:$0xff] }
 0x2e2   :  { %9365 = vmatprep.mubr.msk.f32.mxu0 %vm4355_vm10, %v4295_v50  ;;  %3683 = vrot.lane.b32.xlu1 %v1736_v25, %s10273_s15  ;;  %v1293_v50 = vld [vmem:[#allocation2 + $0x1b9] sm:$0xff] }
 0x2e3   :  { %v12254_v15 = vpop.permute.xlu0 %1887 }
 0x2e4   :  { %v12250_v7 = vpop.permute.xlu1 %2651 }
 0x2e5   :  { %v12256_v54 = vpop.f32.mrb[40].mxu0  ;;  %2155 = vrot.lane.b32.xlu0 %v1736_v25, %s10268_s12 }
 0x2e6   :  { %2153 = vrot.lane.b32.xlu1 %v1735_v51, %s10268_s12  ;;  %v12260_v39 = vpop.f32.mrb[41].mxu0 }
 0x2e7   :  { %v12266_v29 = vpop.permute.xlu0 %2907 }
 0x2e8   :  { %v3672_v8 = vpop.permute.xlu1 %3671 }
 0x2e9   :  { %v4296_v32 = vsel %vm188_vm2, %v4232_v10, %v3672_v8  ;;  %3175 = vrot.lane.b32.xlu0 %v1610_v9, %s10274_s0  ;;  %v1356_v10 = vld [vmem:[#allocation2 + $0x1b2] sm:$0xff] }
 0x2ea   :  { %9366 = vmatmul.mubr.msk.f32.gmra.mrb[52].mxu0 %vm4355_vm10, %v4296_v32  ;;  %3173 = vrot.lane.b32.xlu1 %v1609_v28, %s10274_s0  ;;  %v1357_v32 = vld [vmem:[#allocation2 + $0x1ba] sm:$0xff] }
 0x2eb   :  { %v1088_v63 = vpop.permute.xlu0 %1087 }
 0x2ec   :  { %v12271_v6 = vpop.permute.xlu1 %2141  ;;  %v1157_v49 = vsel %vm670_vm3, %v11961_v2, %v1088_v63  ;;  %v1611_v63 = vld [vmem:[#allocation2 + $0x198] sm:$0xff] }
 0x2ed   :  { %2411 = vrot.lane.b32.xlu0 %v1610_v9, %s10270_s18  ;;  %1190 = vst.msk [vmem:[#allocation2 + $0x301] sm:$0xff] %vm38_vm0, %v1157_v49  ;;  %v3844_v9 = vsel %vm38_vm0, %v11828_v36, %v12168_v35 }
 0x2ee   :  { %2409 = vrot.lane.b32.xlu1 %v1609_v28, %s10270_s18 }
 0x2ef   :  { %v12278_v51 = vpop.permute.xlu0 %2397 }
 0x2f0   :  { %v3162_v56 = vpop.permute.xlu1 %3161 }
 0x2f1   :  { %3431 = vrot.lane.b32.xlu0 %v1674_v48, %s10272_s20 }
 0x2f2   :  { %3429 = vrot.lane.b32.xlu1 %v1673_v43, %s10272_s20 }
 0x2f3   :  { %v3418_v5 = vpop.permute.xlu0 %3417 }
 0x2f4   :  { %v12282_v61 = vpop.permute.xlu1 %2143 }
 0x2f5   :  { %1901 = vrot.lane.b32.xlu0 %v1292_v1, %s10267_s2 }
 0x2f6   :  { %2665 = vrot.lane.b32.xlu1 %v1673_v43, %s10269_s17  ;;  %v1612_v43 = vld [vmem:[#allocation2 + $0x1a0] sm:$0xff] }
 0x2f7   :  { %v12286_v46 = vpop.permute.xlu0 %2399 }
 0x2f8   :  { %v3164_v2 = vpop.permute.xlu1 %3163 }
 0x2f9   :  { %2921 = vrot.lane.b32.xlu0 %v1546_v24, %s10271_s19 }
 0x2fa   :  { %3685 = vrot.lane.b32.xlu1 %v1546_v24, %s10273_s15 }
 0x2fb   :  { %v3420_v58 = vpop.permute.xlu0 %3419 }
 0x2fc   :  { %v1090_v19 = vpop.permute.xlu1 %1089 }
 0x2fd   :  { %v1158_v25 = vsel %vm670_vm3, %v11957_v62, %v1090_v19  ;;  %1903 = vrot.lane.b32.xlu0 %v1293_v50, %s10267_s2  ;;  %v4038_v62 = vsel %vm4015_vm6, %v3973_v33, %v12226_v55  ;;  %v12346_v50 = vld [vmem:[#allocation2 + $0x1c8] sm:$0xff] }
 0x2fe   :  { %1191 = vst.msk [vmem:[#allocation2 + $0x309] sm:$0xff] %vm38_vm0, %v1158_v25  ;;  %2667 = vrot.lane.b32.xlu1 %v1674_v48, %s10269_s17  ;;  %v4103_v18 = vsel %vm4080_vm7, %v4038_v62, %v12238_v20  ;;  %v3909_v20 = vsel %vm3885_vm4, %v3844_v9, %v12206_v17 }
 0x2ff   :  { %v12306_v38 = vpop.permute.xlu0 %1889  ;;  %v4168_v14 = vsel %vm4145_vm8, %v4103_v18, %v3162_v56  ;;  %v3974_v49 = vsel %vm3950_vm5, %v3909_v20, %v12210_v60  ;;  %v1739_v18 = vld [vmem:[#allocation2 + $0x19a] sm:$0xff] }
 0x300   :  { %v12302_v0 = vpop.permute.xlu1 %2653  ;;  %v4233_v30 = vsel %vm4210_vm9, %v4168_v14, %v3418_v5  ;;  %v4039_v48 = vsel %vm4015_vm6, %v3974_v49, %v12250_v7  ;;  %v3845_v49 = vsel %vm38_vm0, %v11900_v12, %v12230_v11 }
 0x301   :  { %2923 = vrot.lane.b32.xlu0 %v1547_v23, %s10271_s19  ;;  %v4104_v1 = vsel %vm4080_vm7, %v4039_v48, %v12266_v29  ;;  %v12349_v29 = vld [vmem:[#allocation2 + $0x1d0] sm:$0xff]  ;;  %v3910_v48 = vsel %vm3885_vm4, %v3845_v49, %v12271_v6  ;;  %v1550_v49 = vld [vmem:[#allocation2 + $0x1e2] sm:$0xff] }
 0x302   :  { %3687 = vrot.lane.b32.xlu1 %v1547_v23, %s10273_s15  ;;  %v4169_v5 = vsel %vm4145_vm8, %v4104_v1, %v3164_v2  ;;  %v1675_v2 = vld [vmem:[#allocation2 + $0x199] sm:$0xff]  ;;  %v1294_v23 = vld [vmem:[#allocation2 + $0x1c9] sm:$0xff]  ;;  %v3975_v1 = vsel %vm3950_vm5, %v3910_v48, %v12278_v51 }
 0x303   :  { %v12315_v55 = vpop.permute.xlu0 %2909  ;;  %v4234_v60 = vsel %vm4210_vm9, %v4169_v5, %v3420_v58  ;;  %v1676_v58 = vld [vmem:[#allocation2 + $0x1a1] sm:$0xff] }
 0x304   :  { %v3674_v8 = vpop.permute.xlu1 %3673 }
 0x305   :  { %v4297_v28 = vsel %vm188_vm2, %v4233_v30, %v3674_v8  ;;  %2159 = vrot.lane.b32.xlu0 %v1357_v32, %s10268_s12  ;;  %v1548_v30 = vld [vmem:[#allocation2 + $0x1ca] sm:$0xff] }
 0x306   :  { %9368 = vmatprep.mubr.msk.f32.mxu0 %vm4355_vm10, %v4297_v28  ;;  %2157 = vrot.lane.b32.xlu1 %v1356_v10, %s10268_s12  ;;  %v1295_v32 = vld [vmem:[#allocation2 + $0x1d1] sm:$0xff]  ;;  %v1740_v28 = vld [vmem:[#allocation2 + $0x1a2] sm:$0xff] }
 0x307   :  { %v12331_v36 = vpop.permute.xlu0 %1891 }
 0x308   :  { %v12327_v56 = vpop.permute.xlu1 %2655 }
 0x309   :  { %v12333_v35 = vpop.f32.mrb[42].mxu0  ;;  %3179 = vrot.lane.b32.xlu0 %v1612_v43, %s10274_s0  ;;  %v1549_v43 = vld [vmem:[#allocation2 + $0x1d2] sm:$0xff] }
 0x30a   :  { %v12337_v17 = vpop.f32.mrb[43].mxu0  ;;  %3177 = vrot.lane.b32.xlu1 %v1611_v63, %s10274_s0 }
 0x30b   :  { %v12344_v19 = vpop.permute.xlu0 %2911 }
 0x30c   :  { %v3676_v24 = vpop.permute.xlu1 %3675 }
 0x30d   :  { %v4298_v7 = vsel %vm188_vm2, %v4234_v60, %v3676_v24  ;;  %2415 = vrot.lane.b32.xlu0 %v12349_v29, %s10270_s18 }
 0x30e   :  { %9369 = vmatmul.mubr.msk.f32.gmra.mrb[54].mxu0 %vm4355_vm10, %v4298_v7  ;;  %2413 = vrot.lane.b32.xlu1 %v12346_v50, %s10270_s18 }
 0x30f   :  { %v1092_v4 = vpop.permute.xlu0 %1091 }
 0x310   :  { %v12355_v25 = vpop.permute.xlu1 %2145  ;;  %v1159_v37 = vsel %vm670_vm3, %v12054_v52, %v1092_v4 }
 0x311   :  { %3435 = vrot.lane.b32.xlu0 %v1676_v58, %s10272_s20  ;;  %1192 = vst.msk [vmem:[#allocation2 + $0x319] sm:$0xff] %vm38_vm0, %v1159_v37 }
 0x312   :  { %3433 = vrot.lane.b32.xlu1 %v1675_v2, %s10272_s20  ;;  %v12399_v2 = vld [vmem:[#allocation2 + $0x1e0] sm:$0xff] }
 0x313   :  { %v12362_v62 = vpop.permute.xlu0 %2401 }
 0x314   :  { %v3166_v33 = vpop.permute.xlu1 %3165 }
 0x315   :  { %1905 = vrot.lane.b32.xlu0 %v1294_v23, %s10267_s2 }
 0x316   :  { %2669 = vrot.lane.b32.xlu1 %v1294_v23, %s10269_s17 }
 0x317   :  { %v3422_v10 = vpop.permute.xlu0 %3421 }
 0x318   :  { %v12366_v14 = vpop.permute.xlu1 %2147 }
 0x319   :  { %2925 = vrot.lane.b32.xlu0 %v1548_v30, %s10271_s19 }
 0x31a   :  { %3689 = vrot.lane.b32.xlu1 %v1739_v18, %s10273_s15 }
 0x31b   :  { %v12370_v8 = vpop.permute.xlu0 %2403 }
 0x31c   :  { %v3168_v52 = vpop.permute.xlu1 %3167 }
 0x31d   :  { %1907 = vrot.lane.b32.xlu0 %v1295_v32, %s10267_s2 }
 0x31e   :  { %2671 = vrot.lane.b32.xlu1 %v1295_v32, %s10269_s17  ;;  %v1677_v32 = vld [vmem:[#allocation2 + $0x1e1] sm:$0xff] }
 0x31f   :  { %v3424_v63 = vpop.permute.xlu0 %3423 }
 0x320   :  { %v1094_v9 = vpop.permute.xlu1 %1093 }
 0x321   :  { %v1160_v20 = vsel %vm670_vm3, %v12050_v59, %v1094_v9  ;;  %2927 = vrot.lane.b32.xlu0 %v1549_v43, %s10271_s19  ;;  %v4040_v59 = vsel %vm4015_vm6, %v3975_v1, %v12302_v0  ;;  %v3846_v0 = vsel %vm38_vm0, %v11916_v45, %v12254_v15 }
 0x322   :  { %1193 = vst.msk [vmem:[#allocation2 + $0x321] sm:$0xff] %vm38_vm0, %v1160_v20  ;;  %3691 = vrot.lane.b32.xlu1 %v1740_v28, %s10273_s15  ;;  %v4105_v12 = vsel %vm4080_vm7, %v4040_v59, %v12315_v55  ;;  %v12405_v55 = vld [vmem:[#allocation2 + $0x1e8] sm:$0xff]  ;;  %v3911_v58 = vsel %vm3885_vm4, %v3846_v0, %v12282_v61 }
 0x323   :  { %v12390_v60 = vpop.permute.xlu0 %1893  ;;  %v4170_v11 = vsel %vm4145_vm8, %v4105_v12, %v3166_v33  ;;  %v3976_v4 = vsel %vm3950_vm5, %v3911_v58, %v12286_v46  ;;  %v1551_v59 = vld [vmem:[#allocation2 + $0x1ea] sm:$0xff] }
 0x324   :  { %v12386_v5 = vpop.permute.xlu1 %2657  ;;  %v4235_v6 = vsel %vm4210_vm9, %v4170_v11, %v3422_v10  ;;  %v4041_v45 = vsel %vm4015_vm6, %v3976_v4, %v12327_v56 }
 0x325   :  { %2163 = vrot.lane.b32.xlu0 %v1549_v43, %s10268_s12  ;;  %v4106_v23 = vsel %vm4080_vm7, %v4041_v45, %v12344_v19  ;;  %v1678_v19 = vld [vmem:[#allocation2 + $0x1e9] sm:$0xff]  ;;  %v12472_v45 = vld [vmem:[#allocation2 + $0x1f8] sm:$0xff] }
 0x326   :  { %2161 = vrot.lane.b32.xlu1 %v1548_v30, %s10268_s12  ;;  %v4171_v61 = vsel %vm4145_vm8, %v4106_v23, %v3168_v52 }
 0x327   :  { %v2914_v7 = vpop.permute.xlu0 %2913  ;;  %v4236_v46 = vsel %vm4210_vm9, %v4171_v61, %v3424_v63 }
 0x328   :  { %v3678_v24 = vpop.permute.xlu1 %3677 }
 0x329   :  { %v4299_v51 = vsel %vm188_vm2, %v4235_v6, %v3678_v24  ;;  %3183 = vrot.lane.b32.xlu0 %v12405_v55, %s10274_s0  ;;  %v3847_v24 = vsel %vm38_vm0, %v11993_v13, %v12306_v38  ;;  %v12475_v38 = vld [vmem:[#allocation2 + $0x200] sm:$0xff] }
 0x32a   :  { %9371 = vmatprep.mubr.msk.f32.mxu0 %vm4355_vm10, %v4299_v51  ;;  %3181 = vrot.lane.b32.xlu1 %v12399_v2, %s10274_s0  ;;  %v3912_v51 = vsel %vm3885_vm4, %v3847_v24, %v12355_v25 }
 0x32b   :  { %v12419_v15 = vpop.permute.xlu0 %1895  ;;  %v3977_v0 = vsel %vm3950_vm5, %v3912_v51, %v12362_v62  ;;  %v1553_v51 = vld [vmem:[#allocation2 + $0x202] sm:$0xff] }
 0x32c   :  { %v12415_v37 = vpop.permute.xlu1 %2659 }
 0x32d   :  { %v12421_v33 = vpop.f32.mrb[44].mxu0  ;;  %2419 = vrot.lane.b32.xlu0 %v12405_v55, %s10270_s18 }
 0x32e   :  { %v12425_v18 = vpop.f32.mrb[45].mxu0  ;;  %2417 = vrot.lane.b32.xlu1 %v12399_v2, %s10270_s18 }
 0x32f   :  { %v2916_v30 = vpop.permute.xlu0 %2915 }
 0x330   :  { %v3680_v56 = vpop.permute.xlu1 %3679 }
 0x331   :  { %v4300_v10 = vsel %vm188_vm2, %v4236_v46, %v3680_v56  ;;  %3439 = vrot.lane.b32.xlu0 %v1678_v19, %s10272_s20 }
 0x332   :  { %9372 = vmatmul.mubr.msk.f32.gmra.mrb[56].mxu0 %vm4355_vm10, %v4300_v10  ;;  %3437 = vrot.lane.b32.xlu1 %v1677_v32, %s10272_s20 }
 0x333   :  { %v1096_v52 = vpop.permute.xlu0 %1095 }
 0x334   :  { %v12437_v28 = vpop.permute.xlu1 %2149  ;;  %v1161_v9 = vsel %vm670_vm3, %v12147_v44, %v1096_v52 }
 0x335   :  { %1909 = vrot.lane.b32.xlu0 %v1677_v32, %s10267_s2  ;;  %1194 = vst.msk [vmem:[#allocation2 + $0x331] sm:$0xff] %vm38_vm0, %v1161_v9 }
 0x336   :  { %2673 = vrot.lane.b32.xlu1 %v1677_v32, %s10269_s17 }
 0x337   :  { %v12444_v63 = vpop.permute.xlu0 %2405 }
 0x338   :  { %v3170_v20 = vpop.permute.xlu1 %3169 }
 0x339   :  { %2929 = vrot.lane.b32.xlu0 %v1550_v49, %s10271_s19 }
 0x33a   :  { %3693 = vrot.lane.b32.xlu1 %v1550_v49, %s10273_s15 }
 0x33b   :  { %v3426_v48 = vpop.permute.xlu0 %3425 }
 0x33c   :  { %v12448_v43 = vpop.permute.xlu1 %2151 }
 0x33d   :  { %1911 = vrot.lane.b32.xlu0 %v1678_v19, %s10267_s2 }
 0x33e   :  { %2675 = vrot.lane.b32.xlu1 %v1678_v19, %s10269_s17 }
 0x33f   :  { %v12452_v1 = vpop.permute.xlu0 %2407 }
 0x340   :  { %v3172_v44 = vpop.permute.xlu1 %3171 }
 0x341   :  { %2931 = vrot.lane.b32.xlu0 %v1551_v59, %s10271_s19 }
 0x342   :  { %3695 = vrot.lane.b32.xlu1 %v1551_v59, %s10273_s15 }
 0x343   :  { %v3428_v6 = vpop.permute.xlu0 %3427 }
 0x344   :  { %v1098_v12 = vpop.permute.xlu1 %1097 }
 0x345   :  { %v1162_v11 = vsel %vm670_vm3, %v12143_v31, %v1098_v12  ;;  %2167 = vrot.lane.b32.xlu0 %v1551_v59, %s10268_s12  ;;  %v4042_v31 = vsel %vm4015_vm6, %v3977_v0, %v12386_v5  ;;  %v1552_v12 = vld [vmem:[#allocation2 + $0x1fa] sm:$0xff] }
 0x346   :  { %1195 = vst.msk [vmem:[#allocation2 + $0x339] sm:$0xff] %vm38_vm0, %v1162_v11  ;;  %2165 = vrot.lane.b32.xlu1 %v1550_v49, %s10268_s12  ;;  %v4107_v13 = vsel %vm4080_vm7, %v4042_v31, %v2914_v7  ;;  %v3848_v7 = vsel %vm38_vm0, %v12009_v53, %v12331_v36  ;;  %v1679_v36 = vld [vmem:[#allocation2 + $0x1f9] sm:$0xff] }
 0x347   :  { %v12470_v4 = vpop.permute.xlu0 %1897  ;;  %v4172_v25 = vsel %vm4145_vm8, %v4107_v13, %v3170_v20  ;;  %v3913_v46 = vsel %vm3885_vm4, %v3848_v7, %v12366_v14  ;;  %v1680_v14 = vld [vmem:[#allocation2 + $0x201] sm:$0xff]  ;;  %v3849_v13 = vsel %vm38_vm0, %v12086_v22, %v12390_v60  ;;  %v12542_v22 = vld [vmem:[#allocation2 + $0x218] sm:$0xff] }
 0x348   :  { %v2662_v58 = vpop.permute.xlu1 %2661  ;;  %v4237_v62 = vsel %vm4210_vm9, %v4172_v25, %v3426_v48  ;;  %v3978_v56 = vsel %vm3950_vm5, %v3913_v46, %v12370_v8  ;;  %v3914_v25 = vsel %vm3885_vm4, %v3849_v13, %v12437_v28  ;;  %v12539_v46 = vld [vmem:[#allocation2 + $0x210] sm:$0xff] }
 0x349   :  { %3187 = vrot.lane.b32.xlu0 %v12475_v38, %s10274_s0  ;;  %v4043_v32 = vsel %vm4015_vm6, %v3978_v56, %v12415_v37 }
 0x34a   :  { %3185 = vrot.lane.b32.xlu1 %v12472_v45, %s10274_s0  ;;  %v4108_v52 = vsel %vm4080_vm7, %v4043_v32, %v2916_v30 }
 0x34b   :  { %v2918_v61 = vpop.permute.xlu0 %2917  ;;  %v4173_v20 = vsel %vm4145_vm8, %v4108_v52, %v3172_v44 }
 0x34c   :  { %v3682_v23 = vpop.permute.xlu1 %3681  ;;  %v4238_v8 = vsel %vm4210_vm9, %v4173_v20, %v3428_v6 }
 0x34d   :  { %v4301_v5 = vsel %vm188_vm2, %v4237_v62, %v3682_v23  ;;  %2423 = vrot.lane.b32.xlu0 %v12475_v38, %s10270_s18  ;;  %v3979_v62 = vsel %vm3950_vm5, %v3914_v25, %v12444_v63 }
 0x34e   :  { %9374 = vmatprep.mubr.msk.f32.mxu0 %vm4355_vm10, %v4301_v5  ;;  %2421 = vrot.lane.b32.xlu1 %v12472_v45, %s10270_s18  ;;  %v4044_v5 = vsel %vm4015_vm6, %v3979_v62, %v2662_v58 }
 0x34f   :  { %v12498_v19 = vpop.permute.xlu0 %1899  ;;  %v4109_v56 = vsel %vm4080_vm7, %v4044_v5, %v2918_v61  ;;  %v3850_v61 = vsel %vm38_vm0, %v12102_v57, %v12419_v15  ;;  %v1681_v57 = vld [vmem:[#allocation2 + $0x211] sm:$0xff]  ;;  %v1555_v5 = vld [vmem:[#allocation2 + $0x21a] sm:$0xff] }
 0x350   :  { %v2664_v10 = vpop.permute.xlu1 %2663 }
 0x351   :  { %v12500_v53 = vpop.f32.mrb[46].mxu0  ;;  %3443 = vrot.lane.b32.xlu0 %v1680_v14, %s10272_s20 }
 0x352   :  { %v12503_v9 = vpop.f32.mrb[47].mxu0  ;;  %3441 = vrot.lane.b32.xlu1 %v1679_v36, %s10272_s20 }
 0x353   :  { %v2920_v48 = vpop.permute.xlu0 %2919 }
 0x354   :  { %v3684_v49 = vpop.permute.xlu1 %3683 }
 0x355   :  { %v4302_v37 = vsel %vm188_vm2, %v4238_v8, %v3684_v49  ;;  %1913 = vrot.lane.b32.xlu0 %v1679_v36, %s10267_s2  ;;  %v1682_v49 = vld [vmem:[#allocation2 + $0x219] sm:$0xff] }
 0x356   :  { %9375 = vmatmul.mubr.msk.f32.gmra.mrb[58].mxu0 %vm4355_vm10, %v4302_v37  ;;  %2677 = vrot.lane.b32.xlu1 %v1679_v36, %s10269_s17  ;;  %v3915_v36 = vsel %vm3885_vm4, %v3850_v61, %v12448_v43 }
 0x357   :  { %v12515_v59 = vpop.permute.xlu0 %2155  ;;  %v3980_v52 = vsel %vm3950_vm5, %v3915_v36, %v12452_v1 }
 0x358   :  { %v12513_v30 = vpop.permute.xlu1 %2153  ;;  %v4045_v20 = vsel %vm4015_vm6, %v3980_v52, %v2664_v10 }
 0x359   :  { %2933 = vrot.lane.b32.xlu0 %v1552_v12, %s10271_s19  ;;  %v4110_v15 = vsel %vm4080_vm7, %v4045_v20, %v2920_v48  ;;  %v12605_v20 = vld [vmem:[#allocation2 + $0x228] sm:$0xff] }
 0x35a   :  { %3697 = vrot.lane.b32.xlu1 %v1552_v12, %s10273_s15 }
 0x35b   :  { %v3176_v11 = vpop.permute.xlu0 %3175 }
 0x35c   :  { %v3174_v44 = vpop.permute.xlu1 %3173  ;;  %v4175_v37 = vsel %vm4145_vm8, %v4110_v15, %v3176_v11 }
 0x35d   :  { %1915 = vrot.lane.b32.xlu0 %v1680_v14, %s10267_s2  ;;  %v4174_v60 = vsel %vm4145_vm8, %v4109_v56, %v3174_v44 }
 0x35e   :  { %2679 = vrot.lane.b32.xlu1 %v1680_v14, %s10269_s17 }
 0x35f   :  { %v12523_v24 = vpop.permute.xlu0 %2411 }
 0x360   :  { %v12521_v6 = vpop.permute.xlu1 %2409 }
 0x361   :  { %2935 = vrot.lane.b32.xlu0 %v1553_v51, %s10271_s19 }
 0x362   :  { %3699 = vrot.lane.b32.xlu1 %v1553_v51, %s10273_s15 }
 0x363   :  { %v3432_v31 = vpop.permute.xlu0 %3431 }
 0x364   :  { %v3430_v0 = vpop.permute.xlu1 %3429  ;;  %v4240_v43 = vsel %vm4210_vm9, %v4175_v37, %v3432_v31 }
 0x365   :  { %2171 = vrot.lane.b32.xlu0 %v1553_v51, %s10268_s12  ;;  %v4239_v28 = vsel %vm4210_vm9, %v4174_v60, %v3430_v0  ;;  %v1554_v0 = vld [vmem:[#allocation2 + $0x212] sm:$0xff] }
 0x366   :  { %2169 = vrot.lane.b32.xlu1 %v1552_v12, %s10268_s12 }
 0x367   :  { %v12537_v7 = vpop.permute.xlu0 %1901 }
 0x368   :  { %v2666_v23 = vpop.permute.xlu1 %2665 }
 0x369   :  { %3191 = vrot.lane.b32.xlu0 %v12542_v22, %s10274_s0 }
 0x36a   :  { %3189 = vrot.lane.b32.xlu1 %v12539_v46, %s10274_s0 }
 0x36b   :  { %v2922_v58 = vpop.permute.xlu0 %2921 }
 0x36c   :  { %v3686_v63 = vpop.permute.xlu1 %3685 }
 0x36d   :  { %v4303_v32 = vsel %vm188_vm2, %v4239_v28, %v3686_v63  ;;  %2427 = vrot.lane.b32.xlu0 %v12542_v22, %s10270_s18  ;;  %v3851_v28 = vsel %vm38_vm0, %v12177_v47, %v12470_v4  ;;  %v12608_v47 = vld [vmem:[#allocation2 + $0x230] sm:$0xff] }
 0x36e   :  { %2425 = vrot.lane.b32.xlu1 %v12539_v46, %s10270_s18  ;;  %9377 = vmatprep.mubr.msk.f32.mxu0 %vm4355_vm10, %v4303_v32  ;;  %v3916_v63 = vsel %vm3885_vm4, %v3851_v28, %v12513_v30 }
 0x36f   :  { %v12564_v8 = vpop.permute.xlu0 %1903  ;;  %v3981_v32 = vsel %vm3950_vm5, %v3916_v63, %v12521_v6 }
 0x370   :  { %v2668_v14 = vpop.permute.xlu1 %2667  ;;  %v4046_v36 = vsel %vm4015_vm6, %v3981_v32, %v2666_v23 }
 0x371   :  { %3447 = vrot.lane.b32.xlu0 %v1682_v49, %s10272_s20 }
 0x372   :  { %3445 = vrot.lane.b32.xlu1 %v1681_v57, %s10272_s20 }
 0x373   :  { %v2924_v44 = vpop.permute.xlu0 %2923 }
 0x374   :  { %v3688_v12 = vpop.permute.xlu1 %3687 }
 0x375   :  { %v4304_v1 = vsel %vm188_vm2, %v4240_v43, %v3688_v12  ;;  %v12572_v51 = vpop.f32.mrb[48].mxu0  ;;  %1917 = vrot.lane.b32.xlu0 %v1681_v57, %s10267_s2 }
 0x376   :  { %v12574_v10 = vpop.f32.mrb[49].mxu0  ;;  %2681 = vrot.lane.b32.xlu1 %v1681_v57, %s10269_s17  ;;  %9378 = vmatmul.mubr.msk.f32.gmra.mrb[60].mxu0 %vm4355_vm10, %v4304_v1  ;;  %v4111_v57 = vsel %vm4080_vm7, %v4046_v36, %v2922_v58  ;;  %v3852_v58 = vsel %vm38_vm0, %v12197_v34, %v12498_v19  ;;  %v1683_v34 = vld [vmem:[#allocation2 + $0x229] sm:$0xff] }
 0x377   :  { %v12581_v11 = vpop.permute.xlu0 %2159 }
 0x378   :  { %v12579_v48 = vpop.permute.xlu1 %2157 }
 0x379   :  { %2937 = vrot.lane.b32.xlu0 %v1554_v0, %s10271_s19 }
 0x37a   :  { %3701 = vrot.lane.b32.xlu1 %v1554_v0, %s10273_s15 }
 0x37b   :  { %v3180_v13 = vpop.permute.xlu0 %3179 }
 0x37c   :  { %v3178_v31 = vpop.permute.xlu1 %3177 }
 0x37d   :  { %1919 = vrot.lane.b32.xlu0 %v1682_v49, %s10267_s2  ;;  %v4176_v4 = vsel %vm4145_vm8, %v4111_v57, %v3178_v31 }
 0x37e   :  { %2683 = vrot.lane.b32.xlu1 %v1682_v49, %s10269_s17  ;;  %v3917_v49 = vsel %vm3885_vm4, %v3852_v58, %v12515_v59 }
 0x37f   :  { %v12589_v62 = vpop.permute.xlu0 %2415  ;;  %v3982_v37 = vsel %vm3950_vm5, %v3917_v49, %v12523_v24 }
 0x380   :  { %v12587_v25 = vpop.permute.xlu1 %2413  ;;  %v4047_v12 = vsel %vm4015_vm6, %v3982_v37, %v2668_v14 }
 0x381   :  { %2939 = vrot.lane.b32.xlu0 %v1555_v5, %s10271_s19  ;;  %v4112_v19 = vsel %vm4080_vm7, %v4047_v12, %v2924_v44 }
 0x382   :  { %3703 = vrot.lane.b32.xlu1 %v1555_v5, %s10273_s15  ;;  %v4177_v31 = vsel %vm4145_vm8, %v4112_v19, %v3180_v13  ;;  %v1556_v13 = vld [vmem:[#allocation2 + $0x22a] sm:$0xff] }
 0x383   :  { %v3436_v60 = vpop.permute.xlu0 %3435 }
 0x384   :  { %v3434_v56 = vpop.permute.xlu1 %3433  ;;  %v4242_v59 = vsel %vm4210_vm9, %v4177_v31, %v3436_v60  ;;  %v12670_v31 = vld [vmem:[#allocation2 + $0x240] sm:$0xff] }
 0x385   :  { %2175 = vrot.lane.b32.xlu0 %v1555_v5, %s10268_s12  ;;  %v4241_v30 = vsel %vm4210_vm9, %v4176_v4, %v3434_v56  ;;  %v1557_v4 = vld [vmem:[#allocation2 + $0x232] sm:$0xff] }
 0x386   :  { %2173 = vrot.lane.b32.xlu1 %v1554_v0, %s10268_s12  ;;  %v1684_v0 = vld [vmem:[#allocation2 + $0x231] sm:$0xff] }
 0x387   :  { %v12603_v52 = vpop.permute.xlu0 %1905 }
 0x388   :  { %v2670_v61 = vpop.permute.xlu1 %2669 }
 0x389   :  { %3195 = vrot.lane.b32.xlu0 %v12608_v47, %s10274_s0 }
 0x38a   :  { %3193 = vrot.lane.b32.xlu1 %v12605_v20, %s10274_s0 }
 0x38b   :  { %v2926_v23 = vpop.permute.xlu0 %2925 }
 0x38c   :  { %v3690_v6 = vpop.permute.xlu1 %3689 }
 0x38d   :  { %v4305_v15 = vsel %vm188_vm2, %v4241_v30, %v3690_v6  ;;  %2431 = vrot.lane.b32.xlu0 %v12608_v47, %s10270_s18  ;;  %v1228_v30 = vld [vmem:[#allocation2 + $0x1b0] sm:$0xff] }
 0x38e   :  { %2429 = vrot.lane.b32.xlu1 %v12605_v20, %s10270_s18  ;;  %9380 = vmatprep.mubr.msk.f32.mxu0 %vm4355_vm10, %v4305_v15  ;;  %v3853_v58 = vsel %vm38_vm0, %v1228_v30, %v12537_v7 }
 0x38f   :  { %v12630_v1 = vpop.permute.xlu0 %1907  ;;  %v3918_v49 = vsel %vm3885_vm4, %v3853_v58, %v12579_v48 }
 0x390   :  { %v2672_v43 = vpop.permute.xlu1 %2671  ;;  %v3983_v37 = vsel %vm3950_vm5, %v3918_v49, %v12587_v25  ;;  %v1686_v49 = vld [vmem:[#allocation2 + $0x249] sm:$0xff] }
 0x391   :  { %3451 = vrot.lane.b32.xlu0 %v1684_v0, %s10272_s20  ;;  %v4048_v19 = vsel %vm4015_vm6, %v3983_v37, %v2670_v61 }
 0x392   :  { %3449 = vrot.lane.b32.xlu1 %v1683_v34, %s10272_s20  ;;  %v4113_v7 = vsel %vm4080_vm7, %v4048_v19, %v2926_v23 }
 0x393   :  { %v2928_v56 = vpop.permute.xlu0 %2927 }
 0x394   :  { %v3692_v5 = vpop.permute.xlu1 %3691 }
 0x395   :  { %v4306_v24 = vsel %vm188_vm2, %v4242_v59, %v3692_v5  ;;  %1921 = vrot.lane.b32.xlu0 %v1683_v34, %s10267_s2  ;;  %v12673_v59 = vld [vmem:[#allocation2 + $0x248] sm:$0xff] }
 0x396   :  { %2685 = vrot.lane.b32.xlu1 %v1683_v34, %s10269_s17  ;;  %9381 = vmatmul.mubr.msk.f32.gmra.mrb[62].mxu0 %vm4355_vm10, %v4306_v24  ;;  %v1229_v34 = vld [vmem:[#allocation2 + $0x1b8] sm:$0xff] }
 0x397   :  { %v12643_v44 = vpop.permute.xlu0 %2163  ;;  %v3854_v25 = vsel %vm38_vm0, %v1229_v34, %v12564_v8 }
 0x398   :  { %v12641_v14 = vpop.permute.xlu1 %2161  ;;  %v3919_v23 = vsel %vm3885_vm4, %v3854_v25, %v12581_v11 }
 0x399   :  { %v12645_v28 = vpop.f32.mrb[50].mxu0  ;;  %2941 = vrot.lane.b32.xlu0 %v1556_v13, %s10271_s19  ;;  %v3984_v8 = vsel %vm3950_vm5, %v3919_v23, %v12589_v62 }
 0x39a   :  { %v12647_v63 = vpop.f32.mrb[51].mxu0  ;;  %3705 = vrot.lane.b32.xlu1 %v1556_v13, %s10273_s15 }
 0x39b   :  { %v3184_v32 = vpop.permute.xlu0 %3183 }
 0x39c   :  { %v3182_v60 = vpop.permute.xlu1 %3181 }
 0x39d   :  { %1923 = vrot.lane.b32.xlu0 %v1684_v0, %s10267_s2  ;;  %v4178_v48 = vsel %vm4145_vm8, %v4113_v7, %v3182_v60  ;;  %v1558_v7 = vld [vmem:[#allocation2 + $0x242] sm:$0xff] }
 0x39e   :  { %2687 = vrot.lane.b32.xlu1 %v1684_v0, %s10269_s17 }
 0x39f   :  { %v12655_v57 = vpop.permute.xlu0 %2419 }
 0x3a0   :  { %v12653_v36 = vpop.permute.xlu1 %2417 }
 0x3a1   :  { %2943 = vrot.lane.b32.xlu0 %v1557_v4, %s10271_s19 }
 0x3a2   :  { %3707 = vrot.lane.b32.xlu1 %v1557_v4, %s10273_s15 }
 0x3a3   :  { %v3440_v15 = vpop.permute.xlu0 %3439 }
 0x3a4   :  { %v3438_v6 = vpop.permute.xlu1 %3437 }
 0x3a5   :  { %2179 = vrot.lane.b32.xlu0 %v1557_v4, %s10268_s12  ;;  %v4243_v61 = vsel %vm4210_vm9, %v4178_v48, %v3438_v6  ;;  %v4049_v4 = vsel %vm4015_vm6, %v3984_v8, %v2672_v43  ;;  %v1685_v6 = vld [vmem:[#allocation2 + $0x241] sm:$0xff] }
 0x3a6   :  { %2177 = vrot.lane.b32.xlu1 %v1556_v13, %s10268_s12  ;;  %v4114_v58 = vsel %vm4080_vm7, %v4049_v4, %v2928_v56  ;;  %v3855_v4 = vsel %vm38_vm0, %v12346_v50, %v12603_v52  ;;  %v12738_v50 = vld [vmem:[#allocation2 + $0x260] sm:$0xff] }
 0x3a7   :  { %v12668_v0 = vpop.permute.xlu0 %1909  ;;  %v4179_v37 = vsel %vm4145_vm8, %v4114_v58, %v3184_v32 }
 0x3a8   :  { %v2674_v12 = vpop.permute.xlu1 %2673  ;;  %v4244_v11 = vsel %vm4210_vm9, %v4179_v37, %v3440_v15 }
 0x3a9   :  { %3199 = vrot.lane.b32.xlu0 %v12673_v59, %s10274_s0 }
 0x3aa   :  { %3197 = vrot.lane.b32.xlu1 %v12670_v31, %s10274_s0 }
 0x3ab   :  { %v2930_v24 = vpop.permute.xlu0 %2929 }
 0x3ac   :  { %v3694_v5 = vpop.permute.xlu1 %3693 }
 0x3ad   :  { %v4307_v13 = vsel %vm188_vm2, %v4243_v61, %v3694_v5  ;;  %2435 = vrot.lane.b32.xlu0 %v12673_v59, %s10270_s18 }
 0x3ae   :  { %2433 = vrot.lane.b32.xlu1 %v12670_v31, %s10270_s18  ;;  %9383 = vmatprep.mubr.msk.f32.mxu0 %vm4355_vm10, %v4307_v13  ;;  %v1559_v13 = vld [vmem:[#allocation2 + $0x24a] sm:$0xff] }
 0x3af   :  { %v12694_v30 = vpop.permute.xlu0 %1911 }
 0x3b0   :  { %v2676_v60 = vpop.permute.xlu1 %2675 }
 0x3b1   :  { %3455 = vrot.lane.b32.xlu0 %v1686_v49, %s10272_s20 }
 0x3b2   :  { %3453 = vrot.lane.b32.xlu1 %v1685_v6, %s10272_s20 }
 0x3b3   :  { %v2932_v19 = vpop.permute.xlu0 %2931 }
 0x3b4   :  { %v3696_v34 = vpop.permute.xlu1 %3695 }
 0x3b5   :  { %v4308_v62 = vsel %vm188_vm2, %v4244_v11, %v3696_v34  ;;  %1925 = vrot.lane.b32.xlu0 %v1685_v6, %s10267_s2  ;;  %v12735_v34 = vld [vmem:[#allocation2 + $0x258] sm:$0xff] }
 0x3b6   :  { %2689 = vrot.lane.b32.xlu1 %v1685_v6, %s10269_s17  ;;  %9384 = vmatmul.mubr.msk.f32.gmra.mrb[64].mxu0 %vm4355_vm10, %v4308_v62  ;;  %v3920_v6 = vsel %vm3885_vm4, %v3855_v4, %v12641_v14 }
 0x3b7   :  { %v12707_v56 = vpop.permute.xlu0 %2167  ;;  %v3985_v58 = vsel %vm3950_vm5, %v3920_v6, %v12653_v36 }
 0x3b8   :  { %v12705_v43 = vpop.permute.xlu1 %2165  ;;  %v4050_v37 = vsel %vm4015_vm6, %v3985_v58, %v2674_v12  ;;  %v1688_v58 = vld [vmem:[#allocation2 + $0x261] sm:$0xff] }
 0x3b9   :  { %2945 = vrot.lane.b32.xlu0 %v1558_v7, %s10271_s19  ;;  %v4115_v62 = vsel %vm4080_vm7, %v4050_v37, %v2930_v24  ;;  %v3856_v24 = vsel %vm38_vm0, %v12349_v29, %v12630_v1  ;;  %v1687_v29 = vld [vmem:[#allocation2 + $0x259] sm:$0xff] }
 0x3ba   :  { %3709 = vrot.lane.b32.xlu1 %v1558_v7, %s10273_s15 }
 0x3bb   :  { %v3188_v15 = vpop.permute.xlu0 %3187 }
 0x3bc   :  { %v3186_v32 = vpop.permute.xlu1 %3185 }
 0x3bd   :  { %v12711_v48 = vpop.f32.mrb[52].mxu0  ;;  %1927 = vrot.lane.b32.xlu0 %v1686_v49, %s10267_s2  ;;  %v4180_v52 = vsel %vm4145_vm8, %v4115_v62, %v3186_v32  ;;  %v3921_v32 = vsel %vm3885_vm4, %v3856_v24, %v12643_v44 }
 0x3be   :  { %v12713_v25 = vpop.f32.mrb[53].mxu0  ;;  %2691 = vrot.lane.b32.xlu1 %v1686_v49, %s10269_s17 }
 0x3bf   :  { %v12719_v5 = vpop.permute.xlu0 %2423 }
 0x3c0   :  { %v12717_v61 = vpop.permute.xlu1 %2421 }
 0x3c1   :  { %2947 = vrot.lane.b32.xlu0 %v1559_v13, %s10271_s19 }
 0x3c2   :  { %3711 = vrot.lane.b32.xlu1 %v1559_v13, %s10273_s15 }
 0x3c3   :  { %v3444_v8 = vpop.permute.xlu0 %3443 }
 0x3c4   :  { %v3442_v23 = vpop.permute.xlu1 %3441 }
 0x3c5   :  { %2183 = vrot.lane.b32.xlu0 %v1559_v13, %s10268_s12  ;;  %v4245_v14 = vsel %vm4210_vm9, %v4180_v52, %v3442_v23  ;;  %v3986_v13 = vsel %vm3950_vm5, %v3921_v32, %v12655_v57  ;;  %v1561_v32 = vld [vmem:[#allocation2 + $0x262] sm:$0xff] }
 0x3c6   :  { %2181 = vrot.lane.b32.xlu1 %v1558_v7, %s10268_s12  ;;  %v4051_v4 = vsel %vm4015_vm6, %v3986_v13, %v2676_v60 }
 0x3c7   :  { %v12733_v11 = vpop.permute.xlu0 %1913  ;;  %v4116_v1 = vsel %vm4080_vm7, %v4051_v4, %v2932_v19 }
 0x3c8   :  { %v2678_v49 = vpop.permute.xlu1 %2677  ;;  %v4181_v37 = vsel %vm4145_vm8, %v4116_v1, %v3188_v15  ;;  %v3857_v1 = vsel %vm38_vm0, %v12399_v2, %v12668_v0  ;;  %v12804_v2 = vld [vmem:[#allocation2 + $0x278] sm:$0xff] }
 0x3c9   :  { %3203 = vrot.lane.b32.xlu0 %v12738_v50, %s10274_s0  ;;  %v4246_v44 = vsel %vm4210_vm9, %v4181_v37, %v3444_v8 }
 0x3ca   :  { %3201 = vrot.lane.b32.xlu1 %v12735_v34, %s10274_s0 }
 0x3cb   :  { %v2934_v12 = vpop.permute.xlu0 %2933 }
 0x3cc   :  { %v3698_v36 = vpop.permute.xlu1 %3697 }
 0x3cd   :  { %v4309_v7 = vsel %vm188_vm2, %v4245_v14, %v3698_v36  ;;  %2439 = vrot.lane.b32.xlu0 %v12738_v50, %s10270_s18  ;;  %v1560_v14 = vld [vmem:[#allocation2 + $0x25a] sm:$0xff] }
 0x3ce   :  { %2437 = vrot.lane.b32.xlu1 %v12735_v34, %s10270_s18  ;;  %9386 = vmatprep.mubr.msk.f32.mxu0 %vm4355_vm10, %v4309_v7 }
 0x3cf   :  { %v12760_v6 = vpop.permute.xlu0 %1915 }
 0x3d0   :  { %v2680_v23 = vpop.permute.xlu1 %2679 }
 0x3d1   :  { %3459 = vrot.lane.b32.xlu0 %v1688_v58, %s10272_s20 }
 0x3d2   :  { %3457 = vrot.lane.b32.xlu1 %v1687_v29, %s10272_s20 }
 0x3d3   :  { %v2936_v52 = vpop.permute.xlu0 %2935 }
 0x3d4   :  { %v3700_v62 = vpop.permute.xlu1 %3699 }
 0x3d5   :  { %v4310_v57 = vsel %vm188_vm2, %v4246_v44, %v3700_v62  ;;  %1929 = vrot.lane.b32.xlu0 %v1687_v29, %s10267_s2 }
 0x3d6   :  { %2693 = vrot.lane.b32.xlu1 %v1687_v29, %s10269_s17  ;;  %9387 = vmatmul.mubr.msk.f32.gmra.mrb[66].mxu0 %vm4355_vm10, %v4310_v57 }
 0x3d7   :  { %v12773_v19 = vpop.permute.xlu0 %2171 }
 0x3d8   :  { %v12771_v60 = vpop.permute.xlu1 %2169 }
 0x3d9   :  { %2949 = vrot.lane.b32.xlu0 %v1560_v14, %s10271_s19 }
 0x3da   :  { %3713 = vrot.lane.b32.xlu1 %v1560_v14, %s10273_s15 }
 0x3db   :  { %v3192_v8 = vpop.permute.xlu0 %3191 }
 0x3dc   :  { %v3190_v15 = vpop.permute.xlu1 %3189 }
 0x3dd   :  { %1931 = vrot.lane.b32.xlu0 %v1688_v58, %s10267_s2 }
 0x3de   :  { %2695 = vrot.lane.b32.xlu1 %v1688_v58, %s10269_s17  ;;  %v3922_v58 = vsel %vm3885_vm4, %v3857_v1, %v12705_v43 }
 0x3df   :  { %v12781_v7 = vpop.permute.xlu0 %2427  ;;  %v3987_v37 = vsel %vm3950_vm5, %v3922_v58, %v12717_v61  ;;  %v1690_v58 = vld [vmem:[#allocation2 + $0x279] sm:$0xff] }
 0x3e0   :  { %v12779_v36 = vpop.permute.xlu1 %2425  ;;  %v4052_v62 = vsel %vm4015_vm6, %v3987_v37, %v2678_v49 }
 0x3e1   :  { %v12783_v24 = vpop.f32.mrb[54].mxu0  ;;  %2951 = vrot.lane.b32.xlu0 %v1561_v32, %s10271_s19 }
 0x3e2   :  { %17553 = vst [vmem:[#allocation4_spill] sm:$0xff] %v12783_v24  ;;  %v12785_v13 = vpop.f32.mrb[55].mxu0  ;;  %3715 = vrot.lane.b32.xlu1 %v1561_v32, %s10273_s15  ;;  %v12801_v24 = vld [vmem:[#allocation2 + $0x270] sm:$0xff] }
 0x3e3   :  { %17554 = vst [vmem:[#allocation5_spill] sm:$0xff] %v12785_v13  ;;  %v3448_v29 = vpop.permute.xlu0 %3447  ;;  %v4117_v13 = vsel %vm4080_vm7, %v4052_v62, %v2934_v12  ;;  %v3858_v12 = vsel %vm38_vm0, %v12405_v55, %v12694_v30  ;;  %v1689_v55 = vld [vmem:[#allocation2 + $0x271] sm:$0xff] }
 0x3e4   :  { %v3446_v4 = vpop.permute.xlu1 %3445  ;;  %v4182_v0 = vsel %vm4145_vm8, %v4117_v13, %v3190_v15  ;;  %v3923_v15 = vsel %vm3885_vm4, %v3858_v12, %v12707_v56  ;;  %v1563_v12 = vld [vmem:[#allocation2 + $0x27a] sm:$0xff] }
 0x3e5   :  { %2187 = vrot.lane.b32.xlu0 %v1561_v32, %s10268_s12  ;;  %v4247_v43 = vsel %vm4210_vm9, %v4182_v0, %v3446_v4  ;;  %v3988_v32 = vsel %vm3950_vm5, %v3923_v15, %v12719_v5 }
 0x3e6   :  { %2185 = vrot.lane.b32.xlu1 %v1560_v14, %s10268_s12  ;;  %v4053_v4 = vsel %vm4015_vm6, %v3988_v32, %v2680_v23 }
 0x3e7   :  { %v12799_v57 = vpop.permute.xlu0 %1917  ;;  %v4118_v30 = vsel %vm4080_vm7, %v4053_v4, %v2936_v52 }
 0x3e8   :  { %v2682_v44 = vpop.permute.xlu1 %2681  ;;  %v4183_v37 = vsel %vm4145_vm8, %v4118_v30, %v3192_v8 }
 0x3e9   :  { %3207 = vrot.lane.b32.xlu0 %v12804_v2, %s10274_s0  ;;  %v4248_v56 = vsel %vm4210_vm9, %v4183_v37, %v3448_v29 }
 0x3ea   :  { %3205 = vrot.lane.b32.xlu1 %v12801_v24, %s10274_s0 }
 0x3eb   :  { %v2938_v49 = vpop.permute.xlu0 %2937 }
 0x3ec   :  { %v3702_v61 = vpop.permute.xlu1 %3701 }
 0x3ed   :  { %v4311_v14 = vsel %vm188_vm2, %v4247_v43, %v3702_v61  ;;  %2443 = vrot.lane.b32.xlu0 %v12804_v2, %s10270_s18  ;;  %v1562_v43 = vld [vmem:[#allocation2 + $0x272] sm:$0xff] }
 0x3ee   :  { %2441 = vrot.lane.b32.xlu1 %v12801_v24, %s10270_s18  ;;  %9389 = vmatprep.mubr.msk.f32.mxu0 %vm4355_vm10, %v4311_v14 }
 0x3ef   :  { %v12826_v1 = vpop.permute.xlu0 %1919 }
 0x3f0   :  { %v2684_v13 = vpop.permute.xlu1 %2683 }
 0x3f1   :  { %3463 = vrot.lane.b32.xlu0 %v1690_v58, %s10272_s20 }
 0x3f2   :  { %3461 = vrot.lane.b32.xlu1 %v1689_v55, %s10272_s20 }
 0x3f3   :  { %v2940_v0 = vpop.permute.xlu0 %2939 }
 0x3f4   :  { %v3704_v62 = vpop.permute.xlu1 %3703 }
 0x3f5   :  { %v4312_v5 = vsel %vm188_vm2, %v4248_v56, %v3704_v62  ;;  %1933 = vrot.lane.b32.xlu0 %v1689_v55, %s10267_s2 }
 0x3f6   :  { %2697 = vrot.lane.b32.xlu1 %v1689_v55, %s10269_s17  ;;  %9390 = vmatmul.mubr.msk.f32.gmra.mrb[68].mxu0 %vm4355_vm10, %v4312_v5  ;;  %v3859_v55 = vsel %vm38_vm0, %v12472_v45, %v12733_v11  ;;  %v12870_v11 = vld [vmem:[#allocation2 + $0x290] sm:$0xff] }
 0x3f7   :  { %v12839_v52 = vpop.permute.xlu0 %2175 }
 0x3f8   :  { %v12837_v23 = vpop.permute.xlu1 %2173 }
 0x3f9   :  { %2953 = vrot.lane.b32.xlu0 %v1562_v43, %s10271_s19 }
 0x3fa   :  { %3717 = vrot.lane.b32.xlu1 %v1562_v43, %s10273_s15 }
 0x3fb   :  { %v3196_v29 = vpop.permute.xlu0 %3195 }
 0x3fc   :  { %v3194_v8 = vpop.permute.xlu1 %3193 }
 0x3fd   :  { %1935 = vrot.lane.b32.xlu0 %v1690_v58, %s10267_s2 }
 0x3fe   :  { %2699 = vrot.lane.b32.xlu1 %v1690_v58, %s10269_s17  ;;  %v3924_v58 = vsel %vm3885_vm4, %v3859_v55, %v12771_v60 }
 0x3ff   :  { %v12847_v14 = vpop.permute.xlu0 %2431  ;;  %v3989_v37 = vsel %vm3950_vm5, %v3924_v58, %v12779_v36 }
 0x400   :  { %v12845_v61 = vpop.permute.xlu1 %2429  ;;  %v4054_v62 = vsel %vm4015_vm6, %v3989_v37, %v2682_v44 }
 0x401   :  { %2955 = vrot.lane.b32.xlu0 %v1563_v12, %s10271_s19  ;;  %v4119_v45 = vsel %vm4080_vm7, %v4054_v62, %v2938_v49  ;;  %v3860_v49 = vsel %vm38_vm0, %v12475_v38, %v12760_v6  ;;  %v1691_v38 = vld [vmem:[#allocation2 + $0x289] sm:$0xff]  ;;  %v1692_v62 = vld [vmem:[#allocation2 + $0x291] sm:$0xff] }
 0x402   :  { %3719 = vrot.lane.b32.xlu1 %v1563_v12, %s10273_s15  ;;  %v4184_v60 = vsel %vm4145_vm8, %v4119_v45, %v3194_v8  ;;  %v3925_v8 = vsel %vm3885_vm4, %v3860_v49, %v12773_v19 }
 0x403   :  { %v3452_v32 = vpop.permute.xlu0 %3451 }
 0x404   :  { %v3450_v15 = vpop.permute.xlu1 %3449 }
 0x405   :  { %v12851_v4 = vpop.f32.mrb[56].mxu0  ;;  %2191 = vrot.lane.b32.xlu0 %v1563_v12, %s10268_s12  ;;  %v4249_v36 = vsel %vm4210_vm9, %v4184_v60, %v3450_v15  ;;  %v3990_v15 = vsel %vm3950_vm5, %v3925_v8, %v12781_v7  ;;  %v1565_v8 = vld [vmem:[#allocation2 + $0x292] sm:$0xff] }
 0x406   :  { %17555 = vst [vmem:[#allocation6_spill] sm:$0xff] %v12851_v4  ;;  %v12856_v30 = vpop.f32.mrb[57].mxu0  ;;  %2189 = vrot.lane.b32.xlu1 %v1562_v43, %s10268_s12  ;;  %v12867_v4 = vld [vmem:[#allocation2 + $0x288] sm:$0xff]  ;;  %v4055_v58 = vsel %vm4015_vm6, %v3990_v15, %v2684_v13 }
 0x407   :  { %17556 = vst [vmem:[#allocation7_spill] sm:$0xff] %v12856_v30  ;;  %v12865_v5 = vpop.permute.xlu0 %1921  ;;  %v4120_v6 = vsel %vm4080_vm7, %v4055_v58, %v2940_v0  ;;  %v12931_v30 = vld [vmem:[#allocation2 + $0x2a0] sm:$0xff] }
 0x408   :  { %v2686_v56 = vpop.permute.xlu1 %2685  ;;  %v4185_v45 = vsel %vm4145_vm8, %v4120_v6, %v3196_v29 }
 0x409   :  { %3211 = vrot.lane.b32.xlu0 %v12870_v11, %s10274_s0  ;;  %v4250_v19 = vsel %vm4210_vm9, %v4185_v45, %v3452_v32 }
 0x40a   :  { %3209 = vrot.lane.b32.xlu1 %v12867_v4, %s10274_s0 }
 0x40b   :  { %v2942_v44 = vpop.permute.xlu0 %2941 }
 0x40c   :  { %v3706_v43 = vpop.permute.xlu1 %3705 }
 0x40d   :  { %v4313_v12 = vsel %vm188_vm2, %v4249_v36, %v3706_v43  ;;  %2447 = vrot.lane.b32.xlu0 %v12870_v11, %s10270_s18  ;;  %v1564_v43 = vld [vmem:[#allocation2 + $0x28a] sm:$0xff] }
 0x40e   :  { %2445 = vrot.lane.b32.xlu1 %v12867_v4, %s10270_s18  ;;  %9392 = vmatprep.mubr.msk.f32.mxu0 %vm4355_vm10, %v4313_v12 }
 0x40f   :  { %v12892_v37 = vpop.permute.xlu0 %1923 }
 0x410   :  { %v2688_v55 = vpop.permute.xlu1 %2687 }
 0x411   :  { %3467 = vrot.lane.b32.xlu0 %v1692_v62, %s10272_s20 }
 0x412   :  { %3465 = vrot.lane.b32.xlu1 %v1691_v38, %s10272_s20 }
 0x413   :  { %v2944_v36 = vpop.permute.xlu0 %2943 }
 0x414   :  { %v3708_v60 = vpop.permute.xlu1 %3707 }
 0x415   :  { %v4314_v7 = vsel %vm188_vm2, %v4250_v19, %v3708_v60  ;;  %1937 = vrot.lane.b32.xlu0 %v1691_v38, %s10267_s2 }
 0x416   :  { %2701 = vrot.lane.b32.xlu1 %v1691_v38, %s10269_s17  ;;  %9393 = vmatmul.mubr.msk.f32.gmra.mrb[70].mxu0 %vm4355_vm10, %v4314_v7  ;;  %v3861_v38 = vsel %vm38_vm0, %v12539_v46, %v12799_v57 }
 0x417   :  { %v12905_v0 = vpop.permute.xlu0 %2179  ;;  %v3926_v6 = vsel %vm3885_vm4, %v3861_v38, %v12837_v23 }
 0x418   :  { %v12903_v13 = vpop.permute.xlu1 %2177 }
 0x419   :  { %2957 = vrot.lane.b32.xlu0 %v1564_v43, %s10271_s19 }
 0x41a   :  { %3721 = vrot.lane.b32.xlu1 %v1564_v43, %s10273_s15 }
 0x41b   :  { %v3200_v32 = vpop.permute.xlu0 %3199 }
 0x41c   :  { %v3198_v29 = vpop.permute.xlu1 %3197 }
 0x41d   :  { %1939 = vrot.lane.b32.xlu0 %v1692_v62, %s10267_s2 }
 0x41e   :  { %2703 = vrot.lane.b32.xlu1 %v1692_v62, %s10269_s17  ;;  %v3991_v62 = vsel %vm3950_vm5, %v3926_v6, %v12845_v61 }
 0x41f   :  { %v12913_v49 = vpop.permute.xlu0 %2435  ;;  %v4056_v19 = vsel %vm4015_vm6, %v3991_v62, %v2686_v56 }
 0x420   :  { %v12911_v12 = vpop.permute.xlu1 %2433  ;;  %v4121_v46 = vsel %vm4080_vm7, %v4056_v19, %v2942_v44  ;;  %v3862_v44 = vsel %vm38_vm0, %v12542_v22, %v12826_v1  ;;  %v1693_v22 = vld [vmem:[#allocation2 + $0x2a1] sm:$0xff] }
 0x421   :  { %2959 = vrot.lane.b32.xlu0 %v1565_v8, %s10271_s19  ;;  %v4186_v23 = vsel %vm4145_vm8, %v4121_v46, %v3198_v29  ;;  %v3927_v29 = vsel %vm3885_vm4, %v3862_v44, %v12839_v52  ;;  %v1694_v46 = vld [vmem:[#allocation2 + $0x2a9] sm:$0xff] }
 0x422   :  { %3723 = vrot.lane.b32.xlu1 %v1565_v8, %s10273_s15 }
 0x423   :  { %v3456_v58 = vpop.permute.xlu0 %3455 }
 0x424   :  { %v3454_v15 = vpop.permute.xlu1 %3453 }
 0x425   :  { %2195 = vrot.lane.b32.xlu0 %v1565_v8, %s10268_s12  ;;  %v4251_v61 = vsel %vm4210_vm9, %v4186_v23, %v3454_v15  ;;  %v3992_v15 = vsel %vm3950_vm5, %v3927_v29, %v12847_v14 }
 0x426   :  { %2193 = vrot.lane.b32.xlu1 %v1564_v43, %s10268_s12  ;;  %v12936_v43 = vld [vmem:[#allocation2 + $0x2a8] sm:$0xff]  ;;  %v4057_v62 = vsel %vm4015_vm6, %v3992_v15, %v2688_v55 }
 0x427   :  { %v12927_v60 = vpop.permute.xlu0 %1925  ;;  %v4122_v1 = vsel %vm4080_vm7, %v4057_v62, %v2944_v36  ;;  %v1567_v15 = vld [vmem:[#allocation2 + $0x2aa] sm:$0xff] }
 0x428   :  { %v2690_v45 = vpop.permute.xlu1 %2689  ;;  %v4187_v23 = vsel %vm4145_vm8, %v4122_v1, %v3200_v32  ;;  %v3863_v1 = vsel %vm38_vm0, %v12605_v20, %v12865_v5  ;;  %v13000_v5 = vld [vmem:[#allocation2 + $0x2c0] sm:$0xff] }
 0x429   :  { %v12929_v7 = vpop.f32.mrb[58].mxu0  ;;  %3215 = vrot.lane.b32.xlu0 %v12936_v43, %s10274_s0  ;;  %v4252_v52 = vsel %vm4210_vm9, %v4187_v23, %v3456_v58 }
 0x42a   :  { %17557 = vst [vmem:[#allocation8_spill] sm:$0xff] %v12929_v7  ;;  %v12934_v57 = vpop.f32.mrb[59].mxu0  ;;  %3213 = vrot.lane.b32.xlu1 %v12931_v30, %s10274_s0 }
 0x42b   :  { %17558 = vst [vmem:[#allocation9_spill] sm:$0xff] %v12934_v57  ;;  %v2946_v8 = vpop.permute.xlu0 %2945  ;;  %v12997_v57 = vld [vmem:[#allocation2 + $0x2b8] sm:$0xff] }
 0x42c   :  { %v3710_v56 = vpop.permute.xlu1 %3709 }
 0x42d   :  { %v4315_v38 = vsel %vm188_vm2, %v4251_v61, %v3710_v56  ;;  %2451 = vrot.lane.b32.xlu0 %v12936_v43, %s10270_s18 }
 0x42e   :  { %2449 = vrot.lane.b32.xlu1 %v12931_v30, %s10270_s18  ;;  %9395 = vmatprep.mubr.msk.f32.mxu0 %vm4355_vm10, %v4315_v38  ;;  %v1566_v38 = vld [vmem:[#allocation2 + $0x2a2] sm:$0xff] }
 0x42f   :  { %v12958_v19 = vpop.permute.xlu0 %1927 }
 0x430   :  { %v2692_v6 = vpop.permute.xlu1 %2691 }
 0x431   :  { %3471 = vrot.lane.b32.xlu0 %v1694_v46, %s10272_s20 }
 0x432   :  { %3469 = vrot.lane.b32.xlu1 %v1693_v22, %s10272_s20 }
 0x433   :  { %v2948_v56 = vpop.permute.xlu0 %2947 }
 0x434   :  { %v3712_v61 = vpop.permute.xlu1 %3711 }
 0x435   :  { %v4316_v14 = vsel %vm188_vm2, %v4252_v52, %v3712_v61  ;;  %1941 = vrot.lane.b32.xlu0 %v1693_v22, %s10267_s2 }
 0x436   :  { %2705 = vrot.lane.b32.xlu1 %v1693_v22, %s10269_s17  ;;  %9396 = vmatmul.mubr.msk.f32.gmra.mrb[72].mxu0 %vm4355_vm10, %v4316_v14 }
 0x437   :  { %v12971_v36 = vpop.permute.xlu0 %2183 }
 0x438   :  { %v12969_v55 = vpop.permute.xlu1 %2181 }
 0x439   :  { %2961 = vrot.lane.b32.xlu0 %v1566_v38, %s10271_s19 }
 0x43a   :  { %3725 = vrot.lane.b32.xlu1 %v1566_v38, %s10273_s15 }
 0x43b   :  { %v3204_v58 = vpop.permute.xlu0 %3203 }
 0x43c   :  { %v3202_v32 = vpop.permute.xlu1 %3201 }
 0x43d   :  { %1943 = vrot.lane.b32.xlu0 %v1694_v46, %s10267_s2 }
 0x43e   :  { %2707 = vrot.lane.b32.xlu1 %v1694_v46, %s10269_s17  ;;  %v3928_v46 = vsel %vm3885_vm4, %v3863_v1, %v12903_v13 }
 0x43f   :  { %v12979_v29 = vpop.permute.xlu0 %2439  ;;  %v3993_v23 = vsel %vm3950_vm5, %v3928_v46, %v12911_v12 }
 0x440   :  { %v12977_v44 = vpop.permute.xlu1 %2437  ;;  %v4058_v61 = vsel %vm4015_vm6, %v3993_v23, %v2690_v45 }
 0x441   :  { %2963 = vrot.lane.b32.xlu0 %v1567_v15, %s10271_s19  ;;  %v4123_v20 = vsel %vm4080_vm7, %v4058_v61, %v2946_v8  ;;  %v3864_v8 = vsel %vm38_vm0, %v12608_v47, %v12892_v37  ;;  %v1695_v47 = vld [vmem:[#allocation2 + $0x2b9] sm:$0xff] }
 0x442   :  { %3727 = vrot.lane.b32.xlu1 %v1567_v15, %s10273_s15  ;;  %v4188_v13 = vsel %vm4145_vm8, %v4123_v20, %v3202_v32  ;;  %v3929_v32 = vsel %vm3885_vm4, %v3864_v8, %v12905_v0  ;;  %v1696_v20 = vld [vmem:[#allocation2 + $0x2c1] sm:$0xff] }
 0x443   :  { %v3460_v22 = vpop.permute.xlu0 %3459 }
 0x444   :  { %v3458_v62 = vpop.permute.xlu1 %3457 }
 0x445   :  { %2199 = vrot.lane.b32.xlu0 %v1567_v15, %s10268_s12  ;;  %v4253_v12 = vsel %vm4210_vm9, %v4188_v13, %v3458_v62  ;;  %v3994_v62 = vsel %vm3950_vm5, %v3929_v32, %v12913_v49 }
 0x446   :  { %2197 = vrot.lane.b32.xlu1 %v1566_v38, %s10268_s12  ;;  %v4059_v23 = vsel %vm4015_vm6, %v3994_v62, %v2692_v6  ;;  %v1569_v62 = vld [vmem:[#allocation2 + $0x2c2] sm:$0xff] }
 0x447   :  { %v12993_v14 = vpop.permute.xlu0 %1929  ;;  %v4124_v37 = vsel %vm4080_vm7, %v4059_v23, %v2948_v56 }
 0x448   :  { %v2694_v52 = vpop.permute.xlu1 %2693  ;;  %v4189_v13 = vsel %vm4145_vm8, %v4124_v37, %v3204_v58  ;;  %v3865_v37 = vsel %vm38_vm0, %v12670_v31, %v12927_v60  ;;  %v13066_v60 = vld [vmem:[#allocation2 + $0x2d8] sm:$0xff] }
 0x449   :  { %v12995_v7 = vpop.f32.mrb[60].mxu0  ;;  %3219 = vrot.lane.b32.xlu0 %v13000_v5, %s10274_s0  ;;  %v4254_v0 = vsel %vm4210_vm9, %v4189_v13, %v3460_v22 }
 0x44a   :  { %17559 = vst [vmem:[#allocation10_spill] sm:$0xff] %v12995_v7  ;;  %v13002_v38 = vpop.f32.mrb[61].mxu0  ;;  %3217 = vrot.lane.b32.xlu1 %v12997_v57, %s10274_s0 }
 0x44b   :  { %17560 = vst [vmem:[#allocation11_spill] sm:$0xff] %v13002_v38  ;;  %v2950_v15 = vpop.permute.xlu0 %2949  ;;  %v13063_v38 = vld [vmem:[#allocation2 + $0x2d0] sm:$0xff] }
 0x44c   :  { %v3714_v45 = vpop.permute.xlu1 %3713 }
 0x44d   :  { %v4317_v1 = vsel %vm188_vm2, %v4253_v12, %v3714_v45  ;;  %2455 = vrot.lane.b32.xlu0 %v13000_v5, %s10270_s18 }
 0x44e   :  { %2453 = vrot.lane.b32.xlu1 %v12997_v57, %s10270_s18  ;;  %9398 = vmatprep.mubr.msk.f32.mxu0 %vm4355_vm10, %v4317_v1  ;;  %v1568_v1 = vld [vmem:[#allocation2 + $0x2ba] sm:$0xff] }
 0x44f   :  { %v13024_v61 = vpop.permute.xlu0 %1931 }
 0x450   :  { %v2696_v46 = vpop.permute.xlu1 %2695 }
 0x451   :  { %3475 = vrot.lane.b32.xlu0 %v1696_v20, %s10272_s20 }
 0x452   :  { %3473 = vrot.lane.b32.xlu1 %v1695_v47, %s10272_s20 }
 0x453   :  { %v2952_v45 = vpop.permute.xlu0 %2951 }
 0x454   :  { %v3716_v12 = vpop.permute.xlu1 %3715 }
 0x455   :  { %v4318_v49 = vsel %vm188_vm2, %v4254_v0, %v3716_v12  ;;  %1945 = vrot.lane.b32.xlu0 %v1695_v47, %s10267_s2 }
 0x456   :  { %2709 = vrot.lane.b32.xlu1 %v1695_v47, %s10269_s17  ;;  %9399 = vmatmul.mubr.msk.f32.gmra.mrb[74].mxu0 %vm4355_vm10, %v4318_v49 }
 0x457   :  { %v13037_v56 = vpop.permute.xlu0 %2187 }
 0x458   :  { %v13035_v6 = vpop.permute.xlu1 %2185 }
 0x459   :  { %2965 = vrot.lane.b32.xlu0 %v1568_v1, %s10271_s19 }
 0x45a   :  { %3729 = vrot.lane.b32.xlu1 %v1568_v1, %s10273_s15 }
 0x45b   :  { %v3208_v22 = vpop.permute.xlu0 %3207 }
 0x45c   :  { %v3206_v58 = vpop.permute.xlu1 %3205 }
 0x45d   :  { %1947 = vrot.lane.b32.xlu0 %v1696_v20, %s10267_s2 }
 0x45e   :  { %2711 = vrot.lane.b32.xlu1 %v1696_v20, %s10269_s17  ;;  %v3930_v20 = vsel %vm3885_vm4, %v3865_v37, %v12969_v55 }
 0x45f   :  { %v13045_v32 = vpop.permute.xlu0 %2443  ;;  %v3995_v13 = vsel %vm3950_vm5, %v3930_v20, %v12977_v44 }
 0x460   :  { %v13043_v8 = vpop.permute.xlu1 %2441  ;;  %v4060_v12 = vsel %vm4015_vm6, %v3995_v13, %v2694_v52 }
 0x461   :  { %2967 = vrot.lane.b32.xlu0 %v1569_v62, %s10271_s19  ;;  %v4125_v31 = vsel %vm4080_vm7, %v4060_v12, %v2950_v15  ;;  %v3866_v15 = vsel %vm38_vm0, %v12673_v59, %v12958_v19  ;;  %v1697_v59 = vld [vmem:[#allocation2 + $0x2d1] sm:$0xff] }
 0x462   :  { %3731 = vrot.lane.b32.xlu1 %v1569_v62, %s10273_s15  ;;  %v4190_v55 = vsel %vm4145_vm8, %v4125_v31, %v3206_v58  ;;  %v3931_v58 = vsel %vm3885_vm4, %v3866_v15, %v12971_v36  ;;  %v1698_v31 = vld [vmem:[#allocation2 + $0x2d9] sm:$0xff] }
 0x463   :  { %v3464_v47 = vpop.permute.xlu0 %3463 }
 0x464   :  { %v3462_v23 = vpop.permute.xlu1 %3461 }
 0x465   :  { %2203 = vrot.lane.b32.xlu0 %v1569_v62, %s10268_s12  ;;  %v4255_v44 = vsel %vm4210_vm9, %v4190_v55, %v3462_v23  ;;  %v3996_v23 = vsel %vm3950_vm5, %v3931_v58, %v12979_v29 }
 0x466   :  { %2201 = vrot.lane.b32.xlu1 %v1568_v1, %s10268_s12  ;;  %v4061_v13 = vsel %vm4015_vm6, %v3996_v23, %v2696_v46  ;;  %v1571_v23 = vld [vmem:[#allocation2 + $0x2da] sm:$0xff] }
 0x467   :  { %v13059_v49 = vpop.permute.xlu0 %1933  ;;  %v4126_v19 = vsel %vm4080_vm7, %v4061_v13, %v2952_v45 }
 0x468   :  { %v2698_v0 = vpop.permute.xlu1 %2697  ;;  %v4191_v55 = vsel %vm4145_vm8, %v4126_v19, %v3208_v22  ;;  %v3867_v19 = vsel %vm38_vm0, %v12735_v34, %v12993_v14  ;;  %v13132_v14 = vld [vmem:[#allocation2 + $0x2f0] sm:$0xff] }
 0x469   :  { %v13061_v7 = vpop.f32.mrb[62].mxu0  ;;  %3223 = vrot.lane.b32.xlu0 %v13066_v60, %s10274_s0  ;;  %v4256_v36 = vsel %vm4210_vm9, %v4191_v55, %v3464_v47 }
 0x46a   :  { %17561 = vst [vmem:[#allocation12_spill] sm:$0xff] %v13061_v7  ;;  %v13068_v1 = vpop.f32.mrb[63].mxu0  ;;  %3221 = vrot.lane.b32.xlu1 %v13063_v38, %s10274_s0 }
 0x46b   :  { %17562 = vst [vmem:[#allocation13_spill] sm:$0xff] %v13068_v1  ;;  %v2954_v62 = vpop.permute.xlu0 %2953  ;;  %v13129_v1 = vld [vmem:[#allocation2 + $0x2e8] sm:$0xff] }
 0x46c   :  { %v3718_v52 = vpop.permute.xlu1 %3717 }
 0x46d   :  { %v4319_v37 = vsel %vm188_vm2, %v4255_v44, %v3718_v52  ;;  %2459 = vrot.lane.b32.xlu0 %v13066_v60, %s10270_s18 }
 0x46e   :  { %2457 = vrot.lane.b32.xlu1 %v13063_v38, %s10270_s18  ;;  %9401 = vmatprep.mubr.msk.f32.mxu0 %vm4355_vm10, %v4319_v37  ;;  %v1570_v37 = vld [vmem:[#allocation2 + $0x2d2] sm:$0xff] }
 0x46f   :  { %v13090_v12 = vpop.permute.xlu0 %1935 }
 0x470   :  { %v2700_v20 = vpop.permute.xlu1 %2699 }
 0x471   :  { %3479 = vrot.lane.b32.xlu0 %v1698_v31, %s10272_s20 }
 0x472   :  { %3477 = vrot.lane.b32.xlu1 %v1697_v59, %s10272_s20 }
 0x473   :  { %v2956_v52 = vpop.permute.xlu0 %2955 }
 0x474   :  { %v3720_v44 = vpop.permute.xlu1 %3719 }
 0x475   :  { %v4320_v29 = vsel %vm188_vm2, %v4256_v36, %v3720_v44  ;;  %1949 = vrot.lane.b32.xlu0 %v1697_v59, %s10267_s2 }
 0x476   :  { %2713 = vrot.lane.b32.xlu1 %v1697_v59, %s10269_s17  ;;  %9402 = vmatmul.mubr.msk.f32.gmra.mrb[76].mxu0 %vm4355_vm10, %v4320_v29 }
 0x477   :  { %v13103_v45 = vpop.permute.xlu0 %2191 }
 0x478   :  { %v13101_v46 = vpop.permute.xlu1 %2189 }
 0x479   :  { %2969 = vrot.lane.b32.xlu0 %v1570_v37, %s10271_s19 }
 0x47a   :  { %3733 = vrot.lane.b32.xlu1 %v1570_v37, %s10273_s15 }
 0x47b   :  { %v3212_v47 = vpop.permute.xlu0 %3211 }
 0x47c   :  { %v3210_v22 = vpop.permute.xlu1 %3209 }
 0x47d   :  { %1951 = vrot.lane.b32.xlu0 %v1698_v31, %s10267_s2 }
 0x47e   :  { %2715 = vrot.lane.b32.xlu1 %v1698_v31, %s10269_s17  ;;  %v3932_v31 = vsel %vm3885_vm4, %v3867_v19, %v13035_v6 }
 0x47f   :  { %v13111_v58 = vpop.permute.xlu0 %2447  ;;  %v3997_v55 = vsel %vm3950_vm5, %v3932_v31, %v13043_v8 }
 0x480   :  { %v13109_v15 = vpop.permute.xlu1 %2445  ;;  %v4062_v44 = vsel %vm4015_vm6, %v3997_v55, %v2698_v0 }
 0x481   :  { %2971 = vrot.lane.b32.xlu0 %v1571_v23, %s10271_s19  ;;  %v4127_v34 = vsel %vm4080_vm7, %v4062_v44, %v2954_v62  ;;  %v3868_v62 = vsel %vm38_vm0, %v12738_v50, %v13024_v61  ;;  %v1699_v50 = vld [vmem:[#allocation2 + $0x2e9] sm:$0xff] }
 0x482   :  { %3735 = vrot.lane.b32.xlu1 %v1571_v23, %s10273_s15  ;;  %v4192_v6 = vsel %vm4145_vm8, %v4127_v34, %v3210_v22  ;;  %v3933_v22 = vsel %vm3885_vm4, %v3868_v62, %v13037_v56  ;;  %v1700_v34 = vld [vmem:[#allocation2 + $0x2f1] sm:$0xff] }
 0x483   :  { %v3468_v59 = vpop.permute.xlu0 %3467 }
 0x484   :  { %v3466_v13 = vpop.permute.xlu1 %3465 }
 0x485   :  { %2207 = vrot.lane.b32.xlu0 %v1571_v23, %s10268_s12  ;;  %v4257_v8 = vsel %vm4210_vm9, %v4192_v6, %v3466_v13  ;;  %v3998_v13 = vsel %vm3950_vm5, %v3933_v22, %v13045_v32 }
 0x486   :  { %2205 = vrot.lane.b32.xlu1 %v1570_v37, %s10268_s12  ;;  %v4063_v55 = vsel %vm4015_vm6, %v3998_v13, %v2700_v20  ;;  %v1573_v13 = vld [vmem:[#allocation2 + $0x2f2] sm:$0xff] }
 0x487   :  { %v13125_v29 = vpop.permute.xlu0 %1937  ;;  %v4128_v61 = vsel %vm4080_vm7, %v4063_v55, %v2956_v52 }
 0x488   :  { %v2702_v36 = vpop.permute.xlu1 %2701  ;;  %v4193_v6 = vsel %vm4145_vm8, %v4128_v61, %v3212_v47  ;;  %v3869_v61 = vsel %vm38_vm0, %v12801_v24, %v13059_v49  ;;  %v13198_v49 = vld [vmem:[#allocation2 + $0x308] sm:$0xff] }
 0x489   :  { %v13127_v7 = vpop.f32.mrb[64].mxu0  ;;  %3227 = vrot.lane.b32.xlu0 %v13132_v14, %s10274_s0  ;;  %v4258_v56 = vsel %vm4210_vm9, %v4193_v6, %v3468_v59 }
 0x48a   :  { %17563 = vst [vmem:[#allocation14_spill] sm:$0xff] %v13127_v7  ;;  %v13134_v37 = vpop.f32.mrb[65].mxu0  ;;  %3225 = vrot.lane.b32.xlu1 %v13129_v1, %s10274_s0 }
 0x48b   :  { %17564 = vst [vmem:[#allocation15_spill] sm:$0xff] %v13134_v37  ;;  %v2958_v23 = vpop.permute.xlu0 %2957  ;;  %v13195_v37 = vld [vmem:[#allocation2 + $0x300] sm:$0xff] }
 0x48c   :  { %v3722_v0 = vpop.permute.xlu1 %3721 }
 0x48d   :  { %v4321_v19 = vsel %vm188_vm2, %v4257_v8, %v3722_v0  ;;  %2463 = vrot.lane.b32.xlu0 %v13132_v14, %s10270_s18 }
 0x48e   :  { %2461 = vrot.lane.b32.xlu1 %v13129_v1, %s10270_s18  ;;  %9404 = vmatprep.mubr.msk.f32.mxu0 %vm4355_vm10, %v4321_v19  ;;  %v1572_v19 = vld [vmem:[#allocation2 + $0x2ea] sm:$0xff] }
 0x48f   :  { %v13156_v44 = vpop.permute.xlu0 %1939 }
 0x490   :  { %v2704_v31 = vpop.permute.xlu1 %2703 }
 0x491   :  { %3483 = vrot.lane.b32.xlu0 %v1700_v34, %s10272_s20 }
 0x492   :  { %3481 = vrot.lane.b32.xlu1 %v1699_v50, %s10272_s20 }
 0x493   :  { %v2960_v0 = vpop.permute.xlu0 %2959 }
 0x494   :  { %v3724_v8 = vpop.permute.xlu1 %3723 }
 0x495   :  { %v4322_v32 = vsel %vm188_vm2, %v4258_v56, %v3724_v8  ;;  %1953 = vrot.lane.b32.xlu0 %v1699_v50, %s10267_s2 }
 0x496   :  { %2717 = vrot.lane.b32.xlu1 %v1699_v50, %s10269_s17  ;;  %9405 = vmatmul.mubr.msk.f32.gmra.mrb[78].mxu0 %vm4355_vm10, %v4322_v32 }
 0x497   :  { %v13169_v52 = vpop.permute.xlu0 %2195 }
 0x498   :  { %v13167_v20 = vpop.permute.xlu1 %2193 }
 0x499   :  { %2973 = vrot.lane.b32.xlu0 %v1572_v19, %s10271_s19 }
 0x49a   :  { %3737 = vrot.lane.b32.xlu1 %v1572_v19, %s10273_s15 }
 0x49b   :  { %v3216_v59 = vpop.permute.xlu0 %3215 }
 0x49c   :  { %v3214_v47 = vpop.permute.xlu1 %3213 }
 0x49d   :  { %1955 = vrot.lane.b32.xlu0 %v1700_v34, %s10267_s2 }
 0x49e   :  { %2719 = vrot.lane.b32.xlu1 %v1700_v34, %s10269_s17  ;;  %v3934_v34 = vsel %vm3885_vm4, %v3869_v61, %v13101_v46 }
 0x49f   :  { %v13177_v22 = vpop.permute.xlu0 %2451  ;;  %v3999_v6 = vsel %vm3950_vm5, %v3934_v34, %v13109_v15 }
 0x4a0   :  { %v13175_v62 = vpop.permute.xlu1 %2449  ;;  %v4064_v8 = vsel %vm4015_vm6, %v3999_v6, %v2702_v36 }
 0x4a1   :  { %2975 = vrot.lane.b32.xlu0 %v1573_v13, %s10271_s19  ;;  %v4129_v24 = vsel %vm4080_vm7, %v4064_v8, %v2958_v23  ;;  %v3870_v23 = vsel %vm38_vm0, %v12804_v2, %v13090_v12  ;;  %v1701_v2 = vld [vmem:[#allocation2 + $0x301] sm:$0xff] }
 0x4a2   :  { %3739 = vrot.lane.b32.xlu1 %v1573_v13, %s10273_s15  ;;  %v4194_v46 = vsel %vm4145_vm8, %v4129_v24, %v3214_v47  ;;  %v3935_v47 = vsel %vm3885_vm4, %v3870_v23, %v13103_v45  ;;  %v1702_v24 = vld [vmem:[#allocation2 + $0x309] sm:$0xff] }
 0x4a3   :  { %v3472_v50 = vpop.permute.xlu0 %3471 }
 0x4a4   :  { %v3470_v55 = vpop.permute.xlu1 %3469 }
 0x4a5   :  { %2211 = vrot.lane.b32.xlu0 %v1573_v13, %s10268_s12  ;;  %v4259_v15 = vsel %vm4210_vm9, %v4194_v46, %v3470_v55  ;;  %v4000_v55 = vsel %vm3950_vm5, %v3935_v47, %v13111_v58 }
 0x4a6   :  { %2209 = vrot.lane.b32.xlu1 %v1572_v19, %s10268_s12  ;;  %v4065_v6 = vsel %vm4015_vm6, %v4000_v55, %v2704_v31  ;;  %v1575_v55 = vld [vmem:[#allocation2 + $0x30a] sm:$0xff] }
 0x4a7   :  { %v13191_v32 = vpop.permute.xlu0 %1941  ;;  %v4130_v12 = vsel %vm4080_vm7, %v4065_v6, %v2960_v0 }
 0x4a8   :  { %v2706_v56 = vpop.permute.xlu1 %2705  ;;  %v4195_v46 = vsel %vm4145_vm8, %v4130_v12, %v3216_v59  ;;  %v3871_v12 = vsel %vm38_vm0, %v12867_v4, %v13125_v29  ;;  %v13264_v29 = vld [vmem:[#allocation2 + $0x320] sm:$0xff] }
 0x4a9   :  { %v13193_v7 = vpop.f32.mrb[66].mxu0  ;;  %3231 = vrot.lane.b32.xlu0 %v13198_v49, %s10274_s0  ;;  %v4260_v45 = vsel %vm4210_vm9, %v4195_v46, %v3472_v50 }
 0x4aa   :  { %17565 = vst [vmem:[#allocation16_spill] sm:$0xff] %v13193_v7  ;;  %v13200_v19 = vpop.f32.mrb[67].mxu0  ;;  %3229 = vrot.lane.b32.xlu1 %v13195_v37, %s10274_s0 }
 0x4ab   :  { %17566 = vst [vmem:[#allocation17_spill] sm:$0xff] %v13200_v19  ;;  %v2962_v13 = vpop.permute.xlu0 %2961  ;;  %v13261_v19 = vld [vmem:[#allocation2 + $0x318] sm:$0xff] }
 0x4ac   :  { %v3726_v36 = vpop.permute.xlu1 %3725 }
 0x4ad   :  { %v4323_v61 = vsel %vm188_vm2, %v4259_v15, %v3726_v36  ;;  %2467 = vrot.lane.b32.xlu0 %v13198_v49, %s10270_s18 }
 0x4ae   :  { %2465 = vrot.lane.b32.xlu1 %v13195_v37, %s10270_s18  ;;  %9407 = vmatprep.mubr.msk.f32.mxu0 %vm4355_vm10, %v4323_v61  ;;  %v1574_v61 = vld [vmem:[#allocation2 + $0x302] sm:$0xff] }
 0x4af   :  { %v13222_v8 = vpop.permute.xlu0 %1943 }
 0x4b0   :  { %v2708_v34 = vpop.permute.xlu1 %2707 }
 0x4b1   :  { %3487 = vrot.lane.b32.xlu0 %v1702_v24, %s10272_s20 }
 0x4b2   :  { %3485 = vrot.lane.b32.xlu1 %v1701_v2, %s10272_s20 }
 0x4b3   :  { %v2964_v36 = vpop.permute.xlu0 %2963 }
 0x4b4   :  { %v3728_v15 = vpop.permute.xlu1 %3727 }
 0x4b5   :  { %v4324_v58 = vsel %vm188_vm2, %v4260_v45, %v3728_v15  ;;  %1957 = vrot.lane.b32.xlu0 %v1701_v2, %s10267_s2 }
 0x4b6   :  { %2721 = vrot.lane.b32.xlu1 %v1701_v2, %s10269_s17  ;;  %9408 = vmatmul.mubr.msk.f32.gmra.mrb[80].mxu0 %vm4355_vm10, %v4324_v58 }
 0x4b7   :  { %v13235_v0 = vpop.permute.xlu0 %2199 }
 0x4b8   :  { %v13233_v31 = vpop.permute.xlu1 %2197 }
 0x4b9   :  { %2977 = vrot.lane.b32.xlu0 %v1574_v61, %s10271_s19 }
 0x4ba   :  { %3741 = vrot.lane.b32.xlu1 %v1574_v61, %s10273_s15 }
 0x4bb   :  { %v3220_v50 = vpop.permute.xlu0 %3219 }
 0x4bc   :  { %v3218_v59 = vpop.permute.xlu1 %3217 }
 0x4bd   :  { %1959 = vrot.lane.b32.xlu0 %v1702_v24, %s10267_s2 }
 0x4be   :  { %2723 = vrot.lane.b32.xlu1 %v1702_v24, %s10269_s17  ;;  %v3936_v24 = vsel %vm3885_vm4, %v3871_v12, %v13167_v20 }
 0x4bf   :  { %v13243_v47 = vpop.permute.xlu0 %2455  ;;  %v4001_v46 = vsel %vm3950_vm5, %v3936_v24, %v13175_v62 }
 0x4c0   :  { %v13241_v23 = vpop.permute.xlu1 %2453  ;;  %v4066_v15 = vsel %vm4015_vm6, %v4001_v46, %v2706_v56 }
 0x4c1   :  { %2979 = vrot.lane.b32.xlu0 %v1575_v55, %s10271_s19  ;;  %v4131_v4 = vsel %vm4080_vm7, %v4066_v15, %v2962_v13  ;;  %v3872_v13 = vsel %vm38_vm0, %v12870_v11, %v13156_v44  ;;  %v1703_v11 = vld [vmem:[#allocation2 + $0x319] sm:$0xff] }
 0x4c2   :  { %3743 = vrot.lane.b32.xlu1 %v1575_v55, %s10273_s15  ;;  %v4196_v20 = vsel %vm4145_vm8, %v4131_v4, %v3218_v59  ;;  %v3937_v59 = vsel %vm3885_vm4, %v3872_v13, %v13169_v52  ;;  %v1704_v4 = vld [vmem:[#allocation2 + $0x321] sm:$0xff] }
 0x4c3   :  { %v3476_v2 = vpop.permute.xlu0 %3475 }
 0x4c4   :  { %v3474_v6 = vpop.permute.xlu1 %3473 }
 0x4c5   :  { %2215 = vrot.lane.b32.xlu0 %v1575_v55, %s10268_s12  ;;  %v4261_v62 = vsel %vm4210_vm9, %v4196_v20, %v3474_v6  ;;  %v4002_v6 = vsel %vm3950_vm5, %v3937_v59, %v13177_v22 }
 0x4c6   :  { %2213 = vrot.lane.b32.xlu1 %v1574_v61, %s10268_s12  ;;  %v4067_v46 = vsel %vm4015_vm6, %v4002_v6, %v2708_v34  ;;  %v1577_v6 = vld [vmem:[#allocation2 + $0x322] sm:$0xff] }
 0x4c7   :  { %v13257_v58 = vpop.permute.xlu0 %1945  ;;  %v4132_v44 = vsel %vm4080_vm7, %v4067_v46, %v2964_v36 }
 0x4c8   :  { %v2710_v45 = vpop.permute.xlu1 %2709  ;;  %v4197_v20 = vsel %vm4145_vm8, %v4132_v44, %v3220_v50  ;;  %v3873_v44 = vsel %vm38_vm0, %v12931_v30, %v13191_v32  ;;  %v1642_v32 = vld [vmem:[#allocation2 + $0x338] sm:$0xff] }
 0x4c9   :  { %v13259_v7 = vpop.f32.mrb[68].mxu0  ;;  %3235 = vrot.lane.b32.xlu0 %v13264_v29, %s10274_s0  ;;  %v4262_v52 = vsel %vm4210_vm9, %v4197_v20, %v3476_v2 }
 0x4ca   :  { %17567 = vst [vmem:[#allocation18_spill] sm:$0xff] %v13259_v7  ;;  %v13266_v61 = vpop.f32.mrb[69].mxu0  ;;  %3233 = vrot.lane.b32.xlu1 %v13261_v19, %s10274_s0 }
 0x4cb   :  { %17568 = vst [vmem:[#allocation19_spill] sm:$0xff] %v13266_v61  ;;  %v2966_v55 = vpop.permute.xlu0 %2965  ;;  %v1641_v61 = vld [vmem:[#allocation2 + $0x330] sm:$0xff] }
 0x4cc   :  { %v3730_v56 = vpop.permute.xlu1 %3729 }
 0x4cd   :  { %v4325_v12 = vsel %vm188_vm2, %v4261_v62, %v3730_v56  ;;  %2471 = vrot.lane.b32.xlu0 %v13264_v29, %s10270_s18 }
 0x4ce   :  { %2469 = vrot.lane.b32.xlu1 %v13261_v19, %s10270_s18  ;;  %9410 = vmatprep.mubr.msk.f32.mxu0 %vm4355_vm10, %v4325_v12  ;;  %v1576_v12 = vld [vmem:[#allocation2 + $0x31a] sm:$0xff] }
 0x4cf   :  { %v13288_v15 = vpop.permute.xlu0 %1947 }
 0x4d0   :  { %v2712_v24 = vpop.permute.xlu1 %2711 }
 0x4d1   :  { %3491 = vrot.lane.b32.xlu0 %v1704_v4, %s10272_s20 }
 0x4d2   :  { %3489 = vrot.lane.b32.xlu1 %v1703_v11, %s10272_s20 }
 0x4d3   :  { %v2968_v56 = vpop.permute.xlu0 %2967 }
 0x4d4   :  { %v3732_v62 = vpop.permute.xlu1 %3731 }
 0x4d5   :  { %v4326_v22 = vsel %vm188_vm2, %v4262_v52, %v3732_v62  ;;  %1961 = vrot.lane.b32.xlu0 %v1703_v11, %s10267_s2 }
 0x4d6   :  { %2725 = vrot.lane.b32.xlu1 %v1703_v11, %s10269_s17  ;;  %9411 = vmatmul.mubr.msk.f32.gmra.mrb[82].mxu0 %vm4355_vm10, %v4326_v22 }
 0x4d7   :  { %v13301_v36 = vpop.permute.xlu0 %2203 }
 0x4d8   :  { %v13299_v34 = vpop.permute.xlu1 %2201 }
 0x4d9   :  { %2981 = vrot.lane.b32.xlu0 %v1576_v12, %s10271_s19 }
 0x4da   :  { %3745 = vrot.lane.b32.xlu1 %v1576_v12, %s10273_s15 }
 0x4db   :  { %v3224_v2 = vpop.permute.xlu0 %3223 }
 0x4dc   :  { %v3222_v50 = vpop.permute.xlu1 %3221 }
 0x4dd   :  { %1963 = vrot.lane.b32.xlu0 %v1704_v4, %s10267_s2 }
 0x4de   :  { %2727 = vrot.lane.b32.xlu1 %v1704_v4, %s10269_s17  ;;  %v3938_v4 = vsel %vm3885_vm4, %v3873_v44, %v13233_v31 }
 0x4df   :  { %v13309_v59 = vpop.permute.xlu0 %2459  ;;  %v4003_v20 = vsel %vm3950_vm5, %v3938_v4, %v13241_v23  ;;  %v3874_v4 = vsel %vm38_vm0, %v12936_v43, %v13222_v8  ;;  %v1706_v8 = vld [vmem:[#allocation2 + $0x339] sm:$0xff] }
 0x4e0   :  { %v13307_v13 = vpop.permute.xlu1 %2457  ;;  %v4068_v62 = vsel %vm4015_vm6, %v4003_v20, %v2710_v45 }
 0x4e1   :  { %2983 = vrot.lane.b32.xlu0 %v1577_v6, %s10271_s19  ;;  %v4133_v30 = vsel %vm4080_vm7, %v4068_v62, %v2966_v55  ;;  %v3939_v55 = vsel %vm3885_vm4, %v3874_v4, %v13235_v0 }
 0x4e2   :  { %3747 = vrot.lane.b32.xlu1 %v1577_v6, %s10273_s15  ;;  %v4198_v31 = vsel %vm4145_vm8, %v4133_v30, %v3222_v50  ;;  %v4004_v50 = vsel %vm3950_vm5, %v3939_v55, %v13243_v47  ;;  %v1705_v30 = vld [vmem:[#allocation2 + $0x331] sm:$0xff]  ;;  %v1707_v55 = vld [vmem:[#allocation2 + $0x349] sm:$0xff] }
 0x4e3   :  { %v3480_v11 = vpop.permute.xlu0 %3479  ;;  %v4069_v20 = vsel %vm4015_vm6, %v4004_v50, %v2712_v24 }
 0x4e4   :  { %v3478_v46 = vpop.permute.xlu1 %3477  ;;  %v4134_v43 = vsel %vm4080_vm7, %v4069_v20, %v2968_v56  ;;  %v1644_v20 = vld [vmem:[#allocation2 + $0x350] sm:$0xff] }
 0x4e5   :  { %2219 = vrot.lane.b32.xlu0 %v1577_v6, %s10268_s12  ;;  %v4263_v23 = vsel %vm4210_vm9, %v4198_v31, %v3478_v46 }
 0x4e6   :  { %2217 = vrot.lane.b32.xlu1 %v1576_v12, %s10268_s12 }
 0x4e7   :  { %v13325_v22 = vpop.permute.xlu0 %1949 }
 0x4e8   :  { %v13322_v52 = vpop.permute.xlu1 %2713 }
 0x4e9   :  { %v13327_v7 = vpop.f32.mrb[70].mxu0  ;;  %3239 = vrot.lane.b32.xlu0 %v1642_v32, %s10274_s0 }
 0x4ea   :  { %v13330_v12 = vpop.f32.mrb[71].mxu0  ;;  %3237 = vrot.lane.b32.xlu1 %v1641_v61, %s10274_s0 }
 0x4eb   :  { %v2970_v45 = vpop.permute.xlu0 %2969 }
 0x4ec   :  { %v3734_v6 = vpop.permute.xlu1 %3733 }
 0x4ed   :  { %v4327_v44 = vsel %vm188_vm2, %v4263_v23, %v3734_v6  ;;  %2475 = vrot.lane.b32.xlu0 %v1642_v32, %s10270_s18  ;;  %v1769_v23 = vld [vmem:[#allocation2 + $0x332] sm:$0xff]  ;;  %v1643_v6 = vld [vmem:[#allocation2 + $0x348] sm:$0xff] }
 0x4ee   :  { %2473 = vrot.lane.b32.xlu1 %v1641_v61, %s10270_s18  ;;  %9413 = vmatprep.mubr.msk.f32.mxu0 %vm4355_vm10, %v4327_v44  ;;  %v4199_v61 = vsel %vm4145_vm8, %v4134_v43, %v3224_v2  ;;  %v1770_v2 = vld [vmem:[#allocation2 + $0x33a] sm:$0xff]  ;;  %v1771_v43 = vld [vmem:[#allocation2 + $0x34a] sm:$0xff] }
 0x4ef   :  { %v13348_v62 = vpop.permute.xlu0 %1951  ;;  %v4264_v0 = vsel %vm4210_vm9, %v4199_v61, %v3480_v11  ;;  %v3875_v61 = vsel %vm38_vm0, %v12997_v57, %v13257_v58 }
 0x4f0   :  { %v2716_v46 = vpop.permute.xlu1 %2715 }
 0x4f1   :  { %3495 = vrot.lane.b32.xlu0 %v1706_v8, %s10272_s20 }
 0x4f2   :  { %3493 = vrot.lane.b32.xlu1 %v1705_v30, %s10272_s20 }
 0x4f3   :  { %v2972_v31 = vpop.permute.xlu0 %2971 }
 0x4f4   :  { %v3736_v32 = vpop.permute.xlu1 %3735 }
 0x4f5   :  { %v4328_v47 = vsel %vm188_vm2, %v4264_v0, %v3736_v32  ;;  %2731 = vrot.lane.b32.xlu0 %v1706_v8, %s10269_s17  ;;  %v3940_v0 = vsel %vm3885_vm4, %v3875_v61, %v13299_v34  ;;  %v1708_v32 = vld [vmem:[#allocation2 + $0x351] sm:$0xff] }
 0x4f6   :  { %2729 = vrot.lane.b32.xlu1 %v1705_v30, %s10269_s17  ;;  %9414 = vmatmul.mubr.msk.f32.gmra.mrb[84].mxu0 %vm4355_vm10, %v4328_v47  ;;  %v4005_v47 = vsel %vm3950_vm5, %v3940_v0, %v13307_v13 }
 0x4f7   :  { %v13361_v56 = vpop.permute.xlu0 %2207 }
 0x4f8   :  { %v13359_v24 = vpop.permute.xlu1 %2205 }
 0x4f9   :  { %3751 = vrot.lane.b32.xlu0 %v1770_v2, %s10273_s15 }
 0x4fa   :  { %3749 = vrot.lane.b32.xlu1 %v1769_v23, %s10273_s15 }
 0x4fb   :  { %v3228_v44 = vpop.permute.xlu0 %3227 }
 0x4fc   :  { %v3226_v11 = vpop.permute.xlu1 %3225 }
 0x4fd   :  { %3241 = vrot.lane.b32.xlu0 %v1643_v6, %s10274_s0 }
 0x4fe   :  { %2985 = vrot.lane.b32.xlu1 %v1769_v23, %s10271_s19 }
 0x4ff   :  { %v13367_v50 = vpop.permute.xlu0 %2463 }
 0x500   :  { %v2462_v4 = vpop.permute.xlu1 %2461 }
 0x501   :  { %3497 = vrot.lane.b32.xlu0 %v1707_v55, %s10272_s20 }
 0x502   :  { %2987 = vrot.lane.b32.xlu1 %v1770_v2, %s10271_s19  ;;  %v4070_v2 = vsel %vm4015_vm6, %v4005_v47, %v13322_v52  ;;  %v3876_v52 = vsel %vm38_vm0, %v13000_v5, %v13288_v15 }
 0x503   :  { %v3484_v8 = vpop.permute.xlu0 %3483  ;;  %v4135_v57 = vsel %vm4080_vm7, %v4070_v2, %v2970_v45  ;;  %v3941_v45 = vsel %vm3885_vm4, %v3876_v52, %v13301_v36 }
 0x504   :  { %v3482_v30 = vpop.permute.xlu1 %3481  ;;  %v4200_v34 = vsel %vm4145_vm8, %v4135_v57, %v3226_v11  ;;  %v4006_v11 = vsel %vm3950_vm5, %v3941_v45, %v13309_v59 }
 0x505   :  { %3753 = vrot.lane.b32.xlu0 %v1771_v43, %s10273_s15  ;;  %v4265_v43 = vsel %vm4210_vm9, %v4200_v34, %v3482_v30  ;;  %v4071_v30 = vsel %vm4015_vm6, %v4006_v11, %v2716_v46 }
 0x506   :  { %3243 = vrot.lane.b32.xlu1 %v1644_v20, %s10274_s0  ;;  %v1772_v20 = vld [vmem:[#allocation2 + $0x352] sm:$0xff]  ;;  %v4136_v2 = vsel %vm4080_vm7, %v4071_v30, %v2972_v31  ;;  %v3877_v31 = vsel %vm38_vm0, %v13063_v38, %v13325_v22 }
 0x507   :  { %v13382_v6 = vpop.permute.xlu0 %1953  ;;  %v4201_v57 = vsel %vm4145_vm8, %v4136_v2, %v3228_v44  ;;  %v3942_v44 = vsel %vm3885_vm4, %v3877_v31, %v13359_v24 }
 0x508   :  { %v2718_v23 = vpop.permute.xlu1 %2717  ;;  %v4266_v5 = vsel %vm4210_vm9, %v4201_v57, %v3484_v8  ;;  %v4007_v8 = vsel %vm3950_vm5, %v3942_v44, %v2462_v4  ;;  %v3878_v4 = vsel %vm38_vm0, %v13066_v60, %v13348_v62 }
 0x509   :  { %v13384_v55 = vpop.f32.mrb[72].mxu0  ;;  %v4072_v30 = vsel %vm4015_vm6, %v4007_v8, %v2718_v23  ;;  %v3943_v23 = vsel %vm3885_vm4, %v3878_v4, %v13361_v56 }
 0x50a   :  { %17569 = vst [vmem:[#allocation20_spill] sm:$0xff] %v13384_v55  ;;  %v13387_v58 = vpop.f32.mrb[73].mxu0  ;;  %3499 = vrot.lane.b32.xlu1 %v1708_v32, %s10272_s20 }
 0x50b   :  { %v2974_v61 = vpop.permute.xlu0 %2973 }
 0x50c   :  { %v3738_v13 = vpop.permute.xlu1 %3737 }
 0x50d   :  { %v4329_v0 = vsel %vm188_vm2, %v4265_v43, %v3738_v13 }
 0x50e   :  { %3755 = vrot.lane.b32.xlu1 %v1772_v20, %s10273_s15  ;;  %9416 = vmatprep.mubr.msk.f32.mxu0 %vm4355_vm10, %v4329_v0 }
 0x50f   :  { %v13403_v47 = vpop.permute.xlu0 %1955 }
 0x510   :  { %v2720_v32 = vpop.permute.xlu1 %2719 }
 0x513   :  { %v2976_v34 = vpop.permute.xlu0 %2975 }
 0x514   :  { %v3740_v15 = vpop.permute.xlu1 %3739 }
 0x515   :  { %v4330_v20 = vsel %vm188_vm2, %v4266_v5, %v3740_v15  ;;  %v4137_v5 = vsel %vm4080_vm7, %v4072_v30, %v2974_v61  ;;  %v4008_v61 = vsel %vm3950_vm5, %v3943_v23, %v13367_v50 }
 0x516   :  { %9417 = vmatmul.mubr.msk.f32.gmra.mrb[86].mxu0 %vm4355_vm10, %v4330_v20 }
 0x517   :  { %v2212_v43 = vpop.permute.xlu0 %2211 }
 0x518   :  { %v2210_v36 = vpop.permute.xlu1 %2209 }
 0x51b   :  { %v3232_v13 = vpop.permute.xlu0 %3231 }
 0x51c   :  { %v3230_v59 = vpop.permute.xlu1 %3229 }
 0x51d   :  { %v4202_v20 = vsel %vm4145_vm8, %v4137_v5, %v3230_v59  ;;  %v4073_v59 = vsel %vm4015_vm6, %v4008_v61, %v2720_v32 }
 0x51e   :  { %v4138_v44 = vsel %vm4080_vm7, %v4073_v59, %v2976_v34  ;;  %v3879_v34 = vsel %vm38_vm0, %v13129_v1, %v13382_v6 }
 0x51f   :  { %v2468_v46 = vpop.permute.xlu0 %2467  ;;  %v4203_v8 = vsel %vm4145_vm8, %v4138_v44, %v3232_v13  ;;  %v3944_v13 = vsel %vm3885_vm4, %v3879_v34, %v2210_v36  ;;  %v3880_v36 = vsel %vm38_vm0, %v13132_v14, %v13403_v47 }
 0x520   :  { %v2466_v0 = vpop.permute.xlu1 %2465 }
 0x523   :  { %v3488_v45 = vpop.permute.xlu0 %3487 }
 0x524   :  { %v3486_v52 = vpop.permute.xlu1 %3485  ;;  %v4268_v30 = vsel %vm4210_vm9, %v4203_v8, %v3488_v45  ;;  %v4009_v45 = vsel %vm3950_vm5, %v3944_v13, %v2466_v0  ;;  %v3945_v0 = vsel %vm3885_vm4, %v3880_v36, %v2212_v43 }
 0x525   :  { %v4267_v38 = vsel %vm4210_vm9, %v4202_v20, %v3486_v52 }
 0x527   :  { %v13417_v2 = vpop.permute.xlu0 %1957 }
 0x528   :  { %v2722_v11 = vpop.permute.xlu1 %2721 }
 0x529   :  { %v13419_v57 = vpop.f32.mrb[74].mxu0  ;;  %v4074_v61 = vsel %vm4015_vm6, %v4009_v45, %v2722_v11 }
 0x52a   :  { %17570 = vst [vmem:[#allocation21_spill] sm:$0xff] %v13419_v57  ;;  %v13422_v15 = vpop.f32.mrb[75].mxu0 }
 0x52b   :  { %v2978_v55 = vpop.permute.xlu0 %2977 }
 0x52c   :  { %v3742_v22 = vpop.permute.xlu1 %3741  ;;  %v4139_v8 = vsel %vm4080_vm7, %v4074_v61, %v2978_v55  ;;  %v4010_v55 = vsel %vm3950_vm5, %v3945_v0, %v2468_v46 }
 0x52d   :  { %v4331_v24 = vsel %vm188_vm2, %v4267_v38, %v3742_v22 }
 0x52e   :  { %9419 = vmatprep.mubr.msk.f32.mxu0 %vm4355_vm10, %v4331_v24 }
 0x52f   :  { %v1960_v52 = vpop.permute.xlu0 %1959 }
 0x530   :  { %v2724_v31 = vpop.permute.xlu1 %2723 }
 0x531   :  { %v4075_v34 = vsel %vm4015_vm6, %v4010_v55, %v2724_v31 }
 0x533   :  { %v2980_v60 = vpop.permute.xlu0 %2979 }
 0x534   :  { %v3744_v5 = vpop.permute.xlu1 %3743 }
 0x535   :  { %v4332_v62 = vsel %vm188_vm2, %v4268_v30, %v3744_v5 }
 0x536   :  { %9420 = vmatmul.mubr.msk.f32.gmra.mrb[88].mxu0 %vm4355_vm10, %v4332_v62 }
 0x537   :  { %v2216_v20 = vpop.permute.xlu0 %2215 }
 0x538   :  { %v2214_v56 = vpop.permute.xlu1 %2213 }
 0x53b   :  { %v3236_v50 = vpop.permute.xlu0 %3235 }
 0x53c   :  { %v3234_v38 = vpop.permute.xlu1 %3233 }
 0x53d   :  { %v4204_v5 = vsel %vm4145_vm8, %v4139_v8, %v3234_v38 }
 0x53f   :  { %v2472_v24 = vpop.permute.xlu0 %2471 }
 0x540   :  { %v2470_v22 = vpop.permute.xlu1 %2469 }
 0x543   :  { %v3492_v4 = vpop.permute.xlu0 %3491 }
 0x544   :  { %v3490_v32 = vpop.permute.xlu1 %3489 }
 0x545   :  { %v4269_v62 = vsel %vm4210_vm9, %v4204_v5, %v3490_v32  ;;  %v4140_v32 = vsel %vm4080_vm7, %v4075_v34, %v2980_v60  ;;  %v3881_v60 = vsel %vm38_vm0, %v13195_v37, %v13417_v2 }
 0x546   :  { %v4205_v13 = vsel %vm4145_vm8, %v4140_v32, %v3236_v50  ;;  %v3882_v50 = vsel %vm38_vm0, %v13198_v49, %v1960_v52 }
 0x547   :  { %v1962_v59 = vpop.permute.xlu0 %1961  ;;  %v3947_v36 = vsel %vm3885_vm4, %v3882_v50, %v2216_v20 }
 0x548   :  { %v2726_v23 = vpop.permute.xlu1 %2725  ;;  %v4012_v34 = vsel %vm3950_vm5, %v3947_v36, %v2472_v24 }
 0x549   :  { %v13447_v44 = vpop.f32.mrb[76].mxu0 }
 0x54a   :  { %v13450_v30 = vpop.f32.mrb[77].mxu0 }
 0x54b   :  { %v2982_v1 = vpop.permute.xlu0 %2981 }
 0x54c   :  { %v3746_v57 = vpop.permute.xlu1 %3745 }
 0x54d   :  { %v4333_v6 = vsel %vm188_vm2, %v4269_v62, %v3746_v57  ;;  %v4270_v57 = vsel %vm4210_vm9, %v4205_v13, %v3492_v4  ;;  %v3946_v4 = vsel %vm3885_vm4, %v3881_v60, %v2214_v56 }
 0x54e   :  { %9422 = vmatprep.mubr.msk.f32.mxu0 %vm4355_vm10, %v4333_v6  ;;  %v4011_v0 = vsel %vm3950_vm5, %v3946_v4, %v2470_v22 }
 0x54f   :  { %v1964_v38 = vpop.permute.xlu0 %1963  ;;  %v4076_v32 = vsel %vm4015_vm6, %v4011_v0, %v2726_v23 }
 0x550   :  { %v2728_v11 = vpop.permute.xlu1 %2727 }
 0x551   :  { %v4077_v37 = vsel %vm4015_vm6, %v4012_v34, %v2728_v11 }
 0x553   :  { %v2984_v61 = vpop.permute.xlu0 %2983 }
 0x554   :  { %v3748_v45 = vpop.permute.xlu1 %3747  ;;  %v4142_v49 = vsel %vm4080_vm7, %v4077_v37, %v2984_v61  ;;  %v3883_v61 = vsel %vm38_vm0, %v13261_v19, %v1962_v59  ;;  %v3884_v19 = vsel %vm38_vm0, %v13264_v29, %v1964_v38 }
 0x555   :  { %v4334_v14 = vsel %vm188_vm2, %v4270_v57, %v3748_v45  ;;  %v4141_v45 = vsel %vm4080_vm7, %v4076_v32, %v2982_v1 }
 0x556   :  { %9423 = vmatmul.mubr.msk.f32.gmra.mrb[90].mxu0 %vm4355_vm10, %v4334_v14 }
 0x557   :  { %v2220_v43 = vpop.permute.xlu0 %2219 }
 0x558   :  { %v2218_v47 = vpop.permute.xlu1 %2217 }
 0x55b   :  { %v3240_v46 = vpop.permute.xlu0 %3239 }
 0x55c   :  { %v3238_v8 = vpop.permute.xlu1 %3237  ;;  %v4207_v56 = vsel %vm4145_vm8, %v4142_v49, %v3240_v46  ;;  %v3948_v46 = vsel %vm3885_vm4, %v3883_v61, %v2218_v47  ;;  %v3949_v47 = vsel %vm3885_vm4, %v3884_v19, %v2220_v43 }
 0x55d   :  { %v4206_v52 = vsel %vm4145_vm8, %v4141_v45, %v3238_v8 }
 0x55f   :  { %v2476_v62 = vpop.permute.xlu0 %2475 }
 0x560   :  { %v2474_v5 = vpop.permute.xlu1 %2473 }
 0x563   :  { %v3496_v6 = vpop.permute.xlu0 %3495 }
 0x564   :  { %v3494_v31 = vpop.permute.xlu1 %3493  ;;  %v4272_v24 = vsel %vm4210_vm9, %v4207_v56, %v3496_v6 }
 0x565   :  { %v4271_v20 = vsel %vm4210_vm9, %v4206_v52, %v3494_v31  ;;  %v4013_v31 = vsel %vm3950_vm5, %v3948_v46, %v2474_v5  ;;  %v4014_v5 = vsel %vm3950_vm5, %v3949_v47, %v2476_v62  ;;  %v13519_v62 = vld [vmem:[%s17415_s4] ss:$0 sm:$0xff] }
 0x566   :  { %v13552_v61 = vadd.f32 %v12106_v40, %v13519_v62  ;;  %v13606_v19 = vadd.f32 %v12500_v53, %v13519_v62 }
 0x567   :  { %v2732_v13 = vpop.permute.xlu0 %2731 }
 0x568   :  { %v2730_v55 = vpop.permute.xlu1 %2729  ;;  %v4079_v45 = vsel %vm4015_vm6, %v4014_v5, %v2732_v13  ;;  %v13523_v13 = vadd.f32 %v11932_v42, %v13519_v62  ;;  %v13542_v42 = vadd.f32 %v12021_v3, %v13519_v62  ;;  %v13620_v5 = vadd.f32 %v13519_v62, %v12647_v63 }
 0x569   :  { %v13477_v57 = vpop.f32.mrb[78].mxu0  ;;  %v4078_v6 = vsel %vm4015_vm6, %v4013_v31, %v2730_v55  ;;  %v13566_v31 = vadd.f32 %v13519_v62, %v12260_v39  ;;  %v13582_v39 = vadd.f32 %v12333_v35, %v13519_v62  ;;  %v13600_v35 = vadd.f32 %v13519_v62, %v12503_v9 }
 0x56a   :  { %v13481_v2 = vpop.f32.mrb[79].mxu0  ;;  %17571 = vst [vmem:[#allocation22_spill] sm:$0xff] %v13523_v13  ;;  %17573 = vst [vmem:[#allocation24_spill] sm:$0xff] %v13542_v42  ;;  %v13616_v9 = vadd.f32 %v12572_v51, %v13519_v62  ;;  %v13636_v63 = vadd.f32 %v12711_v48, %v13519_v62 }
 0x56b   :  { %v3752_v23 = vpop.permute.xlu0 %3751 }
 0x56c   :  { %v3750_v22 = vpop.permute.xlu1 %3749  ;;  %v4336_v1 = vsel %vm188_vm2, %v4272_v24, %v3752_v23  ;;  %17575 = vst [vmem:[#allocation26_spill] sm:$0xff] %v13636_v63 }
 0x56d   :  { %v4335_v14 = vsel %vm188_vm2, %v4271_v20, %v3750_v22  ;;  %v13527_v20 = vadd.f32 %v13519_v62, %v11935_v27  ;;  %v13531_v22 = vadd.f32 %v13519_v62, %v12024_v21  ;;  %v13546_v27 = vadd.f32 %v13519_v62, %v12110_v26 }
 0x56e   :  { %9425 = vmatprep.mubr.msk.f32.mxu0 %vm4355_vm10, %v4335_v14  ;;  %v13562_v26 = vadd.f32 %v12187_v41, %v13519_v62 }
 0x56f   :  { %9426 = vmatmul.mubr.msk.f32.gmra.mrb[92].mxu0 %vm4355_vm10, %v4336_v1  ;;  %v3242_v8 = vpop.permute.xlu0 %3241  ;;  %17572 = vst [vmem:[#allocation23_spill] sm:$0xff] %v13531_v22  ;;  %v4933_v24 = vadd.f32 %v13523_v13, %v13527_v20  ;;  %17574 = vst [vmem:[#allocation25_spill] sm:$0xff] %v13546_v27 }
 0x570   :  { %v2986_v11 = vpop.permute.xlu1 %2985 }
 0x571   :  { %v4143_v50 = vsel %vm4080_vm7, %v4078_v6, %v2986_v11  ;;  %v4934_v1 = vadd.f32 %v4933_v24, %v13531_v22  ;;  %v17579_v24 = vld [vmem:[#allocation7_spill] sm:$0xff] }
 0x572   :  { %v4208_v36 = vsel %vm4145_vm8, %v4143_v50, %v3242_v8  ;;  %v13556_v8 = vadd.f32 %v13519_v62, %v12192_v16  ;;  %v13572_v16 = vadd.f32 %v12256_v54, %v13519_v62 }
 0x573   :  { %v3498_v4 = vpop.permute.xlu0 %3497  ;;  %v4935_v21 = vadd.f32 %v4934_v1, %v13542_v42  ;;  %v13650_v1 = vadd.f32 %v13519_v62, %v17579_v24 }
 0x574   :  { %v2988_v60 = vpop.permute.xlu1 %2987  ;;  %v4273_v34 = vsel %vm4210_vm9, %v4208_v36, %v3498_v4  ;;  %v13586_v4 = vadd.f32 %v13519_v62, %v12425_v18 }
 0x575   :  { %v4144_v37 = vsel %vm4080_vm7, %v4079_v45, %v2988_v60  ;;  %v4936_v11 = vadd.f32 %v4935_v21, %v13546_v27  ;;  %v13576_v60 = vadd.f32 %v13519_v62, %v12337_v17  ;;  %v13630_v45 = vadd.f32 %v13519_v62, %v12713_v25 }
 0x577   :  { %v3754_v32 = vpop.permute.xlu0 %3753  ;;  %v4937_v46 = vadd.f32 %v4936_v11, %v13552_v61 }
 0x578   :  { %v3244_v0 = vpop.permute.xlu1 %3243  ;;  %v4337_v59 = vsel %vm188_vm2, %v4273_v34, %v3754_v32  ;;  %v13596_v34 = vadd.f32 %v12421_v33, %v13519_v62 }
 0x579   :  { %9428 = vmatprep.mubr.msk.f32.mxu0 %vm4355_vm10, %v4337_v59  ;;  %v4209_v49 = vsel %vm4145_vm8, %v4144_v37, %v3244_v0  ;;  %v4938_v3 = vadd.f32 %v4937_v46, %v13556_v8  ;;  %v13610_v59 = vadd.f32 %v13519_v62, %v12574_v10  ;;  %v13626_v10 = vadd.f32 %v12645_v28, %v13519_v62 }
 0x57b   :  { %v4939_v6 = vadd.f32 %v4938_v3, %v13562_v26  ;;  %v17580_v3 = vld [vmem:[#allocation6_spill] sm:$0xff] }
 0x57c   :  { %v3500_v55 = vpop.permute.xlu1 %3499 }
 0x57d   :  { %v4274_v52 = vsel %vm4210_vm9, %v4209_v49, %v3500_v55  ;;  %v4940_v40 = vadd.f32 %v4939_v6, %v13566_v31  ;;  %v17576_v49 = vld [vmem:[#allocation5_spill] sm:$0xff]  ;;  %v13660_v6 = vadd.f32 %v17580_v3, %v13519_v62 }
 0x57f   :  { %v4941_v50 = vadd.f32 %v4940_v40, %v13572_v16  ;;  %v17582_v40 = vld [vmem:[#allocation9_spill] sm:$0xff] }
 0x580   :  { %v3756_v56 = vpop.permute.xlu1 %3755 }
 0x581   :  { %v4338_v29 = vsel %vm188_vm2, %v4274_v52, %v3756_v56  ;;  %v4942_v41 = vadd.f32 %v4941_v50, %v13576_v60  ;;  %v13640_v52 = vadd.f32 %v13519_v62, %v17576_v49  ;;  %v13664_v50 = vadd.f32 %v13519_v62, %v17582_v40 }
 0x582   :  { %9429 = vmatmul.mubr.msk.f32.gmra.mrb[94].mxu0 %vm4355_vm10, %v4338_v29  ;;  %v17577_v29 = vld [vmem:[#allocation4_spill] sm:$0xff] }
 0x583   :  { %v4943_v36 = vadd.f32 %v4942_v41, %v13582_v39  ;;  %v13646_v25 = vadd.f32 %v17577_v29, %v13519_v62  ;;  %17581 = vst [vmem:[#allocation4_spill] sm:$0xff] %v13660_v6  ;;  %v17591_v29 = vld [vmem:[#allocation12_spill] sm:$0xff] }
 0x584   :  { %v13690_v24 = vadd.f32 %v17591_v29, %v13519_v62 }
 0x585   :  { %v4944_v54 = vadd.f32 %v4943_v36, %v13586_v4  ;;  %17578 = vst [vmem:[#allocation5_spill] sm:$0xff] %v13646_v25 }
 0x587   :  { %v4945_v32 = vadd.f32 %v4944_v54, %v13596_v34  ;;  %v17583_v54 = vld [vmem:[#allocation8_spill] sm:$0xff] }
 0x589   :  { %v13512_v38 = vpop.f32.mrb[80].mxu0  ;;  %v4946_v18 = vadd.f32 %v4945_v32, %v13600_v35  ;;  %v13670_v32 = vadd.f32 %v17583_v54, %v13519_v62  ;;  %v17597_v54 = vld [vmem:[#allocation17_spill] sm:$0xff] }
 0x58a   :  { %v13514_v43 = vpop.f32.mrb[81].mxu0 }
 0x58b   :  { %v4947_v47 = vadd.f32 %v4946_v18, %v13606_v19  ;;  %17584 = vst [vmem:[#allocation7_spill] sm:$0xff] %v13670_v32  ;;  %v17585_v18 = vld [vmem:[#allocation11_spill] sm:$0xff] }
 0x58c   :  { %17592 = vst [vmem:[#allocation11_spill] sm:$0xff] %v13690_v24 }
 0x58d   :  { %v4948_v33 = vadd.f32 %v4947_v47, %v13610_v59  ;;  %v13674_v47 = vadd.f32 %v13519_v62, %v17585_v18  ;;  %v13704_v18 = vadd.f32 %v13519_v62, %v17597_v54  ;;  %v17603_v54 = vld [vmem:[#allocation18_spill] sm:$0xff] }
 0x58f   :  { %v4949_v55 = vadd.f32 %v4948_v33, %v13616_v9  ;;  %17586 = vst [vmem:[#allocation6_spill] sm:$0xff] %v13674_v47  ;;  %17598 = vst [vmem:[#allocation12_spill] sm:$0xff] %v13704_v18 }
 0x591   :  { %v4950_v53 = vadd.f32 %v4949_v55, %v13620_v5 }
 0x593   :  { %v4951_v37 = vadd.f32 %v4950_v53, %v13626_v10  ;;  %v17587_v53 = vld [vmem:[#allocation10_spill] sm:$0xff] }
 0x595   :  { %v4952_v51 = vadd.f32 %v4951_v37, %v13630_v45  ;;  %v13680_v37 = vadd.f32 %v17587_v53, %v13519_v62 }
 0x597   :  { %v4953_v56 = vadd.f32 %v4952_v51, %v13636_v63  ;;  %17588 = vst [vmem:[#allocation9_spill] sm:$0xff] %v13680_v37  ;;  %v17589_v51 = vld [vmem:[#allocation13_spill] sm:$0xff] }
 0x598   :  { %v13684_v49 = vadd.f32 %v13519_v62, %v17589_v51 }
 0x599   :  { %v4954_v28 = vadd.f32 %v4953_v56, %v13640_v52 }
 0x59a   :  { %17590 = vst [vmem:[#allocation8_spill] sm:$0xff] %v13684_v49 }
 0x59b   :  { %v4955_v11 = vadd.f32 %v4954_v28, %v13646_v25 }
 0x59d   :  { %v4956_v46 = vadd.f32 %v4955_v11, %v13650_v1  ;;  %v17593_v11 = vld [vmem:[#allocation15_spill] sm:$0xff] }
 0x59f   :  { %v4957_v41 = vadd.f32 %v4956_v46, %v13660_v6  ;;  %v13694_v46 = vadd.f32 %v13519_v62, %v17593_v11 }
 0x5a1   :  { %v4958_v36 = vadd.f32 %v4957_v41, %v13664_v50  ;;  %17594 = vst [vmem:[#allocation10_spill] sm:$0xff] %v13694_v46  ;;  %v17595_v41 = vld [vmem:[#allocation14_spill] sm:$0xff] }
 0x5a3   :  { %v4959_v33 = vadd.f32 %v4958_v36, %v13670_v32  ;;  %v13700_v36 = vadd.f32 %v17595_v41, %v13519_v62 }
 0x5a5   :  { %v4960_v55 = vadd.f32 %v4959_v33, %v13674_v47  ;;  %17596 = vst [vmem:[#allocation13_spill] sm:$0xff] %v13700_v36 }
 0x5a7   :  { %v4961_v56 = vadd.f32 %v4960_v55, %v13680_v37 }
 0x5a9   :  { %v13535_v23 = vpop.f32.mrb[82].mxu0  ;;  %v4962_v28 = vadd.f32 %v4961_v56, %v13684_v49  ;;  %v17599_v56 = vld [vmem:[#allocation16_spill] sm:$0xff] }
 0x5aa   :  { %v13537_v14 = vpop.f32.mrb[83].mxu0  ;;  %v13710_v29 = vadd.f32 %v17599_v56, %v13519_v62 }
 0x5ab   :  { %v4963_v3 = vadd.f32 %v4962_v28, %v13690_v24  ;;  %v17601_v28 = vld [vmem:[#allocation19_spill] sm:$0xff] }
 0x5ac   :  { %17600 = vst [vmem:[#allocation15_spill] sm:$0xff] %v13710_v29  ;;  %v13714_v11 = vadd.f32 %v13519_v62, %v17601_v28  ;;  %v13730_v28 = vadd.f32 %v13327_v7, %v13519_v62 }
 0x5ad   :  { %v4964_v40 = vadd.f32 %v4963_v3, %v13694_v46  ;;  %v13720_v46 = vadd.f32 %v17603_v54, %v13519_v62 }
 0x5ae   :  { %17602 = vst [vmem:[#allocation14_spill] sm:$0xff] %v13714_v11  ;;  %17606 = vst [vmem:[#allocation19_spill] sm:$0xff] %v13730_v28 }
 0x5af   :  { %v4965_v33 = vadd.f32 %v4964_v40, %v13700_v36  ;;  %17604 = vst [vmem:[#allocation17_spill] sm:$0xff] %v13720_v46  ;;  %v13724_v40 = vadd.f32 %v13519_v62, %v13330_v12 }
 0x5b1   :  { %v4966_v51 = vadd.f32 %v4965_v33, %v13704_v18  ;;  %17605 = vst [vmem:[#allocation16_spill] sm:$0xff] %v13724_v40 }
 0x5b3   :  { %v4967_v3 = vadd.f32 %v4966_v51, %v13710_v29  ;;  %v13734_v51 = vadd.f32 %v13519_v62, %v13387_v58 }
 0x5b5   :  { %v4968_v41 = vadd.f32 %v4967_v3, %v13714_v11  ;;  %17607 = vst [vmem:[#allocation18_spill] sm:$0xff] %v13734_v51  ;;  %v17608_v11 = vld [vmem:[#allocation20_spill] sm:$0xff] }
 0x5b6   :  { %v13740_v12 = vadd.f32 %v17608_v11, %v13519_v62 }
 0x5b7   :  { %v4969_v33 = vadd.f32 %v4968_v41, %v13720_v46  ;;  %v13744_v41 = vadd.f32 %v13519_v62, %v13422_v15  ;;  %v13760_v15 = vadd.f32 %v13447_v44, %v13519_v62 }
 0x5b8   :  { %17609 = vst [vmem:[#allocation20_spill] sm:$0xff] %v13740_v12 }
 0x5b9   :  { %v4970_v56 = vadd.f32 %v4969_v33, %v13724_v40  ;;  %v17610_v40 = vld [vmem:[#allocation21_spill] sm:$0xff] }
 0x5ba   :  { %v13750_v58 = vadd.f32 %v17610_v40, %v13519_v62 }
 0x5bb   :  { %v4971_v3 = vadd.f32 %v4970_v56, %v13730_v28  ;;  %v13754_v56 = vadd.f32 %v13519_v62, %v13450_v30  ;;  %v13770_v30 = vadd.f32 %v13477_v57, %v13519_v62 }
 0x5bd   :  { %v4972_v54 = vadd.f32 %v4971_v3, %v13734_v51 }
 0x5bf   :  { %v4973_v33 = vadd.f32 %v4972_v54, %v13740_v12  ;;  %v13764_v54 = vadd.f32 %v13519_v62, %v13481_v2  ;;  %v13780_v2 = vadd.f32 %v13512_v38, %v13519_v62 }
 0x5c1   :  { %v4974_v7 = vadd.f32 %v4973_v33, %v13744_v41 }
 0x5c3   :  { %v4975_v3 = vadd.f32 %v4974_v7, %v13750_v58  ;;  %v13774_v7 = vadd.f32 %v13519_v62, %v13514_v43  ;;  %v13790_v43 = vadd.f32 %v13535_v23, %v13519_v62 }
 0x5c5   :  { %v4976_v11 = vadd.f32 %v4975_v3, %v13754_v56  ;;  %17611 = vst [vmem:[#allocation21_spill] sm:$0xff] %v13774_v7 }
 0x5c7   :  { %v4977_v40 = vadd.f32 %v4976_v11, %v13760_v15  ;;  %v13784_v11 = vadd.f32 %v13519_v62, %v13537_v14 }
 0x5c9   :  { %v13590_v0 = vpop.f32.mrb[84].mxu0  ;;  %v4978_v33 = vadd.f32 %v4977_v40, %v13764_v54  ;;  %17612 = vst [vmem:[#allocation27_spill] sm:$0xff] %v13784_v11 }
 0x5ca   :  { %v13592_v17 = vpop.f32.mrb[85].mxu0  ;;  %v13800_v14 = vadd.f32 %v13590_v0, %v13519_v62 }
 0x5cb   :  { %v4979_v3 = vadd.f32 %v4978_v33, %v13770_v30  ;;  %v13794_v33 = vadd.f32 %v13519_v62, %v13592_v17 }
 0x5cd   :  { %v4980_v44 = vadd.f32 %v4979_v3, %v13774_v7  ;;  %17613 = vst [vmem:[#allocation28_spill] sm:$0xff] %v13794_v33 }
 0x5cf   :  { %v4981_v40 = vadd.f32 %v4980_v44, %v13780_v2 }
 0x5d1   :  { %v4982_v57 = vadd.f32 %v4981_v40, %v13784_v11 }
 0x5d3   :  { %v4983_v3 = vadd.f32 %v4982_v57, %v13790_v43 }
 0x5d5   :  { %v4984_v38 = vadd.f32 %v4983_v3, %v13794_v33 }
 0x5d7   :  { %v4985_v23 = vadd.f32 %v4984_v38, %v13800_v14 }
 0x5e9   :  { %v13652_v21 = vpop.f32.mrb[86].mxu0 }
 0x5ea   :  { %v13654_v48 = vpop.f32.mrb[87].mxu0  ;;  %v13810_v17 = vadd.f32 %v13652_v21, %v13519_v62 }
 0x5eb   :  { %v13804_v44 = vadd.f32 %v13519_v62, %v13654_v48 }
 0x5ec   :  { %17615 = vst [vmem:[#allocation30_spill] sm:$0xff] %v13810_v17 }
 0x5ed   :  { %17614 = vst [vmem:[#allocation29_spill] sm:$0xff] %v13804_v44  ;;  %v4986_v11 = vadd.f32 %v4985_v23, %v13804_v44 }
 0x5ef   :  { %v4987_v3 = vadd.f32 %v4986_v11, %v13810_v17 }
 0x609   :  { %v9421_v55 = vpop.f32.mrb[88].mxu0 }
 0x60a   :  { %v4894_v53 = vpop.f32.mrb[89].mxu0  ;;  %v13818_v33 = vadd.f32 %v9421_v55, %v13519_v62 }
 0x60b   :  { %v13813_v57 = vadd.f32 %v13519_v62, %v4894_v53 }
 0x60c   :  { %17617 = vst [vmem:[#allocation32_spill] sm:$0xff] %v13818_v33 }
 0x60d   :  { %17616 = vst [vmem:[#allocation31_spill] sm:$0xff] %v13813_v57  ;;  %v4988_v0 = vadd.f32 %v4987_v3, %v13813_v57 }
 0x60f   :  { %v4989_v38 = vadd.f32 %v4988_v0, %v13818_v33 }
 0x629   :  { %v9424_v51 = vpop.f32.mrb[90].mxu0 }
 0x62a   :  { %v4904_v28 = vpop.f32.mrb[91].mxu0  ;;  %v13826_v21 = vadd.f32 %v9424_v51, %v13519_v62 }
 0x62b   :  { %v13821_v48 = vadd.f32 %v13519_v62, %v4904_v28 }
 0x62c   :  { %17619 = vst [vmem:[#allocation34_spill] sm:$0xff] %v13826_v21 }
 0x62d   :  { %17618 = vst [vmem:[#allocation33_spill] sm:$0xff] %v13821_v48  ;;  %v4990_v23 = vadd.f32 %v4989_v38, %v13821_v48 }
 0x62f   :  { %v4991_v3 = vadd.f32 %v4990_v23, %v13826_v21 }
 0x642   :  { %v9427_v7 = vpop.f32.mrb[92].mxu0 }
 0x643   :  { %v4914_v40 = vpop.f32.mrb[93].mxu0  ;;  %v13834_v57 = vadd.f32 %v9427_v7, %v13519_v62 }
 0x644   :  { %v13829_v53 = vadd.f32 %v13519_v62, %v4914_v40 }
 0x646   :  { %17620 = vst [vmem:[#allocation35_spill] sm:$0xff] %v13829_v53  ;;  %v4992_v55 = vadd.f32 %v4991_v3, %v13829_v53 }
 0x648   :  { %v4993_v0 = vadd.f32 %v4992_v55, %v13834_v57 }
 0x655   :  { %v9430_v44 = vpop.f32.mrb[94].mxu0 }
 0x656   :  { %v4924_v11 = vpop.f32.mrb[95].mxu0  ;;  %v13842_v38 = vadd.f32 %v9430_v44, %v13519_v62 }
 0x657   :  { %v13837_v28 = vadd.f32 %v13519_v62, %v4924_v11 }
 0x659   :  { %v4994_v51 = vadd.f32 %v4993_v0, %v13837_v28 }
 0x65b   :  { %v4995_v40 = vadd.f32 %v4994_v51, %v13842_v38 }
 0x65d   :  { %v4996_v48 = vrot.slane %v4995_v40, 4 }
 0x65f   :  { %v4997_v33 = vadd.f32 %v4996_v48, %v4995_v40 }
 0x661   :  { %v4998_v23 = vrot.slane %v4997_v33, 2 }
 0x663   :  { %v4999_v21 = vadd.f32 %v4998_v23, %v4997_v33 }
 0x665   :  { %v5000_v3 = vrot.slane %v4999_v21, 1 }
 0x667   :  { %v5001_v53 = vadd.f32 %v5000_v3, %v4999_v21 }
 0x669   :  { %v13845_v7 = vmul.f32 0.001953125, %v5001_v53 }
 0x66b   :  { %v5004_v11 = vsub.f32 %v13527_v20, %v13845_v7  ;;  %v5005_v55 = vsub.f32 %v13523_v13, %v13845_v7  ;;  %v5006_v62 = vsub.f32 %v13531_v22, %v13845_v7  ;;  %v5007_v48 = vsub.f32 %v13542_v42, %v13845_v7 }
 0x66c   :  { %v5008_v33 = vsub.f32 %v13546_v27, %v13845_v7  ;;  %v5009_v51 = vsub.f32 %v13552_v61, %v13845_v7  ;;  %v5010_v3 = vsub.f32 %v13556_v8, %v13845_v7  ;;  %v5012_v27 = vsub.f32 %v13566_v31, %v13845_v7 }
 0x66d   :  { %v5068_v44 = vmul.f32 %v5004_v11, %v5004_v11  ;;  %v5069_v0 = vmul.f32 %v5005_v55, %v5005_v55  ;;  %v5070_v21 = vmul.f32 %v5006_v62, %v5006_v62  ;;  %v5071_v40 = vmul.f32 %v5007_v48, %v5007_v48  ;;  %v6164_v48 = vld [vmem:[%s17416_s7 + $0x8] sm:$0xff] }
 0x66e   :  { %v5072_v13 = vmul.f32 %v5008_v33, %v5008_v33  ;;  %v5011_v11 = vsub.f32 %v13562_v26, %v13845_v7  ;;  %v5073_v55 = vmul.f32 %v5009_v51, %v5009_v51  ;;  %v5074_v62 = vmul.f32 %v5010_v3, %v5010_v3  ;;  %v6166_v3 = vld [vmem:[%s17416_s7 + $0x18] sm:$0xff] }
 0x66f   :  { %v5132_v53 = vadd.f32 %v5069_v0, %v5068_v44  ;;  %v6163_v0 = vld [vmem:[%s17416_s7] sm:$0xff] }
 0x670   :  { %v9608_v33 = vpack.c.bf16 %v6164_v48, %v6163_v0 }
 0x671   :  { %v5133_v23 = vadd.f32 %v5132_v53, %v5070_v21  ;;  %v5013_v21 = vsub.f32 %v13572_v16, %v13845_v7  ;;  %v5075_v53 = vmul.f32 %v5011_v11, %v5011_v11 }
 0x673   :  { %v5134_v22 = vadd.f32 %v5133_v23, %v5071_v40  ;;  %v6165_v23 = vld [vmem:[%s17416_s7 + $0x10] sm:$0xff] }
 0x674   :  { %v9611_v11 = vpack.c.bf16 %v6166_v3, %v6165_v23 }
 0x675   :  { %v5135_v42 = vadd.f32 %v5134_v22, %v5072_v13  ;;  %v17469_v13 = vmov 0.0|0.0   ;;  %v5014_v22 = vsub.f32 %v13576_v60, %v13845_v7 }
 0x676   :  { %9607 = vmatprep.subr.bf16.mxu0 %v17469_v13  ;;  %9831 = vmatprep.subr.bf16.mxu1 %v17469_v13 }
 0x677   :  { %v5136_v44 = vadd.f32 %v5135_v42, %v5073_v55  ;;  %9609 = vmatpush1.bf16.msra.mxu0 %v9608_v33  ;;  %v5076_v42 = vmul.f32 %v5012_v27, %v5012_v27  ;;  %v5015_v55 = vsub.f32 %v13582_v39, %v13845_v7  ;;  %v5016_v27 = vsub.f32 %v13586_v4, %v13845_v7  ;;  %v6167_v33 = vld [vmem:[%s17416_s7 + $0x20] sm:$0xff] }
 0x678   :  { %9610 = vmatprep.subr.bf16.mxu0 %v17469_v13  ;;  %v5078_v0 = vmul.f32 %v5014_v22, %v5014_v22  ;;  %v5018_v22 = vsub.f32 %v13600_v35, %v13845_v7 }
 0x679   :  { %v5137_v51 = vadd.f32 %v5136_v44, %v5074_v62  ;;  %v5077_v62 = vmul.f32 %v5013_v21, %v5013_v21  ;;  %v5017_v21 = vsub.f32 %v13596_v34, %v13845_v7  ;;  %v5080_v23 = vmul.f32 %v5016_v27, %v5016_v27  ;;  %v6195_v27 = vld [vmem:[%s17416_s7 + $0x100] sm:$0xff] }
 0x67b   :  { %v5138_v40 = vadd.f32 %v5137_v51, %v5075_v53  ;;  %9612 = vmatpush1.bf16.msra.mxu0 %v9611_v11  ;;  %v6168_v53 = vld [vmem:[%s17416_s7 + $0x28] sm:$0xff]  ;;  %v6169_v11 = vld [vmem:[%s17416_s7 + $0x30] sm:$0xff] }
 0x67c   :  { %9613 = vmatprep.subr.bf16.mxu0 %v17469_v13  ;;  %v9614_v51 = vpack.c.bf16 %v6168_v53, %v6167_v33  ;;  %v6196_v33 = vld [vmem:[%s17416_s7 + $0x108] sm:$0xff] }
 0x67d   :  { %v5139_v44 = vadd.f32 %v5138_v40, %v5076_v42  ;;  %v5079_v42 = vmul.f32 %v5015_v55, %v5015_v55  ;;  %v5019_v55 = vsub.f32 %v13606_v19, %v13845_v7  ;;  %v13914_v53 = vpack.c.bf16 %v6196_v33, %v6195_v27 }
 0x67e   :  { %v5022_v27 = vsub.f32 %v13620_v5, %v13845_v7 }
 0x67f   :  { %v5140_v48 = vadd.f32 %v5139_v44, %v5077_v62  ;;  %9615 = vmatpush1.bf16.msra.mxu0 %v9614_v51  ;;  %v6170_v62 = vld [vmem:[%s17416_s7 + $0x38] sm:$0xff]  ;;  %v5020_v51 = vsub.f32 %v13610_v59, %v13845_v7  ;;  %9847 = vmatpush1.bf16.msra.mxu1 %v13914_v53 }
 0x680   :  { %9616 = vmatprep.subr.bf16.mxu0 %v17469_v13  ;;  %v9617_v44 = vpack.c.bf16 %v6170_v62, %v6169_v11  ;;  %v5021_v11 = vsub.f32 %v13616_v9, %v13845_v7  ;;  %v5083_v62 = vmul.f32 %v5019_v55, %v5019_v55  ;;  %9832 = vmatprep.subr.bf16.mxu1 %v17469_v13  ;;  %v6173_v55 = vld [vmem:[%s17416_s7 + $0x50] sm:$0xff] }
 0x681   :  { %v5141_v40 = vadd.f32 %v5140_v48, %v5078_v0  ;;  %v5081_v0 = vmul.f32 %v5017_v21, %v5017_v21  ;;  %v6171_v21 = vld [vmem:[%s17416_s7 + $0x40] sm:$0xff]  ;;  %v5084_v33 = vmul.f32 %v5020_v51, %v5020_v51 }
 0x682   :  { %v6199_v51 = vld [vmem:[%s17416_s7 + $0x120] sm:$0xff] }
 0x683   :  { %v5142_v3 = vadd.f32 %v5141_v40, %v5079_v42  ;;  %9618 = vmatpush1.bf16.msra.mxu0 %v9617_v44  ;;  %v5082_v42 = vmul.f32 %v5018_v22, %v5018_v22  ;;  %v6197_v22 = vld [vmem:[%s17416_s7 + $0x110] sm:$0xff] }
 0x684   :  { %9619 = vmatprep.subr.bf16.mxu0 %v17469_v13 }
 0x685   :  { %v5143_v48 = vadd.f32 %v5142_v3, %v5080_v23  ;;  %v6172_v23 = vld [vmem:[%s17416_s7 + $0x48] sm:$0xff] }
 0x686   :  { %v9620_v3 = vpack.c.bf16 %v6172_v23, %v6171_v21  ;;  %v5023_v23 = vsub.f32 %v13626_v10, %v13845_v7 }
 0x687   :  { %v5144_v40 = vadd.f32 %v5143_v48, %v5081_v0  ;;  %v6198_v0 = vld [vmem:[%s17416_s7 + $0x118] sm:$0xff] }
 0x688   :  { %v13935_v48 = vpack.c.bf16 %v6198_v0, %v6197_v22  ;;  %9621 = vmatpush1.bf16.msra.mxu0 %v9620_v3  ;;  %v5085_v3 = vmul.f32 %v5021_v11, %v5021_v11  ;;  %v5024_v0 = vsub.f32 %v13630_v45, %v13845_v7  ;;  %v6175_v11 = vld [vmem:[%s17416_s7 + $0x60] sm:$0xff] }
 0x689   :  { %v5145_v44 = vadd.f32 %v5144_v40, %v5082_v42  ;;  %9622 = vmatprep.subr.bf16.mxu0 %v17469_v13  ;;  %v6174_v42 = vld [vmem:[%s17416_s7 + $0x58] sm:$0xff] }
 0x68a   :  { %9848 = vmatpush1.bf16.msra.mxu1 %v13935_v48  ;;  %v9623_v40 = vpack.c.bf16 %v6174_v42, %v6173_v55  ;;  %v5086_v55 = vmul.f32 %v5022_v27, %v5022_v27  ;;  %v6201_v27 = vld [vmem:[%s17416_s7 + $0x130] sm:$0xff] }
 0x68b   :  { %v5146_v21 = vadd.f32 %v5145_v44, %v5083_v62  ;;  %9833 = vmatprep.subr.bf16.mxu1 %v17469_v13  ;;  %v6200_v62 = vld [vmem:[%s17416_s7 + $0x128] sm:$0xff] }
 0x68c   :  { %v13956_v44 = vpack.c.bf16 %v6200_v62, %v6199_v51  ;;  %9624 = vmatpush1.bf16.msra.mxu0 %v9623_v40  ;;  %v5025_v40 = vsub.f32 %v13636_v63, %v13845_v7  ;;  %v5087_v51 = vmul.f32 %v5023_v23, %v5023_v23  ;;  %v6177_v23 = vld [vmem:[%s17416_s7 + $0x70] sm:$0xff] }
 0x68d   :  { %v5147_v22 = vadd.f32 %v5146_v21, %v5084_v33  ;;  %9625 = vmatprep.subr.bf16.mxu0 %v17469_v13  ;;  %v6176_v33 = vld [vmem:[%s17416_s7 + $0x68] sm:$0xff] }
 0x68e   :  { %9849 = vmatpush1.bf16.msra.mxu1 %v13956_v44  ;;  %v9626_v21 = vpack.c.bf16 %v6176_v33, %v6175_v11  ;;  %v5026_v11 = vsub.f32 %v13640_v52, %v13845_v7  ;;  %v5088_v33 = vmul.f32 %v5024_v0, %v5024_v0  ;;  %v6203_v0 = vld [vmem:[%s17416_s7 + $0x140] sm:$0xff] }
 0x68f   :  { %v5148_v42 = vadd.f32 %v5147_v22, %v5085_v3  ;;  %9834 = vmatprep.subr.bf16.mxu1 %v17469_v13  ;;  %v6202_v3 = vld [vmem:[%s17416_s7 + $0x138] sm:$0xff] }
 0x690   :  { %v13977_v22 = vpack.c.bf16 %v6202_v3, %v6201_v27  ;;  %9627 = vmatpush1.bf16.msra.mxu0 %v9626_v21  ;;  %v5027_v21 = vsub.f32 %v13646_v25, %v13845_v7  ;;  %v5089_v27 = vmul.f32 %v5025_v40, %v5025_v40  ;;  %v6180_v40 = vld [vmem:[%s17416_s7 + $0x88] sm:$0xff] }
 0x691   :  { %v5149_v62 = vadd.f32 %v5148_v42, %v5086_v55  ;;  %9628 = vmatprep.subr.bf16.mxu0 %v17469_v13  ;;  %v6178_v55 = vld [vmem:[%s17416_s7 + $0x78] sm:$0xff] }
 0x692   :  { %9850 = vmatpush1.bf16.msra.mxu1 %v13977_v22  ;;  %v9629_v42 = vpack.c.bf16 %v6178_v55, %v6177_v23  ;;  %v5028_v23 = vsub.f32 %v13650_v1, %v13845_v7  ;;  %v5090_v55 = vmul.f32 %v5026_v11, %v5026_v11  ;;  %v6205_v11 = vld [vmem:[%s17416_s7 + $0x150] sm:$0xff] }
 0x693   :  { %v5150_v63 = vadd.f32 %v5149_v62, %v5087_v51  ;;  %9835 = vmatprep.subr.bf16.mxu1 %v17469_v13  ;;  %v6204_v51 = vld [vmem:[%s17416_s7 + $0x148] sm:$0xff] }
 0x694   :  { %v13998_v62 = vpack.c.bf16 %v6204_v51, %v6203_v0  ;;  %9630 = vmatpush1.bf16.msra.mxu0 %v9629_v42  ;;  %v5029_v42 = vsub.f32 %v13660_v6, %v13845_v7  ;;  %v5091_v0 = vmul.f32 %v5027_v21, %v5027_v21  ;;  %v6182_v21 = vld [vmem:[%s17416_s7 + $0x98] sm:$0xff] }
 0x695   :  { %v5151_v3 = vadd.f32 %v5150_v63, %v5088_v33  ;;  %9631 = vmatprep.subr.bf16.mxu0 %v17469_v13  ;;  %v6179_v63 = vld [vmem:[%s17416_s7 + $0x80] sm:$0xff] }
 0x696   :  { %9851 = vmatpush1.bf16.msra.mxu1 %v13998_v62  ;;  %v9632_v33 = vpack.c.bf16 %v6180_v40, %v6179_v63  ;;  %v5030_v63 = vsub.f32 %v13664_v50, %v13845_v7  ;;  %v5092_v40 = vmul.f32 %v5028_v23, %v5028_v23  ;;  %v6207_v23 = vld [vmem:[%s17416_s7 + $0x160] sm:$0xff] }
 0x697   :  { %v5152_v25 = vadd.f32 %v5151_v3, %v5089_v27  ;;  %9836 = vmatprep.subr.bf16.mxu1 %v17469_v13  ;;  %v6206_v27 = vld [vmem:[%s17416_s7 + $0x158] sm:$0xff] }
 0x698   :  { %v14019_v3 = vpack.c.bf16 %v6206_v27, %v6205_v11  ;;  %9633 = vmatpush1.bf16.msra.mxu0 %v9632_v33  ;;  %v5031_v33 = vsub.f32 %v13670_v32, %v13845_v7  ;;  %v5093_v11 = vmul.f32 %v5029_v42, %v5029_v42  ;;  %v6184_v42 = vld [vmem:[%s17416_s7 + $0xa8] sm:$0xff] }
 0x699   :  { %v5153_v51 = vadd.f32 %v5152_v25, %v5090_v55  ;;  %9634 = vmatprep.subr.bf16.mxu0 %v17469_v13  ;;  %v6181_v25 = vld [vmem:[%s17416_s7 + $0x90] sm:$0xff] }
 0x69a   :  { %9852 = vmatpush1.bf16.msra.mxu1 %v14019_v3  ;;  %v9635_v55 = vpack.c.bf16 %v6182_v21, %v6181_v25  ;;  %v5032_v25 = vsub.f32 %v13674_v47, %v13845_v7  ;;  %v5094_v21 = vmul.f32 %v5030_v63, %v5030_v63  ;;  %v6209_v63 = vld [vmem:[%s17416_s7 + $0x170] sm:$0xff] }
 0x69b   :  { %v5154_v6 = vadd.f32 %v5153_v51, %v5091_v0  ;;  %9837 = vmatprep.subr.bf16.mxu1 %v17469_v13  ;;  %v6208_v0 = vld [vmem:[%s17416_s7 + $0x168] sm:$0xff] }
 0x69c   :  { %v14040_v51 = vpack.c.bf16 %v6208_v0, %v6207_v23  ;;  %9636 = vmatpush1.bf16.msra.mxu0 %v9635_v55  ;;  %v5033_v55 = vsub.f32 %v13680_v37, %v13845_v7  ;;  %v5095_v23 = vmul.f32 %v5031_v33, %v5031_v33  ;;  %v6186_v33 = vld [vmem:[%s17416_s7 + $0xb8] sm:$0xff] }
 0x69d   :  { %v5155_v27 = vadd.f32 %v5154_v6, %v5092_v40  ;;  %9637 = vmatprep.subr.bf16.mxu0 %v17469_v13  ;;  %v6183_v6 = vld [vmem:[%s17416_s7 + $0xa0] sm:$0xff] }
 0x69e   :  { %9853 = vmatpush1.bf16.msra.mxu1 %v14040_v51  ;;  %v9638_v40 = vpack.c.bf16 %v6184_v42, %v6183_v6  ;;  %v5034_v6 = vsub.f32 %v13684_v49, %v13845_v7  ;;  %v5096_v42 = vmul.f32 %v5032_v25, %v5032_v25  ;;  %v6211_v25 = vld [vmem:[%s17416_s7 + $0x180] sm:$0xff] }
 0x69f   :  { %v5156_v32 = vadd.f32 %v5155_v27, %v5093_v11  ;;  %9838 = vmatprep.subr.bf16.mxu1 %v17469_v13  ;;  %v6210_v11 = vld [vmem:[%s17416_s7 + $0x178] sm:$0xff] }
 0x6a0   :  { %v14061_v27 = vpack.c.bf16 %v6210_v11, %v6209_v63  ;;  %9639 = vmatpush1.bf16.msra.mxu0 %v9638_v40  ;;  %v5035_v40 = vsub.f32 %v13690_v24, %v13845_v7  ;;  %v5097_v63 = vmul.f32 %v5033_v55, %v5033_v55  ;;  %v5098_v49 = vmul.f32 %v5034_v6, %v5034_v6  ;;  %v6188_v55 = vld [vmem:[%s17416_s7 + $0xc8] sm:$0xff]  ;;  %v6213_v6 = vld [vmem:[%s17416_s7 + $0x190] sm:$0xff] }
 0x6a1   :  { %v5157_v0 = vadd.f32 %v5156_v32, %v5094_v21  ;;  %9640 = vmatprep.subr.bf16.mxu0 %v17469_v13  ;;  %v6185_v32 = vld [vmem:[%s17416_s7 + $0xb0] sm:$0xff] }
 0x6a2   :  { %9854 = vmatpush1.bf16.msra.mxu1 %v14061_v27  ;;  %v9641_v21 = vpack.c.bf16 %v6186_v33, %v6185_v32  ;;  %v17621_v32 = vld [vmem:[#allocation10_spill] sm:$0xff] }
 0x6a3   :  { %v5158_v37 = vadd.f32 %v5157_v0, %v5095_v23  ;;  %9839 = vmatprep.subr.bf16.mxu1 %v17469_v13  ;;  %v6212_v23 = vld [vmem:[%s17416_s7 + $0x188] sm:$0xff]  ;;  %v5036_v33 = vsub.f32 %v17621_v32, %v13845_v7 }
 0x6a4   :  { %v14082_v0 = vpack.c.bf16 %v6212_v23, %v6211_v25  ;;  %9642 = vmatpush1.bf16.msra.mxu0 %v9641_v21  ;;  %v5037_v21 = vsub.f32 %v13700_v36, %v13845_v7  ;;  %v5099_v25 = vmul.f32 %v5035_v40, %v5035_v40 }
 0x6a5   :  { %v5159_v11 = vadd.f32 %v5158_v37, %v5096_v42  ;;  %9643 = vmatprep.subr.bf16.mxu0 %v17469_v13  ;;  %v6187_v37 = vld [vmem:[%s17416_s7 + $0xc0] sm:$0xff] }
 0x6a6   :  { %9855 = vmatpush1.bf16.msra.mxu1 %v14082_v0  ;;  %v9644_v42 = vpack.c.bf16 %v6188_v55, %v6187_v37  ;;  %v5038_v37 = vsub.f32 %v13704_v18, %v13845_v7  ;;  %v5100_v55 = vmul.f32 %v5036_v33, %v5036_v33  ;;  %v6215_v33 = vld [vmem:[%s17416_s7 + $0x1a0] sm:$0xff] }
 0x6a7   :  { %v5160_v24 = vadd.f32 %v5159_v11, %v5097_v63  ;;  %9840 = vmatprep.subr.bf16.mxu1 %v17469_v13  ;;  %v6214_v63 = vld [vmem:[%s17416_s7 + $0x198] sm:$0xff] }
 0x6a8   :  { %v14103_v11 = vpack.c.bf16 %v6214_v63, %v6213_v6  ;;  %9645 = vmatpush1.bf16.msra.mxu0 %v9644_v42  ;;  %v5039_v42 = vsub.f32 %v13710_v29, %v13845_v7  ;;  %v5101_v6 = vmul.f32 %v5037_v21, %v5037_v21  ;;  %v5102_v18 = vmul.f32 %v5038_v37, %v5038_v37  ;;  %v6192_v21 = vld [vmem:[%s17416_s7 + $0xe8] sm:$0xff]  ;;  %v6217_v37 = vld [vmem:[%s17416_s7 + $0x1b0] sm:$0xff] }
 0x6a9   :  { %v5161_v23 = vadd.f32 %v5160_v24, %v5098_v49  ;;  %9646 = vmatprep.subr.bf16.mxu0 %v17469_v13  ;;  %v6189_v49 = vld [vmem:[%s17416_s7 + $0xd0] sm:$0xff]  ;;  %v6190_v24 = vld [vmem:[%s17416_s7 + $0xd8] sm:$0xff] }
 0x6aa   :  { %9856 = vmatpush1.bf16.msra.mxu1 %v14103_v11  ;;  %v9647_v40 = vpack.c.bf16 %v6190_v24, %v6189_v49  ;;  %v17622_v49 = vld [vmem:[#allocation14_spill] sm:$0xff] }
 0x6ab   :  { %v5162_v36 = vadd.f32 %v5161_v23, %v5099_v25  ;;  %9841 = vmatprep.subr.bf16.mxu1 %v17469_v13  ;;  %v6216_v25 = vld [vmem:[%s17416_s7 + $0x1a8] sm:$0xff]  ;;  %v5040_v24 = vsub.f32 %v17622_v49, %v13845_v7 }
 0x6ac   :  { %v14124_v23 = vpack.c.bf16 %v6216_v25, %v6215_v33  ;;  %9648 = vmatpush1.bf16.msra.mxu0 %v9647_v40  ;;  %v5041_v40 = vsub.f32 %v13720_v46, %v13845_v7  ;;  %v5103_v33 = vmul.f32 %v5039_v42, %v5039_v42 }
 0x6ad   :  { %v5163_v63 = vadd.f32 %v5162_v36, %v5100_v55  ;;  %9649 = vmatprep.subr.bf16.mxu0 %v17469_v13  ;;  %v6191_v36 = vld [vmem:[%s17416_s7 + $0xe0] sm:$0xff]  ;;  %v5104_v49 = vmul.f32 %v5040_v24, %v5040_v24 }
 0x6ae   :  { %9857 = vmatpush1.bf16.msra.mxu1 %v14124_v23  ;;  %v9650_v55 = vpack.c.bf16 %v6192_v21, %v6191_v36  ;;  %v17623_v36 = vld [vmem:[#allocation16_spill] sm:$0xff] }
 0x6af   :  { %v5164_v29 = vadd.f32 %v5163_v63, %v5101_v6  ;;  %9842 = vmatprep.subr.bf16.mxu1 %v17469_v13  ;;  %v6218_v6 = vld [vmem:[%s17416_s7 + $0x1b8] sm:$0xff]  ;;  %v5042_v21 = vsub.f32 %v17623_v36, %v13845_v7  ;;  %v6219_v24 = vld [vmem:[%s17416_s7 + $0x1c0] sm:$0xff] }
 0x6b0   :  { %v14145_v63 = vpack.c.bf16 %v6218_v6, %v6217_v37  ;;  %9651 = vmatpush1.bf16.msra.mxu0 %v9650_v55  ;;  %v17624_v55 = vld [vmem:[#allocation19_spill] sm:$0xff]  ;;  %v5105_v6 = vmul.f32 %v5041_v40, %v5041_v40  ;;  %v5650_v40 = vld [vmem:[#allocation3 + $0x1] sm:$0xff] }
 0x6b1   :  { %v5165_v25 = vadd.f32 %v5164_v29, %v5102_v18  ;;  %9652 = vmatprep.subr.bf16.mxu0 %v17469_v13  ;;  %v6193_v18 = vld [vmem:[%s17416_s7 + $0xf0] sm:$0xff]  ;;  %v6194_v29 = vld [vmem:[%s17416_s7 + $0xf8] sm:$0xff]  ;;  %v5043_v37 = vsub.f32 %v17624_v55, %v13845_v7  ;;  %v5106_v32 = vmul.f32 %v5042_v21, %v5042_v21  ;;  %6378 = vmatprep.mubr.f32.mxu0 %v5650_v40  ;;  %v10262_v21 = vld [vmem:[#allocation3] sm:$0xff] }
 0x6b2   :  { %9858 = vmatpush1.bf16.msra.mxu1 %v14145_v63  ;;  %v9653_v42 = vpack.c.bf16 %v6194_v29, %v6193_v18  ;;  %v17625_v18 = vld [vmem:[#allocation18_spill] sm:$0xff] }
 0x6b3   :  { %v5166_v46 = vadd.f32 %v5165_v25, %v5103_v33  ;;  %9843 = vmatprep.subr.bf16.mxu1 %v17469_v13  ;;  %v6220_v33 = vld [vmem:[%s17416_s7 + $0x1c8] sm:$0xff]  ;;  %v5044_v29 = vsub.f32 %v17625_v18, %v13845_v7 }
 0x6b4   :  { %v14166_v25 = vpack.c.bf16 %v6220_v33, %v6219_v24  ;;  %9654 = vmatpush1.bf16.msra.mxu0 %v9653_v42  ;;  %v6221_v42 = vld [vmem:[%s17416_s7 + $0x1d0] sm:$0xff]  ;;  %v5047_v33 = vsub.f32 %v13750_v58, %v13845_v7 }
 0x6b5   :  { %v5167_v36 = vadd.f32 %v5166_v46, %v5104_v49  ;;  %9655 = vmatprep.subr.bf16.mxu0 %v17469_v13  ;;  %v5045_v46 = vsub.f32 %v13740_v12, %v13845_v7  ;;  %v5107_v49 = vmul.f32 %v5043_v37, %v5043_v37  ;;  %v5046_v37 = vsub.f32 %v13744_v41, %v13845_v7  ;;  %v5651_v24 = vld [vmem:[#allocation3 + $0x9] sm:$0xff] }
 0x6b6   :  { %9859 = vmatpush1.bf16.msra.mxu1 %v14166_v25 }
 0x6b7   :  { %v5168_v55 = vadd.f32 %v5167_v36, %v5105_v6  ;;  %9844 = vmatprep.subr.bf16.mxu1 %v17469_v13  ;;  %v6222_v36 = vld [vmem:[%s17416_s7 + $0x1d8] sm:$0xff]  ;;  %6379 = vmatmul.mubr.f32.vlgmr.msra.gmra.mrb[96].mxu0 %v10262_v21  ;;  %v5109_v40 = vmul.f32 %v5045_v46, %v5045_v46 }
 0x6b8   :  { %v14181_v6 = vpack.c.bf16 %v6222_v36, %v6221_v42  ;;  %9657 = vmatpush1.bf16.msra.mxu0 %v13914_v53  ;;  %6383 = vmatprep.mubr.f32.mxu0 %v5651_v24  ;;  %v6223_v53 = vld [vmem:[%s17416_s7 + $0x1e0] sm:$0xff]  ;;  %v6226_v46 = vld [vmem:[%s17416_s7 + $0x1f8] sm:$0xff]  ;;  %v5048_v42 = vsub.f32 %v13754_v56, %v13845_v7  ;;  %v5110_v36 = vmul.f32 %v5046_v37, %v5046_v37 }
 0x6b9   :  { %v5169_v47 = vadd.f32 %v5168_v55, %v5106_v32  ;;  %v5108_v32 = vmul.f32 %v5044_v29, %v5044_v29  ;;  %9658 = vmatprep.subr.bf16.mxu0 %v17469_v13  ;;  %v5111_v24 = vmul.f32 %v5047_v33, %v5047_v33 }
 0x6ba   :  { %9860 = vmatpush1.bf16.msra.mxu1 %v14181_v6  ;;  %v5112_v37 = vmul.f32 %v5048_v42, %v5048_v42  ;;  %v5053_v42 = vsub.f32 %v13780_v2, %v13845_v7 }
 0x6bb   :  { %v5170_v55 = vadd.f32 %v5169_v47, %v5107_v49  ;;  %9845 = vmatprep.subr.bf16.mxu1 %v17469_v13  ;;  %v6224_v47 = vld [vmem:[%s17416_s7 + $0x1e8] sm:$0xff]  ;;  %6384 = vmatmul.mubr.f32.gmra.mrb[98].mxu0 %v10262_v21  ;;  %v6225_v49 = vld [vmem:[%s17416_s7 + $0x1f0] sm:$0xff] }
 0x6bc   :  { %v14197_v29 = vpack.c.bf16 %v6224_v47, %v6223_v53  ;;  %9660 = vmatpush1.bf16.msra.mxu0 %v13935_v48  ;;  %v14210_v21 = vpack.c.bf16 %v6226_v46, %v6225_v49  ;;  %v5050_v48 = vsub.f32 %v13764_v54, %v13845_v7 }
 0x6bd   :  { %v5171_v12 = vadd.f32 %v5170_v55, %v5108_v32  ;;  %9661 = vmatprep.subr.bf16.mxu0 %v17469_v13  ;;  %v5049_v55 = vsub.f32 %v13760_v15, %v13845_v7 }
 0x6be   :  { %9861 = vmatpush1.bf16.msra.mxu1 %v14197_v29  ;;  %v5114_v46 = vmul.f32 %v5050_v48, %v5050_v48  ;;  %v5117_v48 = vmul.f32 %v5053_v42, %v5053_v42 }
 0x6bf   :  { %v5172_v32 = vadd.f32 %v5171_v12, %v5109_v40  ;;  %9846 = vmatprep.subr.bf16.mxu1 %v17469_v13  ;;  %v5051_v40 = vsub.f32 %v13770_v30, %v13845_v7  ;;  %v5113_v47 = vmul.f32 %v5049_v55, %v5049_v55  ;;  %v17627_v55 = vld [vmem:[#allocation27_spill] sm:$0xff] }
 0x6c0   :  { %9663 = vmatpush1.bf16.msra.mxu0 %v13956_v44  ;;  %v17626_v44 = vld [vmem:[#allocation21_spill] sm:$0xff] }
 0x6c1   :  { %v5173_v53 = vadd.f32 %v5172_v32, %v5110_v36  ;;  %9664 = vmatprep.subr.bf16.mxu0 %v17469_v13  ;;  %v5052_v33 = vsub.f32 %v17626_v44, %v13845_v7  ;;  %v5115_v32 = vmul.f32 %v5051_v40, %v5051_v40 }
 0x6c2   :  { %9862 = vmatpush1.bf16.msra.mxu1 %v14210_v21 }
 0x6c3   :  { %v5174_v12 = vadd.f32 %v5173_v53, %v5111_v24  ;;  %9703 = vmatprep.subr.bf16.mxu1 %v17469_v13  ;;  %v5054_v53 = vsub.f32 %v17627_v55, %v13845_v7 }
 0x6c4   :  { %9666 = vmatpush1.bf16.msra.mxu0 %v13977_v22  ;;  %v5055_v22 = vsub.f32 %v13790_v43, %v13845_v7 }
 0x6c5   :  { %v5175_v49 = vadd.f32 %v5174_v12, %v5112_v37  ;;  %9667 = vmatprep.subr.bf16.mxu0 %v17469_v13  ;;  %v5116_v37 = vmul.f32 %v5052_v33, %v5052_v33 }
 0x6c6   :  { %v5119_v33 = vmul.f32 %v5055_v22, %v5055_v22 }
 0x6c7   :  { %v5176_v36 = vadd.f32 %v5175_v49, %v5113_v47  ;;  %v17628_v49 = vld [vmem:[#allocation28_spill] sm:$0xff] }
 0x6c8   :  { %9669 = vmatpush1.bf16.msra.mxu0 %v13998_v62  ;;  %v5056_v40 = vsub.f32 %v17628_v49, %v13845_v7  ;;  %v5057_v62 = vsub.f32 %v13800_v14, %v13845_v7 }
 0x6c9   :  { %v5177_v24 = vadd.f32 %v5176_v36, %v5114_v46  ;;  %9670 = vmatprep.subr.bf16.mxu0 %v17469_v13  ;;  %v5118_v46 = vmul.f32 %v5054_v53, %v5054_v53 }
 0x6ca   :  { %v5121_v53 = vmul.f32 %v5057_v62, %v5057_v62 }
 0x6cb   :  { %v5178_v12 = vadd.f32 %v5177_v24, %v5115_v32  ;;  %v17629_v24 = vld [vmem:[#allocation29_spill] sm:$0xff] }
 0x6cc   :  { %9672 = vmatpush1.bf16.msra.mxu0 %v14019_v3  ;;  %v5058_v42 = vsub.f32 %v17629_v24, %v13845_v7  ;;  %v5059_v3 = vsub.f32 %v13810_v17, %v13845_v7  ;;  %v17632_v17 = vld [vmem:[#allocation33_spill] sm:$0xff] }
 0x6cd   :  { %v5179_v47 = vadd.f32 %v5178_v12, %v5116_v37  ;;  %9673 = vmatprep.subr.bf16.mxu0 %v17469_v13  ;;  %v5120_v37 = vmul.f32 %v5056_v40, %v5056_v40  ;;  %v5062_v62 = vsub.f32 %v17632_v17, %v13845_v7 }
 0x6cf   :  { %v5180_v36 = vadd.f32 %v5179_v47, %v5117_v48  ;;  %v17630_v47 = vld [vmem:[#allocation31_spill] sm:$0xff] }
 0x6d0   :  { %9675 = vmatpush1.bf16.msra.mxu0 %v14040_v51  ;;  %v5060_v22 = vsub.f32 %v17630_v47, %v13845_v7  ;;  %v17631_v51 = vld [vmem:[#allocation32_spill] sm:$0xff] }
 0x6d1   :  { %v5181_v32 = vadd.f32 %v5180_v36, %v5118_v46  ;;  %9676 = vmatprep.subr.bf16.mxu0 %v17469_v13  ;;  %v5122_v46 = vmul.f32 %v5058_v42, %v5058_v42  ;;  %v5061_v40 = vsub.f32 %v17631_v51, %v13845_v7  ;;  %v17634_v51 = vld [vmem:[#allocation35_spill] sm:$0xff] }
 0x6d3   :  { %v5182_v12 = vadd.f32 %v5181_v32, %v5119_v33  ;;  %v5123_v33 = vmul.f32 %v5059_v3, %v5059_v3  ;;  %v5064_v3 = vsub.f32 %v17634_v51, %v13845_v7 }
 0x6d4   :  { %9678 = vmatpush1.bf16.msra.mxu0 %v14061_v27  ;;  %v17633_v27 = vld [vmem:[#allocation34_spill] sm:$0xff] }
 0x6d5   :  { %v5183_v48 = vadd.f32 %v5182_v12, %v5120_v37  ;;  %9679 = vmatprep.subr.bf16.mxu0 %v17469_v13  ;;  %v5124_v37 = vmul.f32 %v5060_v22, %v5060_v22  ;;  %v5063_v42 = vsub.f32 %v17633_v27, %v13845_v7 }
 0x6d7   :  { %v5184_v36 = vadd.f32 %v5183_v48, %v5121_v53  ;;  %v5125_v53 = vmul.f32 %v5061_v40, %v5061_v40  ;;  %v5127_v22 = vmul.f32 %v5063_v42, %v5063_v42  ;;  %v5066_v40 = vsub.f32 %v13837_v28, %v13845_v7 }
 0x6d8   :  { %9681 = vmatpush1.bf16.msra.mxu0 %v14082_v0  ;;  %v5065_v0 = vsub.f32 %v13834_v57, %v13845_v7 }
 0x6d9   :  { %v5185_v32 = vadd.f32 %v5184_v36, %v5122_v46  ;;  %9682 = vmatprep.subr.bf16.mxu0 %v17469_v13  ;;  %v5126_v46 = vmul.f32 %v5062_v62, %v5062_v62 }
 0x6da   :  { %v5129_v62 = vmul.f32 %v5065_v0, %v5065_v0 }
 0x6db   :  { %v5186_v12 = vadd.f32 %v5185_v32, %v5123_v33  ;;  %v5128_v32 = vmul.f32 %v5064_v3, %v5064_v3 }
 0x6dc   :  { %9684 = vmatpush1.bf16.msra.mxu0 %v14103_v11  ;;  %v5067_v11 = vsub.f32 %v13842_v38, %v13845_v7 }
 0x6dd   :  { %v5187_v48 = vadd.f32 %v5186_v12, %v5124_v37  ;;  %9685 = vmatprep.subr.bf16.mxu0 %v17469_v13 }
 0x6de   :  { %v5131_v42 = vmul.f32 %v5067_v11, %v5067_v11 }
 0x6df   :  { %v5188_v36 = vadd.f32 %v5187_v48, %v5125_v53  ;;  %v5130_v53 = vmul.f32 %v5066_v40, %v5066_v40 }
 0x6e0   :  { %9687 = vmatpush1.bf16.msra.mxu0 %v14124_v23 }
 0x6e1   :  { %v5189_v33 = vadd.f32 %v5188_v36, %v5126_v46  ;;  %9688 = vmatprep.subr.bf16.mxu0 %v17469_v13 }
 0x6e3   :  { %v5190_v37 = vadd.f32 %v5189_v33, %v5127_v22 }
 0x6e4   :  { %9690 = vmatpush1.bf16.msra.mxu0 %v14145_v63 }
 0x6e5   :  { %v5191_v12 = vadd.f32 %v5190_v37, %v5128_v32  ;;  %9691 = vmatprep.subr.bf16.mxu0 %v17469_v13  ;;  %v5210_v32 = vlaneseq }
 0x6e7   :  { %v5192_v48 = vadd.f32 %v5191_v12, %v5129_v62  ;;  %v5211_v37 = vshrl.u32 %v5210_v32, 7  ;;  %v5206_v12 = vld [vmem:[%s17418_s6] sm:$0x1] }
 0x6e8   :  { %9693 = vmatpush1.bf16.msra.mxu0 %v14166_v25 }
 0x6e9   :  { %v5193_v23 = vadd.f32 %v5192_v48, %v5130_v53  ;;  %9694 = vmatprep.subr.bf16.mxu0 %v17469_v13  ;;  %v14283_v11 = vsub.s32 0, %v5211_v37 }
 0x6eb   :  { %v5194_v46 = vadd.f32 %v5193_v23, %v5131_v42  ;;  %17635 = vst [vmem:[#allocation18_spill] sm:$0xff] %v14283_v11 }
 0x6ec   :  { %9696 = vmatpush1.bf16.msra.mxu0 %v14181_v6  ;;  %v5202_v6 = vld [vmem:[%s17417_s5] sm:$0x1] }
 0x6ed   :  { %v5195_v3 = vrot.slane %v5194_v46, 4  ;;  %9697 = vmatprep.subr.bf16.mxu0 %v17469_v13 }
 0x6ef   :  { %v5196_v36 = vadd.f32 %v5195_v3, %v5194_v46  ;;  %v17636_v46 = vld [vmem:[#allocation22_spill] sm:$0xff] }
 0x6f0   :  { %9699 = vmatpush1.bf16.msra.mxu0 %v14197_v29 }
 0x6f1   :  { %v5197_v0 = vrot.slane %v5196_v36, 2  ;;  %9700 = vmatprep.subr.bf16.mxu0 %v17469_v13  ;;  %v17654_v13 = vld [vmem:[#allocation15_spill] sm:$0xff] }
 0x6f3   :  { %v5198_v63 = vadd.f32 %v5197_v0, %v5196_v36  ;;  %v17637_v36 = vld [vmem:[#allocation23_spill] sm:$0xff] }
 0x6f4   :  { %9702 = vmatpush1.bf16.msra.mxu0 %v14210_v21 }
 0x6f5   :  { %v5199_v22 = vrot.slane %v5198_v63, 1 }
 0x6f7   :  { %v5200_v33 = vadd.f32 %v5199_v22, %v5198_v63  ;;  %v17639_v22 = vld [vmem:[#allocation25_spill] sm:$0xff] }
 0x6f9   :  { %v5201_v25 = vmul.f32 0.001953125, %v5200_v33 }
 0x6fb   :  { %v5203_v40 = vadd.f32 1e-05, %v5201_v25 }
 0x6fd   :  { %10258 = vrsqrt.f32 %v5203_v40 }
 0x707   :  { %v10259_v62 = vpop.eup %10258 }
 0x708   :  { %v5205_v29 = vmul.f32 %v10259_v62, %v5202_v6 }
 0x70a   :  { %v5207_v21 = vmul.f32 %v5205_v29, %v13845_v7  ;;  %v14290_v53 = vrot.slane %v5205_v29, %v14283_v11  ;;  %v17638_v7 = vld [vmem:[#allocation24_spill] sm:$0xff]  ;;  %v17640_v29 = vld [vmem:[#allocation26_spill] sm:$0xff] }
 0x70c   :  { %v5208_v48 = vsub.f32 %v5206_v12, %v5207_v21  ;;  %v5277_v42 = vmul.f32 %v14290_v53, %v13837_v28  ;;  %v14296_v23 = vmul.f32 %v14290_v53, %v13527_v20  ;;  %v14300_v3 = vmul.f32 %v14290_v53, %v17636_v46  ;;  %v17641_v12 = vld [vmem:[#allocation5_spill] sm:$0xff]  ;;  %v17642_v21 = vld [vmem:[#allocation4_spill] sm:$0xff]  ;;  %v17644_v46 = vld [vmem:[#allocation6_spill] sm:$0xff] }
 0x70d   :  { %v14304_v0 = vmul.f32 %v14290_v53, %v17637_v36  ;;  %v14308_v63 = vmul.f32 %v14290_v53, %v17638_v7  ;;  %v14312_v33 = vmul.f32 %v14290_v53, %v17639_v22  ;;  %v14316_v20 = vmul.f32 %v14290_v53, %v13552_v61  ;;  %v17645_v7 = vld [vmem:[#allocation9_spill] sm:$0xff]  ;;  %v17646_v22 = vld [vmem:[#allocation8_spill] sm:$0xff] }
 0x70e   :  { %v14319_v28 = vrot.slane %v5208_v48, %v14283_v11  ;;  %v14323_v25 = vmul.f32 %v14290_v53, %v13556_v8  ;;  %v14327_v40 = vmul.f32 %v14290_v53, %v13562_v26  ;;  %v14331_v32 = vmul.f32 %v14290_v53, %v13566_v31  ;;  %v17656_v11 = vld [vmem:[#allocation14_spill] sm:$0xff] }
 0x70f   :  { %v14335_v37 = vmul.f32 %v14290_v53, %v13572_v16  ;;  %v14339_v61 = vmul.f32 %v14290_v53, %v13576_v60  ;;  %v14343_v8 = vmul.f32 %v14290_v53, %v13582_v39  ;;  %v14347_v26 = vmul.f32 %v14290_v53, %v13586_v4 }
 0x710   :  { %v5347_v6 = vadd.f32 %v14319_v28, %v5277_v42  ;;  %v14352_v31 = vmul.f32 %v14290_v53, %v13596_v34  ;;  %v14356_v16 = vmul.f32 %v14290_v53, %v13600_v35  ;;  %v14360_v60 = vmul.f32 %v14290_v53, %v13606_v19  ;;  %v17643_v42 = vld [vmem:[#allocation7_spill] sm:$0xff] }
 0x711   :  { %v14364_v39 = vmul.f32 %v14290_v53, %v13610_v59  ;;  %v14368_v4 = vmul.f32 %v14290_v53, %v13616_v9  ;;  %v14372_v34 = vmul.f32 %v14290_v53, %v13620_v5  ;;  %v14376_v35 = vmul.f32 %v14290_v53, %v13626_v10 }
 0x712   :  { %v5411_v62 = vmax.f32 %v5347_v6, 0.0  ;;  %v14380_v19 = vmul.f32 %v14290_v53, %v13630_v45  ;;  %v14384_v59 = vmul.f32 %v14290_v53, %v17640_v29  ;;  %v14388_v9 = vmul.f32 %v14290_v53, %v13640_v52  ;;  %v17647_v29 = vld [vmem:[#allocation11_spill] sm:$0xff] }
 0x713   :  { %v14392_v5 = vmul.f32 %v14290_v53, %v17641_v12  ;;  %v14396_v10 = vmul.f32 %v14290_v53, %v13650_v1  ;;  %v14400_v45 = vmul.f32 %v14290_v53, %v17642_v21  ;;  %v14404_v48 = vmul.f32 %v14290_v53, %v13664_v50  ;;  %v17651_v21 = vld [vmem:[#allocation13_spill] sm:$0xff] }
 0x714   :  { %5584 = vst [vmem:[#allocation3 + $0x331] sm:$0xff] %v5411_v62  ;;  %v14408_v52 = vmul.f32 %v14290_v53, %v17643_v42  ;;  %v14412_v36 = vmul.f32 %v14290_v53, %v17644_v46  ;;  %v14416_v1 = vmul.f32 %v14290_v53, %v17645_v7  ;;  %v14420_v6 = vmul.f32 %v14290_v53, %v17646_v22  ;;  %v17649_v62 = vld [vmem:[#allocation10_spill] sm:$0xff]  ;;  %v17653_v46 = vld [vmem:[#allocation12_spill] sm:$0xff] }
 0x715   :  { %v14424_v50 = vmul.f32 %v14290_v53, %v17647_v29  ;;  %v14428_v12 = vmul.f32 %v14290_v53, %v17649_v62  ;;  %v14432_v42 = vmul.f32 %v14290_v53, %v17651_v21  ;;  %v14436_v7 = vmul.f32 %v14290_v53, %v17653_v46 }
 0x716   :  { %v14440_v22 = vmul.f32 %v14290_v53, %v17654_v13  ;;  %v14444_v29 = vmul.f32 %v14290_v53, %v17656_v11  ;;  %v14460_v13 = vmul.f32 %v14290_v53, %v17625_v18  ;;  %v14480_v18 = vmul.f32 %v14290_v53, %v13760_v15 }
 0x717   :  { %17648 = vst [vmem:[#allocation21_spill] sm:$0xff] %v14424_v50  ;;  %17650 = vst [vmem:[#allocation27_spill] sm:$0xff] %v14428_v12  ;;  %v17657_v50 = vld [vmem:[#allocation17_spill] sm:$0xff]  ;;  %v17658_v12 = vld [vmem:[#allocation16_spill] sm:$0xff]  ;;  %v14500_v15 = vmul.f32 %v14290_v53, %v17627_v55 }
 0x718   :  { %17652 = vst [vmem:[#allocation28_spill] sm:$0xff] %v14432_v42  ;;  %17655 = vst [vmem:[#allocation29_spill] sm:$0xff] %v14440_v22  ;;  %v14448_v62 = vmul.f32 %v14290_v53, %v17657_v50  ;;  %v14452_v21 = vmul.f32 %v14290_v53, %v17658_v12  ;;  %v17659_v42 = vld [vmem:[#allocation19_spill] sm:$0xff]  ;;  %v17660_v22 = vld [vmem:[#allocation20_spill] sm:$0xff]  ;;  %v14468_v50 = vmul.f32 %v14290_v53, %v13744_v41 }
 0x719   :  { %v14456_v46 = vmul.f32 %v14290_v53, %v17659_v42  ;;  %v14464_v11 = vmul.f32 %v14290_v53, %v17660_v22  ;;  %v14472_v12 = vmul.f32 %v14290_v53, %v13750_v58  ;;  %v14476_v42 = vmul.f32 %v14290_v53, %v13754_v56 }
 0x71a   :  { %v14484_v22 = vmul.f32 %v14290_v53, %v13764_v54  ;;  %v14488_v41 = vmul.f32 %v14290_v53, %v13770_v30  ;;  %v14492_v58 = vmul.f32 %v14290_v53, %v17626_v44  ;;  %v14496_v56 = vmul.f32 %v14290_v53, %v13780_v2 }
 0x71b   :  { %v14504_v54 = vmul.f32 %v14290_v53, %v13790_v43  ;;  %v14508_v30 = vmul.f32 %v14290_v53, %v17628_v49  ;;  %v14512_v44 = vmul.f32 %v14290_v53, %v13800_v14  ;;  %v14516_v2 = vmul.f32 %v14290_v53, %v17629_v24 }
 0x71c   :  { %17661 = vst [vmem:[#allocation31_spill] sm:$0xff] %v14496_v56  ;;  %v17663_v56 = vld [vmem:[#allocation30_spill] sm:$0xff]  ;;  %v14524_v43 = vmul.f32 %v14290_v53, %v17630_v47  ;;  %v14532_v14 = vmul.f32 %v14290_v53, %v17632_v17  ;;  %v14536_v24 = vmul.f32 %v14290_v53, %v17633_v27  ;;  %v14544_v47 = vmul.f32 %v14290_v53, %v13834_v57 }
 0x71d   :  { %17662 = vst [vmem:[#allocation33_spill] sm:$0xff] %v14504_v54  ;;  %v14520_v55 = vmul.f32 %v14290_v53, %v17663_v56  ;;  %v17664_v54 = vld [vmem:[#allocation32_spill] sm:$0xff]  ;;  %v14540_v56 = vmul.f32 %v14290_v53, %v17634_v51  ;;  %v14552_v17 = vadd.f32 %v14319_v28, %v14296_v23  ;;  %v14556_v27 = vadd.f32 %v14319_v28, %v14300_v3 }
 0x71e   :  { %v14528_v49 = vmul.f32 %v14290_v53, %v17664_v54  ;;  %v14548_v54 = vmul.f32 %v14290_v53, %v13842_v38  ;;  %v14560_v51 = vadd.f32 %v14319_v28, %v14304_v0  ;;  %v14564_v57 = vadd.f32 %v14319_v28, %v14308_v63 }
 0x71f   :  { %v14568_v38 = vadd.f32 %v14319_v28, %v14312_v33  ;;  %v14572_v53 = vadd.f32 %v14319_v28, %v14316_v20  ;;  %v14576_v23 = vadd.f32 %v14319_v28, %v14323_v25  ;;  %v14580_v3 = vadd.f32 %v14319_v28, %v14327_v40 }
 0x720   :  { %v14584_v0 = vadd.f32 %v14319_v28, %v14331_v32  ;;  %v14588_v63 = vadd.f32 %v14319_v28, %v14335_v37  ;;  %v14592_v33 = vadd.f32 %v14319_v28, %v14339_v61  ;;  %v14596_v20 = vadd.f32 %v14319_v28, %v14343_v8 }
 0x721   :  { %v14600_v25 = vadd.f32 %v14319_v28, %v14347_v26  ;;  %v14604_v40 = vadd.f32 %v14319_v28, %v14352_v31  ;;  %v14608_v32 = vadd.f32 %v14319_v28, %v14356_v16  ;;  %v14612_v37 = vadd.f32 %v14319_v28, %v14360_v60 }
 0x722   :  { %v14616_v61 = vadd.f32 %v14319_v28, %v14364_v39  ;;  %v14620_v8 = vadd.f32 %v14319_v28, %v14368_v4  ;;  %v14624_v26 = vadd.f32 %v14319_v28, %v14372_v34  ;;  %v14628_v31 = vadd.f32 %v14319_v28, %v14376_v35 }
 0x723   :  { %v14632_v16 = vadd.f32 %v14319_v28, %v14380_v19  ;;  %v14636_v60 = vadd.f32 %v14319_v28, %v14384_v59  ;;  %v14640_v39 = vadd.f32 %v14319_v28, %v14388_v9  ;;  %v14644_v4 = vadd.f32 %v14319_v28, %v14392_v5 }
 0x724   :  { %v14648_v34 = vadd.f32 %v14319_v28, %v14396_v10  ;;  %v14652_v35 = vadd.f32 %v14319_v28, %v14400_v45  ;;  %v14656_v19 = vadd.f32 %v14319_v28, %v14404_v48  ;;  %v14660_v59 = vadd.f32 %v14319_v28, %v14408_v52  ;;  %v17669_v45 = vld [vmem:[#allocation21_spill] sm:$0xff] }
 0x725   :  { %v14664_v9 = vadd.f32 %v14319_v28, %v14412_v36  ;;  %v14668_v5 = vadd.f32 %v14319_v28, %v14416_v1  ;;  %v14672_v10 = vadd.f32 %v14319_v28, %v14420_v6  ;;  %v14676_v48 = vadd.f32 %v14319_v28, %v17669_v45 }
 0x726   :  { %17665 = vst [vmem:[#allocation34_spill] sm:$0xff] %v14656_v19  ;;  %17666 = vst [vmem:[#allocation35_spill] sm:$0xff] %v14660_v59  ;;  %v17670_v19 = vld [vmem:[#allocation27_spill] sm:$0xff]  ;;  %v17671_v59 = vld [vmem:[#allocation28_spill] sm:$0xff]  ;;  %v14688_v1 = vadd.f32 %v14319_v28, %v14436_v7  ;;  %v14696_v45 = vadd.f32 %v14319_v28, %v14444_v29  ;;  %v14708_v7 = vadd.f32 %v14319_v28, %v14456_v46 }
 0x727   :  { %17667 = vst [vmem:[#allocation22_spill] sm:$0xff] %v14664_v9  ;;  %17668 = vst [vmem:[#allocation23_spill] sm:$0xff] %v14668_v5  ;;  %v14680_v52 = vadd.f32 %v14319_v28, %v17670_v19  ;;  %v14684_v36 = vadd.f32 %v14319_v28, %v17671_v59  ;;  %v17672_v5 = vld [vmem:[#allocation29_spill] sm:$0xff]  ;;  %v14700_v19 = vadd.f32 %v14319_v28, %v14448_v62 }
 0x728   :  { %v14692_v6 = vadd.f32 %v14319_v28, %v17672_v5  ;;  %v14704_v59 = vadd.f32 %v14319_v28, %v14452_v21  ;;  %v14712_v5 = vadd.f32 %v14319_v28, %v14460_v13  ;;  %v14716_v29 = vadd.f32 %v14319_v28, %v14464_v11 }
 0x729   :  { %v14720_v62 = vadd.f32 %v14319_v28, %v14468_v50  ;;  %v14724_v21 = vadd.f32 %v14319_v28, %v14472_v12  ;;  %v14728_v46 = vadd.f32 %v14319_v28, %v14476_v42  ;;  %v14732_v13 = vadd.f32 %v14319_v28, %v14480_v18 }
 0x72a   :  { %v14736_v11 = vadd.f32 %v14319_v28, %v14484_v22  ;;  %v14740_v50 = vadd.f32 %v14319_v28, %v14488_v41  ;;  %v14744_v12 = vadd.f32 %v14319_v28, %v14492_v58  ;;  %v14752_v18 = vadd.f32 %v14319_v28, %v14500_v15 }
 0x72b   :  { %17673 = vst [vmem:[#allocation24_spill] sm:$0xff] %v14724_v21  ;;  %17674 = vst [vmem:[#allocation25_spill] sm:$0xff] %v14732_v13  ;;  %v17675_v21 = vld [vmem:[#allocation31_spill] sm:$0xff]  ;;  %v17676_v13 = vld [vmem:[#allocation33_spill] sm:$0xff]  ;;  %v14760_v41 = vadd.f32 %v14319_v28, %v14508_v30  ;;  %v14764_v58 = vadd.f32 %v14319_v28, %v14512_v44  ;;  %v14772_v15 = vadd.f32 %v14319_v28, %v14520_v55 }
 0x72c   :  { %v14748_v42 = vadd.f32 %v14319_v28, %v17675_v21  ;;  %v14756_v22 = vadd.f32 %v14319_v28, %v17676_v13  ;;  %v14768_v21 = vadd.f32 %v14319_v28, %v14516_v2  ;;  %v14776_v13 = vadd.f32 %v14319_v28, %v14524_v43 }
 0x72d   :  { %v14780_v30 = vadd.f32 %v14319_v28, %v14528_v49  ;;  %v14784_v44 = vadd.f32 %v14319_v28, %v14532_v14  ;;  %v14788_v2 = vadd.f32 %v14319_v28, %v14536_v24  ;;  %v14792_v55 = vadd.f32 %v14319_v28, %v14540_v56 }
 0x72e   :  { %v14796_v43 = vadd.f32 %v14319_v28, %v14544_v47  ;;  %v14800_v49 = vadd.f32 %v14319_v28, %v14548_v54  ;;  %v17478_v14 = vmax.f32 %v14556_v27, 0.0  ;;  %v17479_v56 = vmax.f32 %v14572_v53, 0.0 }
 0x72f   :  { %17677 = vst [vmem:[#allocation26_spill] sm:$0xff] %v14780_v30  ;;  %17678 = vst [vmem:[#allocation5_spill] sm:$0xff] %v14784_v44  ;;  %v5349_v30 = vmax.f32 %v14552_v17, 0.0  ;;  %v17476_v44 = vmax.f32 %v14560_v51, 0.0  ;;  %v17482_v28 = vmax.f32 %v14588_v63, 0.0  ;;  %v17682_v47 = vmax.f32 %v14564_v57, 0.0 }
 0x730   :  { %17679 = vst [vmem:[#allocation4_spill] sm:$0xff] %v14788_v2  ;;  %17680 = vst [vmem:[#allocation7_spill] sm:$0xff] %v14792_v55  ;;  %v17477_v2 = vmax.f32 %v14568_v38, 0.0  ;;  %v17480_v55 = vmax.f32 %v14576_v23, 0.0  ;;  %v17484_v54 = vmax.f32 %v14608_v32, 0.0  ;;  %v17485_v17 = vmax.f32 %v14612_v37, 0.0 }
 0x731   :  { %17681 = vst [vmem:[#allocation6_spill] sm:$0xff] %v14796_v43  ;;  %v17481_v43 = vmax.f32 %v14584_v0, 0.0  ;;  %5522 = vst [vmem:[#allocation3 + $0x19] sm:$0xff] %v5349_v30  ;;  %6388 = vmatprep.mubr.f32.mxu0 %v5349_v30  ;;  %v17483_v30 = vmax.f32 %v14604_v40, 0.0  ;;  %v5381_v24 = vmax.f32 %v14680_v52, 0.0  ;;  %v5385_v52 = vmax.f32 %v14696_v45, 0.0 }
 0x732   :  { %5523 = vst [vmem:[#allocation3 + $0x21] sm:$0xff] %v17478_v14  ;;  %5524 = vst [vmem:[#allocation3 + $0x31] sm:$0xff] %v17476_v44  ;;  %v17683_v44 = vmax.f32 %v14580_v3, 0.0  ;;  %v5380_v14 = vmax.f32 %v14676_v48, 0.0  ;;  %v5384_v48 = vmax.f32 %v14692_v6, 0.0  ;;  %v5388_v6 = vmax.f32 %v14708_v7, 0.0 }
 0x733   :  { %5525 = vst [vmem:[#allocation3 + $0x39] sm:$0xff] %v17682_v47  ;;  %5526 = vst [vmem:[#allocation3 + $0x49] sm:$0xff] %v17477_v2  ;;  %v17486_v47 = vmax.f32 %v14620_v8, 0.0  ;;  %v17689_v2 = vld [vmem:[#allocation35_spill] sm:$0xff]  ;;  %v5389_v45 = vmax.f32 %v14712_v5, 0.0  ;;  %v17704_v7 = vld [vmem:[#allocation25_spill] sm:$0xff] }
 0x734   :  { %5527 = vst [vmem:[#allocation3 + $0x51] sm:$0xff] %v17479_v56  ;;  %5528 = vst [vmem:[#allocation3 + $0x61] sm:$0xff] %v17480_v55  ;;  %v17684_v56 = vmax.f32 %v14592_v33, 0.0  ;;  %v17685_v55 = vmax.f32 %v14596_v20, 0.0  ;;  %v5394_v5 = vmax.f32 %v17704_v7, 0.0  ;;  %v17712_v7 = vmov 0.0|0.0  }
 0x735   :  { %5529 = vst [vmem:[#allocation3 + $0x69] sm:$0xff] %v17683_v44  ;;  %5530 = vst [vmem:[#allocation3 + $0x79] sm:$0xff] %v17481_v43  ;;  %v17686_v44 = vmax.f32 %v14600_v25, 0.0  ;;  %v17487_v43 = vmax.f32 %v14636_v60, 0.0 }
 0x736   :  { %5531 = vst [vmem:[#allocation3 + $0x81] sm:$0xff] %v17482_v28  ;;  %5532 = vst [vmem:[#allocation3 + $0x91] sm:$0xff] %v17684_v56  ;;  %v5379_v28 = vmax.f32 %v14672_v10, 0.0  ;;  %v5383_v10 = vmax.f32 %v14688_v1, 0.0  ;;  %v17697_v56 = vmax.f32 %v14652_v35, 0.0  ;;  %v5387_v1 = vmax.f32 %v14704_v59, 0.0 }
 0x737   :  { %5533 = vst [vmem:[#allocation3 + $0x99] sm:$0xff] %v17685_v55  ;;  %5534 = vst [vmem:[#allocation3 + $0xa9] sm:$0xff] %v17686_v44  ;;  %v17687_v55 = vmax.f32 %v14616_v61, 0.0  ;;  %v17688_v44 = vld [vmem:[#allocation34_spill] sm:$0xff]  ;;  %v17703_v59 = vmax.f32 %v14556_v27, 0.0  ;;  %v5399_v27 = vmax.f32 %v14752_v18, 0.0 }
 0x738   :  { %5535 = vst [vmem:[#allocation3 + $0xb1] sm:$0xff] %v17483_v30  ;;  %5536 = vst [vmem:[#allocation3 + $0xc1] sm:$0xff] %v17484_v54  ;;  %v17690_v30 = vmax.f32 %v14624_v26, 0.0  ;;  %v17691_v54 = vmax.f32 %v14628_v31, 0.0  ;;  %v5405_v18 = vmax.f32 %v14776_v13, 0.0  ;;  %v5412_v13 = vmax.f32 %v14800_v49, 0.0 }
 0x739   :  { %5537 = vst [vmem:[#allocation3 + $0xc9] sm:$0xff] %v17485_v17  ;;  %5538 = vst [vmem:[#allocation3 + $0xd9] sm:$0xff] %v17687_v55  ;;  %v17692_v17 = vmax.f32 %v14632_v16, 0.0  ;;  %v17693_v55 = vld [vmem:[#allocation23_spill] sm:$0xff] }
 0x73a   :  { %5539 = vst [vmem:[#allocation3 + $0xe1] sm:$0xff] %v17486_v47  ;;  %5540 = vst [vmem:[#allocation3 + $0xf1] sm:$0xff] %v17690_v30  ;;  %v17694_v47 = vmax.f32 %v14640_v39, 0.0  ;;  %v17695_v30 = vmax.f32 %v14644_v4, 0.0  ;;  %v6230_v49 = vld [vmem:[%s17416_s7 + $0x218] sm:$0xff] }
 0x73b   :  { %5541 = vst [vmem:[#allocation3 + $0xf9] sm:$0xff] %v17691_v54  ;;  %5542 = vst [vmem:[#allocation3 + $0x109] sm:$0xff] %v17692_v17  ;;  %v17696_v54 = vmax.f32 %v14648_v34, 0.0  ;;  %v5382_v17 = vmax.f32 %v14684_v36, 0.0  ;;  %v5386_v36 = vmax.f32 %v14700_v19, 0.0  ;;  %v5393_v19 = vmax.f32 %v14728_v46, 0.0 }
 0x73c   :  { %5543 = vst [vmem:[#allocation3 + $0x111] sm:$0xff] %v17487_v43  ;;  %5544 = vst [vmem:[#allocation3 + $0x121] sm:$0xff] %v17694_v47  ;;  %v17698_v43 = vmax.f32 %v17688_v44, 0.0  ;;  %v17699_v47 = vmax.f32 %v17689_v2, 0.0  ;;  %v5398_v46 = vmax.f32 %v14748_v42, 0.0  ;;  %v5404_v42 = vmax.f32 %v14772_v15, 0.0 }
 0x73d   :  { %5545 = vst [vmem:[#allocation3 + $0x129] sm:$0xff] %v17695_v30  ;;  %5546 = vst [vmem:[#allocation3 + $0x139] sm:$0xff] %v17696_v54  ;;  %v17700_v30 = vmax.f32 %v14664_v9, 0.0  ;;  %v5588_v54 = vld [vmem:[#allocation3 + $0x18] sm:$0xff] }
 0x73e   :  { %5547 = vst [vmem:[#allocation3 + $0x141] sm:$0xff] %v17697_v56  ;;  %5548 = vst [vmem:[#allocation3 + $0x151] sm:$0xff] %v17698_v43  ;;  %v17701_v56 = vmax.f32 %v17693_v55, 0.0  ;;  %6389 = vmatmul.mubr.f32.gmra.mrb[100].mxu0 %v5588_v54  ;;  %v5390_v43 = vmax.f32 %v14716_v29, 0.0  ;;  %v5397_v29 = vmax.f32 %v14744_v12, 0.0  ;;  %v5589_v12 = vld [vmem:[#allocation3 + $0x20] sm:$0xff] }
 0x73f   :  { %5549 = vst [vmem:[#allocation3 + $0x159] sm:$0xff] %v17699_v47  ;;  %5550 = vst [vmem:[#allocation3 + $0x169] sm:$0xff] %v17700_v30  ;;  %v5391_v47 = vmax.f32 %v14720_v62, 0.0  ;;  %v17702_v30 = vld [vmem:[#allocation24_spill] sm:$0xff]  ;;  %6393 = vmatprep.mubr.f32.mxu0 %v17703_v59 }
 0x740   :  { %5551 = vst [vmem:[#allocation3 + $0x171] sm:$0xff] %v17701_v56  ;;  %5552 = vst [vmem:[#allocation3 + $0x181] sm:$0xff] %v5379_v28  ;;  %v5392_v9 = vmax.f32 %v17702_v30, 0.0  ;;  %v6227_v62 = vld [vmem:[%s17416_s7 + $0x200] sm:$0xff]  ;;  %v5400_v28 = vmax.f32 %v14756_v22, 0.0  ;;  %v6229_v56 = vld [vmem:[%s17416_s7 + $0x210] sm:$0xff] }
 0x741   :  { %5553 = vst [vmem:[#allocation3 + $0x189] sm:$0xff] %v5380_v14  ;;  %5554 = vst [vmem:[#allocation3 + $0x1c9] sm:$0xff] %v5381_v24  ;;  %v5395_v14 = vmax.f32 %v14736_v11, 0.0  ;;  %v5396_v24 = vmax.f32 %v14740_v50, 0.0  ;;  %v5401_v11 = vmax.f32 %v14760_v41, 0.0  ;;  %v6228_v50 = vld [vmem:[%s17416_s7 + $0x208] sm:$0xff]  ;;  %v9707_v59 = vpack.c.bf16 %v6230_v49, %v6229_v56 }
 0x742   :  { %5555 = vst [vmem:[#allocation3 + $0x1d1] sm:$0xff] %v5382_v17  ;;  %5556 = vst [vmem:[#allocation3 + $0x1e1] sm:$0xff] %v5383_v10  ;;  %v5402_v17 = vmax.f32 %v14764_v58, 0.0  ;;  %v5403_v10 = vmax.f32 %v14768_v21, 0.0  ;;  %6394 = vmatmul.mubr.f32.gmra.mrb[102].mxu0 %v5589_v12  ;;  %v17706_v41 = vld [vmem:[#allocation5_spill] sm:$0xff]  ;;  %v17709_v58 = vmax.f32 %v14560_v51, 0.0 }
 0x743   :  { %5557 = vst [vmem:[#allocation3 + $0x1e9] sm:$0xff] %v5384_v48  ;;  %5558 = vst [vmem:[#allocation3 + $0x1f9] sm:$0xff] %v5385_v52  ;;  %v5407_v48 = vmax.f32 %v17706_v41, 0.0  ;;  %v17707_v52 = vld [vmem:[#allocation4_spill] sm:$0xff]  ;;  %v17710_v21 = vld [vmem:[#allocation6_spill] sm:$0xff]  ;;  %v17711_v30 = vmax.f32 %v14564_v57, 0.0 }
 0x744   :  { %5559 = vst [vmem:[#allocation3 + $0x201] sm:$0xff] %v5386_v36  ;;  %5560 = vst [vmem:[#allocation3 + $0x211] sm:$0xff] %v5387_v1  ;;  %v5408_v54 = vmax.f32 %v17707_v52, 0.0  ;;  %v17708_v36 = vld [vmem:[#allocation7_spill] sm:$0xff]  ;;  %6398 = vmatprep.mubr.f32.mxu0 %v17709_v58  ;;  %v5410_v15 = vmax.f32 %v17710_v21, 0.0  ;;  %v5594_v41 = vld [vmem:[#allocation3 + $0x60] sm:$0xff] }
 0x745   :  { %5561 = vst [vmem:[#allocation3 + $0x219] sm:$0xff] %v5388_v6  ;;  %5562 = vst [vmem:[#allocation3 + $0x229] sm:$0xff] %v5389_v45  ;;  %v5409_v1 = vmax.f32 %v17708_v36, 0.0  ;;  %v5746_v6 = vld [vmem:[#allocation3 + $0x1b2] sm:$0xff]  ;;  %v9704_v45 = vpack.c.bf16 %v6228_v50, %v6227_v62  ;;  %v17714_v50 = vmax.f32 %v14572_v53, 0.0  ;;  %v17716_v36 = vmax.f32 %v14580_v3, 0.0 }
 0x746   :  { %5563 = vst [vmem:[#allocation3 + $0x231] sm:$0xff] %v5390_v43  ;;  %5564 = vst [vmem:[#allocation3 + $0x241] sm:$0xff] %v5391_v47  ;;  %v5590_v43 = vld [vmem:[#allocation3 + $0x30] sm:$0xff]  ;;  %v6238_v52 = vld [vmem:[%s17416_s7 + $0x258] sm:$0xff] }
 0x747   :  { %5565 = vst [vmem:[#allocation3 + $0x249] sm:$0xff] %v5392_v9  ;;  %5566 = vst [vmem:[#allocation3 + $0x259] sm:$0xff] %v5393_v19  ;;  %v17705_v9 = vld [vmem:[#allocation26_spill] sm:$0xff]  ;;  %6399 = vmatmul.mubr.f32.gmra.mrb[104].mxu0 %v5590_v43  ;;  %v5747_v19 = vld [vmem:[#allocation3 + $0x1ba] sm:$0xff] }
 0x748   :  { %5567 = vst [vmem:[#allocation3 + $0x261] sm:$0xff] %v5394_v5  ;;  %5568 = vst [vmem:[#allocation3 + $0x271] sm:$0xff] %v5395_v14  ;;  %v5406_v22 = vmax.f32 %v17705_v9, 0.0  ;;  %v14936_v51 = vld [vmem:[#allocation3 + $0x1c8] sm:$0xff]  ;;  %6403 = vmatprep.mubr.f32.mxu0 %v17711_v30  ;;  %v5591_v5 = vld [vmem:[#allocation3 + $0x38] sm:$0xff]  ;;  %v17715_v9 = vmax.f32 %v14576_v23, 0.0 }
 0x749   :  { %5569 = vst [vmem:[#allocation3 + $0x279] sm:$0xff] %v5396_v24  ;;  %5570 = vst [vmem:[#allocation3 + $0x289] sm:$0xff] %v5397_v29  ;;  %6923 = vmatprep.mubr.f32.mxu1 %v14936_v51  ;;  %v14942_v47 = vld [vmem:[#allocation3 + $0x1d0] sm:$0xff]  ;;  %v6231_v14 = vld [vmem:[%s17416_s7 + $0x220] sm:$0xff]  ;;  %v17713_v29 = vmax.f32 %v14568_v38, 0.0 }
 0x74a   :  { %5571 = vst [vmem:[#allocation3 + $0x291] sm:$0xff] %v5398_v46  ;;  %5572 = vst [vmem:[#allocation3 + $0x2a1] sm:$0xff] %v5399_v27  ;;  %6924 = vmatmul.mubr.f32.vlgmr.msra.gmra.mrb[32].mxu1 %v5746_v6  ;;  %v6232_v24 = vld [vmem:[%s17416_s7 + $0x228] sm:$0xff]  ;;  %v14954_v57 = vld [vmem:[#allocation3 + $0x1e0] sm:$0xff]  ;;  %v17717_v6 = vmax.f32 %v14584_v0, 0.0 }
 0x74b   :  { %5573 = vst [vmem:[#allocation3 + $0x2a9] sm:$0xff] %v5400_v28  ;;  %5574 = vst [vmem:[#allocation3 + $0x2b9] sm:$0xff] %v5401_v11  ;;  %9705 = vmatpush1.bf16.msra.mxu1 %v9704_v45  ;;  %6928 = vmatprep.mubr.f32.mxu1 %v14942_v47  ;;  %v9710_v62 = vpack.c.bf16 %v6232_v24, %v6231_v14  ;;  %v5592_v46 = vld [vmem:[#allocation3 + $0x48] sm:$0xff]  ;;  %v6233_v27 = vld [vmem:[%s17416_s7 + $0x230] sm:$0xff] }
 0x74c   :  { %5575 = vst [vmem:[#allocation3 + $0x2c1] sm:$0xff] %v5402_v17  ;;  %5576 = vst [vmem:[#allocation3 + $0x2d1] sm:$0xff] %v5403_v10  ;;  %9706 = vmatprep.subr.bf16.mxu1 %v17712_v7  ;;  %6404 = vmatmul.mubr.f32.gmra.mrb[106].mxu0 %v5591_v5  ;;  %v6234_v28 = vld [vmem:[%s17416_s7 + $0x238] sm:$0xff]  ;;  %v5748_v11 = vld [vmem:[#allocation3 + $0x1ca] sm:$0xff] }
 0x74d   :  { %5577 = vst [vmem:[#allocation3 + $0x2d9] sm:$0xff] %v5404_v42  ;;  %5578 = vst [vmem:[#allocation3 + $0x2e9] sm:$0xff] %v5405_v18  ;;  %6408 = vmatprep.mubr.f32.mxu0 %v17713_v29  ;;  %v14966_v38 = vld [vmem:[#allocation3 + $0x1e8] sm:$0xff]  ;;  %v9713_v12 = vpack.c.bf16 %v6234_v28, %v6233_v27  ;;  %v5593_v17 = vld [vmem:[#allocation3 + $0x50] sm:$0xff] }
 0x74e   :  { %5579 = vst [vmem:[#allocation3 + $0x2f1] sm:$0xff] %v5406_v22  ;;  %5580 = vst [vmem:[#allocation3 + $0x301] sm:$0xff] %v5407_v48  ;;  %6929 = vmatmul.mubr.f32.gmra.mrb[34].mxu1 %v5747_v19  ;;  %v6235_v10 = vld [vmem:[%s17416_s7 + $0x240] sm:$0xff]  ;;  %v6236_v42 = vld [vmem:[%s17416_s7 + $0x248] sm:$0xff]  ;;  %v17718_v19 = vmax.f32 %v14588_v63, 0.0 }
 0x74f   :  { %5581 = vst [vmem:[#allocation3 + $0x309] sm:$0xff] %v5408_v54  ;;  %5582 = vst [vmem:[#allocation3 + $0x319] sm:$0xff] %v5409_v1  ;;  %6933 = vmatprep.mubr.f32.mxu1 %v14954_v57  ;;  %9708 = vmatpush1.bf16.msra.mxu1 %v9707_v59  ;;  %v5749_v18 = vld [vmem:[#allocation3 + $0x1d2] sm:$0xff]  ;;  %v9716_v22 = vpack.c.bf16 %v6236_v42, %v6235_v10  ;;  %v5750_v54 = vld [vmem:[#allocation3 + $0x1e2] sm:$0xff] }
 0x750   :  { %5583 = vst [vmem:[#allocation3 + $0x321] sm:$0xff] %v5410_v15  ;;  %5585 = vst [vmem:[#allocation3 + $0x339] sm:$0xff] %v5412_v13  ;;  %9709 = vmatprep.subr.bf16.mxu1 %v17712_v7  ;;  %6409 = vmatmul.mubr.f32.gmra.mrb[108].mxu0 %v5592_v46  ;;  %v14978_v53 = vld [vmem:[#allocation3 + $0x1f8] sm:$0xff]  ;;  %v6237_v48 = vld [vmem:[%s17416_s7 + $0x250] sm:$0xff] }
 0x751   :  { %6413 = vmatprep.mubr.f32.mxu0 %v17714_v50  ;;  %v14990_v23 = vld [vmem:[#allocation3 + $0x200] sm:$0xff]  ;;  %v9719_v1 = vpack.c.bf16 %v6238_v52, %v6237_v48  ;;  %v5595_v58 = vld [vmem:[#allocation3 + $0x68] sm:$0xff]  ;;  %v15002_v3 = vld [vmem:[#allocation3 + $0x210] sm:$0xff] }
 0x752   :  { %6934 = vmatmul.mubr.f32.gmra.mrb[36].mxu1 %v5748_v11  ;;  %v6239_v21 = vld [vmem:[%s17416_s7 + $0x260] sm:$0xff]  ;;  %v6240_v15 = vld [vmem:[%s17416_s7 + $0x268] sm:$0xff]  ;;  %v5596_v56 = vld [vmem:[#allocation3 + $0x78] sm:$0xff] }
 0x753   :  { %6938 = vmatprep.mubr.f32.mxu1 %v14966_v38  ;;  %9711 = vmatpush1.bf16.msra.mxu1 %v9710_v62  ;;  %v5751_v13 = vld [vmem:[#allocation3 + $0x1ea] sm:$0xff]  ;;  %v9722_v45 = vpack.c.bf16 %v6240_v15, %v6239_v21  ;;  %v6242_v49 = vld [vmem:[%s17416_s7 + $0x278] sm:$0xff]  ;;  %v5597_v5 = vld [vmem:[#allocation3 + $0x80] sm:$0xff]  ;;  %v17719_v62 = vmax.f32 %v14592_v33, 0.0 }
 0x754   :  { %9712 = vmatprep.subr.bf16.mxu1 %v17712_v7  ;;  %6414 = vmatmul.mubr.f32.gmra.mrb[110].mxu0 %v5593_v17  ;;  %v6241_v43 = vld [vmem:[%s17416_s7 + $0x270] sm:$0xff]  ;;  %v5752_v30 = vld [vmem:[#allocation3 + $0x1fa] sm:$0xff]  ;;  %v6244_v24 = vld [vmem:[%s17416_s7 + $0x288] sm:$0xff] }
 0x755   :  { %6418 = vmatprep.mubr.f32.mxu0 %v17715_v9  ;;  %v15014_v0 = vld [vmem:[#allocation3 + $0x218] sm:$0xff]  ;;  %v9725_v59 = vpack.c.bf16 %v6242_v49, %v6241_v43  ;;  %v6243_v14 = vld [vmem:[%s17416_s7 + $0x280] sm:$0xff]  ;;  %v15026_v63 = vld [vmem:[#allocation3 + $0x228] sm:$0xff] }
 0x756   :  { %6939 = vmatmul.mubr.f32.gmra.mrb[38].mxu1 %v5749_v18  ;;  %v5753_v29 = vld [vmem:[#allocation3 + $0x202] sm:$0xff]  ;;  %v9728_v46 = vpack.c.bf16 %v6244_v24, %v6243_v14  ;;  %v5598_v27 = vld [vmem:[#allocation3 + $0x90] sm:$0xff]  ;;  %v6246_v11 = vld [vmem:[%s17416_s7 + $0x298] sm:$0xff] }
 0x757   :  { %6943 = vmatprep.mubr.f32.mxu1 %v14978_v53  ;;  %9714 = vmatpush1.bf16.msra.mxu1 %v9713_v12  ;;  %v6245_v28 = vld [vmem:[%s17416_s7 + $0x290] sm:$0xff]  ;;  %v17720_v12 = vmax.f32 %v14596_v20, 0.0  ;;  %v5599_v10 = vld [vmem:[#allocation3 + $0x98] sm:$0xff]  ;;  %v6247_v42 = vld [vmem:[%s17416_s7 + $0x2a0] sm:$0xff] }
 0x758   :  { %9715 = vmatprep.subr.bf16.mxu1 %v17712_v7  ;;  %6419 = vmatmul.mubr.f32.gmra.mrb[112].mxu0 %v5594_v41  ;;  %v5754_v50 = vld [vmem:[#allocation3 + $0x212] sm:$0xff]  ;;  %v9731_v17 = vpack.c.bf16 %v6246_v11, %v6245_v28  ;;  %v6248_v18 = vld [vmem:[%s17416_s7 + $0x2a8] sm:$0xff]  ;;  %v5755_v9 = vld [vmem:[#allocation3 + $0x21a] sm:$0xff] }
 0x759   :  { %6423 = vmatprep.mubr.f32.mxu0 %v17716_v36  ;;  %v15038_v33 = vld [vmem:[#allocation3 + $0x230] sm:$0xff]  ;;  %v15050_v20 = vld [vmem:[#allocation3 + $0x240] sm:$0xff]  ;;  %v9734_v41 = vpack.c.bf16 %v6248_v18, %v6247_v42  ;;  %v5600_v48 = vld [vmem:[#allocation3 + $0xa8] sm:$0xff] }
 0x75a   :  { %6944 = vmatmul.mubr.f32.gmra.mrb[40].mxu1 %v5750_v54  ;;  %v6249_v52 = vld [vmem:[%s17416_s7 + $0x2b0] sm:$0xff]  ;;  %v6250_v54 = vld [vmem:[%s17416_s7 + $0x2b8] sm:$0xff]  ;;  %v6251_v15 = vld [vmem:[%s17416_s7 + $0x2c0] sm:$0xff] }
 0x75b   :  { %6948 = vmatprep.mubr.f32.mxu1 %v14990_v23  ;;  %9717 = vmatpush1.bf16.msra.mxu1 %v9716_v22  ;;  %v17721_v22 = vmax.f32 %v14600_v25, 0.0  ;;  %v5756_v36 = vld [vmem:[#allocation3 + $0x22a] sm:$0xff]  ;;  %v5602_v43 = vld [vmem:[#allocation3 + $0xc0] sm:$0xff]  ;;  %v5604_v28 = vld [vmem:[#allocation3 + $0xd8] sm:$0xff] }
 0x75c   :  { %9718 = vmatprep.subr.bf16.mxu1 %v17712_v7  ;;  %6424 = vmatmul.mubr.f32.gmra.mrb[114].mxu0 %v5595_v58  ;;  %v15062_v25 = vld [vmem:[#allocation3 + $0x248] sm:$0xff]  ;;  %v9737_v58 = vpack.c.bf16 %v6250_v54, %v6249_v52  ;;  %v5601_v21 = vld [vmem:[#allocation3 + $0xb0] sm:$0xff]  ;;  %v6255_v24 = vld [vmem:[%s17416_s7 + $0x2e0] sm:$0xff]  ;;  %v17728_v52 = vmax.f32 %v14628_v31, 0.0  ;;  %v17730_v31 = vmax.f32 %v14636_v60, 0.0  ;;  %v17732_v60 = vmax.f32 %v14644_v4, 0.0 }
 0x75d   :  { %6428 = vmatprep.mubr.f32.mxu0 %v17717_v6  ;;  %v5757_v6 = vld [vmem:[#allocation3 + $0x232] sm:$0xff]  ;;  %v5603_v14 = vld [vmem:[#allocation3 + $0xc8] sm:$0xff]  ;;  %v5605_v42 = vld [vmem:[#allocation3 + $0xe0] sm:$0xff]  ;;  %v17734_v4 = vmax.f32 %v14652_v35, 0.0  ;;  %v17736_v35 = vmax.f32 %v17689_v2, 0.0  ;;  %v17739_v2 = vmax.f32 %v17693_v55, 0.0 }
 0x75e   :  { %6949 = vmatmul.mubr.f32.gmra.mrb[42].mxu1 %v5751_v13  ;;  %v6252_v13 = vld [vmem:[%s17416_s7 + $0x2c8] sm:$0xff]  ;;  %v6253_v49 = vld [vmem:[%s17416_s7 + $0x2d0] sm:$0xff]  ;;  %v5607_v54 = vld [vmem:[#allocation3 + $0xf8] sm:$0xff] }
 0x75f   :  { %6953 = vmatprep.mubr.f32.mxu1 %v15002_v3  ;;  %9720 = vmatpush1.bf16.msra.mxu1 %v9719_v1  ;;  %v17722_v1 = vmax.f32 %v14604_v40, 0.0  ;;  %v15074_v40 = vld [vmem:[#allocation3 + $0x258] sm:$0xff]  ;;  %v6257_v11 = vld [vmem:[%s17416_s7 + $0x2f0] sm:$0xff]  ;;  %v5761_v18 = vld [vmem:[#allocation3 + $0x262] sm:$0xff] }
 0x760   :  { %9721 = vmatprep.subr.bf16.mxu1 %v17712_v7  ;;  %6429 = vmatmul.mubr.f32.gmra.mrb[116].mxu0 %v5596_v56  ;;  %v9740_v56 = vpack.c.bf16 %v6252_v13, %v6251_v15  ;;  %v15132_v15 = vld [vmem:[#allocation3 + $0x2a8] sm:$0xff]  ;;  %v5609_v13 = vld [vmem:[#allocation3 + $0x110] sm:$0xff] }
 0x761   :  { %6433 = vmatprep.mubr.f32.mxu0 %v17718_v19  ;;  %v5758_v19 = vld [vmem:[#allocation3 + $0x242] sm:$0xff]  ;;  %v5775_v55 = vld [vmem:[#allocation3 + $0x30a] sm:$0xff] }
 0x762   :  { %6954 = vmatmul.mubr.f32.gmra.mrb[44].mxu1 %v5752_v30  ;;  %v6254_v30 = vld [vmem:[%s17416_s7 + $0x2d8] sm:$0xff] }
 0x763   :  { %6958 = vmatprep.mubr.f32.mxu1 %v15014_v0  ;;  %9723 = vmatpush1.bf16.msra.mxu1 %v9722_v45  ;;  %v17723_v45 = vmax.f32 %v14608_v32, 0.0  ;;  %v15086_v32 = vld [vmem:[#allocation3 + $0x260] sm:$0xff] }
 0x764   :  { %9724 = vmatprep.subr.bf16.mxu1 %v17712_v7  ;;  %6434 = vmatmul.mubr.f32.gmra.mrb[118].mxu0 %v5597_v5  ;;  %v9743_v5 = vpack.c.bf16 %v6254_v30, %v6253_v49  ;;  %v15142_v49 = vld [vmem:[#allocation3 + $0x2c0] sm:$0xff]  ;;  %v5611_v30 = vld [vmem:[#allocation3 + $0x128] sm:$0xff] }
 0x765   :  { %6438 = vmatprep.mubr.f32.mxu0 %v17719_v62  ;;  %v5759_v62 = vld [vmem:[#allocation3 + $0x24a] sm:$0xff] }
 0x766   :  { %6959 = vmatmul.mubr.f32.gmra.mrb[46].mxu1 %v5753_v29  ;;  %v6256_v29 = vld [vmem:[%s17416_s7 + $0x2e8] sm:$0xff] }
 0x767   :  { %6963 = vmatprep.mubr.f32.mxu1 %v15026_v63  ;;  %9726 = vmatpush1.bf16.msra.mxu1 %v9725_v59  ;;  %v17724_v59 = vmax.f32 %v14612_v37, 0.0  ;;  %v15098_v37 = vld [vmem:[#allocation3 + $0x270] sm:$0xff] }
 0x768   :  { %9727 = vmatprep.subr.bf16.mxu1 %v17712_v7  ;;  %6439 = vmatmul.mubr.f32.gmra.mrb[120].mxu0 %v5598_v27  ;;  %v9746_v27 = vpack.c.bf16 %v6256_v29, %v6255_v24  ;;  %v15152_v24 = vld [vmem:[#allocation3 + $0x2d8] sm:$0xff]  ;;  %v5613_v29 = vld [vmem:[#allocation3 + $0x140] sm:$0xff] }
 0x769   :  { %6443 = vmatprep.mubr.f32.mxu0 %v17720_v12  ;;  %v5760_v12 = vld [vmem:[#allocation3 + $0x25a] sm:$0xff] }
 0x76a   :  { %6964 = vmatmul.mubr.f32.gmra.mrb[48].mxu1 %v5754_v50  ;;  %v6258_v50 = vld [vmem:[%s17416_s7 + $0x2f8] sm:$0xff] }
 0x76b   :  { %6968 = vmatprep.mubr.f32.mxu1 %v15038_v33  ;;  %9729 = vmatpush1.bf16.msra.mxu1 %v9728_v46  ;;  %v17725_v46 = vmax.f32 %v14616_v61, 0.0  ;;  %v15110_v61 = vld [vmem:[#allocation3 + $0x278] sm:$0xff] }
 0x76c   :  { %9730 = vmatprep.subr.bf16.mxu1 %v17712_v7  ;;  %6444 = vmatmul.mubr.f32.gmra.mrb[122].mxu0 %v5599_v10  ;;  %v9749_v10 = vpack.c.bf16 %v6258_v50, %v6257_v11  ;;  %v15162_v11 = vld [vmem:[#allocation3 + $0x2f0] sm:$0xff]  ;;  %v5615_v50 = vld [vmem:[#allocation3 + $0x158] sm:$0xff] }
 0x76d   :  { %6448 = vmatprep.mubr.f32.mxu0 %v17721_v22  ;;  %v17727_v22 = vmax.f32 %v14624_v26, 0.0  ;;  %v15127_v26 = vld [vmem:[#allocation3 + $0x2a0] sm:$0xff] }
 0x76e   :  { %6969 = vmatmul.mubr.f32.gmra.mrb[50].mxu1 %v5755_v9  ;;  %v15116_v9 = vld [vmem:[#allocation3 + $0x288] sm:$0xff] }
 0x76f   :  { %6973 = vmatprep.mubr.f32.mxu1 %v15050_v20  ;;  %9732 = vmatpush1.bf16.msra.mxu1 %v9731_v17  ;;  %v17726_v17 = vmax.f32 %v14620_v8, 0.0  ;;  %v5606_v8 = vld [vmem:[#allocation3 + $0xf0] sm:$0xff] }
 0x770   :  { %9733 = vmatprep.subr.bf16.mxu1 %v17712_v7  ;;  %6449 = vmatmul.mubr.f32.gmra.mrb[124].mxu0 %v5600_v48  ;;  %v15122_v48 = vld [vmem:[#allocation3 + $0x290] sm:$0xff] }
 0x771   :  { %6453 = vmatprep.mubr.f32.mxu0 %v17722_v1  ;;  %v17729_v1 = vmax.f32 %v14632_v16, 0.0  ;;  %v17731_v16 = vmax.f32 %v14640_v39, 0.0  ;;  %v17733_v39 = vmax.f32 %v14648_v34, 0.0  ;;  %v17735_v34 = vmax.f32 %v17688_v44, 0.0  ;;  %v17737_v44 = vld [vmem:[#allocation22_spill] sm:$0xff] }
 0x772   :  { %6974 = vmatmul.mubr.f32.gmra.mrb[52].mxu1 %v5756_v36  ;;  %v5763_v36 = vld [vmem:[#allocation3 + $0x27a] sm:$0xff] }
 0x773   :  { %6978 = vmatprep.mubr.f32.mxu1 %v15062_v25  ;;  %9735 = vmatpush1.bf16.msra.mxu1 %v9734_v41  ;;  %v5762_v41 = vld [vmem:[#allocation3 + $0x272] sm:$0xff] }
 0x774   :  { %9736 = vmatprep.subr.bf16.mxu1 %v17712_v7  ;;  %6454 = vmatmul.mubr.f32.gmra.mrb[126].mxu0 %v5601_v21  ;;  %v5764_v21 = vld [vmem:[#allocation3 + $0x28a] sm:$0xff] }
 0x775   :  { %6458 = vmatprep.mubr.f32.mxu0 %v17723_v45  ;;  %v15137_v45 = vld [vmem:[#allocation3 + $0x2b8] sm:$0xff] }
 0x776   :  { %6979 = vmatmul.mubr.f32.gmra.mrb[54].mxu1 %v5757_v6  ;;  %v5765_v6 = vld [vmem:[#allocation3 + $0x292] sm:$0xff] }
 0x777   :  { %6983 = vmatprep.mubr.f32.mxu1 %v15074_v40  ;;  %9738 = vmatpush1.bf16.msra.mxu1 %v9737_v58  ;;  %v5608_v58 = vld [vmem:[#allocation3 + $0x108] sm:$0xff] }
 0x778   :  { %9739 = vmatprep.subr.bf16.mxu1 %v17712_v7  ;;  %6459 = vmatmul.mubr.f32.gmra.mrb[128].mxu0 %v5602_v43  ;;  %v5766_v43 = vld [vmem:[#allocation3 + $0x2a2] sm:$0xff] }
 0x779   :  { %6463 = vmatprep.mubr.f32.mxu0 %v17724_v59  ;;  %v15147_v59 = vld [vmem:[#allocation3 + $0x2d0] sm:$0xff] }
 0x77a   :  { %6984 = vmatmul.mubr.f32.gmra.mrb[56].mxu1 %v5758_v19  ;;  %v5767_v19 = vld [vmem:[#allocation3 + $0x2aa] sm:$0xff] }
 0x77b   :  { %6988 = vmatprep.mubr.f32.mxu1 %v15086_v32  ;;  %9741 = vmatpush1.bf16.msra.mxu1 %v9740_v56  ;;  %v5610_v56 = vld [vmem:[#allocation3 + $0x120] sm:$0xff] }
 0x77c   :  { %9742 = vmatprep.subr.bf16.mxu1 %v17712_v7  ;;  %6464 = vmatmul.mubr.f32.gmra.mrb[130].mxu0 %v5603_v14  ;;  %v5768_v14 = vld [vmem:[#allocation3 + $0x2ba] sm:$0xff] }
 0x77d   :  { %6468 = vmatprep.mubr.f32.mxu0 %v17725_v46  ;;  %v15157_v46 = vld [vmem:[#allocation3 + $0x2e8] sm:$0xff] }
 0x77e   :  { %6989 = vmatmul.mubr.f32.gmra.mrb[58].mxu1 %v5759_v62  ;;  %v5769_v62 = vld [vmem:[#allocation3 + $0x2c2] sm:$0xff] }
 0x77f   :  { %6993 = vmatprep.mubr.f32.mxu1 %v15098_v37  ;;  %9744 = vmatpush1.bf16.msra.mxu1 %v9743_v5  ;;  %v5612_v5 = vld [vmem:[#allocation3 + $0x138] sm:$0xff] }
 0x780   :  { %9745 = vmatprep.subr.bf16.mxu1 %v17712_v7  ;;  %6469 = vmatmul.mubr.f32.gmra.mrb[132].mxu0 %v5604_v28  ;;  %v5770_v28 = vld [vmem:[#allocation3 + $0x2d2] sm:$0xff] }
 0x781   :  { %6473 = vmatprep.mubr.f32.mxu0 %v17726_v17  ;;  %v15167_v17 = vld [vmem:[#allocation3 + $0x300] sm:$0xff] }
 0x782   :  { %6994 = vmatmul.mubr.f32.gmra.mrb[60].mxu1 %v5760_v12  ;;  %v5771_v12 = vld [vmem:[#allocation3 + $0x2da] sm:$0xff] }
 0x783   :  { %6998 = vmatprep.mubr.f32.mxu1 %v15110_v61  ;;  %9747 = vmatpush1.bf16.msra.mxu1 %v9746_v27  ;;  %v5614_v27 = vld [vmem:[#allocation3 + $0x150] sm:$0xff] }
 0x784   :  { %9748 = vmatprep.subr.bf16.mxu1 %v17712_v7  ;;  %6474 = vmatmul.mubr.f32.gmra.mrb[134].mxu0 %v5605_v42  ;;  %v5616_v42 = vld [vmem:[#allocation3 + $0x168] sm:$0xff] }
 0x785   :  { %6478 = vmatprep.mubr.f32.mxu0 %v17727_v22  ;;  %v15172_v22 = vld [vmem:[#allocation3 + $0x308] sm:$0xff] }
 0x786   :  { %6999 = vmatmul.mubr.f32.gmra.mrb[62].mxu1 %v5761_v18  ;;  %v5772_v18 = vld [vmem:[#allocation3 + $0x2ea] sm:$0xff] }
 0x787   :  { %7003 = vmatprep.mubr.f32.mxu1 %v15116_v9  ;;  %9750 = vmatpush1.bf16.msra.mxu1 %v9749_v10  ;;  %v17738_v10 = vmax.f32 %v17737_v44, 0.0  ;;  %v5844_v44 = vld [vmem:[#allocation3 + $0x31] sm:$0xff] }
 0x788   :  { %9751 = vmatprep.subr.bf16.mxu1 %v17712_v7  ;;  %6479 = vmatmul.mubr.f32.gmra.mrb[136].mxu0 %v5606_v8  ;;  %v5682_v8 = vld [vmem:[#allocation3 + $0x1b1] sm:$0xff] }
 0x789   :  { %6483 = vmatprep.mubr.f32.mxu0 %v17728_v52  ;;  %v5773_v52 = vld [vmem:[#allocation3 + $0x2f2] sm:$0xff] }
 0x78a   :  { %7004 = vmatmul.mubr.f32.gmra.mrb[64].mxu1 %v5762_v41  ;;  %v5617_v41 = vld [vmem:[#allocation3 + $0x170] sm:$0xff] }
 0x78b   :  { %7008 = vmatprep.mubr.f32.mxu1 %v15122_v48 }
 0x78c   :  { %6484 = vmatmul.mubr.f32.gmra.mrb[138].mxu0 %v5607_v54  ;;  %v15177_v54 = vld [vmem:[#allocation3 + $0x318] sm:$0xff] }
 0x78d   :  { %6488 = vmatprep.mubr.f32.mxu0 %v17729_v1  ;;  %v5774_v1 = vld [vmem:[#allocation3 + $0x302] sm:$0xff] }
 0x78e   :  { %7009 = vmatmul.mubr.f32.gmra.mrb[66].mxu1 %v5763_v36  ;;  %v5683_v36 = vld [vmem:[#allocation3 + $0x1b9] sm:$0xff] }
 0x78f   :  { %7013 = vmatprep.mubr.f32.mxu1 %v15127_v26 }
 0x790   :  { %6489 = vmatmul.mubr.f32.gmra.mrb[140].mxu0 %v5608_v58  ;;  %v10263_v58 = vld [vmem:[#allocation3] sm:$0xff] }
 0x791   :  { %6493 = vmatprep.mubr.f32.mxu0 %v17730_v31  ;;  %v15183_v31 = vld [vmem:[#allocation3 + $0x1c9] sm:$0xff] }
 0x792   :  { %7014 = vmatmul.mubr.f32.gmra.mrb[68].mxu1 %v5764_v21  ;;  %v15180_v21 = vld [vmem:[#allocation3 + $0x320] sm:$0xff] }
 0x793   :  { %7018 = vmatprep.mubr.f32.mxu1 %v15132_v15 }
 0x794   :  { %6494 = vmatmul.mubr.f32.gmra.mrb[142].mxu0 %v5609_v13  ;;  %v5840_v13 = vld [vmem:[#allocation3 + $0x330] sm:$0xff] }
 0x795   :  { %6498 = vmatprep.mubr.f32.mxu0 %v17731_v16  ;;  %v15187_v16 = vld [vmem:[#allocation3 + $0x1d1] sm:$0xff] }
 0x796   :  { %7019 = vmatmul.mubr.f32.gmra.mrb[70].mxu1 %v5765_v6  ;;  %v5776_v6 = vld [vmem:[#allocation3 + $0x31a] sm:$0xff] }
 0x797   :  { %7023 = vmatprep.mubr.f32.mxu1 %v15137_v45 }
 0x798   :  { %6499 = vmatmul.mubr.f32.gmra.mrb[144].mxu0 %v5610_v56  ;;  %v5841_v56 = vld [vmem:[#allocation3 + $0x338] sm:$0xff] }
 0x799   :  { %6503 = vmatprep.mubr.f32.mxu0 %v17732_v60  ;;  %v6260_v60 = vld [vmem:[%s17416_s7 + $0x308] sm:$0xff] }
 0x79a   :  { %7024 = vmatmul.mubr.f32.gmra.mrb[72].mxu1 %v5766_v43  ;;  %v6259_v43 = vld [vmem:[%s17416_s7 + $0x300] sm:$0xff] }
 0x79b   :  { %7028 = vmatprep.mubr.f32.mxu1 %v15142_v49 }
 0x79c   :  { %6504 = vmatmul.mubr.f32.gmra.mrb[146].mxu0 %v5611_v30  ;;  %v5777_v30 = vld [vmem:[#allocation3 + $0x322] sm:$0xff] }
 0x79d   :  { %6508 = vmatprep.mubr.f32.mxu0 %v17733_v39  ;;  %v9752_v39 = vpack.c.bf16 %v6260_v60, %v6259_v43  ;;  %v5847_v43 = vld [vmem:[#allocation3 + $0x51] sm:$0xff]  ;;  %v15280_v60 = vld [vmem:[#allocation3 + $0x229] sm:$0xff] }
 0x79e   :  { %7029 = vmatmul.mubr.f32.gmra.mrb[74].mxu1 %v5767_v19  ;;  %v15197_v19 = vld [vmem:[#allocation3 + $0x1e1] sm:$0xff] }
 0x79f   :  { %7033 = vmatprep.mubr.f32.mxu1 %v15147_v59 }
 0x7a0   :  { %6509 = vmatmul.mubr.f32.gmra.mrb[148].mxu0 %v5612_v5  ;;  %v6261_v5 = vld [vmem:[%s17416_s7 + $0x310] sm:$0xff] }
 0x7a1   :  { %6513 = vmatprep.mubr.f32.mxu0 %v17734_v4  ;;  %v5842_v4 = vld [vmem:[#allocation3 + $0x19] sm:$0xff] }
 0x7a2   :  { %7034 = vmatmul.mubr.f32.gmra.mrb[76].mxu1 %v5768_v14  ;;  %v6262_v14 = vld [vmem:[%s17416_s7 + $0x318] sm:$0xff] }
 0x7a3   :  { %7038 = vmatprep.mubr.f32.mxu1 %v15152_v24 }
 0x7a4   :  { %6514 = vmatmul.mubr.f32.gmra.mrb[150].mxu0 %v5613_v29  ;;  %v15212_v29 = vld [vmem:[#allocation3 + $0x22] sm:$0xff] }
 0x7a5   :  { %6518 = vmatprep.mubr.f32.mxu0 %v17735_v34  ;;  %v6263_v34 = vld [vmem:[%s17416_s7 + $0x320] sm:$0xff] }
 0x7a6   :  { %7039 = vmatmul.mubr.f32.gmra.mrb[78].mxu1 %v5769_v62  ;;  %v9755_v62 = vpack.c.bf16 %v6262_v14, %v6261_v5  ;;  %v6273_v5 = vld [vmem:[%s17416_s7 + $0x370] sm:$0xff]  ;;  %v5848_v14 = vld [vmem:[#allocation3 + $0x61] sm:$0xff] }
 0x7a7   :  { %7043 = vmatprep.mubr.f32.mxu1 %v15157_v46 }
 0x7a8   :  { %6519 = vmatmul.mubr.f32.gmra.mrb[152].mxu0 %v5614_v27  ;;  %v5843_v27 = vld [vmem:[#allocation3 + $0x21] sm:$0xff] }
 0x7a9   :  { %6523 = vmatprep.mubr.f32.mxu0 %v17736_v35  ;;  %v15226_v35 = vld [vmem:[#allocation3 + $0x32] sm:$0xff] }
 0x7aa   :  { %7044 = vmatmul.mubr.f32.gmra.mrb[80].mxu1 %v5770_v28  ;;  %v15224_v28 = vld [vmem:[#allocation3 + $0x1f9] sm:$0xff] }
 0x7ab   :  { %7048 = vmatprep.mubr.f32.mxu1 %v15162_v11 }
 0x7ac   :  { %6524 = vmatmul.mubr.f32.gmra.mrb[154].mxu0 %v5615_v50 }
 0x7ad   :  { %6528 = vmatprep.mubr.f32.mxu0 %v17738_v10  ;;  %v15238_v10 = vld [vmem:[#allocation3 + $0x201] sm:$0xff] }
 0x7ae   :  { %7049 = vmatmul.mubr.f32.gmra.mrb[82].mxu1 %v5771_v12  ;;  %v6265_v12 = vld [vmem:[%s17416_s7 + $0x330] sm:$0xff] }
 0x7af   :  { %7053 = vmatprep.mubr.f32.mxu1 %v15167_v17 }
 0x7b0   :  { %6529 = vmatmul.mubr.f32.gmra.mrb[156].mxu0 %v5616_v42  ;;  %v15240_v42 = vld [vmem:[#allocation3 + $0x3a] sm:$0xff] }
 0x7b1   :  { %6533 = vmatprep.mubr.f32.mxu0 %v17739_v2  ;;  %v6267_v2 = vld [vmem:[%s17416_s7 + $0x340] sm:$0xff] }
 0x7b2   :  { %7054 = vmatmul.mubr.f32.gmra.mrb[84].mxu1 %v5772_v18 }
 0x7b3   :  { %7058 = vmatprep.mubr.f32.mxu1 %v15172_v22 }
 0x7b4   :  { %6534 = vmatmul.mubr.f32.gmra.mrb[158].mxu0 %v5617_v41  ;;  %v15252_v41 = vld [vmem:[#allocation3 + $0x211] sm:$0xff] }
 0x7b5   :  { %6538 = vmatprep.mubr.f32.mxu0 %v5682_v8  ;;  %v5845_v8 = vld [vmem:[#allocation3 + $0x39] sm:$0xff] }
 0x7b6   :  { %7059 = vmatmul.mubr.f32.gmra.mrb[86].mxu1 %v5773_v52  ;;  %v15254_v52 = vld [vmem:[#allocation3 + $0x4a] sm:$0xff] }
 0x7b7   :  { %7063 = vmatprep.mubr.f32.mxu1 %v15177_v54 }
 0x7b8   :  { %6539 = vmatmul.mubr.f32.gmra.mrb[160].mxu0 %v10263_v58 }
 0x7b9   :  { %6543 = vmatprep.mubr.f32.mxu0 %v5683_v36 }
 0x7ba   :  { %7064 = vmatmul.mubr.f32.gmra.mrb[88].mxu1 %v5774_v1  ;;  %v6269_v1 = vld [vmem:[%s17416_s7 + $0x350] sm:$0xff] }
 0x7bb   :  { %7068 = vmatprep.mubr.f32.mxu1 %v15180_v21 }
 0x7bc   :  { %6544 = vmatmul.mubr.f32.gmra.mrb[162].mxu0 %v10263_v58  ;;  %v5846_v58 = vld [vmem:[#allocation3 + $0x49] sm:$0xff] }
 0x7bd   :  { %6548 = vmatprep.mubr.f32.mxu0 %v15183_v31 }
 0x7be   :  { %7069 = vmatmul.mubr.f32.gmra.mrb[90].mxu1 %v5775_v55  ;;  %v15266_v55 = vld [vmem:[#allocation3 + $0x219] sm:$0xff] }
 0x7bf   :  { %7073 = vmatprep.mubr.f32.mxu1 %v5840_v13  ;;  %v15268_v13 = vld [vmem:[#allocation3 + $0x52] sm:$0xff] }
 0x7c0   :  { %6549 = vmatmul.mubr.f32.gmra.mrb[164].mxu0 %v14936_v51  ;;  %v15199_v51 = vld [vmem:[#allocation3 + $0x1a] sm:$0xff] }
 0x7c1   :  { %6553 = vmatprep.mubr.f32.mxu0 %v15187_v16 }
 0x7c2   :  { %7074 = vmatmul.mubr.f32.gmra.mrb[92].mxu1 %v5776_v6 }
 0x7c3   :  { %7078 = vmatprep.mubr.f32.mxu1 %v5841_v56  ;;  %v6271_v56 = vld [vmem:[%s17416_s7 + $0x360] sm:$0xff] }
 0x7c4   :  { %6554 = vmatmul.mubr.f32.gmra.mrb[166].mxu0 %v14942_v47  ;;  %v15210_v47 = vld [vmem:[#allocation3 + $0x1e9] sm:$0xff] }
 0x7c5   :  { %6558 = vmatprep.mubr.f32.mxu0 %v15197_v19 }
 0x7c6   :  { %7079 = vmatmul.mubr.f32.gmra.mrb[94].mxu1 %v5777_v30  ;;  %v15282_v30 = vld [vmem:[#allocation3 + $0x62] sm:$0xff] }
 0x7c7   :  { %7148 = vmatprep.mubr.f32.mxu1 %v15199_v51 }
 0x7c8   :  { %6559 = vmatmul.mubr.f32.gmra.mrb[168].mxu0 %v14954_v57  ;;  %v6264_v57 = vld [vmem:[%s17416_s7 + $0x328] sm:$0xff] }
 0x7c9   :  { %6563 = vmatprep.mubr.f32.mxu0 %v15210_v47  ;;  %v9758_v50 = vpack.c.bf16 %v6264_v57, %v6263_v34  ;;  %v6275_v57 = vld [vmem:[%s17416_s7 + $0x380] sm:$0xff] }
 0x7ca   :  { %7149 = vmatmul.mubr.f32.vlgmr.msra.gmra.mrb[96].mxu1 %v5842_v4  ;;  %v15294_v4 = vld [vmem:[#allocation3 + $0x231] sm:$0xff] }
 0x7cb   :  { %9753 = vmatpush1.bf16.msra.mxu1 %v9752_v39  ;;  %7153 = vmatprep.mubr.f32.mxu1 %v15212_v29 }
 0x7cc   :  { %9754 = vmatprep.subr.bf16.mxu1 %v17712_v7  ;;  %6564 = vmatmul.mubr.f32.gmra.mrb[170].mxu0 %v14966_v38  ;;  %v6266_v38 = vld [vmem:[%s17416_s7 + $0x338] sm:$0xff] }
 0x7cd   :  { %6568 = vmatprep.mubr.f32.mxu0 %v15224_v28  ;;  %v9761_v18 = vpack.c.bf16 %v6266_v38, %v6265_v12  ;;  %v15310_v12 = vld [vmem:[#allocation3 + $0x7a] sm:$0xff] }
 0x7ce   :  { %7154 = vmatmul.mubr.f32.gmra.mrb[98].mxu1 %v5843_v27  ;;  %v5849_v27 = vld [vmem:[#allocation3 + $0x69] sm:$0xff] }
 0x7cf   :  { %7158 = vmatprep.mubr.f32.mxu1 %v15226_v35  ;;  %9756 = vmatpush1.bf16.msra.mxu1 %v9755_v62  ;;  %v15296_v62 = vld [vmem:[#allocation3 + $0x6a] sm:$0xff] }
 0x7d0   :  { %9757 = vmatprep.subr.bf16.mxu1 %v17712_v7  ;;  %6569 = vmatmul.mubr.f32.gmra.mrb[172].mxu0 %v14978_v53  ;;  %v6268_v53 = vld [vmem:[%s17416_s7 + $0x348] sm:$0xff] }
 0x7d1   :  { %6573 = vmatprep.mubr.f32.mxu0 %v15238_v10  ;;  %v9764_v36 = vpack.c.bf16 %v6268_v53, %v6267_v2  ;;  %v15322_v2 = vld [vmem:[#allocation3 + $0x249] sm:$0xff] }
 0x7d2   :  { %7159 = vmatmul.mubr.f32.gmra.mrb[100].mxu1 %v5844_v44  ;;  %v6277_v44 = vld [vmem:[%s17416_s7 + $0x390] sm:$0xff]  ;;  %v15324_v53 = vld [vmem:[#allocation3 + $0x82] sm:$0xff] }
 0x7d3   :  { %7163 = vmatprep.mubr.f32.mxu1 %v15240_v42  ;;  %9759 = vmatpush1.bf16.msra.mxu1 %v9758_v50  ;;  %v15308_v50 = vld [vmem:[#allocation3 + $0x241] sm:$0xff] }
 0x7d4   :  { %9760 = vmatprep.subr.bf16.mxu1 %v17712_v7  ;;  %6574 = vmatmul.mubr.f32.gmra.mrb[174].mxu0 %v14990_v23  ;;  %v6270_v23 = vld [vmem:[%s17416_s7 + $0x358] sm:$0xff] }
 0x7d5   :  { %6578 = vmatprep.mubr.f32.mxu0 %v15252_v41  ;;  %v9767_v6 = vpack.c.bf16 %v6270_v23, %v6269_v1  ;;  %v5851_v1 = vld [vmem:[#allocation3 + $0x81] sm:$0xff]  ;;  %v15336_v23 = vld [vmem:[#allocation3 + $0x259] sm:$0xff] }
 0x7d6   :  { %7164 = vmatmul.mubr.f32.gmra.mrb[102].mxu1 %v5845_v8 }
 0x7d7   :  { %7168 = vmatprep.mubr.f32.mxu1 %v15254_v52  ;;  %9762 = vmatpush1.bf16.msra.mxu1 %v9761_v18  ;;  %v5850_v18 = vld [vmem:[#allocation3 + $0x79] sm:$0xff] }
 0x7d8   :  { %9763 = vmatprep.subr.bf16.mxu1 %v17712_v7  ;;  %6579 = vmatmul.mubr.f32.gmra.mrb[176].mxu0 %v15002_v3  ;;  %v6272_v3 = vld [vmem:[%s17416_s7 + $0x368] sm:$0xff] }
 0x7d9   :  { %6583 = vmatprep.mubr.f32.mxu0 %v15266_v55  ;;  %v9770_v39 = vpack.c.bf16 %v6272_v3, %v6271_v56  ;;  %v5852_v56 = vld [vmem:[#allocation3 + $0x91] sm:$0xff]  ;;  %v15344_v3 = vld [vmem:[#allocation3 + $0x261] sm:$0xff] }
 0x7da   :  { %7169 = vmatmul.mubr.f32.gmra.mrb[104].mxu1 %v5846_v58  ;;  %v15338_v58 = vld [vmem:[#allocation3 + $0x92] sm:$0xff] }
 0x7db   :  { %7173 = vmatprep.mubr.f32.mxu1 %v15268_v13  ;;  %9765 = vmatpush1.bf16.msra.mxu1 %v9764_v36  ;;  %v6279_v36 = vld [vmem:[%s17416_s7 + $0x3a0] sm:$0xff] }
 0x7dc   :  { %9766 = vmatprep.subr.bf16.mxu1 %v17712_v7  ;;  %6584 = vmatmul.mubr.f32.gmra.mrb[178].mxu0 %v15014_v0  ;;  %v6274_v0 = vld [vmem:[%s17416_s7 + $0x378] sm:$0xff] }
 0x7dd   :  { %6588 = vmatprep.mubr.f32.mxu0 %v15280_v60  ;;  %v9773_v34 = vpack.c.bf16 %v6274_v0, %v6273_v5  ;;  %v15354_v5 = vld [vmem:[#allocation3 + $0xaa] sm:$0xff]  ;;  %v15359_v0 = vld [vmem:[#allocation3 + $0x279] sm:$0xff] }
 0x7de   :  { %7174 = vmatmul.mubr.f32.gmra.mrb[106].mxu1 %v5847_v43  ;;  %v5853_v43 = vld [vmem:[#allocation3 + $0x99] sm:$0xff] }
 0x7df   :  { %7178 = vmatprep.mubr.f32.mxu1 %v15282_v30  ;;  %9768 = vmatpush1.bf16.msra.mxu1 %v9767_v6 }
 0x7e0   :  { %9769 = vmatprep.subr.bf16.mxu1 %v17712_v7  ;;  %6589 = vmatmul.mubr.f32.gmra.mrb[180].mxu0 %v15026_v63  ;;  %v6276_v63 = vld [vmem:[%s17416_s7 + $0x388] sm:$0xff] }
 0x7e1   :  { %6593 = vmatprep.mubr.f32.mxu0 %v15294_v4  ;;  %v9776_v38 = vpack.c.bf16 %v6276_v63, %v6275_v57  ;;  %v5855_v63 = vld [vmem:[#allocation3 + $0xb1] sm:$0xff] }
 0x7e2   :  { %7179 = vmatmul.mubr.f32.gmra.mrb[108].mxu1 %v5848_v14  ;;  %v15361_v14 = vld [vmem:[#allocation3 + $0xb2] sm:$0xff] }
 0x7e3   :  { %7183 = vmatprep.mubr.f32.mxu1 %v15296_v62  ;;  %9771 = vmatpush1.bf16.msra.mxu1 %v9770_v39  ;;  %v15352_v39 = vld [vmem:[#allocation3 + $0x271] sm:$0xff] }
 0x7e4   :  { %9772 = vmatprep.subr.bf16.mxu1 %v17712_v7  ;;  %6594 = vmatmul.mubr.f32.gmra.mrb[182].mxu0 %v15038_v33  ;;  %v6278_v33 = vld [vmem:[%s17416_s7 + $0x398] sm:$0xff] }
 0x7e5   :  { %6598 = vmatprep.mubr.f32.mxu0 %v15308_v50  ;;  %v9779_v8 = vpack.c.bf16 %v6278_v33, %v6277_v44  ;;  %v15380_v44 = vld [vmem:[#allocation3 + $0x291] sm:$0xff] }
 0x7e6   :  { %7184 = vmatmul.mubr.f32.gmra.mrb[110].mxu1 %v5849_v27  ;;  %v15374_v27 = vld [vmem:[#allocation3 + $0xc2] sm:$0xff]  ;;  %v15382_v33 = vld [vmem:[#allocation3 + $0xca] sm:$0xff] }
 0x7e7   :  { %7188 = vmatprep.mubr.f32.mxu1 %v15310_v12  ;;  %9774 = vmatpush1.bf16.msra.mxu1 %v9773_v34  ;;  %v6282_v34 = vld [vmem:[%s17416_s7 + $0x3b8] sm:$0xff] }
 0x7e8   :  { %9775 = vmatprep.subr.bf16.mxu1 %v17712_v7  ;;  %6599 = vmatmul.mubr.f32.gmra.mrb[184].mxu0 %v15050_v20  ;;  %v6280_v20 = vld [vmem:[%s17416_s7 + $0x3a8] sm:$0xff] }
 0x7e9   :  { %6603 = vmatprep.mubr.f32.mxu0 %v15322_v2  ;;  %v9782_v6 = vpack.c.bf16 %v6280_v20, %v6279_v36  ;;  %v15394_v36 = vld [vmem:[#allocation3 + $0x2a9] sm:$0xff] }
 0x7ea   :  { %7189 = vmatmul.mubr.f32.gmra.mrb[112].mxu1 %v5850_v18  ;;  %v15387_v18 = vld [vmem:[#allocation3 + $0x2a1] sm:$0xff] }
 0x7eb   :  { %7193 = vmatprep.mubr.f32.mxu1 %v15324_v53  ;;  %9777 = vmatpush1.bf16.msra.mxu1 %v9776_v38  ;;  %v5856_v38 = vld [vmem:[#allocation3 + $0xc1] sm:$0xff] }
 0x7ec   :  { %9778 = vmatprep.subr.bf16.mxu1 %v17712_v7  ;;  %6604 = vmatmul.mubr.f32.gmra.mrb[186].mxu0 %v15062_v25  ;;  %v15346_v25 = vld [vmem:[#allocation3 + $0x9a] sm:$0xff]  ;;  %v15396_v20 = vld [vmem:[#allocation3 + $0xe2] sm:$0xff] }
 0x7ed   :  { %6608 = vmatprep.mubr.f32.mxu0 %v15336_v23 }
 0x7ee   :  { %7194 = vmatmul.mubr.f32.gmra.mrb[114].mxu1 %v5851_v1  ;;  %v6284_v1 = vld [vmem:[%s17416_s7 + $0x3c8] sm:$0xff] }
 0x7ef   :  { %7198 = vmatprep.mubr.f32.mxu1 %v15338_v58  ;;  %9780 = vmatpush1.bf16.msra.mxu1 %v9779_v8  ;;  %v15389_v8 = vld [vmem:[#allocation3 + $0xda] sm:$0xff] }
 0x7f0   :  { %9781 = vmatprep.subr.bf16.mxu1 %v17712_v7  ;;  %6609 = vmatmul.mubr.f32.gmra.mrb[188].mxu0 %v15074_v40  ;;  %v5854_v40 = vld [vmem:[#allocation3 + $0xa9] sm:$0xff] }
 0x7f1   :  { %6613 = vmatprep.mubr.f32.mxu0 %v15344_v3 }
 0x7f2   :  { %7199 = vmatmul.mubr.f32.gmra.mrb[116].mxu1 %v5852_v56  ;;  %v5859_v56 = vld [vmem:[#allocation3 + $0xe1] sm:$0xff] }
 0x7f3   :  { %7203 = vmatprep.mubr.f32.mxu1 %v15346_v25  ;;  %9783 = vmatpush1.bf16.msra.mxu1 %v9782_v6 }
 0x7f4   :  { %9784 = vmatprep.subr.bf16.mxu1 %v17712_v7  ;;  %6614 = vmatmul.mubr.f32.gmra.mrb[190].mxu0 %v15086_v32  ;;  %v6281_v32 = vld [vmem:[%s17416_s7 + $0x3b0] sm:$0xff] }
 0x7f5   :  { %6618 = vmatprep.mubr.f32.mxu0 %v15352_v39  ;;  %v9785_v57 = vpack.c.bf16 %v6282_v34, %v6281_v32  ;;  %v15415_v32 = vld [vmem:[#allocation3 + $0x2c1] sm:$0xff] }
 0x7f6   :  { %7204 = vmatmul.mubr.f32.gmra.mrb[118].mxu1 %v5853_v43  ;;  %v15409_v43 = vld [vmem:[#allocation3 + $0xf2] sm:$0xff]  ;;  %v15417_v34 = vld [vmem:[#allocation3 + $0xfa] sm:$0xff] }
 0x7f7   :  { %7208 = vmatprep.mubr.f32.mxu1 %v15354_v5  ;;  %9786 = vmatpush1.bf16.msra.mxu1 %v9785_v57  ;;  %v15422_v57 = vld [vmem:[#allocation3 + $0x2d1] sm:$0xff] }
 0x7f8   :  { %6619 = vmatmul.mubr.f32.gmra.mrb[192].mxu0 %v15098_v37  ;;  %v15372_v37 = vld [vmem:[#allocation3 + $0x289] sm:$0xff]  ;;  %9787 = vmatprep.subr.bf16.mxu1 %v17712_v7 }
 0x7f9   :  { %6623 = vmatprep.mubr.f32.mxu0 %v15359_v0 }
 0x7fa   :  { %7209 = vmatmul.mubr.f32.gmra.mrb[120].mxu1 %v5854_v40  ;;  %v5860_v40 = vld [vmem:[#allocation3 + $0xf1] sm:$0xff] }
 0x7fb   :  { %7213 = vmatprep.mubr.f32.mxu1 %v15361_v14 }
 0x7fc   :  { %6624 = vmatmul.mubr.f32.gmra.mrb[194].mxu0 %v15110_v61  ;;  %v5857_v61 = vld [vmem:[#allocation3 + $0xc9] sm:$0xff] }
 0x7fd   :  { %6628 = vmatprep.mubr.f32.mxu0 %v15372_v37 }
 0x7fe   :  { %7214 = vmatmul.mubr.f32.gmra.mrb[122].mxu1 %v5855_v63  ;;  %v15424_v63 = vld [vmem:[#allocation3 + $0x10a] sm:$0xff] }
 0x7ff   :  { %7218 = vmatprep.mubr.f32.mxu1 %v15374_v27 }
 0x800   :  { %6629 = vmatmul.mubr.f32.gmra.mrb[196].mxu0 %v15116_v9  ;;  %v5858_v9 = vld [vmem:[#allocation3 + $0xd9] sm:$0xff] }
 0x801   :  { %6633 = vmatprep.mubr.f32.mxu0 %v15380_v44 }
 0x802   :  { %7219 = vmatmul.mubr.f32.gmra.mrb[124].mxu1 %v5856_v38  ;;  %v15429_v38 = vld [vmem:[#allocation3 + $0x2d9] sm:$0xff] }
 0x803   :  { %7223 = vmatprep.mubr.f32.mxu1 %v15382_v33  ;;  %17740 = vst [vmem:[#allocation9_spill] sm:$0xff] %v15429_v38 }
 0x804   :  { %6634 = vmatmul.mubr.f32.gmra.mrb[198].mxu0 %v15122_v48  ;;  %v6283_v48 = vld [vmem:[%s17416_s7 + $0x3c0] sm:$0xff] }
 0x805   :  { %6638 = vmatprep.mubr.f32.mxu0 %v15387_v18  ;;  %v9788_v6 = vpack.c.bf16 %v6284_v1, %v6283_v48  ;;  %v5863_v1 = vld [vmem:[#allocation3 + $0x111] sm:$0xff] }
 0x806   :  { %7224 = vmatmul.mubr.f32.gmra.mrb[126].mxu1 %v5857_v61  ;;  %v15431_v61 = vld [vmem:[#allocation3 + $0x112] sm:$0xff] }
 0x807   :  { %7228 = vmatprep.mubr.f32.mxu1 %v15389_v8  ;;  %9789 = vmatpush1.bf16.msra.mxu1 %v9788_v6  ;;  %v15444_v6 = vld [vmem:[#allocation3 + $0x122] sm:$0xff] }
 0x808   :  { %6639 = vmatmul.mubr.f32.gmra.mrb[200].mxu0 %v15127_v26  ;;  %v15407_v26 = vld [vmem:[#allocation3 + $0x2b9] sm:$0xff]  ;;  %9790 = vmatprep.subr.bf16.mxu1 %v17712_v7 }
 0x809   :  { %6643 = vmatprep.mubr.f32.mxu0 %v15394_v36 }
 0x80a   :  { %7229 = vmatmul.mubr.f32.gmra.mrb[128].mxu1 %v5858_v9  ;;  %v6286_v9 = vld [vmem:[%s17416_s7 + $0x3d8] sm:$0xff] }
 0x80b   :  { %7233 = vmatprep.mubr.f32.mxu1 %v15396_v20 }
 0x80c   :  { %6644 = vmatmul.mubr.f32.gmra.mrb[202].mxu0 %v15132_v15  ;;  %v5861_v15 = vld [vmem:[#allocation3 + $0xf9] sm:$0xff] }
 0x80d   :  { %6648 = vmatprep.mubr.f32.mxu0 %v15407_v26 }
 0x80e   :  { %7234 = vmatmul.mubr.f32.gmra.mrb[130].mxu1 %v5859_v56  ;;  %v5864_v56 = vld [vmem:[#allocation3 + $0x121] sm:$0xff] }
 0x80f   :  { %7238 = vmatprep.mubr.f32.mxu1 %v15409_v43 }
 0x810   :  { %6649 = vmatmul.mubr.f32.gmra.mrb[204].mxu0 %v15137_v45  ;;  %v5862_v45 = vld [vmem:[#allocation3 + $0x109] sm:$0xff] }
 0x811   :  { %6653 = vmatprep.mubr.f32.mxu0 %v15415_v32 }
 0x812   :  { %7239 = vmatmul.mubr.f32.gmra.mrb[132].mxu1 %v5860_v40  ;;  %v15450_v40 = vld [vmem:[#allocation3 + $0x2f1] sm:$0xff] }
 0x813   :  { %7243 = vmatprep.mubr.f32.mxu1 %v15417_v34  ;;  %17742 = vst [vmem:[#allocation11_spill] sm:$0xff] %v15450_v40 }
 0x814   :  { %6654 = vmatmul.mubr.f32.gmra.mrb[206].mxu0 %v15142_v49  ;;  %v6285_v49 = vld [vmem:[%s17416_s7 + $0x3d0] sm:$0xff] }
 0x815   :  { %6658 = vmatprep.mubr.f32.mxu0 %v15422_v57  ;;  %v9791_v48 = vpack.c.bf16 %v6286_v9, %v6285_v49  ;;  %v5865_v9 = vld [vmem:[#allocation3 + $0x129] sm:$0xff] }
 0x816   :  { %7244 = vmatmul.mubr.f32.gmra.mrb[134].mxu1 %v5861_v15  ;;  %v15452_v15 = vld [vmem:[#allocation3 + $0x12a] sm:$0xff] }
 0x817   :  { %7248 = vmatprep.mubr.f32.mxu1 %v15424_v63  ;;  %9792 = vmatpush1.bf16.msra.mxu1 %v9791_v48  ;;  %v15465_v48 = vld [vmem:[#allocation3 + $0x13a] sm:$0xff] }
 0x818   :  { %6659 = vmatmul.mubr.f32.gmra.mrb[208].mxu0 %v15147_v59  ;;  %v15442_v59 = vld [vmem:[#allocation3 + $0x2e9] sm:$0xff]  ;;  %9793 = vmatprep.subr.bf16.mxu1 %v17712_v7 }
 0x819   :  { %6663 = vmatprep.mubr.f32.mxu0 %v15429_v38  ;;  %17741 = vst [vmem:[#allocation8_spill] sm:$0xff] %v15442_v59  ;;  %v5936_v38 = vld [vmem:[#allocation3 + $0x182] sm:$0xff] }
 0x81a   :  { %7249 = vmatmul.mubr.f32.gmra.mrb[136].mxu1 %v5862_v45  ;;  %v6292_v45 = vld [vmem:[%s17416_s7 + $0x408] sm:$0xff] }
 0x81b   :  { %7253 = vmatprep.mubr.f32.mxu1 %v15431_v61 }
 0x81c   :  { %6664 = vmatmul.mubr.f32.gmra.mrb[210].mxu0 %v15152_v24  ;;  %v6291_v24 = vld [vmem:[%s17416_s7 + $0x400] sm:$0xff] }
 0x81d   :  { %6668 = vmatprep.mubr.f32.mxu0 %v15442_v59  ;;  %v9799_v49 = vpack.c.bf16 %v6292_v45, %v6291_v24  ;;  %v15472_v24 = vld [vmem:[#allocation3 + $0x142] sm:$0xff] }
 0x81e   :  { %7254 = vmatmul.mubr.f32.gmra.mrb[138].mxu1 %v5863_v1  ;;  %v5866_v1 = vld [vmem:[#allocation3 + $0x139] sm:$0xff]  ;;  %v6288_v45 = vld [vmem:[%s17416_s7 + $0x3e8] sm:$0xff] }
 0x81f   :  { %7258 = vmatprep.mubr.f32.mxu1 %v15444_v6  ;;  %9800 = vmatprep.subr.bf16.mxu0 %v9799_v49 }
 0x820   :  { %6669 = vmatmul.mubr.f32.gmra.mrb[212].mxu0 %v15157_v46  ;;  %v15463_v46 = vld [vmem:[#allocation3 + $0x301] sm:$0xff] }
 0x821   :  { %6673 = vmatprep.mubr.f32.mxu0 %v15450_v40  ;;  %17743 = vst [vmem:[#allocation10_spill] sm:$0xff] %v15463_v46  ;;  %v15491_v40 = vld [vmem:[#allocation3 + $0x321] sm:$0xff] }
 0x822   :  { %7259 = vmatmul.mubr.f32.gmra.mrb[140].mxu1 %v5864_v56  ;;  %v15470_v56 = vld [vmem:[#allocation3 + $0x309] sm:$0xff]  ;;  %17747 = vst [vmem:[#allocation14_spill] sm:$0xff] %v15491_v40 }
 0x823   :  { %7263 = vmatprep.mubr.f32.mxu1 %v15452_v15  ;;  %17744 = vst [vmem:[#allocation13_spill] sm:$0xff] %v15470_v56 }
 0x824   :  { %6674 = vmatmul.mubr.f32.gmra.mrb[214].mxu0 %v15162_v11  ;;  %v6287_v11 = vld [vmem:[%s17416_s7 + $0x3e0] sm:$0xff] }
 0x825   :  { %6678 = vmatprep.mubr.f32.mxu0 %v15463_v46  ;;  %v5867_v46 = vld [vmem:[#allocation3 + $0x141] sm:$0xff] }
 0x826   :  { %7264 = vmatmul.mubr.f32.gmra.mrb[142].mxu1 %v5865_v9  ;;  %v9794_v9 = vpack.c.bf16 %v6288_v45, %v6287_v11  ;;  %v15493_v11 = vld [vmem:[#allocation3 + $0x15a] sm:$0xff]  ;;  %v5714_v45 = vld [vmem:[#allocation3 + $0x2] sm:$0xff] }
 0x827   :  { %7268 = vmatprep.mubr.f32.mxu1 %v15465_v48  ;;  %17748 = vst [vmem:[#allocation17_spill] sm:$0xff] %v15493_v11 }
 0x828   :  { %6679 = vmatmul.mubr.f32.gmra.mrb[216].mxu0 %v15167_v17  ;;  %v15483_v17 = vld [vmem:[#allocation3 + $0x319] sm:$0xff]  ;;  %9795 = vmatpush1.bf16.msra.mxu1 %v9794_v9  ;;  %v5870_v9 = vld [vmem:[#allocation3 + $0x169] sm:$0xff] }
 0x829   :  { %6683 = vmatprep.mubr.f32.mxu0 %v15470_v56  ;;  %17745 = vst [vmem:[#allocation12_spill] sm:$0xff] %v15483_v17  ;;  %9796 = vmatprep.subr.bf16.mxu1 %v17712_v7  ;;  %v5868_v56 = vld [vmem:[#allocation3 + $0x151] sm:$0xff] }
 0x82a   :  { %7269 = vmatmul.mubr.f32.gmra.mrb[144].mxu1 %v5866_v1  ;;  %v15485_v1 = vld [vmem:[#allocation3 + $0x152] sm:$0xff] }
 0x82b   :  { %7273 = vmatprep.mubr.f32.mxu1 %v15472_v24  ;;  %17746 = vst [vmem:[#allocation15_spill] sm:$0xff] %v15485_v1  ;;  %v6293_v7 = vld [vmem:[%s17416_s7 + $0x410] sm:$0xff] }
 0x82c   :  { %6684 = vmatmul.mubr.f32.gmra.mrb[218].mxu0 %v15172_v22  ;;  %v5869_v22 = vld [vmem:[#allocation3 + $0x159] sm:$0xff] }
 0x82d   :  { %6688 = vmatprep.mubr.f32.mxu0 %v15483_v17  ;;  %v5779_v17 = vld [vmem:[#allocation3 + $0x20] sm:$0xff] }
 0x82e   :  { %7274 = vmatmul.mubr.f32.gmra.mrb[146].mxu1 %v5867_v46  ;;  %v5778_v46 = vld [vmem:[#allocation3 + $0x18] sm:$0xff] }
 0x82f   :  { %7278 = vmatprep.mubr.f32.mxu1 %v15485_v1  ;;  %v15522_v1 = vld [vmem:[#allocation3 + $0x30] sm:$0xff] }
 0x830   :  { %6689 = vmatmul.mubr.f32.gmra.mrb[220].mxu0 %v15177_v54  ;;  %v6294_v54 = vld [vmem:[%s17416_s7 + $0x418] sm:$0xff] }
 0x831   :  { %6693 = vmatprep.mubr.f32.mxu0 %v15491_v40  ;;  %v15507_v40 = vld [vmem:[#allocation3 + $0x172] sm:$0xff] }
 0x832   :  { %7279 = vmatmul.mubr.f32.gmra.mrb[148].mxu1 %v5868_v56  ;;  %v15504_v56 = vld [vmem:[#allocation3 + $0x16a] sm:$0xff] }
 0x833   :  { %7283 = vmatprep.mubr.f32.mxu1 %v15493_v11  ;;  %17749 = vst [vmem:[#allocation16_spill] sm:$0xff] %v15504_v56  ;;  %v6295_v11 = vld [vmem:[%s17416_s7 + $0x420] sm:$0xff] }
 0x834   :  { %6694 = vmatmul.mubr.f32.gmra.mrb[222].mxu0 %v15180_v21  ;;  %v9803_v21 = vpack.c.bf16 %v6294_v54, %v6293_v7  ;;  %v6290_v7 = vld [vmem:[%s17416_s7 + $0x3f8] sm:$0xff] }
 0x835   :  { %6763 = vmatprep.mubr.f32.mxu0 %v5778_v46  ;;  %v5715_v46 = vld [vmem:[#allocation3 + $0xa] sm:$0xff] }
 0x836   :  { %7284 = vmatmul.mubr.f32.gmra.mrb[150].mxu1 %v5869_v22  ;;  %v6296_v22 = vld [vmem:[%s17416_s7 + $0x428] sm:$0xff] }
 0x837   :  { %7288 = vmatprep.mubr.f32.mxu1 %v15504_v56  ;;  %v6289_v56 = vld [vmem:[%s17416_s7 + $0x3f0] sm:$0xff]  ;;  %v9807_v59 = vpack.c.bf16 %v6296_v22, %v6295_v11  ;;  %v6299_v22 = vld [vmem:[%s17416_s7 + $0x440] sm:$0xff] }
 0x838   :  { %6764 = vmatmul.mubr.f32.vlgmr.msra.gmra.mrb[96].mxu0 %v5714_v45  ;;  %v9797_v54 = vpack.c.bf16 %v6290_v7, %v6289_v56  ;;  %v5871_v45 = vld [vmem:[#allocation3 + $0x171] sm:$0xff] }
 0x839   :  { %6768 = vmatprep.mubr.f32.mxu0 %v5779_v17  ;;  %9802 = vmatpush3.bf16.msra.mxu0 %v9799_v49  ;;  %v6297_v17 = vld [vmem:[%s17416_s7 + $0x430] sm:$0xff]  ;;  %v5872_v49 = vld [vmem:[#allocation3 + $0x181] sm:$0xff]  ;;  %v15532_v56 = vld [vmem:[#allocation3 + $0x38] sm:$0xff] }
 0x83a   :  { %7289 = vmatmul.mubr.f32.gmra.mrb[152].mxu1 %v5870_v9  ;;  %9804 = vmatprep.subr.bf16.mxu0 %v9803_v21  ;;  %v6298_v9 = vld [vmem:[%s17416_s7 + $0x438] sm:$0xff]  ;;  %v5937_v7 = vld [vmem:[#allocation3 + $0x18a] sm:$0xff] }
 0x83b   :  { %7293 = vmatprep.mubr.f32.mxu1 %v15507_v40  ;;  %9798 = vmatpush1.bf16.msra.mxu1 %v9797_v54  ;;  %v9811_v11 = vpack.c.bf16 %v6298_v9, %v6297_v17  ;;  %v6301_v54 = vld [vmem:[%s17416_s7 + $0x450] sm:$0xff]  ;;  %v6303_v9 = vld [vmem:[%s17416_s7 + $0x460] sm:$0xff] }
 0x83c   :  { %6769 = vmatmul.mubr.f32.gmra.mrb[98].mxu0 %v5715_v46  ;;  %v6300_v46 = vld [vmem:[%s17416_s7 + $0x448] sm:$0xff] }
 0x83d   :  { %6773 = vmatprep.mubr.f32.mxu0 %v15522_v1  ;;  %9806 = vmatpush3.bf16.msra.mxu0 %v9803_v21  ;;  %v9815_v21 = vpack.c.bf16 %v6300_v46, %v6299_v22  ;;  %v5938_v17 = vld [vmem:[#allocation3 + $0x1ca] sm:$0xff]  ;;  %v5939_v22 = vld [vmem:[#allocation3 + $0x1d2] sm:$0xff] }
 0x83e   :  { %7294 = vmatmul.mubr.f32.gmra.mrb[154].mxu1 %v5871_v45  ;;  %9808 = vmatprep.subr.bf16.mxu0 %v9807_v59  ;;  %v6302_v45 = vld [vmem:[%s17416_s7 + $0x458] sm:$0xff]  ;;  %v6305_v46 = vld [vmem:[%s17416_s7 + $0x470] sm:$0xff] }
 0x83f   :  { %7298 = vmatprep.mubr.f32.mxu1 %v5936_v38  ;;  %v5873_v38 = vld [vmem:[#allocation3 + $0x189] sm:$0xff] }
 0x840   :  { %6774 = vmatmul.mubr.f32.gmra.mrb[100].mxu0 %v15199_v51  ;;  %v15542_v51 = vld [vmem:[#allocation3 + $0x48] sm:$0xff] }
 0x841   :  { %6778 = vmatprep.mubr.f32.mxu0 %v15532_v56  ;;  %9810 = vmatpush3.bf16.msra.mxu0 %v9807_v59  ;;  %v9819_v59 = vpack.c.bf16 %v6302_v45, %v6301_v54  ;;  %v15588_v54 = vld [vmem:[#allocation3 + $0x1fa] sm:$0xff] }
 0x842   :  { %7299 = vmatmul.mubr.f32.gmra.mrb[156].mxu1 %v5872_v49  ;;  %9812 = vmatprep.subr.bf16.mxu0 %v9811_v11  ;;  %v6304_v49 = vld [vmem:[%s17416_s7 + $0x468] sm:$0xff] }
 0x843   :  { %7303 = vmatprep.mubr.f32.mxu1 %v5937_v7  ;;  %v6306_v7 = vld [vmem:[%s17416_s7 + $0x478] sm:$0xff] }
 0x844   :  { %6779 = vmatmul.mubr.f32.gmra.mrb[102].mxu0 %v15212_v29  ;;  %v15552_v29 = vld [vmem:[#allocation3 + $0x50] sm:$0xff] }
 0x845   :  { %6783 = vmatprep.mubr.f32.mxu0 %v15542_v51  ;;  %9814 = vmatpush3.bf16.msra.mxu0 %v9811_v11  ;;  %v9823_v11 = vpack.c.bf16 %v6304_v49, %v6303_v9  ;;  %v15719_v49 = vld [vmem:[#allocation3 + $0x138] sm:$0xff] }
 0x846   :  { %7304 = vmatmul.mubr.f32.gmra.mrb[158].mxu1 %v5873_v38  ;;  %9816 = vmatprep.subr.bf16.mxu0 %v9815_v21  ;;  %v15577_v38 = vld [vmem:[#allocation3 + $0x68] sm:$0xff] }
 0x847   :  { %7308 = vmatprep.mubr.f32.mxu1 %v5938_v17  ;;  %v15709_v17 = vld [vmem:[#allocation3 + $0x128] sm:$0xff] }
 0x848   :  { %6784 = vmatmul.mubr.f32.gmra.mrb[104].mxu0 %v15226_v35  ;;  %v15563_v35 = vld [vmem:[#allocation3 + $0x60] sm:$0xff] }
 0x849   :  { %6788 = vmatprep.mubr.f32.mxu0 %v15552_v29  ;;  %9818 = vmatpush3.bf16.msra.mxu0 %v9815_v21  ;;  %v15580_v21 = vld [vmem:[#allocation3 + $0x1ea] sm:$0xff] }
 0x84a   :  { %7309 = vmatmul.mubr.f32.gmra.mrb[32].mxu1 %v15183_v31  ;;  %9820 = vmatprep.subr.bf16.mxu0 %v9819_v59  ;;  %v15572_v31 = vld [vmem:[#allocation3 + $0x1e2] sm:$0xff] }
 0x84b   :  { %7313 = vmatprep.mubr.f32.mxu1 %v5939_v22 }
 0x84c   :  { %6789 = vmatmul.mubr.f32.gmra.mrb[106].mxu0 %v15240_v42  ;;  %v9827_v42 = vpack.c.bf16 %v6306_v7, %v6305_v46  ;;  %v15739_v7 = vld [vmem:[#allocation3 + $0x150] sm:$0xff] }
 0x84d   :  { %6793 = vmatprep.mubr.f32.mxu0 %v15563_v35  ;;  %9822 = vmatpush3.bf16.msra.mxu0 %v9819_v59 }
 0x84e   :  { %7314 = vmatmul.mubr.f32.gmra.mrb[34].mxu1 %v15187_v16  ;;  %9824 = vmatprep.subr.bf16.mxu0 %v9823_v11  ;;  %v15585_v16 = vld [vmem:[#allocation3 + $0x78] sm:$0xff] }
 0x84f   :  { %7318 = vmatprep.mubr.f32.mxu1 %v15572_v31 }
 0x850   :  { %6794 = vmatmul.mubr.f32.gmra.mrb[108].mxu0 %v15254_v52  ;;  %v15596_v52 = vld [vmem:[#allocation3 + $0x202] sm:$0xff] }
 0x851   :  { %6798 = vmatprep.mubr.f32.mxu0 %v15577_v38  ;;  %9826 = vmatpush3.bf16.msra.mxu0 %v9823_v11  ;;  %v15729_v11 = vld [vmem:[#allocation3 + $0x140] sm:$0xff] }
 0x852   :  { %7319 = vmatmul.mubr.f32.gmra.mrb[36].mxu1 %v15197_v19  ;;  %9828 = vmatprep.subr.bf16.mxu0 %v9827_v42  ;;  %v15593_v19 = vld [vmem:[#allocation3 + $0x80] sm:$0xff] }
 0x853   :  { %7323 = vmatprep.mubr.f32.mxu1 %v15580_v21 }
 0x854   :  { %6799 = vmatmul.mubr.f32.gmra.mrb[110].mxu0 %v15268_v13  ;;  %v15604_v13 = vld [vmem:[#allocation3 + $0x212] sm:$0xff] }
 0x855   :  { %6803 = vmatprep.mubr.f32.mxu0 %v15585_v16  ;;  %9830 = vmatpush3.bf16.msra.mxu0 %v9827_v42 }
 0x856   :  { %7324 = vmatmul.mubr.f32.gmra.mrb[38].mxu1 %v15210_v47  ;;  %v15601_v47 = vld [vmem:[#allocation3 + $0x90] sm:$0xff] }
 0x857   :  { %7328 = vmatprep.mubr.f32.mxu1 %v15588_v54 }
 0x858   :  { %6804 = vmatmul.mubr.f32.gmra.mrb[112].mxu0 %v15282_v30  ;;  %v15612_v30 = vld [vmem:[#allocation3 + $0x21a] sm:$0xff] }
 0x859   :  { %6808 = vmatprep.mubr.f32.mxu0 %v15593_v19 }
 0x85a   :  { %7329 = vmatmul.mubr.f32.gmra.mrb[40].mxu1 %v15224_v28  ;;  %v15609_v28 = vld [vmem:[#allocation3 + $0x98] sm:$0xff] }
 0x85b   :  { %7333 = vmatprep.mubr.f32.mxu1 %v15596_v52 }
 0x85c   :  { %6809 = vmatmul.mubr.f32.gmra.mrb[114].mxu0 %v15296_v62  ;;  %v15620_v62 = vld [vmem:[#allocation3 + $0x22a] sm:$0xff] }
 0x85d   :  { %6813 = vmatprep.mubr.f32.mxu0 %v15601_v47 }
 0x85e   :  { %7334 = vmatmul.mubr.f32.gmra.mrb[42].mxu1 %v15238_v10  ;;  %v15617_v10 = vld [vmem:[#allocation3 + $0xa8] sm:$0xff] }
 0x85f   :  { %7338 = vmatprep.mubr.f32.mxu1 %v15604_v13 }
 0x860   :  { %6814 = vmatmul.mubr.f32.gmra.mrb[116].mxu0 %v15310_v12  ;;  %v15628_v12 = vld [vmem:[#allocation3 + $0x232] sm:$0xff] }
 0x861   :  { %6818 = vmatprep.mubr.f32.mxu0 %v15609_v28 }
 0x862   :  { %7339 = vmatmul.mubr.f32.gmra.mrb[44].mxu1 %v15252_v41  ;;  %v15625_v41 = vld [vmem:[#allocation3 + $0xb0] sm:$0xff] }
 0x863   :  { %7343 = vmatprep.mubr.f32.mxu1 %v15612_v30 }
 0x864   :  { %6819 = vmatmul.mubr.f32.gmra.mrb[118].mxu0 %v15324_v53  ;;  %v15636_v53 = vld [vmem:[#allocation3 + $0x242] sm:$0xff] }
 0x865   :  { %6823 = vmatprep.mubr.f32.mxu0 %v15617_v10 }
 0x866   :  { %7344 = vmatmul.mubr.f32.gmra.mrb[46].mxu1 %v15266_v55  ;;  %v15633_v55 = vld [vmem:[#allocation3 + $0xc0] sm:$0xff] }
 0x867   :  { %7348 = vmatprep.mubr.f32.mxu1 %v15620_v62 }
 0x868   :  { %6824 = vmatmul.mubr.f32.gmra.mrb[120].mxu0 %v15338_v58  ;;  %v15644_v58 = vld [vmem:[#allocation3 + $0x24a] sm:$0xff] }
 0x869   :  { %6828 = vmatprep.mubr.f32.mxu0 %v15625_v41 }
 0x86a   :  { %7349 = vmatmul.mubr.f32.gmra.mrb[48].mxu1 %v15280_v60  ;;  %v15641_v60 = vld [vmem:[#allocation3 + $0xc8] sm:$0xff] }
 0x86b   :  { %7353 = vmatprep.mubr.f32.mxu1 %v15628_v12 }
 0x86c   :  { %6829 = vmatmul.mubr.f32.gmra.mrb[122].mxu0 %v15346_v25  ;;  %v15652_v25 = vld [vmem:[#allocation3 + $0x25a] sm:$0xff] }
 0x86d   :  { %6833 = vmatprep.mubr.f32.mxu0 %v15633_v55 }
 0x86e   :  { %7354 = vmatmul.mubr.f32.gmra.mrb[50].mxu1 %v15294_v4  ;;  %v15649_v4 = vld [vmem:[#allocation3 + $0xd8] sm:$0xff] }
 0x86f   :  { %7358 = vmatprep.mubr.f32.mxu1 %v15636_v53 }
 0x870   :  { %6834 = vmatmul.mubr.f32.gmra.mrb[124].mxu0 %v15354_v5  ;;  %v15660_v5 = vld [vmem:[#allocation3 + $0x262] sm:$0xff] }
 0x871   :  { %6838 = vmatprep.mubr.f32.mxu0 %v15641_v60 }
 0x872   :  { %7359 = vmatmul.mubr.f32.gmra.mrb[52].mxu1 %v15308_v50  ;;  %v15657_v50 = vld [vmem:[#allocation3 + $0xe0] sm:$0xff] }
 0x873   :  { %7363 = vmatprep.mubr.f32.mxu1 %v15644_v58 }
 0x874   :  { %6839 = vmatmul.mubr.f32.gmra.mrb[126].mxu0 %v15361_v14  ;;  %v15668_v14 = vld [vmem:[#allocation3 + $0x272] sm:$0xff] }
 0x875   :  { %6843 = vmatprep.mubr.f32.mxu0 %v15649_v4 }
 0x876   :  { %7364 = vmatmul.mubr.f32.gmra.mrb[54].mxu1 %v15322_v2  ;;  %v15665_v2 = vld [vmem:[#allocation3 + $0xf0] sm:$0xff] }
 0x877   :  { %7368 = vmatprep.mubr.f32.mxu1 %v15652_v25 }
 0x878   :  { %6844 = vmatmul.mubr.f32.gmra.mrb[128].mxu0 %v15374_v27  ;;  %v15676_v27 = vld [vmem:[#allocation3 + $0x27a] sm:$0xff] }
 0x879   :  { %6848 = vmatprep.mubr.f32.mxu0 %v15657_v50 }
 0x87a   :  { %7369 = vmatmul.mubr.f32.gmra.mrb[56].mxu1 %v15336_v23  ;;  %v15673_v23 = vld [vmem:[#allocation3 + $0xf8] sm:$0xff] }
 0x87b   :  { %7373 = vmatprep.mubr.f32.mxu1 %v15660_v5 }
 0x87c   :  { %6849 = vmatmul.mubr.f32.gmra.mrb[130].mxu0 %v15382_v33  ;;  %v15684_v33 = vld [vmem:[#allocation3 + $0x28a] sm:$0xff] }
 0x87d   :  { %6853 = vmatprep.mubr.f32.mxu0 %v15665_v2 }
 0x87e   :  { %7374 = vmatmul.mubr.f32.gmra.mrb[58].mxu1 %v15344_v3  ;;  %v15681_v3 = vld [vmem:[#allocation3 + $0x108] sm:$0xff] }
 0x87f   :  { %7378 = vmatprep.mubr.f32.mxu1 %v15668_v14 }
 0x880   :  { %6854 = vmatmul.mubr.f32.gmra.mrb[132].mxu0 %v15389_v8  ;;  %v15692_v8 = vld [vmem:[#allocation3 + $0x292] sm:$0xff] }
 0x881   :  { %6858 = vmatprep.mubr.f32.mxu0 %v15673_v23 }
 0x882   :  { %7379 = vmatmul.mubr.f32.gmra.mrb[60].mxu1 %v15352_v39  ;;  %v15689_v39 = vld [vmem:[#allocation3 + $0x110] sm:$0xff] }
 0x883   :  { %7383 = vmatprep.mubr.f32.mxu1 %v15676_v27 }
 0x884   :  { %6859 = vmatmul.mubr.f32.gmra.mrb[134].mxu0 %v15396_v20 }
 0x885   :  { %6863 = vmatprep.mubr.f32.mxu0 %v15681_v3 }
 0x886   :  { %7384 = vmatmul.mubr.f32.gmra.mrb[62].mxu1 %v15359_v0  ;;  %v15699_v0 = vld [vmem:[#allocation3 + $0x120] sm:$0xff] }
 0x887   :  { %7388 = vmatprep.mubr.f32.mxu1 %v15684_v33 }
 0x888   :  { %6864 = vmatmul.mubr.f32.gmra.mrb[136].mxu0 %v15409_v43  ;;  %v15702_v43 = vld [vmem:[#allocation3 + $0x2a2] sm:$0xff] }
 0x889   :  { %6868 = vmatprep.mubr.f32.mxu0 %v15689_v39 }
 0x88a   :  { %7389 = vmatmul.mubr.f32.gmra.mrb[64].mxu1 %v15372_v37 }
 0x88b   :  { %7393 = vmatprep.mubr.f32.mxu1 %v15692_v8  ;;  %v15696_v20 = vpop.f32.mrb[160].mxu0 }
 0x88c   :  { %17750 = vst [vmem:[#allocation19_spill] sm:$0xff] %v15696_v20  ;;  %6869 = vmatmul.mubr.f32.gmra.mrb[138].mxu0 %v15417_v34  ;;  %v6542_v45 = vpop.f32.mrb[161].mxu0  ;;  %v15712_v34 = vld [vmem:[#allocation3 + $0x2aa] sm:$0xff]  ;;  %v6099_v20 = vld [vmem:[#allocation3 + $0x32] sm:$0xff] }
 0x88d   :  { %6873 = vmatprep.mubr.f32.mxu0 %v15699_v0  ;;  %v15749_v45 = vld [vmem:[#allocation3 + $0x158] sm:$0xff] }
 0x88e   :  { %7394 = vmatmul.mubr.f32.gmra.mrb[66].mxu1 %v15380_v44  ;;  %17756 = vst [vmem:[#allocation28_spill] sm:$0xff] %v15749_v45 }
 0x88f   :  { %7398 = vmatprep.mubr.f32.mxu1 %v15702_v43  ;;  %v15706_v37 = vpop.f32.mrb[162].mxu0 }
 0x890   :  { %17751 = vst [vmem:[#allocation20_spill] sm:$0xff] %v15706_v37  ;;  %6874 = vmatmul.mubr.f32.gmra.mrb[140].mxu0 %v15424_v63  ;;  %v6547_v59 = vpop.f32.mrb[163].mxu0  ;;  %v15722_v63 = vld [vmem:[#allocation3 + $0x2ba] sm:$0xff]  ;;  %v15789_v37 = vld [vmem:[#allocation3 + $0x188] sm:$0xff] }
 0x891   :  { %6878 = vmatprep.mubr.f32.mxu0 %v15709_v17  ;;  %17770 = vst [vmem:[#allocation25_spill] sm:$0xff] %v15789_v37 }
 0x892   :  { %7399 = vmatmul.mubr.f32.gmra.mrb[68].mxu1 %v15387_v18 }
 0x893   :  { %7403 = vmatprep.mubr.f32.mxu1 %v15712_v34  ;;  %v15716_v44 = vpop.f32.mrb[164].mxu0 }
 0x894   :  { %17752 = vst [vmem:[#allocation30_spill] sm:$0xff] %v15716_v44  ;;  %v6552_v9 = vpop.f32.mrb[165].mxu0  ;;  %6879 = vmatmul.mubr.f32.gmra.mrb[142].mxu0 %v15431_v61  ;;  %v15732_v61 = vld [vmem:[#allocation3 + $0x2c2] sm:$0xff] }
 0x895   :  { %6883 = vmatprep.mubr.f32.mxu0 %v15719_v49  ;;  %v15759_v9 = vld [vmem:[#allocation3 + $0x168] sm:$0xff]  ;;  %v17769_v44 = vld [vmem:[#allocation16_spill] sm:$0xff] }
 0x896   :  { %7404 = vmatmul.mubr.f32.gmra.mrb[70].mxu1 %v15394_v36  ;;  %17758 = vst [vmem:[#allocation31_spill] sm:$0xff] %v15759_v9 }
 0x897   :  { %7408 = vmatprep.mubr.f32.mxu1 %v15722_v63  ;;  %v15726_v18 = vpop.f32.mrb[166].mxu0 }
 0x898   :  { %17753 = vst [vmem:[#allocation32_spill] sm:$0xff] %v15726_v18  ;;  %v6557_v22 = vpop.f32.mrb[167].mxu0  ;;  %6884 = vmatmul.mubr.f32.gmra.mrb[144].mxu0 %v15444_v6  ;;  %v15742_v6 = vld [vmem:[#allocation3 + $0x2d2] sm:$0xff]  ;;  %v15779_v18 = vld [vmem:[#allocation3 + $0x180] sm:$0xff] }
 0x899   :  { %6888 = vmatprep.mubr.f32.mxu0 %v15729_v11  ;;  %v17759_v22 = vld [vmem:[#allocation9_spill] sm:$0xff]  ;;  %17766 = vst [vmem:[#allocation23_spill] sm:$0xff] %v15779_v18 }
 0x89a   :  { %7409 = vmatmul.mubr.f32.gmra.mrb[72].mxu1 %v15407_v26 }
 0x89b   :  { %7413 = vmatprep.mubr.f32.mxu1 %v15732_v61  ;;  %v15736_v36 = vpop.f32.mrb[168].mxu0 }
 0x89c   :  { %17754 = vst [vmem:[#allocation21_spill] sm:$0xff] %v15736_v36  ;;  %v6562_v46 = vpop.f32.mrb[169].mxu0  ;;  %6889 = vmatmul.mubr.f32.gmra.mrb[146].mxu0 %v15452_v15  ;;  %v15752_v15 = vld [vmem:[#allocation3 + $0x2da] sm:$0xff]  ;;  %v17765_v36 = vld [vmem:[#allocation17_spill] sm:$0xff] }
 0x89d   :  { %6893 = vmatprep.mubr.f32.mxu0 %v15739_v7 }
 0x89e   :  { %7414 = vmatmul.mubr.f32.gmra.mrb[74].mxu1 %v15415_v32 }
 0x89f   :  { %7418 = vmatprep.mubr.f32.mxu1 %v15742_v6  ;;  %v15746_v26 = vpop.f32.mrb[170].mxu0 }
 0x8a0   :  { %17755 = vst [vmem:[#allocation27_spill] sm:$0xff] %v15746_v26  ;;  %v6567_v42 = vpop.f32.mrb[171].mxu0  ;;  %6894 = vmatmul.mubr.f32.gmra.mrb[148].mxu0 %v15465_v48  ;;  %v15762_v48 = vld [vmem:[#allocation3 + $0x2ea] sm:$0xff] }
 0x8a1   :  { %6898 = vmatprep.mubr.f32.mxu0 %v15749_v45  ;;  %v17761_v42 = vld [vmem:[#allocation15_spill] sm:$0xff]  ;;  %v15769_v26 = vld [vmem:[#allocation3 + $0x170] sm:$0xff] }
 0x8a2   :  { %7419 = vmatmul.mubr.f32.gmra.mrb[76].mxu1 %v15422_v57  ;;  %17762 = vst [vmem:[#allocation34_spill] sm:$0xff] %v15769_v26  ;;  %v6105_v45 = vld [vmem:[#allocation3 + $0x7a] sm:$0xff] }
 0x8a3   :  { %7423 = vmatprep.mubr.f32.mxu1 %v15752_v15  ;;  %v15756_v32 = vpop.f32.mrb[172].mxu0 }
 0x8a4   :  { %17757 = vst [vmem:[#allocation29_spill] sm:$0xff] %v15756_v32  ;;  %v6572_v59 = vpop.f32.mrb[173].mxu0  ;;  %6899 = vmatmul.mubr.f32.gmra.mrb[150].mxu0 %v15472_v24  ;;  %v15772_v24 = vld [vmem:[#allocation3 + $0x2f2] sm:$0xff] }
 0x8a5   :  { %6903 = vmatprep.mubr.f32.mxu0 %v15759_v9  ;;  %v17763_v59 = vld [vmem:[#allocation8_spill] sm:$0xff]  ;;  %v17778_v9 = vld [vmem:[#allocation14_spill] sm:$0xff] }
 0x8a6   :  { %7424 = vmatmul.mubr.f32.gmra.mrb[78].mxu1 %v17759_v22 }
 0x8a7   :  { %7428 = vmatprep.mubr.f32.mxu1 %v15762_v48  ;;  %v15766_v57 = vpop.f32.mrb[174].mxu0 }
 0x8a8   :  { %17760 = vst [vmem:[#allocation33_spill] sm:$0xff] %v15766_v57  ;;  %v6577_v46 = vpop.f32.mrb[175].mxu0  ;;  %6904 = vmatmul.mubr.f32.gmra.mrb[152].mxu0 %v17761_v42  ;;  %v15782_v42 = vld [vmem:[#allocation3 + $0x302] sm:$0xff] }
 0x8a9   :  { %6908 = vmatprep.mubr.f32.mxu0 %v15769_v26  ;;  %v17767_v46 = vld [vmem:[#allocation11_spill] sm:$0xff]  ;;  %v17775_v26 = vld [vmem:[#allocation12_spill] sm:$0xff] }
 0x8aa   :  { %7429 = vmatmul.mubr.f32.gmra.mrb[80].mxu1 %v17763_v59 }
 0x8ab   :  { %7433 = vmatprep.mubr.f32.mxu1 %v15772_v24  ;;  %v15776_v22 = vpop.f32.mrb[176].mxu0 }
 0x8ac   :  { %17764 = vst [vmem:[#allocation35_spill] sm:$0xff] %v15776_v22  ;;  %v6582_v32 = vpop.f32.mrb[177].mxu0  ;;  %6909 = vmatmul.mubr.f32.gmra.mrb[154].mxu0 %v17765_v36  ;;  %v15792_v36 = vld [vmem:[#allocation3 + $0x30a] sm:$0xff] }
 0x8ad   :  { %6913 = vmatprep.mubr.f32.mxu0 %v15779_v18  ;;  %v17771_v32 = vld [vmem:[#allocation10_spill] sm:$0xff] }
 0x8ae   :  { %7434 = vmatmul.mubr.f32.gmra.mrb[82].mxu1 %v17767_v46 }
 0x8af   :  { %7438 = vmatprep.mubr.f32.mxu1 %v15782_v42  ;;  %v15786_v59 = vpop.f32.mrb[178].mxu0 }
 0x8b0   :  { %17768 = vst [vmem:[#allocation24_spill] sm:$0xff] %v15786_v59  ;;  %v6587_v57 = vpop.f32.mrb[179].mxu0  ;;  %6914 = vmatmul.mubr.f32.gmra.mrb[156].mxu0 %v17769_v44  ;;  %v17773_v59 = vld [vmem:[#allocation13_spill] sm:$0xff] }
 0x8b1   :  { %6918 = vmatprep.mubr.f32.mxu0 %v15789_v37  ;;  %v15800_v57 = vld [vmem:[#allocation3 + $0x31a] sm:$0xff]  ;;  %v6101_v37 = vld [vmem:[#allocation3 + $0x4a] sm:$0xff] }
 0x8b2   :  { %7439 = vmatmul.mubr.f32.gmra.mrb[84].mxu1 %v17771_v32  ;;  %v6100_v32 = vld [vmem:[#allocation3 + $0x3a] sm:$0xff] }
 0x8b3   :  { %7443 = vmatprep.mubr.f32.mxu1 %v15792_v36  ;;  %v15796_v46 = vpop.f32.mrb[180].mxu0 }
 0x8b4   :  { %17772 = vst [vmem:[#allocation26_spill] sm:$0xff] %v15796_v46  ;;  %v6592_v22 = vpop.f32.mrb[181].mxu0  ;;  %6919 = vmatmul.mubr.f32.gmra.mrb[158].mxu0 %v15507_v40  ;;  %v15806_v46 = vld [vmem:[#allocation3 + $0x322] sm:$0xff] }
 0x8b5   :  { %9463 = vmatprep.mubr.f32.mxu0 %v6099_v20  ;;  %17776 = vst [vmem:[#allocation4_spill] sm:$0xff] %v15806_v46  ;;  %v6102_v22 = vld [vmem:[#allocation3 + $0x52] sm:$0xff]  ;;  %v6103_v20 = vld [vmem:[#allocation3 + $0x62] sm:$0xff] }
 0x8b6   :  { %7444 = vmatmul.mubr.f32.gmra.mrb[86].mxu1 %v17773_v59 }
 0x8b7   :  { %7448 = vmatprep.mubr.f32.mxu1 %v15800_v57  ;;  %v15803_v44 = vpop.f32.mrb[182].mxu0 }
 0x8b8   :  { %17774 = vst [vmem:[#allocation5_spill] sm:$0xff] %v15803_v44  ;;  %v6597_v18 = vpop.f32.mrb[183].mxu0  ;;  %9464 = vmatmul.mubr.f32.vlgmr.msra.gmra.mrb[224].mxu0 %v6100_v32  ;;  %v15812_v44 = vld [vmem:[#allocation3 + $0x332] sm:$0xff] }
 0x8b9   :  { %9466 = vmatprep.mubr.f32.mxu0 %v6101_v37  ;;  %17779 = vst [vmem:[#allocation6_spill] sm:$0xff] %v15812_v44  ;;  %v5904_v32 = vld [vmem:[#allocation3 + $0x331] sm:$0xff] }
 0x8ba   :  { %7449 = vmatmul.mubr.f32.gmra.mrb[88].mxu1 %v17775_v26  ;;  %v6104_v26 = vld [vmem:[#allocation3 + $0x6a] sm:$0xff] }
 0x8bb   :  { %7453 = vmatprep.mubr.f32.mxu1 %v15806_v46  ;;  %v15809_v40 = vpop.f32.mrb[184].mxu0  ;;  %v6109_v46 = vld [vmem:[#allocation3 + $0xaa] sm:$0xff] }
 0x8bc   :  { %17777 = vst [vmem:[#allocation7_spill] sm:$0xff] %v15809_v40  ;;  %v6602_v59 = vpop.f32.mrb[185].mxu0  ;;  %9467 = vmatmul.mubr.f32.gmra.mrb[226].mxu0 %v6102_v22  ;;  %v15817_v40 = vld [vmem:[#allocation3 + $0x33a] sm:$0xff] }
 0x8bd   :  { %9469 = vmatprep.mubr.f32.mxu0 %v6103_v20  ;;  %v5905_v59 = vld [vmem:[#allocation3 + $0x339] sm:$0xff] }
 0x8be   :  { %7454 = vmatmul.mubr.f32.gmra.mrb[90].mxu1 %v17778_v9  ;;  %v6106_v9 = vld [vmem:[#allocation3 + $0x82] sm:$0xff] }
 0x8bf   :  { %7458 = vmatprep.mubr.f32.mxu1 %v15812_v44  ;;  %v15815_v18 = vpop.f32.mrb[186].mxu0  ;;  %v6107_v44 = vld [vmem:[#allocation3 + $0x92] sm:$0xff] }
 0x8c0   :  { %17780 = vst [vmem:[#allocation22_spill] sm:$0xff] %v15815_v18  ;;  %v6607_v37 = vpop.f32.mrb[187].mxu0  ;;  %9470 = vmatmul.mubr.f32.gmra.mrb[228].mxu0 %v6104_v26  ;;  %v6035_v18 = vld [vmem:[#allocation3 + $0x31] sm:$0xff]  ;;  %v6108_v26 = vld [vmem:[#allocation3 + $0x9a] sm:$0xff] }
 0x8c1   :  { %9472 = vmatprep.mubr.f32.mxu0 %v6105_v45  ;;  %v6036_v45 = vld [vmem:[#allocation3 + $0x39] sm:$0xff] }
 0x8c2   :  { %7459 = vmatmul.mubr.f32.gmra.mrb[92].mxu1 %v5904_v32 }
 0x8c3   :  { %7463 = vmatprep.mubr.f32.mxu1 %v15817_v40  ;;  %v15820_v22 = vpop.f32.mrb[188].mxu0 }
 0x8c4   :  { %17781 = vst [vmem:[#allocation9_spill] sm:$0xff] %v15820_v22  ;;  %v6612_v20 = vpop.f32.mrb[189].mxu0  ;;  %9473 = vmatmul.mubr.f32.gmra.mrb[230].mxu0 %v6106_v9 }
 0x8c5   :  { %9475 = vmatprep.mubr.f32.mxu0 %v6107_v44  ;;  %v6110_v20 = vld [vmem:[#allocation3 + $0xb2] sm:$0xff]  ;;  %v6037_v44 = vld [vmem:[#allocation3 + $0x49] sm:$0xff] }
 0x8c6   :  { %7464 = vmatmul.mubr.f32.gmra.mrb[94].mxu1 %v5905_v59  ;;  %v6111_v59 = vld [vmem:[#allocation3 + $0xc2] sm:$0xff] }
 0x8c7   :  { %7533 = vmatprep.mubr.f32.mxu1 %v6035_v18  ;;  %v15822_v37 = vpop.f32.mrb[190].mxu0 }
 0x8c8   :  { %17782 = vst [vmem:[#allocation15_spill] sm:$0xff] %v15822_v37  ;;  %v6617_v32 = vpop.f32.mrb[191].mxu0  ;;  %9476 = vmatmul.mubr.f32.gmra.mrb[232].mxu0 %v6108_v26  ;;  %v6112_v26 = vld [vmem:[#allocation3 + $0xca] sm:$0xff] }
 0x8c9   :  { %9478 = vmatprep.mubr.f32.mxu0 %v6109_v46  ;;  %v6038_v46 = vld [vmem:[#allocation3 + $0x51] sm:$0xff] }
 0x8ca   :  { %7534 = vmatmul.mubr.f32.vlgmr.msra.gmra.mrb[96].mxu1 %v15522_v1  ;;  %v6113_v1 = vld [vmem:[#allocation3 + $0xda] sm:$0xff] }
 0x8cb   :  { %7538 = vmatprep.mubr.f32.mxu1 %v6036_v45  ;;  %v15825_v22 = vpop.f32.mrb[192].mxu0 }
 0x8cc   :  { %17783 = vst [vmem:[#allocation8_spill] sm:$0xff] %v15825_v22  ;;  %v6622_v9 = vpop.f32.mrb[193].mxu0  ;;  %9479 = vmatmul.mubr.f32.gmra.mrb[234].mxu0 %v6110_v20  ;;  %v6114_v20 = vld [vmem:[#allocation3 + $0xe2] sm:$0xff] }
 0x8cd   :  { %9481 = vmatprep.mubr.f32.mxu0 %v6111_v59  ;;  %v6039_v59 = vld [vmem:[#allocation3 + $0x61] sm:$0xff] }
 0x8ce   :  { %7539 = vmatmul.mubr.f32.gmra.mrb[98].mxu1 %v15532_v56  ;;  %v6115_v56 = vld [vmem:[#allocation3 + $0xf2] sm:$0xff] }
 0x8cf   :  { %7543 = vmatprep.mubr.f32.mxu1 %v6037_v44  ;;  %v15828_v18 = vpop.f32.mrb[194].mxu0 }
 0x8d0   :  { %17784 = vst [vmem:[#allocation17_spill] sm:$0xff] %v15828_v18  ;;  %v6627_v32 = vpop.f32.mrb[195].mxu0  ;;  %9482 = vmatmul.mubr.f32.gmra.mrb[236].mxu0 %v6112_v26  ;;  %v6116_v26 = vld [vmem:[#allocation3 + $0xfa] sm:$0xff] }
 0x8d1   :  { %9484 = vmatprep.mubr.f32.mxu0 %v6113_v1  ;;  %v6040_v1 = vld [vmem:[#allocation3 + $0x69] sm:$0xff] }
 0x8d2   :  { %7544 = vmatmul.mubr.f32.gmra.mrb[100].mxu1 %v15542_v51  ;;  %v6117_v51 = vld [vmem:[#allocation3 + $0x10a] sm:$0xff] }
 0x8d3   :  { %7548 = vmatprep.mubr.f32.mxu1 %v6038_v46  ;;  %v15831_v45 = vpop.f32.mrb[196].mxu0 }
 0x8d4   :  { %17785 = vst [vmem:[#allocation11_spill] sm:$0xff] %v15831_v45  ;;  %v6632_v9 = vpop.f32.mrb[197].mxu0  ;;  %9485 = vmatmul.mubr.f32.gmra.mrb[238].mxu0 %v6114_v20  ;;  %v6118_v20 = vld [vmem:[#allocation3 + $0x112] sm:$0xff] }
 0x8d5   :  { %9487 = vmatprep.mubr.f32.mxu0 %v6115_v56  ;;  %v6041_v56 = vld [vmem:[#allocation3 + $0x79] sm:$0xff] }
 0x8d6   :  { %7549 = vmatmul.mubr.f32.gmra.mrb[102].mxu1 %v15552_v29  ;;  %v6119_v29 = vld [vmem:[#allocation3 + $0x122] sm:$0xff] }
 0x8d7   :  { %7553 = vmatprep.mubr.f32.mxu1 %v6039_v59  ;;  %v15834_v44 = vpop.f32.mrb[198].mxu0 }
 0x8d8   :  { %17786 = vst [vmem:[#allocation16_spill] sm:$0xff] %v15834_v44  ;;  %v6637_v32 = vpop.f32.mrb[199].mxu0  ;;  %9488 = vmatmul.mubr.f32.gmra.mrb[240].mxu0 %v6116_v26  ;;  %v6120_v26 = vld [vmem:[#allocation3 + $0x12a] sm:$0xff] }
 0x8d9   :  { %9490 = vmatprep.mubr.f32.mxu0 %v6117_v51  ;;  %v6042_v51 = vld [vmem:[#allocation3 + $0x81] sm:$0xff]  ;;  %v6092_v44 = vld [vmem:[#allocation3 + $0x309] sm:$0xff] }
 0x8da   :  { %7554 = vmatmul.mubr.f32.gmra.mrb[104].mxu1 %v15563_v35  ;;  %v6121_v35 = vld [vmem:[#allocation3 + $0x13a] sm:$0xff] }
 0x8db   :  { %7558 = vmatprep.mubr.f32.mxu1 %v6040_v1  ;;  %v15837_v46 = vpop.f32.mrb[200].mxu0 }
 0x8dc   :  { %17787 = vst [vmem:[#allocation10_spill] sm:$0xff] %v15837_v46  ;;  %v6642_v9 = vpop.f32.mrb[201].mxu0  ;;  %9491 = vmatmul.mubr.f32.gmra.mrb[242].mxu0 %v6118_v20  ;;  %v6122_v20 = vld [vmem:[#allocation3 + $0x142] sm:$0xff] }
 0x8dd   :  { %9493 = vmatprep.mubr.f32.mxu0 %v6119_v29  ;;  %v6043_v29 = vld [vmem:[#allocation3 + $0x91] sm:$0xff]  ;;  %v6091_v46 = vld [vmem:[#allocation3 + $0x301] sm:$0xff] }
 0x8de   :  { %7559 = vmatmul.mubr.f32.gmra.mrb[106].mxu1 %v15577_v38  ;;  %v6123_v38 = vld [vmem:[#allocation3 + $0x152] sm:$0xff] }
 0x8df   :  { %7563 = vmatprep.mubr.f32.mxu1 %v6041_v56  ;;  %v15840_v59 = vpop.f32.mrb[202].mxu0 }
 0x8e0   :  { %17788 = vst [vmem:[#allocation13_spill] sm:$0xff] %v15840_v59  ;;  %v6647_v32 = vpop.f32.mrb[203].mxu0  ;;  %9494 = vmatmul.mubr.f32.gmra.mrb[244].mxu0 %v6120_v26  ;;  %v6124_v26 = vld [vmem:[#allocation3 + $0x15a] sm:$0xff]  ;;  %v6090_v59 = vld [vmem:[#allocation3 + $0x2f1] sm:$0xff] }
 0x8e1   :  { %9496 = vmatprep.mubr.f32.mxu0 %v6121_v35  ;;  %v6044_v35 = vld [vmem:[#allocation3 + $0x99] sm:$0xff] }
 0x8e2   :  { %7564 = vmatmul.mubr.f32.gmra.mrb[108].mxu1 %v15585_v16  ;;  %v6125_v16 = vld [vmem:[#allocation3 + $0x16a] sm:$0xff] }
 0x8e3   :  { %7568 = vmatprep.mubr.f32.mxu1 %v6042_v51  ;;  %v15843_v1 = vpop.f32.mrb[204].mxu0 }
 0x8e4   :  { %17789 = vst [vmem:[#allocation12_spill] sm:$0xff] %v15843_v1  ;;  %v6652_v9 = vpop.f32.mrb[205].mxu0  ;;  %9497 = vmatmul.mubr.f32.gmra.mrb[246].mxu0 %v6122_v20  ;;  %v6126_v20 = vld [vmem:[#allocation3 + $0x172] sm:$0xff] }
 0x8e5   :  { %9499 = vmatprep.mubr.f32.mxu0 %v6123_v38  ;;  %v6045_v38 = vld [vmem:[#allocation3 + $0xa9] sm:$0xff] }
 0x8e6   :  { %7569 = vmatmul.mubr.f32.gmra.mrb[110].mxu1 %v15593_v19  ;;  %v6127_v19 = vld [vmem:[#allocation3 + $0x182] sm:$0xff] }
 0x8e7   :  { %7573 = vmatprep.mubr.f32.mxu1 %v6043_v29  ;;  %v15846_v56 = vpop.f32.mrb[206].mxu0  ;;  %v6129_v29 = vld [vmem:[#allocation3 + $0x19a] sm:$0xff] }
 0x8e8   :  { %17790 = vst [vmem:[#allocation14_spill] sm:$0xff] %v15846_v56  ;;  %v6657_v32 = vpop.f32.mrb[207].mxu0  ;;  %9500 = vmatmul.mubr.f32.gmra.mrb[248].mxu0 %v6124_v26  ;;  %v6128_v26 = vld [vmem:[#allocation3 + $0x18a] sm:$0xff] }
 0x8e9   :  { %9502 = vmatprep.mubr.f32.mxu0 %v6125_v16  ;;  %v6130_v16 = vld [vmem:[#allocation3 + $0x1a2] sm:$0xff] }
 0x8ea   :  { %7574 = vmatmul.mubr.f32.gmra.mrb[112].mxu1 %v15601_v47  ;;  %v6046_v47 = vld [vmem:[#allocation3 + $0xb1] sm:$0xff] }
 0x8eb   :  { %7578 = vmatprep.mubr.f32.mxu1 %v6044_v35  ;;  %v15849_v51 = vpop.f32.mrb[208].mxu0 }
 0x8ec   :  { %17791 = vst [vmem:[#allocation36_spill] sm:$0xff] %v15849_v51  ;;  %v6662_v9 = vpop.f32.mrb[209].mxu0  ;;  %9503 = vmatmul.mubr.f32.gmra.mrb[250].mxu0 %v6126_v20 }
 0x8ed   :  { %9505 = vmatprep.mubr.f32.mxu0 %v6127_v19 }
 0x8ee   :  { %7579 = vmatmul.mubr.f32.gmra.mrb[114].mxu1 %v15609_v28  ;;  %v6047_v28 = vld [vmem:[#allocation3 + $0xc1] sm:$0xff] }
 0x8ef   :  { %7583 = vmatprep.mubr.f32.mxu1 %v6045_v38  ;;  %v15852_v32 = vpop.f32.mrb[210].mxu0 }
 0x8f0   :  { %17792 = vst [vmem:[#allocation37_spill] sm:$0xff] %v15852_v32  ;;  %v6667_v56 = vpop.f32.mrb[211].mxu0  ;;  %9506 = vmatmul.mubr.f32.gmra.mrb[252].mxu0 %v6128_v26  ;;  %v17801_v26 = vld [vmem:[#allocation6_spill] sm:$0xff] }
 0x8f1   :  { %9508 = vmatprep.mubr.f32.mxu0 %v6129_v29  ;;  %v17799_v29 = vld [vmem:[#allocation4_spill] sm:$0xff] }
 0x8f2   :  { %7584 = vmatmul.mubr.f32.gmra.mrb[116].mxu1 %v15617_v10  ;;  %v6048_v10 = vld [vmem:[#allocation3 + $0xc9] sm:$0xff] }
 0x8f3   :  { %7588 = vmatprep.mubr.f32.mxu1 %v6046_v47  ;;  %v15855_v35 = vpop.f32.mrb[212].mxu0 }
 0x8f4   :  { %17793 = vst [vmem:[#allocation38_spill] sm:$0xff] %v15855_v35  ;;  %v6672_v20 = vpop.f32.mrb[213].mxu0  ;;  %9509 = vmatmul.mubr.f32.gmra.mrb[254].mxu0 %v6130_v16 }
 0x8f5   :  { %9511 = vmatprep.mubr.f32.mxu0 %v15572_v31  ;;  %v6049_v31 = vld [vmem:[#allocation3 + $0xd9] sm:$0xff] }
 0x8f6   :  { %7589 = vmatmul.mubr.f32.gmra.mrb[118].mxu1 %v15625_v41 }
 0x8f7   :  { %7593 = vmatprep.mubr.f32.mxu1 %v6047_v28  ;;  %v15859_v9 = vpop.f32.mrb[214].mxu0  ;;  %v17803_v28 = vld [vmem:[#allocation34_spill] sm:$0xff] }
 0x8f8   :  { %17794 = vst [vmem:[#allocation39_spill] sm:$0xff] %v15859_v9  ;;  %v6677_v56 = vpop.f32.mrb[215].mxu0  ;;  %9512 = vmatmul.mubr.f32.gmra.mrb[0].mxu0 %v15580_v21 }
 0x8f9   :  { %9514 = vmatprep.mubr.f32.mxu0 %v15588_v54  ;;  %v6050_v54 = vld [vmem:[#allocation3 + $0xe1] sm:$0xff] }
 0x8fa   :  { %7594 = vmatmul.mubr.f32.gmra.mrb[120].mxu1 %v15633_v55  ;;  %v6063_v56 = vld [vmem:[#allocation3 + $0x181] sm:$0xff] }
 0x8fb   :  { %7598 = vmatprep.mubr.f32.mxu1 %v6048_v10  ;;  %v15864_v19 = vpop.f32.mrb[216].mxu0 }
 0x8fc   :  { %17795 = vst [vmem:[#allocation40_spill] sm:$0xff] %v15864_v19  ;;  %v6682_v38 = vpop.f32.mrb[217].mxu0  ;;  %9515 = vmatmul.mubr.f32.gmra.mrb[2].mxu0 %v15596_v52 }
 0x8fd   :  { %9517 = vmatprep.mubr.f32.mxu0 %v15604_v13  ;;  %v6051_v13 = vld [vmem:[#allocation3 + $0xf1] sm:$0xff] }
 0x8fe   :  { %7599 = vmatmul.mubr.f32.gmra.mrb[122].mxu1 %v15641_v60 }
 0x8ff   :  { %7603 = vmatprep.mubr.f32.mxu1 %v6049_v31  ;;  %v15869_v41 = vpop.f32.mrb[218].mxu0  ;;  %v17804_v31 = vld [vmem:[#allocation23_spill] sm:$0xff] }
 0x900   :  { %17796 = vst [vmem:[#allocation41_spill] sm:$0xff] %v15869_v41  ;;  %v6687_v21 = vpop.f32.mrb[219].mxu0  ;;  %9518 = vmatmul.mubr.f32.gmra.mrb[4].mxu0 %v15612_v30 }
 0x901   :  { %9520 = vmatprep.mubr.f32.mxu0 %v15620_v62  ;;  %v6052_v62 = vld [vmem:[#allocation3 + $0xf9] sm:$0xff]  ;;  %v6064_v21 = vld [vmem:[#allocation3 + $0x189] sm:$0xff] }
 0x902   :  { %7604 = vmatmul.mubr.f32.gmra.mrb[124].mxu1 %v15649_v4 }
 0x903   :  { %7608 = vmatprep.mubr.f32.mxu1 %v6050_v54  ;;  %v15874_v55 = vpop.f32.mrb[220].mxu0  ;;  %v6065_v54 = vld [vmem:[#allocation3 + $0x199] sm:$0xff] }
 0x904   :  { %17797 = vst [vmem:[#allocation42_spill] sm:$0xff] %v15874_v55  ;;  %v6692_v52 = vpop.f32.mrb[221].mxu0  ;;  %9521 = vmatmul.mubr.f32.gmra.mrb[6].mxu0 %v15628_v12 }
 0x905   :  { %9523 = vmatprep.mubr.f32.mxu0 %v15636_v53  ;;  %v6053_v53 = vld [vmem:[#allocation3 + $0x109] sm:$0xff] }
 0x906   :  { %7609 = vmatmul.mubr.f32.gmra.mrb[126].mxu1 %v15657_v50 }
 0x907   :  { %7613 = vmatprep.mubr.f32.mxu1 %v6051_v13  ;;  %v15879_v60 = vpop.f32.mrb[222].mxu0  ;;  %v17805_v13 = vld [vmem:[#allocation25_spill] sm:$0xff] }
 0x908   :  { %17798 = vst [vmem:[#allocation43_spill] sm:$0xff] %v15879_v60  ;;  %v6697_v30 = vpop.f32.mrb[223].mxu0  ;;  %9524 = vmatmul.mubr.f32.gmra.mrb[8].mxu0 %v15644_v58 }
 0x909   :  { %9526 = vmatprep.mubr.f32.mxu0 %v15652_v25  ;;  %v6054_v25 = vld [vmem:[#allocation3 + $0x111] sm:$0xff]  ;;  %v6066_v30 = vld [vmem:[#allocation3 + $0x1a1] sm:$0xff] }
 0x90a   :  { %7614 = vmatmul.mubr.f32.gmra.mrb[128].mxu1 %v15665_v2 }
 0x90b   :  { %7618 = vmatprep.mubr.f32.mxu1 %v6052_v62  ;;  %v15884_v4 = vpop.f32.mrb[96].mxu0 }
 0x90c   :  { %v6767_v12 = vpop.f32.mrb[97].mxu0  ;;  %9527 = vmatmul.mubr.f32.gmra.mrb[10].mxu0 %v15660_v5 }
 0x90d   :  { %9529 = vmatprep.mubr.f32.mxu0 %v15668_v14  ;;  %v6055_v14 = vld [vmem:[#allocation3 + $0x121] sm:$0xff] }
 0x90e   :  { %7619 = vmatmul.mubr.f32.gmra.mrb[130].mxu1 %v15673_v23 }
 0x90f   :  { %7623 = vmatprep.mubr.f32.mxu1 %v6053_v53  ;;  %v15889_v50 = vpop.f32.mrb[98].mxu0  ;;  %v15944_v53 = vld [vmem:[#allocation3] sm:$0xff] }
 0x910   :  { %v6772_v58 = vpop.f32.mrb[99].mxu0  ;;  %9530 = vmatmul.mubr.f32.gmra.mrb[12].mxu0 %v15676_v27 }
 0x911   :  { %9532 = vmatprep.mubr.f32.mxu0 %v15684_v33 }
 0x912   :  { %7624 = vmatmul.mubr.f32.gmra.mrb[132].mxu1 %v15681_v3  ;;  %v6056_v3 = vld [vmem:[#allocation3 + $0x129] sm:$0xff] }
 0x913   :  { %7628 = vmatprep.mubr.f32.mxu1 %v6054_v25  ;;  %v15894_v2 = vpop.f32.mrb[100].mxu0 }
 0x914   :  { %v6777_v5 = vpop.f32.mrb[101].mxu0  ;;  %9533 = vmatmul.mubr.f32.gmra.mrb[14].mxu0 %v15692_v8 }
 0x915   :  { %9535 = vmatprep.mubr.f32.mxu0 %v15702_v43  ;;  %v6067_v5 = vld [vmem:[#allocation3 + $0x1e1] sm:$0xff] }
 0x916   :  { %7629 = vmatmul.mubr.f32.gmra.mrb[134].mxu1 %v15689_v39  ;;  %v6057_v39 = vld [vmem:[#allocation3 + $0x139] sm:$0xff] }
 0x917   :  { %7633 = vmatprep.mubr.f32.mxu1 %v6055_v14  ;;  %v15899_v23 = vpop.f32.mrb[102].mxu0  ;;  %v6161_v14 = vld [vmem:[#allocation3 + $0x34a] sm:$0xff] }
 0x918   :  { %v6782_v27 = vpop.f32.mrb[103].mxu0  ;;  %9536 = vmatmul.mubr.f32.gmra.mrb[16].mxu0 %v15712_v34 }
 0x919   :  { %9538 = vmatprep.mubr.f32.mxu0 %v15722_v63  ;;  %v6162_v27 = vld [vmem:[#allocation3 + $0x352] sm:$0xff] }
 0x91a   :  { %7634 = vmatmul.mubr.f32.gmra.mrb[136].mxu1 %v15699_v0  ;;  %v6058_v0 = vld [vmem:[#allocation3 + $0x141] sm:$0xff] }
 0x91b   :  { %7638 = vmatprep.mubr.f32.mxu1 %v6056_v3  ;;  %v15904_v33 = vpop.f32.mrb[104].mxu0 }
 0x91c   :  { %v6787_v8 = vpop.f32.mrb[105].mxu0  ;;  %9539 = vmatmul.mubr.f32.gmra.mrb[18].mxu0 %v15732_v61 }
 0x91d   :  { %9541 = vmatprep.mubr.f32.mxu0 %v15742_v6  ;;  %v6003_v8 = vld [vmem:[#allocation3 + $0x1e0] sm:$0xff] }
 0x91e   :  { %7639 = vmatmul.mubr.f32.gmra.mrb[138].mxu1 %v15709_v17  ;;  %v6059_v17 = vld [vmem:[#allocation3 + $0x151] sm:$0xff] }
 0x91f   :  { %7643 = vmatprep.mubr.f32.mxu1 %v6057_v39  ;;  %v15909_v43 = vpop.f32.mrb[106].mxu0 }
 0x920   :  { %v6792_v34 = vpop.f32.mrb[107].mxu0  ;;  %9542 = vmatmul.mubr.f32.gmra.mrb[20].mxu0 %v15752_v15 }
 0x921   :  { %9544 = vmatprep.mubr.f32.mxu0 %v15762_v48  ;;  %v6068_v34 = vld [vmem:[#allocation3 + $0x1e9] sm:$0xff] }
 0x922   :  { %7644 = vmatmul.mubr.f32.gmra.mrb[140].mxu1 %v15719_v49  ;;  %v6060_v49 = vld [vmem:[#allocation3 + $0x159] sm:$0xff] }
 0x923   :  { %7648 = vmatprep.mubr.f32.mxu1 %v6058_v0  ;;  %v15914_v63 = vpop.f32.mrb[108].mxu0 }
 0x924   :  { %v6797_v61 = vpop.f32.mrb[109].mxu0  ;;  %9545 = vmatmul.mubr.f32.gmra.mrb[22].mxu0 %v15772_v24 }
 0x925   :  { %9547 = vmatprep.mubr.f32.mxu0 %v15782_v42  ;;  %v6061_v42 = vld [vmem:[#allocation3 + $0x169] sm:$0xff] }
 0x926   :  { %7649 = vmatmul.mubr.f32.gmra.mrb[142].mxu1 %v15729_v11  ;;  %v17800_v11 = vld [vmem:[#allocation28_spill] sm:$0xff]  ;;  %v6004_v61 = vld [vmem:[#allocation3 + $0x1e8] sm:$0xff] }
 0x927   :  { %7653 = vmatprep.mubr.f32.mxu1 %v6059_v17  ;;  %v15919_v6 = vpop.f32.mrb[110].mxu0 }
 0x928   :  { %v6802_v15 = vpop.f32.mrb[111].mxu0  ;;  %9548 = vmatmul.mubr.f32.gmra.mrb[24].mxu0 %v15792_v36 }
 0x929   :  { %9550 = vmatprep.mubr.f32.mxu0 %v15800_v57  ;;  %v6062_v57 = vld [vmem:[#allocation3 + $0x171] sm:$0xff]  ;;  %v6069_v15 = vld [vmem:[#allocation3 + $0x1f9] sm:$0xff] }
 0x92a   :  { %7654 = vmatmul.mubr.f32.gmra.mrb[144].mxu1 %v15739_v7  ;;  %v17802_v7 = vld [vmem:[#allocation31_spill] sm:$0xff] }
 0x92b   :  { %7658 = vmatprep.mubr.f32.mxu1 %v6060_v49  ;;  %v15924_v48 = vpop.f32.mrb[112].mxu0 }
 0x92c   :  { %v6807_v24 = vpop.f32.mrb[113].mxu0  ;;  %9551 = vmatmul.mubr.f32.gmra.mrb[26].mxu0 %v17799_v29 }
 0x92d   :  { %9553 = vmatprep.mubr.f32.mxu0 %v17801_v26  ;;  %v6005_v24 = vld [vmem:[#allocation3 + $0x1f8] sm:$0xff]  ;;  %v6006_v26 = vld [vmem:[#allocation3 + $0x200] sm:$0xff] }
 0x92e   :  { %7659 = vmatmul.mubr.f32.gmra.mrb[146].mxu1 %v17800_v11  ;;  %v6070_v11 = vld [vmem:[#allocation3 + $0x201] sm:$0xff] }
 0x92f   :  { %7663 = vmatprep.mubr.f32.mxu1 %v6061_v42  ;;  %v15929_v47 = vpop.f32.mrb[114].mxu0 }
 0x930   :  { %v6812_v36 = vpop.f32.mrb[115].mxu0  ;;  %9554 = vmatmul.mubr.f32.gmra.mrb[28].mxu0 %v15817_v40 }
 0x931   :  { %9556 = vmatprep.mubr.f32.mxu0 %v6161_v14 }
 0x932   :  { %7664 = vmatmul.mubr.f32.gmra.mrb[148].mxu1 %v17802_v7  ;;  %v6071_v7 = vld [vmem:[#allocation3 + $0x211] sm:$0xff] }
 0x933   :  { %7668 = vmatprep.mubr.f32.mxu1 %v6062_v57  ;;  %v15933_v16 = vpop.f32.mrb[116].mxu0 }
 0x934   :  { %v6817_v20 = vpop.f32.mrb[117].mxu0  ;;  %9557 = vmatmul.mubr.f32.gmra.mrb[30].mxu0 %v6162_v27  ;;  %v6075_v27 = vld [vmem:[#allocation3 + $0x241] sm:$0xff] }
 0x935   :  { %v6007_v20 = vld [vmem:[#allocation3 + $0x210] sm:$0xff] }
 0x936   :  { %7669 = vmatmul.mubr.f32.gmra.mrb[150].mxu1 %v17803_v28 }
 0x937   :  { %7673 = vmatprep.mubr.f32.mxu1 %v6063_v56  ;;  %v15936_v10 = vpop.f32.mrb[118].mxu0  ;;  %v6072_v56 = vld [vmem:[#allocation3 + $0x219] sm:$0xff] }
 0x938   :  { %v6822_v38 = vpop.f32.mrb[119].mxu0 }
 0x93a   :  { %7674 = vmatmul.mubr.f32.gmra.mrb[152].mxu1 %v17804_v31  ;;  %v6008_v31 = vld [vmem:[#allocation3 + $0x218] sm:$0xff] }
 0x93b   :  { %7678 = vmatprep.mubr.f32.mxu1 %v6064_v21  ;;  %v15939_v40 = vpop.f32.mrb[120].mxu0 }
 0x93c   :  { %v6827_v52 = vpop.f32.mrb[121].mxu0 }
 0x93e   :  { %7679 = vmatmul.mubr.f32.gmra.mrb[154].mxu1 %v17805_v13  ;;  %v6009_v13 = vld [vmem:[#allocation3 + $0x228] sm:$0xff] }
 0x93f   :  { %7683 = vmatprep.mubr.f32.mxu1 %v6065_v54  ;;  %v15942_v62 = vpop.f32.mrb[122].mxu0  ;;  %v6073_v54 = vld [vmem:[#allocation3 + $0x229] sm:$0xff] }
 0x940   :  { %v6832_v12 = vpop.f32.mrb[123].mxu0 }
 0x941   :  { %v6074_v12 = vld [vmem:[#allocation3 + $0x231] sm:$0xff] }
 0x942   :  { %7684 = vmatmul.mubr.f32.gmra.mrb[156].mxu1 %v15944_v53 }
 0x943   :  { %7688 = vmatprep.mubr.f32.mxu1 %v6066_v30  ;;  %v15947_v58 = vpop.f32.mrb[124].mxu0 }
 0x944   :  { %v6837_v25 = vpop.f32.mrb[125].mxu0 }
 0x946   :  { %7689 = vmatmul.mubr.f32.gmra.mrb[158].mxu1 %v15944_v53 }
 0x947   :  { %7693 = vmatprep.mubr.f32.mxu1 %v6067_v5  ;;  %v15950_v3 = vpop.f32.mrb[126].mxu0  ;;  %v6010_v5 = vld [vmem:[#allocation3 + $0x230] sm:$0xff] }
 0x948   :  { %v6842_v39 = vpop.f32.mrb[127].mxu0 }
 0x949   :  { %v6011_v39 = vld [vmem:[#allocation3 + $0x240] sm:$0xff] }
 0x94a   :  { %7694 = vmatmul.mubr.f32.gmra.mrb[32].mxu1 %v6003_v8 }
 0x94b   :  { %7698 = vmatprep.mubr.f32.mxu1 %v6068_v34  ;;  %v15952_v0 = vpop.f32.mrb[128].mxu0 }
 0x94c   :  { %v6847_v17 = vpop.f32.mrb[129].mxu0 }
 0x94e   :  { %7699 = vmatmul.mubr.f32.gmra.mrb[34].mxu1 %v6004_v61  ;;  %v6076_v61 = vld [vmem:[#allocation3 + $0x249] sm:$0xff] }
 0x94f   :  { %7703 = vmatprep.mubr.f32.mxu1 %v6069_v15  ;;  %v15954_v49 = vpop.f32.mrb[130].mxu0  ;;  %v6012_v15 = vld [vmem:[#allocation3 + $0x248] sm:$0xff] }
 0x950   :  { %v6852_v29 = vpop.f32.mrb[131].mxu0 }
 0x951   :  { %v6077_v29 = vld [vmem:[#allocation3 + $0x259] sm:$0xff] }
 0x952   :  { %7704 = vmatmul.mubr.f32.gmra.mrb[36].mxu1 %v6005_v24 }
 0x953   :  { %7708 = vmatprep.mubr.f32.mxu1 %v6070_v11  ;;  %v15956_v42 = vpop.f32.mrb[132].mxu0 }
 0x954   :  { %v6857_v36 = vpop.f32.mrb[133].mxu0 }
 0x956   :  { %7709 = vmatmul.mubr.f32.gmra.mrb[38].mxu1 %v6006_v26  ;;  %v6013_v26 = vld [vmem:[#allocation3 + $0x258] sm:$0xff] }
 0x957   :  { %7713 = vmatprep.mubr.f32.mxu1 %v6071_v7  ;;  %v15958_v57 = vpop.f32.mrb[134].mxu0  ;;  %v6078_v7 = vld [vmem:[#allocation3 + $0x261] sm:$0xff] }
 0x958   :  { %v6862_v28 = vpop.f32.mrb[135].mxu0 }
 0x959   :  { %v6014_v28 = vld [vmem:[#allocation3 + $0x260] sm:$0xff] }
 0x95a   :  { %7714 = vmatmul.mubr.f32.gmra.mrb[40].mxu1 %v6007_v20 }
 0x95b   :  { %7718 = vmatprep.mubr.f32.mxu1 %v6072_v56  ;;  %v15960_v38 = vpop.f32.mrb[136].mxu0 }
 0x95c   :  { %v6867_v21 = vpop.f32.mrb[137].mxu0 }
 0x95e   :  { %7719 = vmatmul.mubr.f32.gmra.mrb[42].mxu1 %v6008_v31  ;;  %v6079_v31 = vld [vmem:[#allocation3 + $0x271] sm:$0xff] }
 0x95f   :  { %7723 = vmatprep.mubr.f32.mxu1 %v6073_v54  ;;  %v15962_v52 = vpop.f32.mrb[138].mxu0  ;;  %v6015_v54 = vld [vmem:[#allocation3 + $0x270] sm:$0xff] }
 0x960   :  { %v6872_v30 = vpop.f32.mrb[139].mxu0 }
 0x961   :  { %v6080_v30 = vld [vmem:[#allocation3 + $0x279] sm:$0xff] }
 0x962   :  { %7724 = vmatmul.mubr.f32.gmra.mrb[44].mxu1 %v6009_v13 }
 0x963   :  { %7728 = vmatprep.mubr.f32.mxu1 %v6074_v12  ;;  %v15964_v25 = vpop.f32.mrb[140].mxu0 }
 0x964   :  { %v6877_v14 = vpop.f32.mrb[141].mxu0 }
 0x966   :  { %7729 = vmatmul.mubr.f32.gmra.mrb[46].mxu1 %v6010_v5  ;;  %v6016_v5 = vld [vmem:[#allocation3 + $0x278] sm:$0xff] }
 0x967   :  { %7733 = vmatprep.mubr.f32.mxu1 %v6075_v27  ;;  %v15966_v8 = vpop.f32.mrb[142].mxu0  ;;  %v6081_v27 = vld [vmem:[#allocation3 + $0x289] sm:$0xff] }
 0x968   :  { %v6882_v34 = vpop.f32.mrb[143].mxu0 }
 0x969   :  { %v6017_v34 = vld [vmem:[#allocation3 + $0x288] sm:$0xff] }
 0x96a   :  { %7734 = vmatmul.mubr.f32.gmra.mrb[48].mxu1 %v6011_v39 }
 0x96b   :  { %7738 = vmatprep.mubr.f32.mxu1 %v6076_v61  ;;  %v15968_v17 = vpop.f32.mrb[144].mxu0 }
 0x96c   :  { %v6887_v24 = vpop.f32.mrb[145].mxu0 }
 0x96e   :  { %7739 = vmatmul.mubr.f32.gmra.mrb[50].mxu1 %v6012_v15  ;;  %v6082_v15 = vld [vmem:[#allocation3 + $0x291] sm:$0xff] }
 0x96f   :  { %7743 = vmatprep.mubr.f32.mxu1 %v6077_v29  ;;  %v15970_v11 = vpop.f32.mrb[146].mxu0  ;;  %v6018_v29 = vld [vmem:[#allocation3 + $0x290] sm:$0xff] }
 0x970   :  { %v6892_v36 = vpop.f32.mrb[147].mxu0 }
 0x971   :  { %v6083_v36 = vld [vmem:[#allocation3 + $0x2a1] sm:$0xff] }
 0x972   :  { %7744 = vmatmul.mubr.f32.gmra.mrb[52].mxu1 %v6013_v26 }
 0x973   :  { %7748 = vmatprep.mubr.f32.mxu1 %v6078_v7  ;;  %v15972_v20 = vpop.f32.mrb[148].mxu0 }
 0x974   :  { %v6897_v56 = vpop.f32.mrb[149].mxu0 }
 0x976   :  { %7749 = vmatmul.mubr.f32.gmra.mrb[54].mxu1 %v6014_v28  ;;  %v6019_v28 = vld [vmem:[#allocation3 + $0x2a0] sm:$0xff] }
 0x977   :  { %7753 = vmatprep.mubr.f32.mxu1 %v6079_v31  ;;  %v15974_v21 = vpop.f32.mrb[150].mxu0  ;;  %v6084_v31 = vld [vmem:[#allocation3 + $0x2a9] sm:$0xff] }
 0x978   :  { %v6902_v13 = vpop.f32.mrb[151].mxu0 }
 0x979   :  { %v6020_v13 = vld [vmem:[#allocation3 + $0x2a8] sm:$0xff] }
 0x97a   :  { %7754 = vmatmul.mubr.f32.gmra.mrb[56].mxu1 %v6015_v54 }
 0x97b   :  { %7758 = vmatprep.mubr.f32.mxu1 %v6080_v30  ;;  %v15976_v12 = vpop.f32.mrb[152].mxu0 }
 0x97c   :  { %v6907_v14 = vpop.f32.mrb[153].mxu0 }
 0x97e   :  { %7759 = vmatmul.mubr.f32.gmra.mrb[58].mxu1 %v6016_v5  ;;  %v6085_v5 = vld [vmem:[#allocation3 + $0x2b9] sm:$0xff] }
 0x97f   :  { %7763 = vmatprep.mubr.f32.mxu1 %v6081_v27  ;;  %v15978_v39 = vpop.f32.mrb[154].mxu0  ;;  %v6021_v27 = vld [vmem:[#allocation3 + $0x2b8] sm:$0xff] }
 0x980   :  { %v6912_v61 = vpop.f32.mrb[155].mxu0 }
 0x981   :  { %v6086_v61 = vld [vmem:[#allocation3 + $0x2c1] sm:$0xff] }
 0x982   :  { %7764 = vmatmul.mubr.f32.gmra.mrb[60].mxu1 %v6017_v34 }
 0x983   :  { %7768 = vmatprep.mubr.f32.mxu1 %v6082_v15  ;;  %v15980_v24 = vpop.f32.mrb[156].mxu0 }
 0x984   :  { %v6917_v26 = vpop.f32.mrb[157].mxu0 }
 0x986   :  { %7769 = vmatmul.mubr.f32.gmra.mrb[62].mxu1 %v6018_v29  ;;  %v6022_v29 = vld [vmem:[#allocation3 + $0x2c0] sm:$0xff] }
 0x987   :  { %7773 = vmatprep.mubr.f32.mxu1 %v6083_v36  ;;  %v15982_v7 = vpop.f32.mrb[158].mxu0  ;;  %v6087_v36 = vld [vmem:[#allocation3 + $0x2d1] sm:$0xff] }
 0x988   :  { %v6922_v56 = vpop.f32.mrb[159].mxu0 }
 0x989   :  { %v6023_v56 = vld [vmem:[#allocation3 + $0x2d0] sm:$0xff] }
 0x98a   :  { %7774 = vmatmul.mubr.f32.gmra.mrb[64].mxu1 %v6019_v28 }
 0x98b   :  { %7778 = vmatprep.mubr.f32.mxu1 %v6084_v31  ;;  %v9465_v54 = vpop.f32.mrb[224].mxu0 }
 0x98c   :  { %v7920_v30 = vpop.f32.mrb[225].mxu0 }
 0x98e   :  { %7779 = vmatmul.mubr.f32.gmra.mrb[66].mxu1 %v6020_v13  ;;  %v6088_v13 = vld [vmem:[#allocation3 + $0x2d9] sm:$0xff] }
 0x98f   :  { %7783 = vmatprep.mubr.f32.mxu1 %v6085_v5  ;;  %v15984_v14 = vpop.f32.mrb[226].mxu0  ;;  %v15997_v5 = vld [vmem:[%s17419_s8] ss:$0 sm:$0xff] }
 0x990   :  { %v7930_v34 = vpop.f32.mrb[227].mxu0  ;;  %v9865_v19 = vadd.f32 %v15997_v5, %v15889_v50  ;;  %v6026_v50 = vld [vmem:[#allocation3 + $0x2f0] sm:$0xff] }
 0x992   :  { %7784 = vmatmul.mubr.f32.gmra.mrb[68].mxu1 %v6021_v27  ;;  %v9863_v27 = vadd.f32 %v15997_v5, %v15884_v4  ;;  %v6025_v4 = vld [vmem:[#allocation3 + $0x2e8] sm:$0xff] }
 0x993   :  { %7788 = vmatprep.mubr.f32.mxu1 %v6086_v61  ;;  %v15986_v15 = vpop.f32.mrb[228].mxu0 }
 0x994   :  { %v15988_v26 = vpop.f32.mrb[229].mxu0 }
 0x996   :  { %7789 = vmatmul.mubr.f32.gmra.mrb[70].mxu1 %v6022_v29 }
 0x997   :  { %7793 = vmatprep.mubr.f32.mxu1 %v6087_v36  ;;  %v15990_v28 = vpop.f32.mrb[230].mxu0  ;;  %v6024_v36 = vld [vmem:[#allocation3 + $0x2d8] sm:$0xff] }
 0x998   :  { %v15992_v31 = vpop.f32.mrb[231].mxu0 }
 0x99a   :  { %7794 = vmatmul.mubr.f32.gmra.mrb[72].mxu1 %v6023_v56  ;;  %v6089_v56 = vld [vmem:[#allocation3 + $0x2e9] sm:$0xff] }
 0x99b   :  { %7798 = vmatprep.mubr.f32.mxu1 %v6088_v13  ;;  %v16001_v61 = vpop.f32.mrb[232].mxu0 }
 0x99c   :  { %v16003_v60 = vpop.f32.mrb[233].mxu0 }
 0x99d   :  { %v7535_v29 = vpop.f32.mrb[96].mxu1 }
 0x99e   :  { %v9864_v55 = vadd.f32 %v9863_v27, %v7535_v29  ;;  %v7537_v41 = vpop.f32.mrb[97].mxu1  ;;  %7799 = vmatmul.mubr.f32.gmra.mrb[74].mxu1 %v6024_v36 }
 0x99f   :  { %7803 = vmatprep.mubr.f32.mxu1 %v6089_v56  ;;  %v16009_v13 = vpop.f32.mrb[234].mxu0  ;;  %v9867_v41 = vadd.f32 %v15997_v5, %v15894_v2 }
 0x9a0   :  { %v16007_v9 = vadd.f32 %v9864_v55, %v7920_v30  ;;  %v16011_v32 = vpop.f32.mrb[235].mxu0 }
 0x9a1   :  { %v7540_v35 = vpop.f32.mrb[98].mxu1 }
 0x9a2   :  { %v9866_v51 = vadd.f32 %v9865_v19, %v7540_v35  ;;  %v7542_v1 = vpop.f32.mrb[99].mxu1  ;;  %7804 = vmatmul.mubr.f32.gmra.mrb[76].mxu1 %v6025_v4  ;;  %v6027_v19 = vld [vmem:[#allocation3 + $0x300] sm:$0xff] }
 0x9a3   :  { %7808 = vmatprep.mubr.f32.mxu1 %v6090_v59  ;;  %v16017_v29 = vpop.f32.mrb[236].mxu0  ;;  %v9869_v1 = vadd.f32 %v15997_v5, %v15899_v23 }
 0x9a4   :  { %v16015_v27 = vadd.f32 %v9866_v51, %v9465_v54  ;;  %v16019_v30 = vpop.f32.mrb[237].mxu0 }
 0x9a5   :  { %v7545_v55 = vpop.f32.mrb[100].mxu1 }
 0x9a6   :  { %17806 = vst [vmem:[#allocation4_spill] sm:$0xff] %v16015_v27  ;;  %v9868_v36 = vadd.f32 %v9867_v41, %v7545_v55  ;;  %v7547_v56 = vpop.f32.mrb[101].mxu1  ;;  %7809 = vmatmul.mubr.f32.gmra.mrb[78].mxu1 %v6026_v50  ;;  %v9871_v41 = vadd.f32 %v15997_v5, %v15904_v33  ;;  %v6028_v55 = vld [vmem:[#allocation3 + $0x308] sm:$0xff] }
 0x9a7   :  { %7813 = vmatprep.mubr.f32.mxu1 %v6091_v46  ;;  %v16025_v35 = vpop.f32.mrb[238].mxu0 }
 0x9a8   :  { %v16023_v59 = vadd.f32 %v9868_v36, %v7930_v34  ;;  %v16027_v2 = vpop.f32.mrb[239].mxu0 }
 0x9a9   :  { %v7550_v51 = vpop.f32.mrb[102].mxu1 }
 0x9aa   :  { %17807 = vst [vmem:[#allocation28_spill] sm:$0xff] %v16023_v59  ;;  %v9870_v54 = vadd.f32 %v9869_v1, %v7550_v51  ;;  %v7552_v4 = vpop.f32.mrb[103].mxu1  ;;  %7814 = vmatmul.mubr.f32.gmra.mrb[80].mxu1 %v6027_v19  ;;  %v6093_v1 = vld [vmem:[#allocation3 + $0x319] sm:$0xff] }
 0x9ab   :  { %7818 = vmatprep.mubr.f32.mxu1 %v6092_v44  ;;  %v16034_v23 = vpop.f32.mrb[240].mxu0  ;;  %v9873_v44 = vadd.f32 %v15997_v5, %v15909_v43  ;;  %v6029_v19 = vld [vmem:[#allocation3 + $0x318] sm:$0xff] }
 0x9ac   :  { %v16032_v46 = vadd.f32 %v9870_v54, %v15984_v14  ;;  %v16036_v50 = vpop.f32.mrb[241].mxu0 }
 0x9ad   :  { %v7555_v34 = vpop.f32.mrb[104].mxu1 }
 0x9ae   :  { %17808 = vst [vmem:[#allocation6_spill] sm:$0xff] %v16032_v46  ;;  %v9872_v36 = vadd.f32 %v9871_v41, %v7555_v34  ;;  %v7557_v56 = vpop.f32.mrb[105].mxu1  ;;  %7819 = vmatmul.mubr.f32.gmra.mrb[82].mxu1 %v6028_v55  ;;  %v6094_v41 = vld [vmem:[#allocation3 + $0x321] sm:$0xff]  ;;  %v9875_v34 = vadd.f32 %v15997_v5, %v15914_v63 }
 0x9af   :  { %7823 = vmatprep.mubr.f32.mxu1 %v6093_v1  ;;  %v16043_v33 = vpop.f32.mrb[242].mxu0 }
 0x9b0   :  { %v16041_v51 = vadd.f32 %v9872_v36, %v15988_v26  ;;  %v16045_v54 = vpop.f32.mrb[243].mxu0  ;;  %v6030_v36 = vld [vmem:[#allocation3 + $0x320] sm:$0xff] }
 0x9b1   :  { %v7560_v14 = vpop.f32.mrb[106].mxu1 }
 0x9b2   :  { %17809 = vst [vmem:[#allocation31_spill] sm:$0xff] %v16041_v51  ;;  %v9874_v4 = vadd.f32 %v9873_v44, %v7560_v14  ;;  %v7562_v45 = vpop.f32.mrb[107].mxu1  ;;  %7824 = vmatmul.mubr.f32.gmra.mrb[84].mxu1 %v6029_v19  ;;  %v6095_v44 = vld [vmem:[#allocation3 + $0x331] sm:$0xff] }
 0x9b3   :  { %7828 = vmatprep.mubr.f32.mxu1 %v6094_v41  ;;  %v16052_v43 = vpop.f32.mrb[244].mxu0  ;;  %v9877_v45 = vadd.f32 %v15997_v5, %v15919_v6  ;;  %v6031_v19 = vld [vmem:[#allocation3 + $0x330] sm:$0xff] }
 0x9b4   :  { %v16050_v55 = vadd.f32 %v9874_v4, %v15986_v15  ;;  %v16054_v56 = vpop.f32.mrb[245].mxu0  ;;  %v6097_v6 = vld [vmem:[#allocation3 + $0x349] sm:$0xff] }
 0x9b5   :  { %v7565_v26 = vpop.f32.mrb[108].mxu1 }
 0x9b6   :  { %17810 = vst [vmem:[#allocation34_spill] sm:$0xff] %v16050_v55  ;;  %v9876_v1 = vadd.f32 %v9875_v34, %v7565_v26  ;;  %v7567_v18 = vpop.f32.mrb[109].mxu1  ;;  %7829 = vmatmul.mubr.f32.gmra.mrb[86].mxu1 %v6030_v36  ;;  %v6096_v34 = vld [vmem:[#allocation3 + $0x339] sm:$0xff] }
 0x9b7   :  { %7833 = vmatprep.mubr.f32.mxu1 %v6095_v44  ;;  %v16061_v63 = vpop.f32.mrb[246].mxu0  ;;  %v9879_v18 = vadd.f32 %v15997_v5, %v15924_v48  ;;  %v6098_v48 = vld [vmem:[#allocation3 + $0x351] sm:$0xff] }
 0x9b8   :  { %v16059_v14 = vadd.f32 %v9876_v1, %v15992_v31  ;;  %v16063_v4 = vpop.f32.mrb[247].mxu0  ;;  %v6032_v1 = vld [vmem:[#allocation3 + $0x338] sm:$0xff] }
 0x9b9   :  { %v7570_v15 = vpop.f32.mrb[110].mxu1 }
 0x9ba   :  { %17811 = vst [vmem:[#allocation23_spill] sm:$0xff] %v16059_v14  ;;  %v9878_v41 = vadd.f32 %v9877_v45, %v7570_v15  ;;  %v7572_v22 = vpop.f32.mrb[111].mxu1  ;;  %7834 = vmatmul.mubr.f32.gmra.mrb[88].mxu1 %v6031_v19 }
 0x9bb   :  { %7838 = vmatprep.mubr.f32.mxu1 %v6096_v34  ;;  %v16070_v31 = vpop.f32.mrb[248].mxu0  ;;  %v9881_v22 = vadd.f32 %v15997_v5, %v15929_v47 }
 0x9bc   :  { %v16068_v26 = vadd.f32 %v9878_v41, %v15990_v28  ;;  %v16072_v44 = vpop.f32.mrb[249].mxu0 }
 0x9bd   :  { %v7575_v36 = vpop.f32.mrb[112].mxu1 }
 0x9be   :  { %17812 = vst [vmem:[#allocation25_spill] sm:$0xff] %v16068_v26  ;;  %v9880_v37 = vadd.f32 %v9879_v18, %v7575_v36  ;;  %v7577_v14 = vpop.f32.mrb[113].mxu1  ;;  %7839 = vmatmul.mubr.f32.gmra.mrb[90].mxu1 %v6032_v1  ;;  %v9885_v1 = vadd.f32 %v15997_v5, %v15936_v10 }
 0x9bf   :  { %7843 = vmatprep.mubr.f32.mxu1 %v6097_v6  ;;  %v16079_v28 = vpop.f32.mrb[250].mxu0  ;;  %v9883_v14 = vadd.f32 %v15997_v5, %v15933_v16 }
 0x9c0   :  { %v16077_v45 = vadd.f32 %v9880_v37, %v16003_v60  ;;  %v16081_v19 = vpop.f32.mrb[251].mxu0 }
 0x9c1   :  { %v7580_v15 = vpop.f32.mrb[114].mxu1 }
 0x9c2   :  { %17813 = vst [vmem:[#allocation44_spill] sm:$0xff] %v16077_v45  ;;  %v9882_v41 = vadd.f32 %v9881_v22, %v7580_v15  ;;  %v7582_v34 = vpop.f32.mrb[115].mxu1  ;;  %7844 = vmatmul.mubr.f32.gmra.mrb[92].mxu1 %v15944_v53 }
 0x9c3   :  { %7848 = vmatprep.mubr.f32.mxu1 %v6098_v48  ;;  %v16089_v47 = vpop.f32.mrb[252].mxu0  ;;  %v9887_v34 = vadd.f32 %v15997_v5, %v15939_v40 }
 0x9c4   :  { %v16087_v18 = vadd.f32 %v9882_v41, %v16001_v61  ;;  %v16091_v60 = vpop.f32.mrb[253].mxu0 }
 0x9c5   :  { %v7585_v37 = vpop.f32.mrb[116].mxu1 }
 0x9c6   :  { %17814 = vst [vmem:[#allocation45_spill] sm:$0xff] %v16087_v18  ;;  %v9884_v6 = vadd.f32 %v9883_v14, %v7585_v37  ;;  %v7587_v36 = vpop.f32.mrb[117].mxu1  ;;  %7849 = vmatmul.mubr.f32.gmra.mrb[94].mxu1 %v15944_v53 }
 0x9c7   :  { %v16099_v48 = vpop.f32.mrb[254].mxu0  ;;  %v9889_v36 = vadd.f32 %v15997_v5, %v15942_v62 }
 0x9c8   :  { %v16097_v22 = vadd.f32 %v9884_v6, %v16011_v32  ;;  %v16101_v61 = vpop.f32.mrb[255].mxu0 }
 0x9c9   :  { %v7590_v16 = vpop.f32.mrb[118].mxu1 }
 0x9ca   :  { %17815 = vst [vmem:[#allocation46_spill] sm:$0xff] %v16097_v22  ;;  %v9886_v15 = vadd.f32 %v9885_v1, %v7590_v16  ;;  %v7592_v41 = vpop.f32.mrb[119].mxu1 }
 0x9cb   :  { %v16108_v53 = vpop.f32.mrb[0].mxu0  ;;  %v9891_v41 = vadd.f32 %v15997_v5, %v15947_v58 }
 0x9cc   :  { %v16106_v14 = vadd.f32 %v9886_v15, %v16009_v13  ;;  %v16110_v10 = vpop.f32.mrb[1].mxu0 }
 0x9cd   :  { %v7595_v37 = vpop.f32.mrb[120].mxu1 }
 0x9ce   :  { %17816 = vst [vmem:[#allocation47_spill] sm:$0xff] %v16106_v14  ;;  %v9888_v32 = vadd.f32 %v9887_v34, %v7595_v37  ;;  %v7597_v6 = vpop.f32.mrb[121].mxu1 }
 0x9cf   :  { %v16117_v1 = vpop.f32.mrb[2].mxu0  ;;  %v9893_v6 = vadd.f32 %v15997_v5, %v15950_v3 }
 0x9d0   :  { %v16115_v22 = vadd.f32 %v9888_v32, %v16019_v30  ;;  %v16119_v40 = vpop.f32.mrb[3].mxu0 }
 0x9d1   :  { %v7600_v16 = vpop.f32.mrb[122].mxu1 }
 0x9d2   :  { %17817 = vst [vmem:[#allocation48_spill] sm:$0xff] %v16115_v22  ;;  %v9890_v13 = vadd.f32 %v9889_v36, %v7600_v16  ;;  %v7602_v15 = vpop.f32.mrb[123].mxu1 }
 0x9d3   :  { %v16126_v34 = vpop.f32.mrb[4].mxu0  ;;  %v9895_v15 = vadd.f32 %v15997_v5, %v15952_v0 }
 0x9d4   :  { %v16124_v14 = vadd.f32 %v9890_v13, %v16017_v29  ;;  %v16128_v62 = vpop.f32.mrb[5].mxu0 }
 0x9d5   :  { %v7605_v37 = vpop.f32.mrb[124].mxu1 }
 0x9d6   :  { %17818 = vst [vmem:[#allocation49_spill] sm:$0xff] %v16124_v14  ;;  %v9892_v30 = vadd.f32 %v9891_v41, %v7605_v37  ;;  %v7607_v32 = vpop.f32.mrb[125].mxu1 }
 0x9d7   :  { %v16135_v36 = vpop.f32.mrb[6].mxu0  ;;  %v9897_v32 = vadd.f32 %v15997_v5, %v15954_v49 }
 0x9d8   :  { %v16133_v22 = vadd.f32 %v9892_v30, %v16027_v2  ;;  %v16137_v58 = vpop.f32.mrb[7].mxu0 }
 0x9d9   :  { %v7610_v16 = vpop.f32.mrb[126].mxu1 }
 0x9da   :  { %17819 = vst [vmem:[#allocation50_spill] sm:$0xff] %v16133_v22  ;;  %v9894_v29 = vadd.f32 %v9893_v6, %v7610_v16  ;;  %v7612_v13 = vpop.f32.mrb[127].mxu1 }
 0x9db   :  { %v16144_v41 = vpop.f32.mrb[8].mxu0  ;;  %v9899_v13 = vadd.f32 %v15997_v5, %v15956_v42 }
 0x9dc   :  { %v16142_v14 = vadd.f32 %v9894_v29, %v16025_v35  ;;  %v16146_v3 = vpop.f32.mrb[9].mxu0 }
 0x9dd   :  { %v7615_v37 = vpop.f32.mrb[128].mxu1 }
 0x9de   :  { %17820 = vst [vmem:[#allocation51_spill] sm:$0xff] %v16142_v14  ;;  %v9896_v2 = vadd.f32 %v9895_v15, %v7615_v37  ;;  %v7617_v30 = vpop.f32.mrb[129].mxu1 }
 0x9df   :  { %v16153_v6 = vpop.f32.mrb[10].mxu0  ;;  %v9901_v30 = vadd.f32 %v15997_v5, %v15958_v57 }
 0x9e0   :  { %v16151_v22 = vadd.f32 %v9896_v2, %v16036_v50  ;;  %17822 = vst [vmem:[#allocation53_spill] sm:$0xff] %v16153_v6  ;;  %v16155_v0 = vpop.f32.mrb[11].mxu0 }
 0x9e1   :  { %v7620_v16 = vpop.f32.mrb[130].mxu1 }
 0x9e2   :  { %17821 = vst [vmem:[#allocation52_spill] sm:$0xff] %v16151_v22  ;;  %v9898_v35 = vadd.f32 %v9897_v32, %v7620_v16  ;;  %v7622_v29 = vpop.f32.mrb[131].mxu1 }
 0x9e3   :  { %v16162_v15 = vpop.f32.mrb[12].mxu0  ;;  %v9903_v29 = vadd.f32 %v15997_v5, %v15960_v38 }
 0x9e4   :  { %v16160_v14 = vadd.f32 %v9898_v35, %v16034_v23  ;;  %17823 = vst [vmem:[#allocation54_spill] sm:$0xff] %v16162_v15  ;;  %v16164_v49 = vpop.f32.mrb[13].mxu0 }
 0x9e5   :  { %v7625_v37 = vpop.f32.mrb[132].mxu1 }
 0x9e6   :  { %v9900_v50 = vadd.f32 %v9899_v13, %v7625_v37  ;;  %v7627_v2 = vpop.f32.mrb[133].mxu1 }
 0x9e7   :  { %v16171_v32 = vpop.f32.mrb[14].mxu0  ;;  %v9905_v2 = vadd.f32 %v15997_v5, %v15962_v52 }
 0x9e8   :  { %v16169_v6 = vadd.f32 %v9900_v50, %v16045_v54  ;;  %17824 = vst [vmem:[#allocation55_spill] sm:$0xff] %v16171_v32  ;;  %v16173_v42 = vpop.f32.mrb[15].mxu0 }
 0x9e9   :  { %v7630_v16 = vpop.f32.mrb[134].mxu1 }
 0x9ea   :  { %v9902_v23 = vadd.f32 %v9901_v30, %v7630_v16  ;;  %v7632_v35 = vpop.f32.mrb[135].mxu1 }
 0x9eb   :  { %v16180_v13 = vpop.f32.mrb[16].mxu0  ;;  %v9907_v35 = vadd.f32 %v15997_v5, %v15964_v25 }
 0x9ec   :  { %v16178_v15 = vadd.f32 %v9902_v23, %v16043_v33  ;;  %17825 = vst [vmem:[#allocation56_spill] sm:$0xff] %v16180_v13  ;;  %v16182_v57 = vpop.f32.mrb[17].mxu0 }
 0x9ed   :  { %v7635_v37 = vpop.f32.mrb[136].mxu1 }
 0x9ee   :  { %v9904_v54 = vadd.f32 %v9903_v29, %v7635_v37  ;;  %v7637_v50 = vpop.f32.mrb[137].mxu1 }
 0x9ef   :  { %v16189_v30 = vpop.f32.mrb[18].mxu0  ;;  %v9909_v50 = vadd.f32 %v15997_v5, %v15966_v8 }
 0x9f0   :  { %v16187_v32 = vadd.f32 %v9904_v54, %v16054_v56  ;;  %17827 = vst [vmem:[#allocation58_spill] sm:$0xff] %v16189_v30  ;;  %v16191_v38 = vpop.f32.mrb[19].mxu0 }
 0x9f1   :  { %v7640_v16 = vpop.f32.mrb[138].mxu1 }
 0x9f2   :  { %17826 = vst [vmem:[#allocation57_spill] sm:$0xff] %v16187_v32  ;;  %v9906_v33 = vadd.f32 %v9905_v2, %v7640_v16  ;;  %v7642_v23 = vpop.f32.mrb[139].mxu1 }
 0x9f3   :  { %v16198_v29 = vpop.f32.mrb[20].mxu0  ;;  %v9911_v23 = vadd.f32 %v15997_v5, %v15968_v17 }
 0x9f4   :  { %v16196_v13 = vadd.f32 %v9906_v33, %v16052_v43  ;;  %17828 = vst [vmem:[#allocation59_spill] sm:$0xff] %v16198_v29  ;;  %v16200_v52 = vpop.f32.mrb[21].mxu0 }
 0x9f5   :  { %v7645_v37 = vpop.f32.mrb[140].mxu1 }
 0x9f6   :  { %v9908_v56 = vadd.f32 %v9907_v35, %v7645_v37  ;;  %v7647_v54 = vpop.f32.mrb[141].mxu1 }
 0x9f7   :  { %v16207_v2 = vpop.f32.mrb[22].mxu0  ;;  %v9913_v54 = vadd.f32 %v15997_v5, %v15970_v11 }
 0x9f8   :  { %v16205_v30 = vadd.f32 %v9908_v56, %v16063_v4  ;;  %17829 = vst [vmem:[#allocation60_spill] sm:$0xff] %v16207_v2  ;;  %v16209_v25 = vpop.f32.mrb[23].mxu0 }
 0x9f9   :  { %v7650_v16 = vpop.f32.mrb[142].mxu1 }
 0x9fa   :  { %v9910_v43 = vadd.f32 %v9909_v50, %v7650_v16  ;;  %v7652_v33 = vpop.f32.mrb[143].mxu1 }
 0x9fb   :  { %v16216_v35 = vpop.f32.mrb[24].mxu0  ;;  %v9915_v33 = vadd.f32 %v15997_v5, %v15972_v20  ;;  %v9919_v20 = vadd.f32 %v15997_v5, %v15976_v12 }
 0x9fc   :  { %v16214_v29 = vadd.f32 %v9910_v43, %v16061_v63  ;;  %17830 = vst [vmem:[#allocation61_spill] sm:$0xff] %v16216_v35  ;;  %v16218_v8 = vpop.f32.mrb[25].mxu0 }
 0x9fd   :  { %v7655_v37 = vpop.f32.mrb[144].mxu1 }
 0x9fe   :  { %v9912_v4 = vadd.f32 %v9911_v23, %v7655_v37  ;;  %v7657_v56 = vpop.f32.mrb[145].mxu1 }
 0x9ff   :  { %v16225_v50 = vpop.f32.mrb[26].mxu0  ;;  %v9917_v56 = vadd.f32 %v15997_v5, %v15974_v21 }
 0xa00   :  { %v16223_v2 = vadd.f32 %v9912_v4, %v16072_v44  ;;  %17832 = vst [vmem:[#allocation63_spill] sm:$0xff] %v16225_v50  ;;  %v16227_v17 = vpop.f32.mrb[27].mxu0 }
 0xa01   :  { %v7660_v16 = vpop.f32.mrb[146].mxu1 }
 0xa02   :  { %17831 = vst [vmem:[#allocation62_spill] sm:$0xff] %v16223_v2  ;;  %v9914_v63 = vadd.f32 %v9913_v54, %v7660_v16  ;;  %v7662_v43 = vpop.f32.mrb[147].mxu1 }
 0xa03   :  { %v16234_v23 = vpop.f32.mrb[28].mxu0 }
 0xa04   :  { %v16232_v35 = vadd.f32 %v9914_v63, %v16070_v31  ;;  %17833 = vst [vmem:[#allocation64_spill] sm:$0xff] %v16234_v23  ;;  %v16236_v11 = vpop.f32.mrb[29].mxu0 }
 0xa05   :  { %v7665_v37 = vpop.f32.mrb[148].mxu1  ;;  %17834 = vst [vmem:[#allocation65_spill] sm:$0xff] %v16236_v11 }
 0xa06   :  { %v9916_v44 = vadd.f32 %v9915_v33, %v7665_v37  ;;  %v7667_v4 = vpop.f32.mrb[149].mxu1  ;;  %v9921_v33 = vadd.f32 %v15997_v5, %v15978_v39 }
 0xa07   :  { %v9923_v4 = vadd.f32 %v15997_v5, %v15980_v24 }
 0xa08   :  { %v16241_v50 = vadd.f32 %v9916_v44, %v16081_v19 }
 0xa09   :  { %v7670_v54 = vpop.f32.mrb[150].mxu1 }
 0xa0a   :  { %v9918_v16 = vadd.f32 %v9917_v56, %v7670_v54  ;;  %v7672_v43 = vpop.f32.mrb[151].mxu1 }
 0xa0b   :  { %v16263_v43 = vpop.f32.mrb[30].mxu0 }
 0xa0c   :  { %v16246_v31 = vadd.f32 %v9918_v16, %v16079_v28 }
 0xa0d   :  { %v7675_v63 = vpop.f32.mrb[152].mxu1 }
 0xa0e   :  { %v9920_v23 = vadd.f32 %v9919_v20, %v7675_v63  ;;  %v7677_v11 = vpop.f32.mrb[153].mxu1  ;;  %v17836_v20 = vld [vmem:[#allocation19_spill] sm:$0xff]  ;;  %v16270_v63 = vpop.f32.mrb[31].mxu0 }
 0xa0f   :  { %v9925_v11 = vadd.f32 %v15997_v5, %v15982_v7  ;;  %v6541_v24 = vadd.f32 %v15997_v5, %v17836_v20  ;;  %v17837_v7 = vld [vmem:[#allocation20_spill] sm:$0xff] }
 0xa10   :  { %v16251_v21 = vadd.f32 %v9920_v23, %v16091_v60  ;;  %v17840_v20 = vld [vmem:[#allocation32_spill] sm:$0xff] }
 0xa11   :  { %v7680_v19 = vpop.f32.mrb[154].mxu1 }
 0xa12   :  { %17835 = vst [vmem:[#allocation66_spill] sm:$0xff] %v16251_v21  ;;  %v9922_v37 = vadd.f32 %v9921_v33, %v7680_v19  ;;  %v7682_v44 = vpop.f32.mrb[155].mxu1 }
 0xa14   :  { %v16256_v12 = vadd.f32 %v9922_v37, %v16089_v47 }
 0xa15   :  { %v7685_v28 = vpop.f32.mrb[156].mxu1 }
 0xa16   :  { %v9924_v56 = vadd.f32 %v9923_v4, %v7685_v28  ;;  %v7687_v54 = vpop.f32.mrb[157].mxu1 }
 0xa17   :  { %v17839_v54 = vld [vmem:[#allocation30_spill] sm:$0xff] }
 0xa18   :  { %v16261_v39 = vadd.f32 %v9924_v56, %v16101_v61  ;;  %v6546_v61 = vadd.f32 %v15997_v5, %v17837_v7 }
 0xa19   :  { %v7690_v60 = vpop.f32.mrb[158].mxu1 }
 0xa1a   :  { %v9926_v23 = vadd.f32 %v9925_v11, %v7690_v60  ;;  %v7692_v16 = vpop.f32.mrb[159].mxu1  ;;  %v6551_v11 = vadd.f32 %v15997_v5, %v17839_v54 }
 0xa1c   :  { %v16268_v47 = vadd.f32 %v9926_v23, %v16099_v48 }
 0xa1d   :  { %v7695_v33 = vpop.f32.mrb[32].mxu1 }
 0xa1e   :  { %v9928_v19 = vadd.f32 %v7695_v33, %v6541_v24  ;;  %v7697_v37 = vpop.f32.mrb[33].mxu1  ;;  %v6556_v24 = vadd.f32 %v15997_v5, %v17840_v20 }
 0xa20   :  { %v16275_v44 = vadd.f32 %v9928_v19, %v16110_v10  ;;  %v8239_v19 = vadd.f32 %v16015_v27, %v16007_v9 }
 0xa21   :  { %v7700_v4 = vpop.f32.mrb[34].mxu1 }
 0xa22   :  { %17838 = vst [vmem:[#allocation19_spill] sm:$0xff] %v16275_v44  ;;  %v9930_v28 = vadd.f32 %v7700_v4, %v6546_v61  ;;  %v7702_v56 = vpop.f32.mrb[35].mxu1  ;;  %v17841_v61 = vld [vmem:[#allocation21_spill] sm:$0xff] }
 0xa23   :  { %v6561_v4 = vadd.f32 %v15997_v5, %v17841_v61  ;;  %v17845_v61 = vld [vmem:[#allocation23_spill] sm:$0xff] }
 0xa24   :  { %v16280_v48 = vadd.f32 %v9930_v28, %v16108_v53  ;;  %v8240_v53 = vadd.f32 %v8239_v19, %v16023_v59 }
 0xa25   :  { %v7705_v60 = vpop.f32.mrb[36].mxu1 }
 0xa26   :  { %v9932_v23 = vadd.f32 %v7705_v60, %v6551_v11  ;;  %v7707_v16 = vpop.f32.mrb[37].mxu1  ;;  %v8241_v54 = vadd.f32 %v8240_v53, %v16032_v46  ;;  %v17842_v60 = vld [vmem:[#allocation27_spill] sm:$0xff] }
 0xa28   :  { %v16285_v33 = vadd.f32 %v9932_v23, %v16119_v40  ;;  %v6566_v23 = vadd.f32 %v15997_v5, %v17842_v60  ;;  %v8242_v16 = vadd.f32 %v8241_v54, %v16041_v51 }
 0xa29   :  { %v7710_v10 = vpop.f32.mrb[38].mxu1 }
 0xa2a   :  { %v9934_v37 = vadd.f32 %v7710_v10, %v6556_v24  ;;  %v7712_v7 = vpop.f32.mrb[39].mxu1  ;;  %v8243_v10 = vadd.f32 %v8242_v16, %v16050_v55 }
 0xa2c   :  { %v16293_v28 = vadd.f32 %v9934_v37, %v16117_v1  ;;  %v17844_v1 = vld [vmem:[#allocation29_spill] sm:$0xff]  ;;  %v8244_v53 = vadd.f32 %v8243_v10, %v17845_v61  ;;  %v17848_v61 = vld [vmem:[#allocation46_spill] sm:$0xff] }
 0xa2d   :  { %v7715_v56 = vpop.f32.mrb[40].mxu1  ;;  %v6571_v37 = vadd.f32 %v15997_v5, %v17844_v1 }
 0xa2e   :  { %v9936_v11 = vadd.f32 %v7715_v56, %v6561_v4  ;;  %v7717_v40 = vpop.f32.mrb[41].mxu1 }
 0xa2f   :  { %v8245_v40 = vadd.f32 %v8244_v53, %v16068_v26  ;;  %v17851_v26 = vld [vmem:[#allocation48_spill] sm:$0xff] }
 0xa30   :  { %v16300_v20 = vadd.f32 %v9936_v11, %v16128_v62  ;;  %v17846_v62 = vld [vmem:[#allocation33_spill] sm:$0xff] }
 0xa31   :  { %v7720_v24 = vpop.f32.mrb[42].mxu1  ;;  %v6576_v11 = vadd.f32 %v15997_v5, %v17846_v62  ;;  %v8246_v16 = vadd.f32 %v8245_v40, %v16077_v45 }
 0xa32   :  { %17843 = vst [vmem:[#allocation20_spill] sm:$0xff] %v16300_v20  ;;  %v9938_v19 = vadd.f32 %v7720_v24, %v6566_v23  ;;  %v7722_v7 = vpop.f32.mrb[43].mxu1 }
 0xa33   :  { %v8247_v7 = vadd.f32 %v8246_v16, %v16087_v18  ;;  %v17855_v18 = vld [vmem:[#allocation50_spill] sm:$0xff] }
 0xa34   :  { %v16307_v4 = vadd.f32 %v9938_v19, %v16126_v34  ;;  %v17847_v34 = vld [vmem:[#allocation35_spill] sm:$0xff] }
 0xa35   :  { %v7725_v56 = vpop.f32.mrb[44].mxu1  ;;  %v6581_v19 = vadd.f32 %v15997_v5, %v17847_v34  ;;  %v8248_v53 = vadd.f32 %v8247_v7, %v17848_v61 }
 0xa36   :  { %v9940_v54 = vadd.f32 %v7725_v56, %v6571_v37  ;;  %v7727_v60 = vpop.f32.mrb[45].mxu1 }
 0xa37   :  { %v17849_v60 = vld [vmem:[#allocation47_spill] sm:$0xff] }
 0xa38   :  { %v16314_v23 = vadd.f32 %v9940_v54, %v16137_v58  ;;  %v8249_v62 = vadd.f32 %v8248_v53, %v17849_v60  ;;  %v17850_v58 = vld [vmem:[#allocation24_spill] sm:$0xff] }
 0xa39   :  { %v7730_v24 = vpop.f32.mrb[46].mxu1  ;;  %v6586_v54 = vadd.f32 %v15997_v5, %v17850_v58 }
 0xa3a   :  { %v9942_v10 = vadd.f32 %v7730_v24, %v6576_v11  ;;  %v7732_v1 = vpop.f32.mrb[47].mxu1  ;;  %v8250_v16 = vadd.f32 %v8249_v62, %v17851_v26 }
 0xa3b   :  { %v17853_v1 = vld [vmem:[#allocation49_spill] sm:$0xff] }
 0xa3c   :  { %v16321_v37 = vadd.f32 %v9942_v10, %v16135_v36  ;;  %v8251_v34 = vadd.f32 %v8250_v16, %v17853_v1  ;;  %v17854_v36 = vld [vmem:[#allocation26_spill] sm:$0xff] }
 0xa3d   :  { %v7735_v56 = vpop.f32.mrb[48].mxu1  ;;  %v6591_v10 = vadd.f32 %v15997_v5, %v17854_v36 }
 0xa3e   :  { %v9944_v40 = vadd.f32 %v7735_v56, %v6581_v19  ;;  %v7737_v45 = vpop.f32.mrb[49].mxu1  ;;  %v8252_v53 = vadd.f32 %v8251_v34, %v17855_v18  ;;  %v17856_v56 = vld [vmem:[#allocation51_spill] sm:$0xff] }
 0xa40   :  { %v16328_v11 = vadd.f32 %v9944_v40, %v16146_v3  ;;  %v8253_v58 = vadd.f32 %v8252_v53, %v17856_v56  ;;  %v17857_v3 = vld [vmem:[#allocation5_spill] sm:$0xff] }
 0xa41   :  { %v7740_v24 = vpop.f32.mrb[50].mxu1  ;;  %v6596_v40 = vadd.f32 %v15997_v5, %v17857_v3 }
 0xa42   :  { %17852 = vst [vmem:[#allocation30_spill] sm:$0xff] %v16328_v11  ;;  %v9946_v7 = vadd.f32 %v7740_v24, %v6586_v54  ;;  %v7742_v61 = vpop.f32.mrb[51].mxu1  ;;  %v8254_v16 = vadd.f32 %v8253_v58, %v16151_v22 }
 0xa44   :  { %v16335_v45 = vadd.f32 %v9946_v7, %v16144_v41  ;;  %v8255_v24 = vadd.f32 %v8254_v16, %v16160_v14  ;;  %v17858_v41 = vld [vmem:[#allocation7_spill] sm:$0xff] }
 0xa45   :  { %v7745_v19 = vpop.f32.mrb[52].mxu1  ;;  %v6601_v7 = vadd.f32 %v15997_v5, %v17858_v41 }
 0xa46   :  { %v9948_v62 = vadd.f32 %v7745_v19, %v6591_v10  ;;  %v7747_v26 = vpop.f32.mrb[53].mxu1  ;;  %v8256_v53 = vadd.f32 %v8255_v24, %v16169_v6  ;;  %v17859_v10 = vld [vmem:[#allocation53_spill] sm:$0xff] }
 0xa48   :  { %v16342_v61 = vadd.f32 %v9948_v62, %v16155_v0  ;;  %v8257_v3 = vadd.f32 %v8256_v53, %v16178_v15  ;;  %v17860_v0 = vld [vmem:[#allocation22_spill] sm:$0xff] }
 0xa49   :  { %v7750_v54 = vpop.f32.mrb[54].mxu1  ;;  %v6606_v62 = vadd.f32 %v15997_v5, %v17860_v0 }
 0xa4a   :  { %v9950_v34 = vadd.f32 %v7750_v54, %v6596_v40  ;;  %v7752_v36 = vpop.f32.mrb[55].mxu1  ;;  %v8258_v16 = vadd.f32 %v8257_v3, %v16187_v32 }
 0xa4c   :  { %v16349_v26 = vadd.f32 %v9950_v34, %v17859_v10  ;;  %v8259_v36 = vadd.f32 %v8258_v16, %v16196_v13  ;;  %v17862_v34 = vld [vmem:[#allocation9_spill] sm:$0xff] }
 0xa4d   :  { %v7755_v19 = vpop.f32.mrb[56].mxu1  ;;  %v6611_v10 = vadd.f32 %v15997_v5, %v17862_v34 }
 0xa4e   :  { %v9952_v58 = vadd.f32 %v7755_v19, %v6601_v7  ;;  %v7757_v22 = vpop.f32.mrb[57].mxu1  ;;  %v8260_v53 = vadd.f32 %v8259_v36, %v16205_v30  ;;  %v17863_v7 = vld [vmem:[#allocation54_spill] sm:$0xff] }
 0xa50   :  { %v16356_v40 = vadd.f32 %v9952_v58, %v16164_v49  ;;  %v8261_v0 = vadd.f32 %v8260_v53, %v16214_v29  ;;  %v17864_v49 = vld [vmem:[#allocation15_spill] sm:$0xff] }
 0xa51   :  { %v7760_v54 = vpop.f32.mrb[58].mxu1  ;;  %v6616_v58 = vadd.f32 %v15997_v5, %v17864_v49 }
 0xa52   :  { %17861 = vst [vmem:[#allocation32_spill] sm:$0xff] %v16356_v40  ;;  %v9954_v24 = vadd.f32 %v7760_v54, %v6606_v62  ;;  %v7762_v41 = vpop.f32.mrb[59].mxu1  ;;  %v8262_v16 = vadd.f32 %v8261_v0, %v16223_v2 }
 0xa54   :  { %v16363_v22 = vadd.f32 %v9954_v24, %v17863_v7  ;;  %v8263_v41 = vadd.f32 %v8262_v16, %v16232_v35  ;;  %v17866_v24 = vld [vmem:[#allocation8_spill] sm:$0xff] }
 0xa55   :  { %v7765_v19 = vpop.f32.mrb[60].mxu1  ;;  %v6621_v7 = vadd.f32 %v15997_v5, %v17866_v24 }
 0xa56   :  { %v9956_v3 = vadd.f32 %v7765_v19, %v6611_v10  ;;  %v7767_v32 = vpop.f32.mrb[61].mxu1  ;;  %v8264_v53 = vadd.f32 %v8263_v41, %v16241_v50  ;;  %v17867_v10 = vld [vmem:[#allocation55_spill] sm:$0xff] }
 0xa58   :  { %v16370_v62 = vadd.f32 %v9956_v3, %v16173_v42  ;;  %v8265_v49 = vadd.f32 %v8264_v53, %v16246_v31  ;;  %v17868_v42 = vld [vmem:[#allocation17_spill] sm:$0xff] }
 0xa59   :  { %v7770_v54 = vpop.f32.mrb[62].mxu1  ;;  %v6626_v3 = vadd.f32 %v15997_v5, %v17868_v42 }
 0xa5a   :  { %17865 = vst [vmem:[#allocation21_spill] sm:$0xff] %v16370_v62  ;;  %v9958_v36 = vadd.f32 %v7770_v54, %v6616_v58  ;;  %v7772_v34 = vpop.f32.mrb[63].mxu1  ;;  %v8266_v16 = vadd.f32 %v8265_v49, %v16251_v21 }
 0xa5c   :  { %v16377_v32 = vadd.f32 %v9958_v36, %v17867_v10  ;;  %v8267_v34 = vadd.f32 %v8266_v16, %v16256_v12  ;;  %v17870_v36 = vld [vmem:[#allocation11_spill] sm:$0xff] }
 0xa5d   :  { %v7775_v19 = vpop.f32.mrb[64].mxu1  ;;  %v6631_v10 = vadd.f32 %v15997_v5, %v17870_v36 }
 0xa5e   :  { %v9960_v0 = vadd.f32 %v7775_v19, %v6621_v7  ;;  %v7777_v2 = vpop.f32.mrb[65].mxu1  ;;  %v8268_v53 = vadd.f32 %v8267_v34, %v16261_v39  ;;  %v17871_v7 = vld [vmem:[#allocation56_spill] sm:$0xff] }
 0xa60   :  { %v16384_v58 = vadd.f32 %v9960_v0, %v16182_v57  ;;  %v8269_v42 = vadd.f32 %v8268_v53, %v16268_v47  ;;  %v17872_v57 = vld [vmem:[#allocation16_spill] sm:$0xff] }
 0xa61   :  { %v7780_v54 = vpop.f32.mrb[66].mxu1  ;;  %v6636_v0 = vadd.f32 %v15997_v5, %v17872_v57 }
 0xa62   :  { %17869 = vst [vmem:[#allocation27_spill] sm:$0xff] %v16384_v58  ;;  %v9962_v41 = vadd.f32 %v7780_v54, %v6626_v3  ;;  %v7782_v24 = vpop.f32.mrb[67].mxu1  ;;  %v8270_v16 = vadd.f32 %v8269_v42, %v16275_v44 }
 0xa64   :  { %v16391_v2 = vadd.f32 %v9962_v41, %v17871_v7  ;;  %v8271_v24 = vadd.f32 %v8270_v16, %v16280_v48  ;;  %v17874_v41 = vld [vmem:[#allocation10_spill] sm:$0xff] }
 0xa65   :  { %v7785_v19 = vpop.f32.mrb[68].mxu1  ;;  %v6641_v7 = vadd.f32 %v15997_v5, %v17874_v41 }
 0xa66   :  { %v9964_v49 = vadd.f32 %v7785_v19, %v6631_v10  ;;  %v7787_v21 = vpop.f32.mrb[69].mxu1  ;;  %v8272_v53 = vadd.f32 %v8271_v24, %v16285_v33  ;;  %v17875_v10 = vld [vmem:[#allocation58_spill] sm:$0xff] }
 0xa68   :  { %v16398_v3 = vadd.f32 %v9964_v49, %v16191_v38  ;;  %v8273_v57 = vadd.f32 %v8272_v53, %v16293_v28  ;;  %v17876_v38 = vld [vmem:[#allocation13_spill] sm:$0xff] }
 0xa69   :  { %v7790_v54 = vpop.f32.mrb[70].mxu1  ;;  %v6646_v49 = vadd.f32 %v15997_v5, %v17876_v38 }
 0xa6a   :  { %17873 = vst [vmem:[#allocation29_spill] sm:$0xff] %v16398_v3  ;;  %v9966_v34 = vadd.f32 %v7790_v54, %v6636_v0  ;;  %v7792_v36 = vpop.f32.mrb[71].mxu1  ;;  %v8274_v16 = vadd.f32 %v8273_v57, %v16300_v20 }
 0xa6c   :  { %v16405_v21 = vadd.f32 %v9966_v34, %v17875_v10  ;;  %v8275_v36 = vadd.f32 %v8274_v16, %v16307_v4  ;;  %v17878_v34 = vld [vmem:[#allocation12_spill] sm:$0xff] }
 0xa6d   :  { %v7795_v19 = vpop.f32.mrb[72].mxu1  ;;  %v6651_v10 = vadd.f32 %v15997_v5, %v17878_v34 }
 0xa6e   :  { %v9968_v42 = vadd.f32 %v7795_v19, %v6641_v7  ;;  %v7797_v44 = vpop.f32.mrb[73].mxu1  ;;  %v8276_v53 = vadd.f32 %v8275_v36, %v16314_v23  ;;  %v17879_v7 = vld [vmem:[#allocation59_spill] sm:$0xff] }
 0xa70   :  { %v16412_v0 = vadd.f32 %v9968_v42, %v16200_v52  ;;  %v8277_v38 = vadd.f32 %v8276_v53, %v16321_v37  ;;  %v17880_v52 = vld [vmem:[#allocation14_spill] sm:$0xff] }
 0xa71   :  { %v7800_v54 = vpop.f32.mrb[74].mxu1  ;;  %v6656_v42 = vadd.f32 %v15997_v5, %v17880_v52 }
 0xa72   :  { %17877 = vst [vmem:[#allocation33_spill] sm:$0xff] %v16412_v0  ;;  %v9970_v24 = vadd.f32 %v7800_v54, %v6646_v49  ;;  %v7802_v41 = vpop.f32.mrb[75].mxu1  ;;  %v8278_v16 = vadd.f32 %v8277_v38, %v16328_v11 }
 0xa74   :  { %v16419_v44 = vadd.f32 %v9970_v24, %v17879_v7  ;;  %v8279_v41 = vadd.f32 %v8278_v16, %v16335_v45  ;;  %v17881_v24 = vld [vmem:[#allocation36_spill] sm:$0xff] }
 0xa75   :  { %v7805_v19 = vpop.f32.mrb[76].mxu1  ;;  %v6661_v7 = vadd.f32 %v15997_v5, %v17881_v24 }
 0xa76   :  { %v9972_v57 = vadd.f32 %v7805_v19, %v6651_v10  ;;  %v7807_v20 = vpop.f32.mrb[77].mxu1  ;;  %v8280_v53 = vadd.f32 %v8279_v41, %v16342_v61  ;;  %v17882_v10 = vld [vmem:[#allocation60_spill] sm:$0xff] }
 0xa78   :  { %v16426_v49 = vadd.f32 %v9972_v57, %v16209_v25  ;;  %v8281_v52 = vadd.f32 %v8280_v53, %v16349_v26  ;;  %v17883_v25 = vld [vmem:[#allocation37_spill] sm:$0xff] }
 0xa79   :  { %v7810_v54 = vpop.f32.mrb[78].mxu1  ;;  %v6666_v57 = vadd.f32 %v15997_v5, %v17883_v25 }
 0xa7a   :  { %v9974_v36 = vadd.f32 %v7810_v54, %v6656_v42  ;;  %v7812_v34 = vpop.f32.mrb[79].mxu1  ;;  %v8282_v16 = vadd.f32 %v8281_v52, %v16356_v40 }
 0xa7c   :  { %v16433_v20 = vadd.f32 %v9974_v36, %v17882_v10  ;;  %v8283_v34 = vadd.f32 %v8282_v16, %v16363_v22  ;;  %v17884_v36 = vld [vmem:[#allocation38_spill] sm:$0xff] }
 0xa7d   :  { %v7815_v19 = vpop.f32.mrb[80].mxu1  ;;  %v6671_v10 = vadd.f32 %v15997_v5, %v17884_v36 }
 0xa7e   :  { %v9976_v38 = vadd.f32 %v7815_v19, %v6661_v7  ;;  %v7817_v11 = vpop.f32.mrb[81].mxu1  ;;  %v8284_v53 = vadd.f32 %v8283_v34, %v16370_v62  ;;  %v17885_v7 = vld [vmem:[#allocation61_spill] sm:$0xff] }
 0xa80   :  { %v16440_v42 = vadd.f32 %v9976_v38, %v16218_v8  ;;  %v8285_v25 = vadd.f32 %v8284_v53, %v16377_v32  ;;  %v17887_v8 = vld [vmem:[#allocation39_spill] sm:$0xff] }
 0xa81   :  { %v7820_v54 = vpop.f32.mrb[82].mxu1  ;;  %v6676_v38 = vadd.f32 %v15997_v5, %v17887_v8 }
 0xa82   :  { %v9978_v41 = vadd.f32 %v7820_v54, %v6666_v57  ;;  %v7822_v24 = vpop.f32.mrb[83].mxu1  ;;  %v8286_v16 = vadd.f32 %v8285_v25, %v16384_v58 }
 0xa84   :  { %v16447_v11 = vadd.f32 %v9978_v41, %v17885_v7  ;;  %v8287_v24 = vadd.f32 %v8286_v16, %v16391_v2  ;;  %v17889_v41 = vld [vmem:[#allocation40_spill] sm:$0xff] }
 0xa85   :  { %v7825_v19 = vpop.f32.mrb[84].mxu1  ;;  %v6681_v7 = vadd.f32 %v15997_v5, %v17889_v41 }
 0xa86   :  { %17886 = vst [vmem:[#allocation35_spill] sm:$0xff] %v16447_v11  ;;  %v9980_v52 = vadd.f32 %v7825_v19, %v6671_v10  ;;  %v7827_v40 = vpop.f32.mrb[85].mxu1  ;;  %v8288_v53 = vadd.f32 %v8287_v24, %v16398_v3  ;;  %v17890_v10 = vld [vmem:[#allocation63_spill] sm:$0xff] }
 0xa88   :  { %v16454_v57 = vadd.f32 %v9980_v52, %v16227_v17  ;;  %v8289_v8 = vadd.f32 %v8288_v53, %v16405_v21  ;;  %v17892_v17 = vld [vmem:[#allocation41_spill] sm:$0xff] }
 0xa89   :  { %v7830_v54 = vpop.f32.mrb[86].mxu1  ;;  %v6686_v52 = vadd.f32 %v15997_v5, %v17892_v17 }
 0xa8a   :  { %17888 = vst [vmem:[#allocation47_spill] sm:$0xff] %v16454_v57  ;;  %v9982_v34 = vadd.f32 %v7830_v54, %v6676_v38  ;;  %v7832_v36 = vpop.f32.mrb[87].mxu1  ;;  %v8290_v16 = vadd.f32 %v8289_v8, %v16412_v0  ;;  %v17893_v38 = vld [vmem:[#allocation65_spill] sm:$0xff] }
 0xa8c   :  { %v16461_v40 = vadd.f32 %v9982_v34, %v17890_v10  ;;  %v8291_v41 = vadd.f32 %v8290_v16, %v16419_v44  ;;  %v17895_v34 = vld [vmem:[#allocation42_spill] sm:$0xff] }
 0xa8d   :  { %v7835_v19 = vpop.f32.mrb[88].mxu1  ;;  %v6691_v10 = vadd.f32 %v15997_v5, %v17895_v34 }
 0xa8e   :  { %17891 = vst [vmem:[#allocation24_spill] sm:$0xff] %v16461_v40  ;;  %v9984_v25 = vadd.f32 %v7835_v19, %v6681_v7  ;;  %v7837_v58 = vpop.f32.mrb[89].mxu1  ;;  %v8292_v53 = vadd.f32 %v8291_v41, %v16426_v49  ;;  %v17896_v7 = vld [vmem:[#allocation64_spill] sm:$0xff] }
 0xa90   :  { %v16468_v54 = vadd.f32 %v9984_v25, %v17893_v38  ;;  %v8293_v17 = vadd.f32 %v8292_v53, %v16433_v20  ;;  %v17898_v25 = vld [vmem:[#allocation43_spill] sm:$0xff] }
 0xa91   :  { %v7840_v36 = vpop.f32.mrb[90].mxu1  ;;  %v6696_v38 = vadd.f32 %v15997_v5, %v17898_v25 }
 0xa92   :  { %17894 = vst [vmem:[#allocation49_spill] sm:$0xff] %v16468_v54  ;;  %v9986_v24 = vadd.f32 %v7840_v36, %v6686_v52  ;;  %v7842_v3 = vpop.f32.mrb[91].mxu1  ;;  %v8294_v16 = vadd.f32 %v8293_v17, %v16440_v42 }
 0xa94   :  { %v16475_v58 = vadd.f32 %v9986_v24, %v17896_v7  ;;  %v8295_v36 = vadd.f32 %v8294_v16, %v16447_v11 }
 0xa95   :  { %v7845_v19 = vpop.f32.mrb[92].mxu1 }
 0xa96   :  { %17897 = vst [vmem:[#allocation26_spill] sm:$0xff] %v16475_v58  ;;  %v9988_v8 = vadd.f32 %v7845_v19, %v6691_v10  ;;  %v7847_v0 = vpop.f32.mrb[93].mxu1  ;;  %v8296_v24 = vadd.f32 %v8295_v36, %v16454_v57 }
 0xa98   :  { %v16482_v3 = vadd.f32 %v9988_v8, %v16270_v63  ;;  %v8297_v0 = vadd.f32 %v8296_v24, %v16461_v40 }
 0xa99   :  { %v7850_v52 = vpop.f32.mrb[94].mxu1 }
 0xa9a   :  { %17899 = vst [vmem:[#allocation50_spill] sm:$0xff] %v16482_v3  ;;  %v9990_v41 = vadd.f32 %v7850_v52, %v6696_v38  ;;  %v7852_v34 = vpop.f32.mrb[95].mxu1  ;;  %v8298_v10 = vadd.f32 %v8297_v0, %v16468_v54 }
 0xa9c   :  { %v16487_v7 = vadd.f32 %v9990_v41, %v16263_v43  ;;  %v8299_v5 = vadd.f32 %v8298_v10, %v16475_v58 }
 0xa9e   :  { %v8300_v53 = vadd.f32 %v8299_v5, %v16482_v3 }
 0xaa0   :  { %v8301_v63 = vadd.f32 %v8300_v53, %v16487_v7 }
 0xaa2   :  { %v8302_v19 = vrot.slane %v8301_v63, 4 }
 0xaa4   :  { %v8303_v17 = vadd.f32 %v8302_v19, %v8301_v63 }
 0xaa6   :  { %v8304_v8 = vrot.slane %v8303_v17, 2 }
 0xaa8   :  { %v8305_v25 = vadd.f32 %v8304_v8, %v8303_v17  ;;  %v17900_v8 = vld [vmem:[#allocation23_spill] sm:$0xff] }
 0xaaa   :  { %v8306_v38 = vrot.slane %v8305_v25, 1 }
 0xaac   :  { %v8307_v16 = vadd.f32 %v8306_v38, %v8305_v25 }
 0xaae   :  { %v16494_v52 = vmul.f32 0.001953125, %v8307_v16 }
 0xab0   :  { %v8309_v43 = vsub.f32 %v16007_v9, %v16494_v52  ;;  %v8310_v36 = vsub.f32 %v16015_v27, %v16494_v52  ;;  %v8311_v41 = vsub.f32 %v16023_v59, %v16494_v52  ;;  %v8312_v0 = vsub.f32 %v16032_v46, %v16494_v52  ;;  %v17902_v27 = vld [vmem:[#allocation44_spill] sm:$0xff] }
 0xab1   :  { %v8313_v10 = vsub.f32 %v16041_v51, %v16494_v52  ;;  %v8314_v63 = vsub.f32 %v16050_v55, %v16494_v52  ;;  %v8315_v25 = vsub.f32 %v17900_v8, %v16494_v52  ;;  %v8317_v51 = vsub.f32 %v17902_v27, %v16494_v52 }
 0xab2   :  { %v8373_v34 = vmul.f32 %v8309_v43, %v8309_v43  ;;  %v8374_v24 = vmul.f32 %v8310_v36, %v8310_v36  ;;  %v8375_v5 = vmul.f32 %v8311_v41, %v8311_v41  ;;  %v8376_v19 = vmul.f32 %v8312_v0, %v8312_v0  ;;  %v17901_v43 = vld [vmem:[#allocation25_spill] sm:$0xff] }
 0xab3   :  { %v8377_v38 = vmul.f32 %v8313_v10, %v8313_v10  ;;  %v8316_v36 = vsub.f32 %v17901_v43, %v16494_v52  ;;  %v8378_v59 = vmul.f32 %v8314_v63, %v8314_v63  ;;  %v8379_v41 = vmul.f32 %v8315_v25, %v8315_v25 }
 0xab4   :  { %v8437_v53 = vadd.f32 %v8374_v24, %v8373_v34  ;;  %v17903_v24 = vld [vmem:[#allocation45_spill] sm:$0xff]  ;;  %v8381_v10 = vmul.f32 %v8317_v51, %v8317_v51 }
 0xab5   :  { %v8318_v55 = vsub.f32 %v17903_v24, %v16494_v52  ;;  %v8380_v0 = vmul.f32 %v8316_v36, %v8316_v36 }
 0xab6   :  { %v8438_v17 = vadd.f32 %v8437_v53, %v8375_v5  ;;  %v17904_v53 = vld [vmem:[#allocation46_spill] sm:$0xff] }
 0xab7   :  { %v8319_v8 = vsub.f32 %v17904_v53, %v16494_v52  ;;  %v8382_v63 = vmul.f32 %v8318_v55, %v8318_v55 }
 0xab8   :  { %v8439_v16 = vadd.f32 %v8438_v17, %v8376_v19  ;;  %v8320_v17 = vsub.f32 %v17849_v60, %v16494_v52 }
 0xab9   :  { %v8383_v25 = vmul.f32 %v8319_v8, %v8319_v8 }
 0xaba   :  { %v8440_v46 = vadd.f32 %v8439_v16, %v8377_v38  ;;  %v17905_v16 = vld [vmem:[#allocation48_spill] sm:$0xff]  ;;  %v8384_v36 = vmul.f32 %v8320_v17, %v8320_v17 }
 0xabb   :  { %v8321_v27 = vsub.f32 %v17905_v16, %v16494_v52 }
 0xabc   :  { %v8441_v34 = vadd.f32 %v8440_v46, %v8378_v59  ;;  %v8322_v46 = vsub.f32 %v17853_v1, %v16494_v52 }
 0xabd   :  { %v8385_v51 = vmul.f32 %v8321_v27, %v8321_v27 }
 0xabe   :  { %v8442_v5 = vadd.f32 %v8441_v34, %v8379_v41  ;;  %v8323_v34 = vsub.f32 %v17855_v18, %v16494_v52  ;;  %v8386_v55 = vmul.f32 %v8322_v46, %v8322_v46 }
 0xac0   :  { %v8443_v19 = vadd.f32 %v8442_v5, %v8380_v0  ;;  %v8324_v5 = vsub.f32 %v17856_v56, %v16494_v52  ;;  %v8387_v8 = vmul.f32 %v8323_v34, %v8323_v34 }
 0xac2   :  { %v8444_v38 = vadd.f32 %v8443_v19, %v8381_v10  ;;  %v17906_v19 = vld [vmem:[#allocation52_spill] sm:$0xff]  ;;  %v8388_v17 = vmul.f32 %v8324_v5, %v8324_v5 }
 0xac3   :  { %v8325_v16 = vsub.f32 %v17906_v19, %v16494_v52 }
 0xac4   :  { %v8445_v59 = vadd.f32 %v8444_v38, %v8382_v63  ;;  %v8326_v38 = vsub.f32 %v16160_v14, %v16494_v52 }
 0xac5   :  { %v8389_v27 = vmul.f32 %v8325_v16, %v8325_v16 }
 0xac6   :  { %v8446_v41 = vadd.f32 %v8445_v59, %v8383_v25  ;;  %v8327_v59 = vsub.f32 %v16169_v6, %v16494_v52  ;;  %v8390_v46 = vmul.f32 %v8326_v38, %v8326_v38 }
 0xac8   :  { %v8447_v0 = vadd.f32 %v8446_v41, %v8384_v36  ;;  %v8328_v41 = vsub.f32 %v16178_v15, %v16494_v52  ;;  %v8391_v34 = vmul.f32 %v8327_v59, %v8327_v59 }
 0xaca   :  { %v8448_v10 = vadd.f32 %v8447_v0, %v8385_v51  ;;  %v17907_v0 = vld [vmem:[#allocation57_spill] sm:$0xff]  ;;  %v8392_v5 = vmul.f32 %v8328_v41, %v8328_v41 }
 0xacb   :  { %v8329_v19 = vsub.f32 %v17907_v0, %v16494_v52 }
 0xacc   :  { %v8449_v63 = vadd.f32 %v8448_v10, %v8386_v55  ;;  %v8330_v10 = vsub.f32 %v16196_v13, %v16494_v52 }
 0xacd   :  { %v8393_v16 = vmul.f32 %v8329_v19, %v8329_v19 }
 0xace   :  { %v8450_v25 = vadd.f32 %v8449_v63, %v8387_v8  ;;  %v8331_v63 = vsub.f32 %v16205_v30, %v16494_v52  ;;  %v8394_v38 = vmul.f32 %v8330_v10, %v8330_v10 }
 0xad0   :  { %v8451_v36 = vadd.f32 %v8450_v25, %v8388_v17  ;;  %v8332_v25 = vsub.f32 %v16214_v29, %v16494_v52  ;;  %v8395_v59 = vmul.f32 %v8331_v63, %v8331_v63 }
 0xad2   :  { %v8452_v51 = vadd.f32 %v8451_v36, %v8389_v27  ;;  %v17908_v36 = vld [vmem:[#allocation62_spill] sm:$0xff]  ;;  %v8396_v41 = vmul.f32 %v8332_v25, %v8332_v25 }
 0xad3   :  { %v8333_v0 = vsub.f32 %v17908_v36, %v16494_v52 }
 0xad4   :  { %v8453_v55 = vadd.f32 %v8452_v51, %v8390_v46  ;;  %v8334_v51 = vsub.f32 %v16232_v35, %v16494_v52 }
 0xad5   :  { %v8397_v19 = vmul.f32 %v8333_v0, %v8333_v0 }
 0xad6   :  { %v8454_v8 = vadd.f32 %v8453_v55, %v8391_v34  ;;  %v8335_v55 = vsub.f32 %v16241_v50, %v16494_v52  ;;  %v8398_v10 = vmul.f32 %v8334_v51, %v8334_v51 }
 0xad8   :  { %v8455_v17 = vadd.f32 %v8454_v8, %v8392_v5  ;;  %v8336_v8 = vsub.f32 %v16246_v31, %v16494_v52  ;;  %v8399_v63 = vmul.f32 %v8335_v55, %v8335_v55 }
 0xada   :  { %v8456_v27 = vadd.f32 %v8455_v17, %v8393_v16  ;;  %v17909_v17 = vld [vmem:[#allocation66_spill] sm:$0xff]  ;;  %v8400_v25 = vmul.f32 %v8336_v8, %v8336_v8 }
 0xadb   :  { %v8337_v36 = vsub.f32 %v17909_v17, %v16494_v52 }
 0xadc   :  { %v8457_v46 = vadd.f32 %v8456_v27, %v8394_v38  ;;  %v8338_v27 = vsub.f32 %v16256_v12, %v16494_v52 }
 0xadd   :  { %v8401_v0 = vmul.f32 %v8337_v36, %v8337_v36 }
 0xade   :  { %v8458_v34 = vadd.f32 %v8457_v46, %v8395_v59  ;;  %v8339_v46 = vsub.f32 %v16261_v39, %v16494_v52  ;;  %v8402_v51 = vmul.f32 %v8338_v27, %v8338_v27 }
 0xae0   :  { %v8459_v5 = vadd.f32 %v8458_v34, %v8396_v41  ;;  %v8340_v34 = vsub.f32 %v16268_v47, %v16494_v52  ;;  %v8403_v55 = vmul.f32 %v8339_v46, %v8339_v46 }
 0xae2   :  { %v8460_v16 = vadd.f32 %v8459_v5, %v8397_v19  ;;  %v17910_v5 = vld [vmem:[#allocation19_spill] sm:$0xff]  ;;  %v8404_v8 = vmul.f32 %v8340_v34, %v8340_v34 }
 0xae3   :  { %v8341_v17 = vsub.f32 %v17910_v5, %v16494_v52 }
 0xae4   :  { %v8461_v38 = vadd.f32 %v8460_v16, %v8398_v10  ;;  %v8342_v16 = vsub.f32 %v16280_v48, %v16494_v52 }
 0xae5   :  { %v8405_v36 = vmul.f32 %v8341_v17, %v8341_v17 }
 0xae6   :  { %v8462_v59 = vadd.f32 %v8461_v38, %v8399_v63  ;;  %v8343_v38 = vsub.f32 %v16285_v33, %v16494_v52  ;;  %v8406_v27 = vmul.f32 %v8342_v16, %v8342_v16 }
 0xae8   :  { %v8463_v41 = vadd.f32 %v8462_v59, %v8400_v25  ;;  %v8344_v59 = vsub.f32 %v16293_v28, %v16494_v52  ;;  %v8407_v46 = vmul.f32 %v8343_v38, %v8343_v38 }
 0xaea   :  { %v8464_v19 = vadd.f32 %v8463_v41, %v8401_v0  ;;  %v17911_v41 = vld [vmem:[#allocation20_spill] sm:$0xff]  ;;  %v8408_v34 = vmul.f32 %v8344_v59, %v8344_v59 }
 0xaeb   :  { %v8345_v5 = vsub.f32 %v17911_v41, %v16494_v52 }
 0xaec   :  { %v8465_v10 = vadd.f32 %v8464_v19, %v8402_v51  ;;  %v8346_v19 = vsub.f32 %v16307_v4, %v16494_v52 }
 0xaed   :  { %v8409_v17 = vmul.f32 %v8345_v5, %v8345_v5 }
 0xaee   :  { %v8466_v63 = vadd.f32 %v8465_v10, %v8403_v55  ;;  %v8347_v10 = vsub.f32 %v16314_v23, %v16494_v52  ;;  %v8410_v16 = vmul.f32 %v8346_v19, %v8346_v19 }
 0xaf0   :  { %v8467_v25 = vadd.f32 %v8466_v63, %v8404_v8  ;;  %v8348_v63 = vsub.f32 %v16321_v37, %v16494_v52  ;;  %v8411_v38 = vmul.f32 %v8347_v10, %v8347_v10 }
 0xaf2   :  { %v8468_v0 = vadd.f32 %v8467_v25, %v8405_v36  ;;  %v17912_v25 = vld [vmem:[#allocation30_spill] sm:$0xff]  ;;  %v8412_v59 = vmul.f32 %v8348_v63, %v8348_v63 }
 0xaf3   :  { %v8349_v41 = vsub.f32 %v17912_v25, %v16494_v52 }
 0xaf4   :  { %v8469_v51 = vadd.f32 %v8468_v0, %v8406_v27  ;;  %v8350_v0 = vsub.f32 %v16335_v45, %v16494_v52 }
 0xaf5   :  { %v8413_v5 = vmul.f32 %v8349_v41, %v8349_v41 }
 0xaf6   :  { %v8470_v55 = vadd.f32 %v8469_v51, %v8407_v46  ;;  %v8351_v51 = vsub.f32 %v16342_v61, %v16494_v52  ;;  %v8414_v19 = vmul.f32 %v8350_v0, %v8350_v0 }
 0xaf8   :  { %v8471_v8 = vadd.f32 %v8470_v55, %v8408_v34  ;;  %v8352_v55 = vsub.f32 %v16349_v26, %v16494_v52  ;;  %v8415_v10 = vmul.f32 %v8351_v51, %v8351_v51 }
 0xafa   :  { %v8472_v36 = vadd.f32 %v8471_v8, %v8409_v17  ;;  %v17913_v8 = vld [vmem:[#allocation32_spill] sm:$0xff]  ;;  %v8416_v63 = vmul.f32 %v8352_v55, %v8352_v55 }
 0xafb   :  { %v8353_v25 = vsub.f32 %v17913_v8, %v16494_v52 }
 0xafc   :  { %v8473_v27 = vadd.f32 %v8472_v36, %v8410_v16  ;;  %v8354_v36 = vsub.f32 %v16363_v22, %v16494_v52 }
 0xafd   :  { %v8417_v41 = vmul.f32 %v8353_v25, %v8353_v25 }
 0xafe   :  { %v8474_v46 = vadd.f32 %v8473_v27, %v8411_v38  ;;  %v8355_v27 = vsub.f32 %v16370_v62, %v16494_v52  ;;  %v8418_v0 = vmul.f32 %v8354_v36, %v8354_v36 }
 0xb00   :  { %v8475_v34 = vadd.f32 %v8474_v46, %v8412_v59  ;;  %v8356_v46 = vsub.f32 %v16377_v32, %v16494_v52  ;;  %v8419_v51 = vmul.f32 %v8355_v27, %v8355_v27 }
 0xb02   :  { %v8476_v17 = vadd.f32 %v8475_v34, %v8413_v5  ;;  %v17914_v34 = vld [vmem:[#allocation27_spill] sm:$0xff]  ;;  %v8420_v55 = vmul.f32 %v8356_v46, %v8356_v46 }
 0xb03   :  { %v8357_v8 = vsub.f32 %v17914_v34, %v16494_v52 }
 0xb04   :  { %v8477_v16 = vadd.f32 %v8476_v17, %v8414_v19  ;;  %v8358_v17 = vsub.f32 %v16391_v2, %v16494_v52 }
 0xb05   :  { %v8421_v25 = vmul.f32 %v8357_v8, %v8357_v8 }
 0xb06   :  { %v8478_v38 = vadd.f32 %v8477_v16, %v8415_v10  ;;  %v17915_v16 = vld [vmem:[#allocation29_spill] sm:$0xff]  ;;  %v8422_v36 = vmul.f32 %v8358_v17, %v8358_v17 }
 0xb07   :  { %v8359_v62 = vsub.f32 %v17915_v16, %v16494_v52 }
 0xb08   :  { %v8479_v59 = vadd.f32 %v8478_v38, %v8416_v63  ;;  %v8360_v38 = vsub.f32 %v16405_v21, %v16494_v52 }
 0xb09   :  { %v8423_v27 = vmul.f32 %v8359_v62, %v8359_v62 }
 0xb0a   :  { %v8480_v5 = vadd.f32 %v8479_v59, %v8417_v41  ;;  %v17916_v59 = vld [vmem:[#allocation33_spill] sm:$0xff]  ;;  %v8424_v46 = vmul.f32 %v8360_v38, %v8360_v38 }
 0xb0b   :  { %v8361_v34 = vsub.f32 %v17916_v59, %v16494_v52 }
 0xb0c   :  { %v8481_v19 = vadd.f32 %v8480_v5, %v8418_v0  ;;  %v8362_v5 = vsub.f32 %v16419_v44, %v16494_v52 }
 0xb0d   :  { %v8425_v8 = vmul.f32 %v8361_v34, %v8361_v34 }
 0xb0e   :  { %v8482_v10 = vadd.f32 %v8481_v19, %v8419_v51  ;;  %v8363_v19 = vsub.f32 %v16426_v49, %v16494_v52  ;;  %v8426_v17 = vmul.f32 %v8362_v5, %v8362_v5 }
 0xb10   :  { %v8483_v63 = vadd.f32 %v8482_v10, %v8420_v55  ;;  %v8364_v10 = vsub.f32 %v16433_v20, %v16494_v52  ;;  %v8427_v62 = vmul.f32 %v8363_v19, %v8363_v19 }
 0xb12   :  { %v8484_v41 = vadd.f32 %v8483_v63, %v8421_v25  ;;  %v8365_v63 = vsub.f32 %v16440_v42, %v16494_v52  ;;  %v8428_v38 = vmul.f32 %v8364_v10, %v8364_v10 }
 0xb14   :  { %v8485_v0 = vadd.f32 %v8484_v41, %v8422_v36  ;;  %v8366_v41 = vsub.f32 %v16447_v11, %v16494_v52  ;;  %v8429_v34 = vmul.f32 %v8365_v63, %v8365_v63 }
 0xb16   :  { %v8486_v51 = vadd.f32 %v8485_v0, %v8423_v27  ;;  %v8367_v0 = vsub.f32 %v16454_v57, %v16494_v52  ;;  %v8430_v5 = vmul.f32 %v8366_v41, %v8366_v41 }
 0xb18   :  { %v8487_v55 = vadd.f32 %v8486_v51, %v8424_v46  ;;  %v8368_v51 = vsub.f32 %v16461_v40, %v16494_v52  ;;  %v8431_v19 = vmul.f32 %v8367_v0, %v8367_v0 }
 0xb1a   :  { %v8488_v25 = vadd.f32 %v8487_v55, %v8425_v8  ;;  %v8369_v55 = vsub.f32 %v16468_v54, %v16494_v52  ;;  %v8432_v10 = vmul.f32 %v8368_v51, %v8368_v51 }
 0xb1c   :  { %v8489_v36 = vadd.f32 %v8488_v25, %v8426_v17  ;;  %v8370_v25 = vsub.f32 %v16475_v58, %v16494_v52  ;;  %v8433_v63 = vmul.f32 %v8369_v55, %v8369_v55  ;;  %v8507_v55 = vld [vmem:[%s17420_s9] sm:$0x1] }
 0xb1e   :  { %v8490_v27 = vadd.f32 %v8489_v36, %v8427_v62  ;;  %v8371_v36 = vsub.f32 %v16482_v3, %v16494_v52  ;;  %v8434_v41 = vmul.f32 %v8370_v25, %v8370_v25 }
 0xb20   :  { %v8491_v46 = vadd.f32 %v8490_v27, %v8428_v38  ;;  %v8372_v27 = vsub.f32 %v16487_v7, %v16494_v52 }
 0xb22   :  { %v8492_v8 = vadd.f32 %v8491_v46, %v8429_v34  ;;  %v8435_v46 = vmul.f32 %v8371_v36, %v8371_v36  ;;  %v8436_v54 = vmul.f32 %v8372_v27, %v8372_v27 }
 0xb24   :  { %v8493_v17 = vadd.f32 %v8492_v8, %v8430_v5 }
 0xb26   :  { %v8494_v62 = vadd.f32 %v8493_v17, %v8431_v19 }
 0xb28   :  { %v8495_v38 = vadd.f32 %v8494_v62, %v8432_v10  ;;  %v17918_v62 = vld [vmem:[#allocation4_spill] sm:$0xff] }
 0xb2a   :  { %v8496_v34 = vadd.f32 %v8495_v38, %v8433_v63  ;;  %v17919_v63 = vld [vmem:[#allocation28_spill] sm:$0xff] }
 0xb2c   :  { %v8497_v40 = vadd.f32 %v8496_v34, %v8434_v41  ;;  %v17921_v41 = vld [vmem:[#allocation31_spill] sm:$0xff] }
 0xb2e   :  { %v8498_v0 = vadd.f32 %v8497_v40, %v8435_v46  ;;  %v16630_v40 = vld [vmem:[%s17421_s10] sm:$0x1]  ;;  %v17922_v46 = vld [vmem:[#allocation34_spill] sm:$0xff] }
 0xb30   :  { %v8499_v5 = vadd.f32 %v8498_v0, %v8436_v54  ;;  %v17923_v0 = vld [vmem:[#allocation23_spill] sm:$0xff] }
 0xb32   :  { %v8500_v8 = vrot.slane %v8499_v5, 4 }
 0xb34   :  { %v8501_v57 = vadd.f32 %v8500_v8, %v8499_v5 }
 0xb36   :  { %v8502_v58 = vrot.slane %v8501_v57, 2 }
 0xb38   :  { %v8503_v51 = vadd.f32 %v8502_v58, %v8501_v57  ;;  %v17917_v57 = vld [vmem:[#allocation18_spill] sm:$0xff] }
 0xb3a   :  { %v8504_v19 = vrot.slane %v8503_v51, 1 }
 0xb3c   :  { %v8505_v17 = vadd.f32 %v8504_v19, %v8503_v51  ;;  %v17924_v51 = vld [vmem:[#allocation44_spill] sm:$0xff] }
 0xb3e   :  { %v8506_v11 = vmul.f32 0.001953125, %v8505_v17 }
 0xb40   :  { %v8508_v3 = vadd.f32 1e-05, %v8506_v11 }
 0xb42   :  { %10260 = vrsqrt.f32 %v8508_v3 }
 0xb4c   :  { %v10261_v25 = vpop.eup %10260 }
 0xb4d   :  { %v8510_v10 = vmul.f32 %v10261_v25, %v8507_v55 }
 0xb4f   :  { %v16633_v54 = vmul.f32 %v8510_v10, %v16494_v52  ;;  %v16636_v58 = vrot.slane %v8510_v10, %v17917_v57  ;;  %v17920_v52 = vld [vmem:[#allocation6_spill] sm:$0xff]  ;;  %v17925_v10 = vld [vmem:[#allocation48_spill] sm:$0xff] }
 0xb51   :  { %v8513_v11 = vsub.f32 %v16630_v40, %v16633_v54  ;;  %v16642_v3 = vmul.f32 %v16636_v58, %v16007_v9  ;;  %v16646_v36 = vmul.f32 %v16636_v58, %v17918_v62  ;;  %v16650_v38 = vmul.f32 %v16636_v58, %v17919_v63  ;;  %v17926_v54 = vld [vmem:[#allocation52_spill] sm:$0xff]  ;;  %v17927_v63 = vld [vmem:[#allocation57_spill] sm:$0xff] }
 0xb52   :  { %v16654_v27 = vmul.f32 %v16636_v58, %v17920_v52  ;;  %v16658_v34 = vmul.f32 %v16636_v58, %v17921_v41  ;;  %v16662_v9 = vmul.f32 %v16636_v58, %v17922_v46  ;;  %v16666_v5 = vmul.f32 %v16636_v58, %v17923_v0  ;;  %v17928_v41 = vld [vmem:[#allocation62_spill] sm:$0xff] }
 0xb53   :  { %v16670_v8 = vmul.f32 %v16636_v58, %v17901_v43  ;;  %v16674_v19 = vmul.f32 %v16636_v58, %v17924_v51  ;;  %v16678_v17 = vmul.f32 %v16636_v58, %v17903_v24  ;;  %v16682_v55 = vmul.f32 %v16636_v58, %v17904_v53  ;;  %v17929_v0 = vld [vmem:[#allocation66_spill] sm:$0xff] }
 0xb54   :  { %v16686_v25 = vmul.f32 %v16636_v58, %v17849_v60  ;;  %v16690_v43 = vmul.f32 %v16636_v58, %v17925_v10  ;;  %v16694_v40 = vmul.f32 %v16636_v58, %v17853_v1  ;;  %v16698_v24 = vmul.f32 %v16636_v58, %v17855_v18  ;;  %v17930_v10 = vld [vmem:[#allocation19_spill] sm:$0xff] }
 0xb55   :  { %v16702_v53 = vmul.f32 %v16636_v58, %v17856_v56  ;;  %v16706_v60 = vmul.f32 %v16636_v58, %v17926_v54  ;;  %v16710_v62 = vmul.f32 %v16636_v58, %v16160_v14  ;;  %v16714_v1 = vmul.f32 %v16636_v58, %v16169_v6 }
 0xb56   :  { %v16718_v18 = vmul.f32 %v16636_v58, %v16178_v15  ;;  %v16722_v56 = vmul.f32 %v16636_v58, %v17927_v63  ;;  %v16726_v52 = vmul.f32 %v16636_v58, %v16196_v13  ;;  %v16730_v14 = vmul.f32 %v16636_v58, %v16205_v30  ;;  %v17931_v63 = vld [vmem:[#allocation20_spill] sm:$0xff] }
 0xb57   :  { %v16734_v6 = vmul.f32 %v16636_v58, %v16214_v29  ;;  %v16738_v15 = vmul.f32 %v16636_v58, %v17928_v41  ;;  %v16742_v46 = vmul.f32 %v16636_v58, %v16232_v35  ;;  %v16746_v13 = vmul.f32 %v16636_v58, %v16241_v50 }
 0xb58   :  { %v16750_v30 = vmul.f32 %v16636_v58, %v16246_v31  ;;  %v16754_v29 = vmul.f32 %v16636_v58, %v17929_v0  ;;  %v16758_v51 = vmul.f32 %v16636_v58, %v16256_v12  ;;  %v16762_v35 = vmul.f32 %v16636_v58, %v16261_v39  ;;  %v17932_v0 = vld [vmem:[#allocation30_spill] sm:$0xff] }
 0xb59   :  { %v16766_v50 = vmul.f32 %v16636_v58, %v16268_v47  ;;  %v16770_v31 = vmul.f32 %v16636_v58, %v17930_v10  ;;  %v16774_v54 = vmul.f32 %v16636_v58, %v16280_v48  ;;  %v16778_v12 = vmul.f32 %v16636_v58, %v16285_v33 }
 0xb5a   :  { %v16782_v39 = vmul.f32 %v16636_v58, %v16293_v28  ;;  %v16786_v47 = vmul.f32 %v16636_v58, %v17931_v63  ;;  %v16790_v41 = vmul.f32 %v16636_v58, %v16307_v4  ;;  %v16794_v48 = vmul.f32 %v16636_v58, %v16314_v23  ;;  %v17935_v63 = vld [vmem:[#allocation32_spill] sm:$0xff] }
 0xb5b   :  { %v16798_v33 = vmul.f32 %v16636_v58, %v16321_v37  ;;  %v16802_v28 = vmul.f32 %v16636_v58, %v17932_v0  ;;  %v16806_v10 = vmul.f32 %v16636_v58, %v16335_v45  ;;  %v16810_v4 = vmul.f32 %v16636_v58, %v16342_v61 }
 0xb5c   :  { %v16814_v23 = vmul.f32 %v16636_v58, %v16349_v26  ;;  %v16818_v37 = vmul.f32 %v16636_v58, %v17935_v63  ;;  %v16822_v0 = vmul.f32 %v16636_v58, %v16363_v22  ;;  %v16830_v61 = vmul.f32 %v16636_v58, %v16377_v32 }
 0xb5d   :  { %17933 = vst [vmem:[#allocation51_spill] sm:$0xff] %v16802_v28  ;;  %17934 = vst [vmem:[#allocation5_spill] sm:$0xff] %v16810_v4  ;;  %v17936_v28 = vld [vmem:[#allocation21_spill] sm:$0xff]  ;;  %v17937_v4 = vld [vmem:[#allocation27_spill] sm:$0xff]  ;;  %v16838_v63 = vmul.f32 %v16636_v58, %v16391_v2  ;;  %v16842_v22 = vmul.f32 %v16636_v58, %v17915_v16  ;;  %v16850_v32 = vmul.f32 %v16636_v58, %v17916_v59 }
 0xb5e   :  { %v16826_v45 = vmul.f32 %v16636_v58, %v17936_v28  ;;  %v16834_v26 = vmul.f32 %v16636_v58, %v17937_v4  ;;  %v16846_v28 = vmul.f32 %v16636_v58, %v16405_v21  ;;  %v16854_v4 = vmul.f32 %v16636_v58, %v16419_v44 }
 0xb5f   :  { %17939 = vst [vmem:[#allocation53_spill] sm:$0xff] %v16850_v32  ;;  %v16858_v2 = vmul.f32 %v16636_v58, %v16426_v49  ;;  %v16862_v16 = vmul.f32 %v16636_v58, %v16433_v20  ;;  %v16866_v21 = vmul.f32 %v16636_v58, %v16440_v42  ;;  %v17946_v32 = vld [vmem:[#allocation47_spill] sm:$0xff]  ;;  %v17948_v20 = vld [vmem:[#allocation49_spill] sm:$0xff]  ;;  %v17949_v42 = vld [vmem:[#allocation26_spill] sm:$0xff] }
 0xb60   :  { %17938 = vst [vmem:[#allocation7_spill] sm:$0xff] %v16846_v28  ;;  %17940 = vst [vmem:[#allocation22_spill] sm:$0xff] %v16854_v4  ;;  %v17944_v28 = vld [vmem:[#allocation35_spill] sm:$0xff]  ;;  %v16874_v44 = vmul.f32 %v16636_v58, %v17946_v32  ;;  %v17947_v4 = vld [vmem:[#allocation24_spill] sm:$0xff]  ;;  %v16897_v32 = vmul.f32 %v16636_v58, %v16487_v7 }
 0xb61   :  { %17941 = vst [vmem:[#allocation9_spill] sm:$0xff] %v16858_v2  ;;  %17942 = vst [vmem:[#allocation54_spill] sm:$0xff] %v16862_v16  ;;  %v16870_v59 = vmul.f32 %v16636_v58, %v17944_v28  ;;  %v16878_v49 = vmul.f32 %v16636_v58, %v17947_v4  ;;  %v16881_v2 = vrot.slane %v8513_v11, %v17917_v57  ;;  %v17950_v28 = vld [vmem:[#allocation50_spill] sm:$0xff] }
 0xb62   :  { %17943 = vst [vmem:[#allocation15_spill] sm:$0xff] %v16866_v21  ;;  %v16885_v16 = vmul.f32 %v16636_v58, %v17948_v20  ;;  %v16889_v21 = vmul.f32 %v16636_v58, %v17949_v42 }
 0xb63   :  { %17945 = vst [vmem:[#allocation8_spill] sm:$0xff] %v16870_v59  ;;  %v16893_v59 = vmul.f32 %v16636_v58, %v17950_v28  ;;  %v16901_v57 = vadd.f32 %v16881_v2, %v16642_v3  ;;  %v16905_v11 = vadd.f32 %v16881_v2, %v16646_v36  ;;  %v16909_v4 = vadd.f32 %v16881_v2, %v16650_v38 }
 0xb64   :  { %v16913_v20 = vadd.f32 %v16881_v2, %v16654_v27  ;;  %v16917_v7 = vadd.f32 %v16881_v2, %v16658_v34  ;;  %v16921_v58 = vadd.f32 %v16881_v2, %v16662_v9  ;;  %v16925_v3 = vadd.f32 %v16881_v2, %v16666_v5  ;;  %v17952_v42 = vld [vmem:[#allocation5_spill] sm:$0xff] }
 0xb65   :  { %v16929_v36 = vadd.f32 %v16881_v2, %v16670_v8  ;;  %v16933_v38 = vadd.f32 %v16881_v2, %v16674_v19  ;;  %v16937_v27 = vadd.f32 %v16881_v2, %v16678_v17  ;;  %v16941_v34 = vadd.f32 %v16881_v2, %v16682_v55 }
 0xb66   :  { %v16945_v9 = vadd.f32 %v16881_v2, %v16686_v25  ;;  %v16949_v5 = vadd.f32 %v16881_v2, %v16690_v43  ;;  %v16953_v8 = vadd.f32 %v16881_v2, %v16694_v40  ;;  %v16957_v19 = vadd.f32 %v16881_v2, %v16698_v24 }
 0xb67   :  { %v16961_v17 = vadd.f32 %v16881_v2, %v16702_v53  ;;  %v16965_v55 = vadd.f32 %v16881_v2, %v16706_v60  ;;  %v16969_v25 = vadd.f32 %v16881_v2, %v16710_v62  ;;  %v16973_v43 = vadd.f32 %v16881_v2, %v16714_v1 }
 0xb68   :  { %v16977_v40 = vadd.f32 %v16881_v2, %v16718_v18  ;;  %v16981_v24 = vadd.f32 %v16881_v2, %v16722_v56  ;;  %v16985_v53 = vadd.f32 %v16881_v2, %v16726_v52  ;;  %v16989_v60 = vadd.f32 %v16881_v2, %v16730_v14 }
 0xb69   :  { %v16993_v62 = vadd.f32 %v16881_v2, %v16734_v6  ;;  %v16997_v1 = vadd.f32 %v16881_v2, %v16738_v15  ;;  %v17001_v18 = vadd.f32 %v16881_v2, %v16742_v46  ;;  %v17005_v56 = vadd.f32 %v16881_v2, %v16746_v13 }
 0xb6a   :  { %v17009_v52 = vadd.f32 %v16881_v2, %v16750_v30  ;;  %v17013_v14 = vadd.f32 %v16881_v2, %v16754_v29  ;;  %v17017_v6 = vadd.f32 %v16881_v2, %v16758_v51  ;;  %v17021_v15 = vadd.f32 %v16881_v2, %v16762_v35 }
 0xb6b   :  { %v17025_v46 = vadd.f32 %v16881_v2, %v16766_v50  ;;  %v17029_v13 = vadd.f32 %v16881_v2, %v16770_v31  ;;  %v17033_v30 = vadd.f32 %v16881_v2, %v16774_v54  ;;  %v17037_v29 = vadd.f32 %v16881_v2, %v16778_v12  ;;  %v17951_v12 = vld [vmem:[#allocation51_spill] sm:$0xff] }
 0xb6c   :  { %v17041_v51 = vadd.f32 %v16881_v2, %v16782_v39  ;;  %v17045_v35 = vadd.f32 %v16881_v2, %v16786_v47  ;;  %v17049_v50 = vadd.f32 %v16881_v2, %v16790_v41  ;;  %v17053_v31 = vadd.f32 %v16881_v2, %v16794_v48 }
 0xb6d   :  { %v17057_v54 = vadd.f32 %v16881_v2, %v16798_v33  ;;  %v17061_v39 = vadd.f32 %v16881_v2, %v17951_v12  ;;  %v17065_v47 = vadd.f32 %v16881_v2, %v16806_v10  ;;  %v17069_v41 = vadd.f32 %v16881_v2, %v17952_v42  ;;  %v17958_v42 = vld [vmem:[#allocation7_spill] sm:$0xff] }
 0xb6e   :  { %v17073_v48 = vadd.f32 %v16881_v2, %v16814_v23  ;;  %v17077_v33 = vadd.f32 %v16881_v2, %v16818_v37  ;;  %v17081_v28 = vadd.f32 %v16881_v2, %v16822_v0  ;;  %v17085_v10 = vadd.f32 %v16881_v2, %v16826_v45 }
 0xb6f   :  { %v17089_v12 = vadd.f32 %v16881_v2, %v16830_v61  ;;  %v17093_v23 = vadd.f32 %v16881_v2, %v16834_v26  ;;  %v17097_v37 = vadd.f32 %v16881_v2, %v16838_v63  ;;  %v17101_v0 = vadd.f32 %v16881_v2, %v16842_v22 }
 0xb70   :  { %17953 = vst [vmem:[#allocation55_spill] sm:$0xff] %v17085_v10  ;;  %v17105_v45 = vadd.f32 %v16881_v2, %v17958_v42  ;;  %v17960_v10 = vld [vmem:[#allocation53_spill] sm:$0xff] }
 0xb71   :  { %17954 = vst [vmem:[#allocation17_spill] sm:$0xff] %v17089_v12  ;;  %17955 = vst [vmem:[#allocation11_spill] sm:$0xff] %v17093_v23  ;;  %v17109_v61 = vadd.f32 %v16881_v2, %v17960_v10  ;;  %v17961_v12 = vld [vmem:[#allocation22_spill] sm:$0xff]  ;;  %v17962_v23 = vld [vmem:[#allocation9_spill] sm:$0xff] }
 0xb72   :  { %17956 = vst [vmem:[#allocation56_spill] sm:$0xff] %v17097_v37  ;;  %17957 = vst [vmem:[#allocation16_spill] sm:$0xff] %v17101_v0  ;;  %v17113_v26 = vadd.f32 %v16881_v2, %v17961_v12  ;;  %v17117_v63 = vadd.f32 %v16881_v2, %v17962_v23  ;;  %v17963_v37 = vld [vmem:[#allocation54_spill] sm:$0xff]  ;;  %v17964_v0 = vld [vmem:[#allocation15_spill] sm:$0xff]  ;;  %v17133_v12 = vadd.f32 %v16881_v2, %v16874_v44 }
 0xb73   :  { %17959 = vst [vmem:[#allocation10_spill] sm:$0xff] %v17105_v45  ;;  %v17121_v22 = vadd.f32 %v16881_v2, %v17963_v37  ;;  %v17125_v42 = vadd.f32 %v16881_v2, %v17964_v0  ;;  %v17965_v45 = vld [vmem:[#allocation8_spill] sm:$0xff]  ;;  %v17137_v23 = vadd.f32 %v16881_v2, %v16878_v49  ;;  %v17141_v37 = vadd.f32 %v16881_v2, %v16885_v16 }
 0xb74   :  { %v17129_v10 = vadd.f32 %v16881_v2, %v17965_v45  ;;  %17966 = vst [vmem:[#allocation58_spill] sm:$0xff] %v17133_v12  ;;  %v17145_v0 = vadd.f32 %v16881_v2, %v16889_v21  ;;  %v17149_v45 = vadd.f32 %v16881_v2, %v16893_v59  ;;  %v17153_v44 = vadd.f32 %v16881_v2, %v16897_v32 }
 0xb75   :  { %17967 = vst [vmem:[#allocation13_spill] sm:$0xff] %v17137_v23  ;;  %17968 = vst [vmem:[#allocation12_spill] sm:$0xff] %v17141_v37  ;;  %v8654_v12 = vmax.f32 %v16901_v57, 0.0  ;;  %v8655_v49 = vmax.f32 %v16905_v11, 0.0  ;;  %v8656_v23 = vmax.f32 %v16909_v4, 0.0  ;;  %v8657_v16 = vmax.f32 %v16913_v20, 0.0 }
 0xb76   :  { %17969 = vst [vmem:[#allocation59_spill] sm:$0xff] %v17145_v0  ;;  %17970 = vst [vmem:[#allocation14_spill] sm:$0xff] %v17149_v45  ;;  %v8658_v37 = vmax.f32 %v16917_v7, 0.0  ;;  %v8659_v21 = vmax.f32 %v16921_v58, 0.0  ;;  %v8660_v0 = vmax.f32 %v16925_v3, 0.0  ;;  %v8661_v59 = vmax.f32 %v16929_v36, 0.0 }
 0xb77   :  { %v8662_v45 = vmax.f32 %v16933_v38, 0.0  ;;  %v8663_v2 = vmax.f32 %v16937_v27, 0.0  ;;  %v8664_v32 = vmax.f32 %v16941_v34, 0.0  ;;  %v8665_v57 = vmax.f32 %v16945_v9, 0.0  ;;  %8718 = vst [vmem:[%s17422_s11] sm:$0xff] %v8654_v12  ;;  %8719 = vst [vmem:[%s17422_s11 + $0x8] sm:$0xff] %v8655_v49 }
 0xb78   :  { %8720 = vst [vmem:[%s17422_s11 + $0x10] sm:$0xff] %v8656_v23  ;;  %8721 = vst [vmem:[%s17422_s11 + $0x18] sm:$0xff] %v8657_v16  ;;  %v8666_v11 = vmax.f32 %v16949_v5, 0.0  ;;  %v8667_v4 = vmax.f32 %v16953_v8, 0.0  ;;  %v8668_v20 = vmax.f32 %v16957_v19, 0.0  ;;  %v8669_v7 = vmax.f32 %v16961_v17, 0.0 }
 0xb79   :  { %8722 = vst [vmem:[%s17422_s11 + $0x20] sm:$0xff] %v8658_v37  ;;  %8723 = vst [vmem:[%s17422_s11 + $0x28] sm:$0xff] %v8659_v21  ;;  %v8670_v58 = vmax.f32 %v16965_v55, 0.0  ;;  %v8671_v3 = vmax.f32 %v16969_v25, 0.0  ;;  %v8672_v36 = vmax.f32 %v16973_v43, 0.0  ;;  %v8673_v38 = vmax.f32 %v16977_v40, 0.0 }
 0xb7a   :  { %8724 = vst [vmem:[%s17422_s11 + $0x30] sm:$0xff] %v8660_v0  ;;  %8725 = vst [vmem:[%s17422_s11 + $0x38] sm:$0xff] %v8661_v59  ;;  %v8674_v27 = vmax.f32 %v16981_v24, 0.0  ;;  %v8675_v34 = vmax.f32 %v16985_v53, 0.0  ;;  %v8676_v9 = vmax.f32 %v16989_v60, 0.0  ;;  %v8677_v5 = vmax.f32 %v16993_v62, 0.0 }
 0xb7b   :  { %8726 = vst [vmem:[%s17422_s11 + $0x40] sm:$0xff] %v8662_v45  ;;  %8727 = vst [vmem:[%s17422_s11 + $0x48] sm:$0xff] %v8663_v2  ;;  %v8678_v8 = vmax.f32 %v16997_v1, 0.0  ;;  %v8679_v19 = vmax.f32 %v17001_v18, 0.0  ;;  %v8680_v17 = vmax.f32 %v17005_v56, 0.0  ;;  %v8681_v55 = vmax.f32 %v17009_v52, 0.0 }
 0xb7c   :  { %8728 = vst [vmem:[%s17422_s11 + $0x50] sm:$0xff] %v8664_v32  ;;  %8729 = vst [vmem:[%s17422_s11 + $0x58] sm:$0xff] %v8665_v57  ;;  %v8682_v25 = vmax.f32 %v17013_v14, 0.0  ;;  %v8683_v43 = vmax.f32 %v17017_v6, 0.0  ;;  %v8684_v40 = vmax.f32 %v17021_v15, 0.0  ;;  %v8685_v24 = vmax.f32 %v17025_v46, 0.0 }
 0xb7d   :  { %8730 = vst [vmem:[%s17422_s11 + $0x60] sm:$0xff] %v8666_v11  ;;  %8731 = vst [vmem:[%s17422_s11 + $0x68] sm:$0xff] %v8667_v4  ;;  %v8686_v53 = vmax.f32 %v17029_v13, 0.0  ;;  %v8687_v60 = vmax.f32 %v17033_v30, 0.0  ;;  %v8688_v62 = vmax.f32 %v17037_v29, 0.0  ;;  %v8689_v1 = vmax.f32 %v17041_v51, 0.0 }
 0xb7e   :  { %8732 = vst [vmem:[%s17422_s11 + $0x70] sm:$0xff] %v8668_v20  ;;  %8733 = vst [vmem:[%s17422_s11 + $0x78] sm:$0xff] %v8669_v7  ;;  %v8690_v18 = vmax.f32 %v17045_v35, 0.0  ;;  %v8691_v56 = vmax.f32 %v17049_v50, 0.0  ;;  %v8692_v52 = vmax.f32 %v17053_v31, 0.0  ;;  %v8693_v14 = vmax.f32 %v17057_v54, 0.0 }
 0xb7f   :  { %8734 = vst [vmem:[%s17422_s11 + $0x80] sm:$0xff] %v8670_v58  ;;  %8735 = vst [vmem:[%s17422_s11 + $0x88] sm:$0xff] %v8671_v3  ;;  %v8694_v6 = vmax.f32 %v17061_v39, 0.0  ;;  %v8695_v15 = vmax.f32 %v17065_v47, 0.0  ;;  %v8696_v46 = vmax.f32 %v17069_v41, 0.0  ;;  %v8697_v13 = vmax.f32 %v17073_v48, 0.0 }
 0xb80   :  { %8736 = vst [vmem:[%s17422_s11 + $0x90] sm:$0xff] %v8672_v36  ;;  %8737 = vst [vmem:[%s17422_s11 + $0x98] sm:$0xff] %v8673_v38  ;;  %v8698_v30 = vmax.f32 %v17077_v33, 0.0  ;;  %v8699_v29 = vmax.f32 %v17081_v28, 0.0  ;;  %v17971_v51 = vld [vmem:[#allocation55_spill] sm:$0xff]  ;;  %v17972_v50 = vld [vmem:[#allocation17_spill] sm:$0xff] }
 0xb81   :  { %8738 = vst [vmem:[%s17422_s11 + $0xa0] sm:$0xff] %v8674_v27  ;;  %8739 = vst [vmem:[%s17422_s11 + $0xa8] sm:$0xff] %v8675_v34  ;;  %v8700_v35 = vmax.f32 %v17971_v51, 0.0  ;;  %v8701_v31 = vmax.f32 %v17972_v50, 0.0  ;;  %v17973_v54 = vld [vmem:[#allocation11_spill] sm:$0xff]  ;;  %v17974_v47 = vld [vmem:[#allocation56_spill] sm:$0xff] }
 0xb82   :  { %8740 = vst [vmem:[%s17422_s11 + $0xb0] sm:$0xff] %v8676_v9  ;;  %8741 = vst [vmem:[%s17422_s11 + $0xb8] sm:$0xff] %v8677_v5  ;;  %v8702_v39 = vmax.f32 %v17973_v54, 0.0  ;;  %v8703_v41 = vmax.f32 %v17974_v47, 0.0  ;;  %v17975_v48 = vld [vmem:[#allocation16_spill] sm:$0xff]  ;;  %v17976_v28 = vld [vmem:[#allocation10_spill] sm:$0xff] }
 0xb83   :  { %8742 = vst [vmem:[%s17422_s11 + $0xc0] sm:$0xff] %v8678_v8  ;;  %8743 = vst [vmem:[%s17422_s11 + $0xc8] sm:$0xff] %v8679_v19  ;;  %v8704_v33 = vmax.f32 %v17975_v48, 0.0  ;;  %v8705_v12 = vmax.f32 %v17976_v28, 0.0  ;;  %v8706_v23 = vmax.f32 %v17109_v61, 0.0  ;;  %v8707_v37 = vmax.f32 %v17113_v26, 0.0 }
 0xb84   :  { %8744 = vst [vmem:[%s17422_s11 + $0xd0] sm:$0xff] %v8680_v17  ;;  %8745 = vst [vmem:[%s17422_s11 + $0xd8] sm:$0xff] %v8681_v55  ;;  %v8708_v0 = vmax.f32 %v17117_v63, 0.0  ;;  %v8709_v45 = vmax.f32 %v17121_v22, 0.0  ;;  %v8710_v61 = vmax.f32 %v17125_v42, 0.0  ;;  %v8711_v26 = vmax.f32 %v17129_v10, 0.0 }
 0xb85   :  { %8746 = vst [vmem:[%s17422_s11 + $0xe0] sm:$0xff] %v8682_v25  ;;  %8747 = vst [vmem:[%s17422_s11 + $0xe8] sm:$0xff] %v8683_v43  ;;  %v17977_v63 = vld [vmem:[#allocation58_spill] sm:$0xff]  ;;  %v17978_v49 = vld [vmem:[#allocation13_spill] sm:$0xff]  ;;  %v8717_v57 = vmax.f32 %v17153_v44, 0.0 }
 0xb86   :  { %8748 = vst [vmem:[%s17422_s11 + $0xf0] sm:$0xff] %v8684_v40  ;;  %8749 = vst [vmem:[%s17422_s11 + $0xf8] sm:$0xff] %v8685_v24  ;;  %v8712_v22 = vmax.f32 %v17977_v63, 0.0  ;;  %v8713_v16 = vmax.f32 %v17978_v49, 0.0  ;;  %v17979_v42 = vld [vmem:[#allocation12_spill] sm:$0xff]  ;;  %v17980_v21 = vld [vmem:[#allocation59_spill] sm:$0xff] }
 0xb87   :  { %8750 = vst [vmem:[%s17422_s11 + $0x100] sm:$0xff] %v8686_v53  ;;  %8751 = vst [vmem:[%s17422_s11 + $0x108] sm:$0xff] %v8687_v60  ;;  %v8714_v10 = vmax.f32 %v17979_v42, 0.0  ;;  %v8715_v59 = vmax.f32 %v17980_v21, 0.0  ;;  %v17981_v2 = vld [vmem:[#allocation14_spill] sm:$0xff] }
 0xb88   :  { %8752 = vst [vmem:[%s17422_s11 + $0x110] sm:$0xff] %v8688_v62  ;;  %8753 = vst [vmem:[%s17422_s11 + $0x118] sm:$0xff] %v8689_v1  ;;  %v8716_v32 = vmax.f32 %v17981_v2, 0.0 }
 0xb89   :  { %8754 = vst [vmem:[%s17422_s11 + $0x120] sm:$0xff] %v8690_v18  ;;  %8755 = vst [vmem:[%s17422_s11 + $0x128] sm:$0xff] %v8691_v56 }
 0xb8a   :  { %8756 = vst [vmem:[%s17422_s11 + $0x130] sm:$0xff] %v8692_v52  ;;  %8757 = vst [vmem:[%s17422_s11 + $0x138] sm:$0xff] %v8693_v14 }
 0xb8b   :  { %8758 = vst [vmem:[%s17422_s11 + $0x140] sm:$0xff] %v8694_v6  ;;  %8759 = vst [vmem:[%s17422_s11 + $0x148] sm:$0xff] %v8695_v15 }
 0xb8c   :  { %8760 = vst [vmem:[%s17422_s11 + $0x150] sm:$0xff] %v8696_v46  ;;  %8761 = vst [vmem:[%s17422_s11 + $0x158] sm:$0xff] %v8697_v13 }
 0xb8d   :  { %8762 = vst [vmem:[%s17422_s11 + $0x160] sm:$0xff] %v8698_v30  ;;  %8763 = vst [vmem:[%s17422_s11 + $0x168] sm:$0xff] %v8699_v29 }
 0xb8e   :  { %8764 = vst [vmem:[%s17422_s11 + $0x170] sm:$0xff] %v8700_v35  ;;  %8765 = vst [vmem:[%s17422_s11 + $0x178] sm:$0xff] %v8701_v31 }
 0xb8f   :  { %8766 = vst [vmem:[%s17422_s11 + $0x180] sm:$0xff] %v8702_v39  ;;  %8767 = vst [vmem:[%s17422_s11 + $0x188] sm:$0xff] %v8703_v41 }
 0xb90   :  { %8768 = vst [vmem:[%s17422_s11 + $0x190] sm:$0xff] %v8704_v33  ;;  %8769 = vst [vmem:[%s17422_s11 + $0x198] sm:$0xff] %v8705_v12 }
 0xb91   :  { %8770 = vst [vmem:[%s17422_s11 + $0x1a0] sm:$0xff] %v8706_v23  ;;  %8771 = vst [vmem:[%s17422_s11 + $0x1a8] sm:$0xff] %v8707_v37 }
 0xb92   :  { %8772 = vst [vmem:[%s17422_s11 + $0x1b0] sm:$0xff] %v8708_v0  ;;  %8773 = vst [vmem:[%s17422_s11 + $0x1b8] sm:$0xff] %v8709_v45 }
 0xb93   :  { %8774 = vst [vmem:[%s17422_s11 + $0x1c0] sm:$0xff] %v8710_v61  ;;  %8775 = vst [vmem:[%s17422_s11 + $0x1c8] sm:$0xff] %v8711_v26 }
 0xb94   :  { %8776 = vst [vmem:[%s17422_s11 + $0x1d0] sm:$0xff] %v8712_v22  ;;  %8777 = vst [vmem:[%s17422_s11 + $0x1d8] sm:$0xff] %v8713_v16 }
 0xb95   :  { %8778 = vst [vmem:[%s17422_s11 + $0x1e0] sm:$0xff] %v8714_v10  ;;  %8779 = vst [vmem:[%s17422_s11 + $0x1e8] sm:$0xff] %v8715_v59 }
 0xb96   :  { %8780 = vst [vmem:[%s17422_s11 + $0x1f0] sm:$0xff] %v8716_v32  ;;  %8781 = vst [vmem:[%s17422_s11 + $0x1f8] sm:$0xff] %v8717_v57 }

</bundles_post_ra>
